<compile_context>
chip_gen: v7x
topology: tpu7x:2x2x1
jax: 0.10.0
libtpu: 0.0.40
codegen_flags: <defaults>
</compile_context>

<pallas_src>
import functools

import jax
import jax.numpy as jnp
from jax import lax
from jax.experimental import pallas as pl
from jax.experimental.pallas import tpu as pltpu


# ----------------------------- Pallas kernel ------------------------------- #

def _tcn_kernel(x_ref, w1_ref, b1_ref, w2_ref, b2_ref, wd_ref, bd_ref, o_ref,
                a_buf, h_buf, *, K, C, KC, KC_pad, L_pad, P_buf, slot, B_tile,
                dilations, use_ds, mxu_dtype):
    """Fused 6-level TCN for B_tile batch elements.

    x_ref : (B_tile, C, L_pad)       input (channels/length zero-padded), NCL
    w1_ref: (levels, C, KC_pad)      conv1 weights (im2col layout, mxu_dtype)
    b1_ref: (levels, C, 1)           f32
    w2_ref: (levels, C, KC_pad)      conv2 weights
    b2_ref: (levels, C, 1)
    wd_ref: (C, C)                   1x1 downsample (block 0 only), mxu_dtype
    bd_ref: (C, 1)
    o_ref : (B_tile, C, L_pad)       output, NCL
    a_buf, h_buf: VMEM (C, B_tile*slot) f32 ping-pong buffers; per sample the
        first P_buf columns stay zero (causal left pad), the next L_pad are
        the lane-aligned valid region.  slot = P_buf + L_pad.
    """
    width = B_tile * L_pad
    pad_zeros = jnp.zeros((C, P_buf), jnp.float32)

    # Zero only the causal-pad columns; valid columns are fully overwritten.
    for s in range(B_tile):
        a_buf[:, s * slot: s * slot + P_buf] = pad_zeros
        h_buf[:, s * slot: s * slot + P_buf] = pad_zeros
        a_buf[:, s * slot + P_buf: (s + 1) * slot] = x_ref[s].astype(jnp.float32)

    # Extra zero rows so the contraction dim is MXU-depth aligned (224 -> 256).
    zero_rows = (jnp.zeros((KC_pad - KC, width), mxu_dtype)
                 if KC_pad > KC else None)

    def valid(buf):
        """Concatenate per-sample valid regions -> (C, B_tile*L_pad)."""
        return jnp.concatenate(
            [buf[:, s * slot + P_buf: (s + 1) * slot] for s in range(B_tile)],
            axis=1)

    def write_valid(buf, val):
        for s in range(B_tile):
            buf[:, s * slot + P_buf: (s + 1) * slot] = (
                val[:, s * L_pad: (s + 1) * L_pad])

    def dilated_conv(buf, w, b, dil):
        """Causal dilated conv as one im2col MXU matmul."""
        P = (K - 1) * dil
        taps = []
        for k in range(K):                       # row order (k major, cin minor)
            start = P_buf - P + k * dil          # static offset, >= 64
            taps.append(jnp.concatenate(
                [buf[:, s * slot + start: s * slot + start + L_pad]
                 for s in range(B_tile)], axis=1))
        xcol = jnp.concatenate(taps, axis=0).astype(mxu_dtype)   # (KC, width)
        if zero_rows is not None:
            xcol = jnp.concatenate([xcol, zero_rows], axis=0)    # (KC_pad, width)
        return jnp.dot(w, xcol, preferred_element_type=jnp.float32) + b

    for i, dil in enumerate(dilations):                          # static unroll
        # conv1 -> relu  (dropout = identity)
        h = jnp.maximum(dilated_conv(a_buf, w1_ref[i], b1_ref[i], dil), 0.0)
        write_valid(h_buf, h)
        # conv2 -> relu
        out = jnp.maximum(dilated_conv(h_buf, w2_ref[i], b2_ref[i], dil), 0.0)
        # residual path
        res = valid(a_buf)
        if i == 0 and use_ds:
            res = jnp.dot(wd_ref[...], res.astype(mxu_dtype),
                          preferred_element_type=jnp.float32) + bd_ref[...]
        # final block relu; result becomes next block's input
        write_valid(a_buf, jnp.maximum(out + res, 0.0))

    for s in range(B_tile):
        o_ref[s] = a_buf[:, s * slot + P_buf: (s + 1) * slot].astype(o_ref.dtype)


# ------------------------------ Model glue --------------------------------- #

def weight_norm_effective(v, g):
    """weight_norm (dim=0): w[o] = g[o] * v[o] / ||v[o]||  (PyTorch OIK)."""
    norm = jnp.sqrt(jnp.sum(v * v, axis=(1, 2), keepdims=True))
    return v * (g.reshape(-1, 1, 1) / norm)


def init_tcn_params(key, num_inputs, num_channels, kernel_size, num_levels=6):
    params = []
    for i in range(num_levels):
        cin = num_inputs if i == 0 else num_channels
        cout = num_channels
        key, k1, k2, k3, k4, k5, k6 = jax.random.split(key, 7)
        v1 = jax.random.normal(k1, (cout, cin, kernel_size), jnp.float32) * 0.01
        v2 = jax.random.normal(k2, (cout, cout, kernel_size), jnp.float32) * 0.01
        g1 = jnp.sqrt(jnp.sum(v1 * v1, axis=(1, 2)))      # w == v at init
        g2 = jnp.sqrt(jnp.sum(v2 * v2, axis=(1, 2)))
        b1 = jax.random.normal(k3, (cout,), jnp.float32) * 0.01
        b2 = jax.random.normal(k4, (cout,), jnp.float32) * 0.01
        blk = {
            "w1_oik": weight_norm_effective(v1, g1), "b1": b1,
            "w2_oik": weight_norm_effective(v2, g2), "b2": b2,
            "wd_oik": None, "bd": None,
        }
        if cin != cout:                                   # 1x1 downsample conv
            blk["wd_oik"] = jax.random.normal(
                k5, (cout, cin, 1), jnp.float32) * 0.01
            blk["bd"] = jax.random.normal(k6, (cout,), jnp.float32) * 0.01
        params.append(blk)
    return params


def tcn_forward_pallas(x_ncl, params, kernel_size, *,
                       mxu_dtype=jnp.bfloat16, b_tile=None):
    """TemporalConvNet forward. Input/output in PyTorch NCL layout."""
    N, cin, L = x_ncl.shape
    C = params[0]["w1_oik"].shape[0]
    K = kernel_size
    nlev = len(params)
    dilations = tuple(2 ** i for i in range(nlev))
    P_max = (K - 1) * dilations[-1]

    # Lane-aligned sizes.
    P_buf = ((P_max + 127) // 128) * 128          # causal-pad slot, 128-aligned
    L_pad = ((L + 127) // 128) * 128              # lane-dense sequence length
    KC = K * C
    KC_pad = ((KC + 127) // 128) * 128            # MXU-depth aligned contraction
    slot = P_buf + L_pad                          # per-sample scratch width

    # Pack a few batch elements into the matmul lane dimension.
    if b_tile is None:
        b_tile = max(1, min(N, max(1, 512 // L_pad)))
    N_pad = ((N + b_tile - 1) // b_tile) * b_tile

    # --- pack weights once: (Cout, KC_pad) rows for the im2col matmul ------- #
    def pack_conv(w_oik):
        cout, ci, k = w_oik.shape
        if ci < C:                                    # zero-pad in-channels
            w_oik = jnp.pad(w_oik, ((0, 0), (0, C - ci), (0, 0)))
        w = jnp.transpose(w_oik, (0, 2, 1)).reshape(cout, k * C)   # (k,cin) cols
        if KC_pad > KC:
            w = jnp.pad(w, ((0, 0), (0, KC_pad - KC)))
        return w.astype(mxu_dtype)

    W1 = jnp.stack([pack_conv(p["w1_oik"]) for p in params])       # (lvl,C,KCp)
    W2 = jnp.stack([pack_conv(p["w2_oik"]) for p in params])
    B1 = jnp.stack([p["b1"].reshape(C, 1) for p in params])        # (lvl,C,1) f32
    B2 = jnp.stack([p["b2"].reshape(C, 1) for p in params])

    use_ds = params[0]["wd_oik"] is not None
    if use_ds:
        wd = params[0]["wd_oik"][:, :, 0]                          # (C, cin)
        Wd = jnp.pad(wd, ((0, 0), (0, C - wd.shape[1]))).astype(mxu_dtype)
        Bd = params[0]["bd"].reshape(C, 1)
    else:
        Wd = jnp.zeros((C, C), mxu_dtype)
        Bd = jnp.zeros((C, 1), jnp.float32)

    # Single zero-pad of the network input: channels -> C, length -> L_pad,
    # batch -> N_pad.  Causality + chomp guarantee the first L outputs are
    # unaffected by the right pad.
    padded = (cin < C) or (L < L_pad) or (N < N_pad)
    xp = (jnp.pad(x_ncl, ((0, N_pad - N), (0, C - cin), (0, L_pad - L)))
          if padded else x_ncl)

    kernel = functools.partial(
        _tcn_kernel, K=K, C=C, KC=KC, KC_pad=KC_pad, L_pad=L_pad, P_buf=P_buf,
        slot=slot, B_tile=b_tile, dilations=dilations, use_ds=use_ds,
        mxu_dtype=mxu_dtype)

    out = pl.pallas_call(
        kernel,
        out_shape=jax.ShapeDtypeStruct((N_pad, C, L_pad), x_ncl.dtype),
        grid_spec=pltpu.PrefetchScalarGridSpec(
            num_scalar_prefetch=0,
            grid=(N_pad // b_tile,),
            in_specs=[
                pl.BlockSpec((b_tile, C, L_pad), lambda n: (n, 0, 0)),    # x
                pl.BlockSpec((nlev, C, KC_pad), lambda n: (0, 0, 0)),     # W1
                pl.BlockSpec((nlev, C, 1), lambda n: (0, 0, 0)),          # B1
                pl.BlockSpec((nlev, C, KC_pad), lambda n: (0, 0, 0)),     # W2
                pl.BlockSpec((nlev, C, 1), lambda n: (0, 0, 0)),          # B2
                pl.BlockSpec((C, C), lambda n: (0, 0)),                   # Wd
                pl.BlockSpec((C, 1), lambda n: (0, 0)),                   # Bd
            ],
            out_specs=pl.BlockSpec((b_tile, C, L_pad), lambda n: (n, 0, 0)),
            scratch_shapes=[
                pltpu.VMEM((C, b_tile * slot), jnp.float32),   # activation A
                pltpu.VMEM((C, b_tile * slot), jnp.float32),   # activation H
            ],
        ),
        compiler_params=pltpu.CompilerParams(
            dimension_semantics=("parallel",)),
        # Reuse the (freshly created) padded input buffer for the output —
        # safe here: each grid step reads/writes only its own batch block.
        input_output_aliases=({0: 0} if padded else {}),
    )(xp, W1, B1, W2, B2, Wd, Bd)

    return out[:N, :, :L]


# --------------------------- Pure-JAX reference ----------------------------- #

def _ref_conv1d(x_ncl, w_oik, b, dilation, pad):
    y = lax.conv_general_dilated(
        x_ncl, w_oik, window_strides=(1,), padding=[(pad, pad)],
        rhs_dilation=(dilation,),
        dimension_numbers=("NCH", "OIH", "NCH"))
    y = y + b.reshape(1, -1, 1)
    return y[:, :, :x_ncl.shape[2]] if pad > 0 else y    # chomp


def tcn_forward_ref(x_ncl, params, kernel_size):
    x = x_ncl
    for i, p in enumerate(params):
        d = 2 ** i
        pad = (kernel_size - 1) * d
        h = jnp.maximum(_ref_conv1d(x, p["w1_oik"], p["b1"], d, pad), 0.0)
        h = jnp.maximum(_ref_conv1d(h, p["w2_oik"], p["b2"], d, pad), 0.0)
        res = x if p["wd_oik"] is None else _ref_conv1d(x, p["wd_oik"],
                                                        p["bd"], 1, 0)
        x = jnp.maximum(h + res, 0.0)
    return x


# --------------------------------- Main ------------------------------------ #

if __name__ == "__main__":
    N, num_inputs, L = 2, 4, 16
    num_channels, kernel_size = 32, 7

    key = jax.random.PRNGKey(0)
    key, kx = jax.random.split(key)
    x = jax.random.normal(kx, (N, num_inputs, L), jnp.float32)   # NCL (PyTorch)

    params = init_tcn_params(key, num_inputs, num_channels, kernel_size)

    out = jax.block_until_ready(tcn_forward_pallas(x, params, kernel_size))
    ref = jax.block_until_ready(tcn_forward_ref(x, params, kernel_size))

    assert out.shape == (N, num_channels, L), out.shape
    # bf16 MXU operands + f32 accumulation: error << 1e-2 at these scales.
    assert jnp.allclose(out, ref, atol=1e-2, rtol=1e-2), (
        float(jnp.max(jnp.abs(out - ref))))

    print("KERNEL_OK")
</pallas_src>

<mosaic_0001>
module attributes {stable_mosaic.version = 11 : i64} {
  func.func @_tcn_kernel(%arg0: i32, %arg1: memref<2x32x128xf32, #tpu.memory_space<vmem>>, %arg2: memref<6x32x256xbf16, #tpu.memory_space<vmem>>, %arg3: memref<6x32x1xf32, #tpu.memory_space<vmem>>, %arg4: memref<6x32x256xbf16, #tpu.memory_space<vmem>>, %arg5: memref<6x32x1xf32, #tpu.memory_space<vmem>>, %arg6: memref<32x32xbf16, #tpu.memory_space<vmem>>, %arg7: memref<32x1xf32, #tpu.memory_space<vmem>>, %arg8: memref<2x32x128xf32, #tpu.memory_space<vmem>>, %arg9: memref<32x768xf32, #tpu.memory_space<vmem>>, %arg10: memref<32x768xf32, #tpu.memory_space<vmem>>) attributes {dimension_semantics = [#tpu.dimension_semantics<parallel>], iteration_bounds = array<i64: 1>, scalar_prefetch = 0 : i64, scratch_operands = 2 : i64, tpu.core_type = #tpu.core_type<tc>, window_params = [{transform_indices = @transform_0, window_bounds = array<i64: 2, 32, 128>}, {pipeline_mode = #tpu.pipeline_mode<synchronous>, transform_indices = @transform_1, window_bounds = array<i64: 6, 32, 256>}, {pipeline_mode = #tpu.pipeline_mode<synchronous>, transform_indices = @transform_2, window_bounds = array<i64: 6, 32, 1>}, {pipeline_mode = #tpu.pipeline_mode<synchronous>, transform_indices = @transform_3, window_bounds = array<i64: 6, 32, 256>}, {pipeline_mode = #tpu.pipeline_mode<synchronous>, transform_indices = @transform_4, window_bounds = array<i64: 6, 32, 1>}, {pipeline_mode = #tpu.pipeline_mode<synchronous>, transform_indices = @transform_5, window_bounds = array<i64: 32, 32>}, {pipeline_mode = #tpu.pipeline_mode<synchronous>, transform_indices = @transform_6, window_bounds = array<i64: 32, 1>}, {transform_indices = @transform_7, window_bounds = array<i64: 2, 32, 128>}]} {
    %cst = arith.constant 0.000000e+00 : f32
    %0 = vector.broadcast %cst : f32 to vector<32x256xf32>
    %c0 = arith.constant 0 : index
    %c0_0 = arith.constant 0 : index
    %1 = vector.load %arg9[%c0, %c0_0] : memref<32x768xf32, #tpu.memory_space<vmem>>, vector<32x256xf32>
    tpu.vector_store %arg9[%c0, %c0_0], %0 {strides = array<i32>} : memref<32x768xf32, #tpu.memory_space<vmem>>, vector<32x256xf32>,
    %c0_1 = arith.constant 0 : index
    %c0_2 = arith.constant 0 : index
    %2 = vector.load %arg10[%c0_1, %c0_2] : memref<32x768xf32, #tpu.memory_space<vmem>>, vector<32x256xf32>
    tpu.vector_store %arg10[%c0_1, %c0_2], %0 {strides = array<i32>} : memref<32x768xf32, #tpu.memory_space<vmem>>, vector<32x256xf32>,
    %c0_3 = arith.constant 0 : index
    %c0_4 = arith.constant 0 : index
    %c0_5 = arith.constant 0 : index
    %3 = vector.load %arg1[%c0_3, %c0_4, %c0_5] : memref<2x32x128xf32, #tpu.memory_space<vmem>>, vector<1x32x128xf32>
    %4 = vector.shape_cast %3 : vector<1x32x128xf32> to vector<32x128xf32>
    %c0_6 = arith.constant 0 : index
    %c256 = arith.constant 256 : index
    %5 = vector.load %arg9[%c0_6, %c256] : memref<32x768xf32, #tpu.memory_space<vmem>>, vector<32x128xf32>
    tpu.vector_store %arg9[%c0_6, %c256], %4 {strides = array<i32>} : memref<32x768xf32, #tpu.memory_space<vmem>>, vector<32x128xf32>,
    %c0_7 = arith.constant 0 : index
    %c384 = arith.constant 384 : index
    %6 = vector.load %arg9[%c0_7, %c384] : memref<32x768xf32, #tpu.memory_space<vmem>>, vector<32x256xf32>
    tpu.vector_store %arg9[%c0_7, %c384], %0 {strides = array<i32>} : memref<32x768xf32, #tpu.memory_space<vmem>>, vector<32x256xf32>,
    %c0_8 = arith.constant 0 : index
    %c384_9 = arith.constant 384 : index
    %7 = vector.load %arg10[%c0_8, %c384_9] : memref<32x768xf32, #tpu.memory_space<vmem>>, vector<32x256xf32>
    tpu.vector_store %arg10[%c0_8, %c384_9], %0 {strides = array<i32>} : memref<32x768xf32, #tpu.memory_space<vmem>>, vector<32x256xf32>,
    %c1 = arith.constant 1 : index
    %c0_10 = arith.constant 0 : index
    %c0_11 = arith.constant 0 : index
    %8 = vector.load %arg1[%c1, %c0_10, %c0_11] : memref<2x32x128xf32, #tpu.memory_space<vmem>>, vector<1x32x128xf32>
    %9 = vector.shape_cast %8 : vector<1x32x128xf32> to vector<32x128xf32>
    %c0_12 = arith.constant 0 : index
    %c640 = arith.constant 640 : index
    %10 = vector.load %arg9[%c0_12, %c640] : memref<32x768xf32, #tpu.memory_space<vmem>>, vector<32x128xf32>
    tpu.vector_store %arg9[%c0_12, %c640], %9 {strides = array<i32>} : memref<32x768xf32, #tpu.memory_space<vmem>>, vector<32x128xf32>,
    %cst_13 = arith.constant 0.000000e+00 : bf16
    %11 = vector.broadcast %cst_13 : bf16 to vector<32x256xbf16>
    %c0_14 = arith.constant 0 : index
    %c0_15 = arith.constant 0 : index
    %c0_16 = arith.constant 0 : index
    %12 = vector.load %arg2[%c0_14, %c0_15, %c0_16] : memref<6x32x256xbf16, #tpu.memory_space<vmem>>, vector<1x32x256xbf16>
    %13 = vector.shape_cast %12 : vector<1x32x256xbf16> to vector<32x256xbf16>
    %c0_17 = arith.constant 0 : index
    %c0_18 = arith.constant 0 : index
    %c0_19 = arith.constant 0 : index
    %14 = vector.load %arg3[%c0_17, %c0_18, %c0_19] : memref<6x32x1xf32, #tpu.memory_space<vmem>>, vector<1x32x1xf32>
    %15 = vector.shape_cast %14 : vector<1x32x1xf32> to vector<32x1xf32>
    %c0_20 = arith.constant 0 : index
    %c250 = arith.constant 250 : index
    %16 = vector.load %arg9[%c0_20, %c250] : memref<32x768xf32, #tpu.memory_space<vmem>>, vector<32x128xf32>
    %c0_21 = arith.constant 0 : index
    %c634 = arith.constant 634 : index
    %17 = vector.load %arg9[%c0_21, %c634] : memref<32x768xf32, #tpu.memory_space<vmem>>, vector<32x128xf32>
    %18 = tpu.concatenate %16, %17 in 1 : vector<32x128xf32>, vector<32x128xf32> -> vector<32x256xf32>
    %c0_22 = arith.constant 0 : index
    %c251 = arith.constant 251 : index
    %19 = vector.load %arg9[%c0_22, %c251] : memref<32x768xf32, #tpu.memory_space<vmem>>, vector<32x128xf32>
    %c0_23 = arith.constant 0 : index
    %c635 = arith.constant 635 : index
    %20 = vector.load %arg9[%c0_23, %c635] : memref<32x768xf32, #tpu.memory_space<vmem>>, vector<32x128xf32>
    %21 = tpu.concatenate %19, %20 in 1 : vector<32x128xf32>, vector<32x128xf32> -> vector<32x256xf32>
    %c0_24 = arith.constant 0 : index
    %c252 = arith.constant 252 : index
    %22 = vector.load %arg9[%c0_24, %c252] : memref<32x768xf32, #tpu.memory_space<vmem>>, vector<32x128xf32>
    %c0_25 = arith.constant 0 : index
    %c636 = arith.constant 636 : index
    %23 = vector.load %arg9[%c0_25, %c636] : memref<32x768xf32, #tpu.memory_space<vmem>>, vector<32x128xf32>
    %24 = tpu.concatenate %22, %23 in 1 : vector<32x128xf32>, vector<32x128xf32> -> vector<32x256xf32>
    %c0_26 = arith.constant 0 : index
    %c253 = arith.constant 253 : index
    %25 = vector.load %arg9[%c0_26, %c253] : memref<32x768xf32, #tpu.memory_space<vmem>>, vector<32x128xf32>
    %c0_27 = arith.constant 0 : index
    %c637 = arith.constant 637 : index
    %26 = vector.load %arg9[%c0_27, %c637] : memref<32x768xf32, #tpu.memory_space<vmem>>, vector<32x128xf32>
    %27 = tpu.concatenate %25, %26 in 1 : vector<32x128xf32>, vector<32x128xf32> -> vector<32x256xf32>
    %c0_28 = arith.constant 0 : index
    %c254 = arith.constant 254 : index
    %28 = vector.load %arg9[%c0_28, %c254] : memref<32x768xf32, #tpu.memory_space<vmem>>, vector<32x128xf32>
    %c0_29 = arith.constant 0 : index
    %c638 = arith.constant 638 : index
    %29 = vector.load %arg9[%c0_29, %c638] : memref<32x768xf32, #tpu.memory_space<vmem>>, vector<32x128xf32>
    %30 = tpu.concatenate %28, %29 in 1 : vector<32x128xf32>, vector<32x128xf32> -> vector<32x256xf32>
    %c0_30 = arith.constant 0 : index
    %c255 = arith.constant 255 : index
    %31 = vector.load %arg9[%c0_30, %c255] : memref<32x768xf32, #tpu.memory_space<vmem>>, vector<32x128xf32>
    %c0_31 = arith.constant 0 : index
    %c639 = arith.constant 639 : index
    %32 = vector.load %arg9[%c0_31, %c639] : memref<32x768xf32, #tpu.memory_space<vmem>>, vector<32x128xf32>
    %33 = tpu.concatenate %31, %32 in 1 : vector<32x128xf32>, vector<32x128xf32> -> vector<32x256xf32>
    %c0_32 = arith.constant 0 : index
    %c256_33 = arith.constant 256 : index
    %34 = vector.load %arg9[%c0_32, %c256_33] : memref<32x768xf32, #tpu.memory_space<vmem>>, vector<32x128xf32>
    %c0_34 = arith.constant 0 : index
    %c640_35 = arith.constant 640 : index
    %35 = vector.load %arg9[%c0_34, %c640_35] : memref<32x768xf32, #tpu.memory_space<vmem>>, vector<32x128xf32>
    %36 = tpu.concatenate %34, %35 in 1 : vector<32x128xf32>, vector<32x128xf32> -> vector<32x256xf32>
    %37 = tpu.concatenate %18, %21, %24, %27, %30, %33, %36 in 0 : vector<32x256xf32>, vector<32x256xf32>, vector<32x256xf32>, vector<32x256xf32>, vector<32x256xf32>, vector<32x256xf32>, vector<32x256xf32> -> vector<224x256xf32>
    %38 = arith.truncf %37 : vector<224x256xf32> to vector<224x256xbf16>
    %39 = tpu.concatenate %38, %11 in 0 : vector<224x256xbf16>, vector<32x256xbf16> -> vector<256x256xbf16>
    %cst_36 = arith.constant dense<0.000000e+00> : vector<32x256xf32>
    %40 = tpu.matmul %13, %39, %cst_36 {dimension_numbers = #tpu.dot_dimension_numbers<[1], [0], [0], [1], [0, 0, 1, 1], [], []>} : vector<32x256xbf16>, vector<256x256xbf16>, vector<32x256xf32> -> vector<32x256xf32>
    %41 = vector.broadcast %15 : vector<32x1xf32> to vector<32x256xf32>
    %42 = arith.addf %40, %41 : vector<32x256xf32>
    %cst_37 = arith.constant 0.000000e+00 : f32
    %43 = vector.broadcast %cst_37 : f32 to vector<32x256xf32>
    %44 = arith.maximumf %42, %43 : vector<32x256xf32>
    %45 = vector.extract_strided_slice %44 {offsets = [0, 0], sizes = [32, 128], strides = [1, 1]} : vector<32x256xf32> to vector<32x128xf32>
    %c0_38 = arith.constant 0 : index
    %c256_39 = arith.constant 256 : index
    %46 = vector.load %arg10[%c0_38, %c256_39] : memref<32x768xf32, #tpu.memory_space<vmem>>, vector<32x128xf32>
    tpu.vector_store %arg10[%c0_38, %c256_39], %45 {strides = array<i32>} : memref<32x768xf32, #tpu.memory_space<vmem>>, vector<32x128xf32>,
    %47 = vector.extract_strided_slice %44 {offsets = [0, 128], sizes = [32, 128], strides = [1, 1]} : vector<32x256xf32> to vector<32x128xf32>
    %c0_40 = arith.constant 0 : index
    %c640_41 = arith.constant 640 : index
    %48 = vector.load %arg10[%c0_40, %c640_41] : memref<32x768xf32, #tpu.memory_space<vmem>>, vector<32x128xf32>
    tpu.vector_store %arg10[%c0_40, %c640_41], %47 {strides = array<i32>} : memref<32x768xf32, #tpu.memory_space<vmem>>, vector<32x128xf32>,
    %c0_42 = arith.constant 0 : index
    %c0_43 = arith.constant 0 : index
    %c0_44 = arith.constant 0 : index
    %49 = vector.load %arg4[%c0_42, %c0_43, %c0_44] : memref<6x32x256xbf16, #tpu.memory_space<vmem>>, vector<1x32x256xbf16>
    %50 = vector.shape_cast %49 : vector<1x32x256xbf16> to vector<32x256xbf16>
    %c0_45 = arith.constant 0 : index
    %c0_46 = arith.constant 0 : index
    %c0_47 = arith.constant 0 : index
    %51 = vector.load %arg5[%c0_45, %c0_46, %c0_47] : memref<6x32x1xf32, #tpu.memory_space<vmem>>, vector<1x32x1xf32>
    %52 = vector.shape_cast %51 : vector<1x32x1xf32> to vector<32x1xf32>
    %c0_48 = arith.constant 0 : index
    %c250_49 = arith.constant 250 : index
    %53 = vector.load %arg10[%c0_48, %c250_49] : memref<32x768xf32, #tpu.memory_space<vmem>>, vector<32x128xf32>
    %c0_50 = arith.constant 0 : index
    %c634_51 = arith.constant 634 : index
    %54 = vector.load %arg10[%c0_50, %c634_51] : memref<32x768xf32, #tpu.memory_space<vmem>>, vector<32x128xf32>
    %55 = tpu.concatenate %53, %54 in 1 : vector<32x128xf32>, vector<32x128xf32> -> vector<32x256xf32>
    %c0_52 = arith.constant 0 : index
    %c251_53 = arith.constant 251 : index
    %56 = vector.load %arg10[%c0_52, %c251_53] : memref<32x768xf32, #tpu.memory_space<vmem>>, vector<32x128xf32>
    %c0_54 = arith.constant 0 : index
    %c635_55 = arith.constant 635 : index
    %57 = vector.load %arg10[%c0_54, %c635_55] : memref<32x768xf32, #tpu.memory_space<vmem>>, vector<32x128xf32>
    %58 = tpu.concatenate %56, %57 in 1 : vector<32x128xf32>, vector<32x128xf32> -> vector<32x256xf32>
    %c0_56 = arith.constant 0 : index
    %c252_57 = arith.constant 252 : index
    %59 = vector.load %arg10[%c0_56, %c252_57] : memref<32x768xf32, #tpu.memory_space<vmem>>, vector<32x128xf32>
    %c0_58 = arith.constant 0 : index
    %c636_59 = arith.constant 636 : index
    %60 = vector.load %arg10[%c0_58, %c636_59] : memref<32x768xf32, #tpu.memory_space<vmem>>, vector<32x128xf32>
    %61 = tpu.concatenate %59, %60 in 1 : vector<32x128xf32>, vector<32x128xf32> -> vector<32x256xf32>
    %c0_60 = arith.constant 0 : index
    %c253_61 = arith.constant 253 : index
    %62 = vector.load %arg10[%c0_60, %c253_61] : memref<32x768xf32, #tpu.memory_space<vmem>>, vector<32x128xf32>
    %c0_62 = arith.constant 0 : index
    %c637_63 = arith.constant 637 : index
    %63 = vector.load %arg10[%c0_62, %c637_63] : memref<32x768xf32, #tpu.memory_space<vmem>>, vector<32x128xf32>
    %64 = tpu.concatenate %62, %63 in 1 : vector<32x128xf32>, vector<32x128xf32> -> vector<32x256xf32>
    %c0_64 = arith.constant 0 : index
    %c254_65 = arith.constant 254 : index
    %65 = vector.load %arg10[%c0_64, %c254_65] : memref<32x768xf32, #tpu.memory_space<vmem>>, vector<32x128xf32>
    %c0_66 = arith.constant 0 : index
    %c638_67 = arith.constant 638 : index
    %66 = vector.load %arg10[%c0_66, %c638_67] : memref<32x768xf32, #tpu.memory_space<vmem>>, vector<32x128xf32>
    %67 = tpu.concatenate %65, %66 in 1 : vector<32x128xf32>, vector<32x128xf32> -> vector<32x256xf32>
    %c0_68 = arith.constant 0 : index
    %c255_69 = arith.constant 255 : index
    %68 = vector.load %arg10[%c0_68, %c255_69] : memref<32x768xf32, #tpu.memory_space<vmem>>, vector<32x128xf32>
    %c0_70 = arith.constant 0 : index
    %c639_71 = arith.constant 639 : index
    %69 = vector.load %arg10[%c0_70, %c639_71] : memref<32x768xf32, #tpu.memory_space<vmem>>, vector<32x128xf32>
    %70 = tpu.concatenate %68, %69 in 1 : vector<32x128xf32>, vector<32x128xf32> -> vector<32x256xf32>
    %c0_72 = arith.constant 0 : index
    %c256_73 = arith.constant 256 : index
    %71 = vector.load %arg10[%c0_72, %c256_73] : memref<32x768xf32, #tpu.memory_space<vmem>>, vector<32x128xf32>
    %c0_74 = arith.constant 0 : index
    %c640_75 = arith.constant 640 : index
    %72 = vector.load %arg10[%c0_74, %c640_75] : memref<32x768xf32, #tpu.memory_space<vmem>>, vector<32x128xf32>
    %73 = tpu.concatenate %71, %72 in 1 : vector<32x128xf32>, vector<32x128xf32> -> vector<32x256xf32>
    %74 = tpu.concatenate %55, %58, %61, %64, %67, %70, %73 in 0 : vector<32x256xf32>, vector<32x256xf32>, vector<32x256xf32>, vector<32x256xf32>, vector<32x256xf32>, vector<32x256xf32>, vector<32x256xf32> -> vector<224x256xf32>
    %75 = arith.truncf %74 : vector<224x256xf32> to vector<224x256xbf16>
    %76 = tpu.concatenate %75, %11 in 0 : vector<224x256xbf16>, vector<32x256xbf16> -> vector<256x256xbf16>
    %cst_76 = arith.constant dense<0.000000e+00> : vector<32x256xf32>
    %77 = tpu.matmul %50, %76, %cst_76 {dimension_numbers = #tpu.dot_dimension_numbers<[1], [0], [0], [1], [0, 0, 1, 1], [], []>} : vector<32x256xbf16>, vector<256x256xbf16>, vector<32x256xf32> -> vector<32x256xf32>
    %78 = vector.broadcast %52 : vector<32x1xf32> to vector<32x256xf32>
    %79 = arith.addf %77, %78 : vector<32x256xf32>
    %cst_77 = arith.constant 0.000000e+00 : f32
    %80 = vector.broadcast %cst_77 : f32 to vector<32x256xf32>
    %81 = arith.maximumf %79, %80 : vector<32x256xf32>
    %c0_78 = arith.constant 0 : index
    %c256_79 = arith.constant 256 : index
    %82 = vector.load %arg9[%c0_78, %c256_79] : memref<32x768xf32, #tpu.memory_space<vmem>>, vector<32x128xf32>
    %c0_80 = arith.constant 0 : index
    %c640_81 = arith.constant 640 : index
    %83 = vector.load %arg9[%c0_80, %c640_81] : memref<32x768xf32, #tpu.memory_space<vmem>>, vector<32x128xf32>
    %84 = tpu.concatenate %82, %83 in 1 : vector<32x128xf32>, vector<32x128xf32> -> vector<32x256xf32>
    %c0_82 = arith.constant 0 : index
    %c0_83 = arith.constant 0 : index
    %85 = vector.load %arg6[%c0_82, %c0_83] : memref<32x32xbf16, #tpu.memory_space<vmem>>, vector<32x32xbf16>
    %86 = arith.truncf %84 : vector<32x256xf32> to vector<32x256xbf16>
    %cst_84 = arith.constant dense<0.000000e+00> : vector<32x256xf32>
    %87 = tpu.matmul %85, %86, %cst_84 {dimension_numbers = #tpu.dot_dimension_numbers<[1], [0], [0], [1], [0, 0, 1, 1], [], []>} : vector<32x32xbf16>, vector<32x256xbf16>, vector<32x256xf32> -> vector<32x256xf32>
    %c0_85 = arith.constant 0 : index
    %c0_86 = arith.constant 0 : index
    %88 = vector.load %arg7[%c0_85, %c0_86] : memref<32x1xf32, #tpu.memory_space<vmem>>, vector<32x1xf32>
    %89 = vector.broadcast %88 : vector<32x1xf32> to vector<32x256xf32>
    %90 = arith.addf %87, %89 : vector<32x256xf32>
    %91 = arith.addf %81, %90 : vector<32x256xf32>
    %cst_87 = arith.constant 0.000000e+00 : f32
    %92 = vector.broadcast %cst_87 : f32 to vector<32x256xf32>
    %93 = arith.maximumf %91, %92 : vector<32x256xf32>
    %94 = vector.extract_strided_slice %93 {offsets = [0, 0], sizes = [32, 128], strides = [1, 1]} : vector<32x256xf32> to vector<32x128xf32>
    %c0_88 = arith.constant 0 : index
    %c256_89 = arith.constant 256 : index
    %95 = vector.load %arg9[%c0_88, %c256_89] : memref<32x768xf32, #tpu.memory_space<vmem>>, vector<32x128xf32>
    tpu.vector_store %arg9[%c0_88, %c256_89], %94 {strides = array<i32>} : memref<32x768xf32, #tpu.memory_space<vmem>>, vector<32x128xf32>,
    %96 = vector.extract_strided_slice %93 {offsets = [0, 128], sizes = [32, 128], strides = [1, 1]} : vector<32x256xf32> to vector<32x128xf32>
    %c0_90 = arith.constant 0 : index
    %c640_91 = arith.constant 640 : index
    %97 = vector.load %arg9[%c0_90, %c640_91] : memref<32x768xf32, #tpu.memory_space<vmem>>, vector<32x128xf32>
    tpu.vector_store %arg9[%c0_90, %c640_91], %96 {strides = array<i32>} : memref<32x768xf32, #tpu.memory_space<vmem>>, vector<32x128xf32>,
    %c1_92 = arith.constant 1 : index
    %c0_93 = arith.constant 0 : index
    %c0_94 = arith.constant 0 : index
    %98 = vector.load %arg2[%c1_92, %c0_93, %c0_94] : memref<6x32x256xbf16, #tpu.memory_space<vmem>>, vector<1x32x256xbf16>
    %99 = vector.shape_cast %98 : vector<1x32x256xbf16> to vector<32x256xbf16>
    %c1_95 = arith.constant 1 : index
    %c0_96 = arith.constant 0 : index
    %c0_97 = arith.constant 0 : index
    %100 = vector.load %arg3[%c1_95, %c0_96, %c0_97] : memref<6x32x1xf32, #tpu.memory_space<vmem>>, vector<1x32x1xf32>
    %101 = vector.shape_cast %100 : vector<1x32x1xf32> to vector<32x1xf32>
    %c0_98 = arith.constant 0 : index
    %c244 = arith.constant 244 : index
    %102 = vector.load %arg9[%c0_98, %c244] : memref<32x768xf32, #tpu.memory_space<vmem>>, vector<32x128xf32>
    %c0_99 = arith.constant 0 : index
    %c628 = arith.constant 628 : index
    %103 = vector.load %arg9[%c0_99, %c628] : memref<32x768xf32, #tpu.memory_space<vmem>>, vector<32x128xf32>
    %104 = tpu.concatenate %102, %103 in 1 : vector<32x128xf32>, vector<32x128xf32> -> vector<32x256xf32>
    %c0_100 = arith.constant 0 : index
    %c246 = arith.constant 246 : index
    %105 = vector.load %arg9[%c0_100, %c246] : memref<32x768xf32, #tpu.memory_space<vmem>>, vector<32x128xf32>
    %c0_101 = arith.constant 0 : index
    %c630 = arith.constant 630 : index
    %106 = vector.load %arg9[%c0_101, %c630] : memref<32x768xf32, #tpu.memory_space<vmem>>, vector<32x128xf32>
    %107 = tpu.concatenate %105, %106 in 1 : vector<32x128xf32>, vector<32x128xf32> -> vector<32x256xf32>
    %c0_102 = arith.constant 0 : index
    %c248 = arith.constant 248 : index
    %108 = vector.load %arg9[%c0_102, %c248] : memref<32x768xf32, #tpu.memory_space<vmem>>, vector<32x128xf32>
    %c0_103 = arith.constant 0 : index
    %c632 = arith.constant 632 : index
    %109 = vector.load %arg9[%c0_103, %c632] : memref<32x768xf32, #tpu.memory_space<vmem>>, vector<32x128xf32>
    %110 = tpu.concatenate %108, %109 in 1 : vector<32x128xf32>, vector<32x128xf32> -> vector<32x256xf32>
    %c0_104 = arith.constant 0 : index
    %c250_105 = arith.constant 250 : index
    %111 = vector.load %arg9[%c0_104, %c250_105] : memref<32x768xf32, #tpu.memory_space<vmem>>, vector<32x128xf32>
    %c0_106 = arith.constant 0 : index
    %c634_107 = arith.constant 634 : index
    %112 = vector.load %arg9[%c0_106, %c634_107] : memref<32x768xf32, #tpu.memory_space<vmem>>, vector<32x128xf32>
    %113 = tpu.concatenate %111, %112 in 1 : vector<32x128xf32>, vector<32x128xf32> -> vector<32x256xf32>
    %c0_108 = arith.constant 0 : index
    %c252_109 = arith.constant 252 : index
    %114 = vector.load %arg9[%c0_108, %c252_109] : memref<32x768xf32, #tpu.memory_space<vmem>>, vector<32x128xf32>
    %c0_110 = arith.constant 0 : index
    %c636_111 = arith.constant 636 : index
    %115 = vector.load %arg9[%c0_110, %c636_111] : memref<32x768xf32, #tpu.memory_space<vmem>>, vector<32x128xf32>
    %116 = tpu.concatenate %114, %115 in 1 : vector<32x128xf32>, vector<32x128xf32> -> vector<32x256xf32>
    %c0_112 = arith.constant 0 : index
    %c254_113 = arith.constant 254 : index
    %117 = vector.load %arg9[%c0_112, %c254_113] : memref<32x768xf32, #tpu.memory_space<vmem>>, vector<32x128xf32>
    %c0_114 = arith.constant 0 : index
    %c638_115 = arith.constant 638 : index
    %118 = vector.load %arg9[%c0_114, %c638_115] : memref<32x768xf32, #tpu.memory_space<vmem>>, vector<32x128xf32>
    %119 = tpu.concatenate %117, %118 in 1 : vector<32x128xf32>, vector<32x128xf32> -> vector<32x256xf32>
    %c0_116 = arith.constant 0 : index
    %c256_117 = arith.constant 256 : index
    %120 = vector.load %arg9[%c0_116, %c256_117] : memref<32x768xf32, #tpu.memory_space<vmem>>, vector<32x128xf32>
    %c0_118 = arith.constant 0 : index
    %c640_119 = arith.constant 640 : index
    %121 = vector.load %arg9[%c0_118, %c640_119] : memref<32x768xf32, #tpu.memory_space<vmem>>, vector<32x128xf32>
    %122 = tpu.concatenate %120, %121 in 1 : vector<32x128xf32>, vector<32x128xf32> -> vector<32x256xf32>
    %123 = tpu.concatenate %104, %107, %110, %113, %116, %119, %122 in 0 : vector<32x256xf32>, vector<32x256xf32>, vector<32x256xf32>, vector<32x256xf32>, vector<32x256xf32>, vector<32x256xf32>, vector<32x256xf32> -> vector<224x256xf32>
    %124 = arith.truncf %123 : vector<224x256xf32> to vector<224x256xbf16>
    %125 = tpu.concatenate %124, %11 in 0 : vector<224x256xbf16>, vector<32x256xbf16> -> vector<256x256xbf16>
    %cst_120 = arith.constant dense<0.000000e+00> : vector<32x256xf32>
    %126 = tpu.matmul %99, %125, %cst_120 {dimension_numbers = #tpu.dot_dimension_numbers<[1], [0], [0], [1], [0, 0, 1, 1], [], []>} : vector<32x256xbf16>, vector<256x256xbf16>, vector<32x256xf32> -> vector<32x256xf32>
    %127 = vector.broadcast %101 : vector<32x1xf32> to vector<32x256xf32>
    %128 = arith.addf %126, %127 : vector<32x256xf32>
    %cst_121 = arith.constant 0.000000e+00 : f32
    %129 = vector.broadcast %cst_121 : f32 to vector<32x256xf32>
    %130 = arith.maximumf %128, %129 : vector<32x256xf32>
    %131 = vector.extract_strided_slice %130 {offsets = [0, 0], sizes = [32, 128], strides = [1, 1]} : vector<32x256xf32> to vector<32x128xf32>
    %c0_122 = arith.constant 0 : index
    %c256_123 = arith.constant 256 : index
    %132 = vector.load %arg10[%c0_122, %c256_123] : memref<32x768xf32, #tpu.memory_space<vmem>>, vector<32x128xf32>
    tpu.vector_store %arg10[%c0_122, %c256_123], %131 {strides = array<i32>} : memref<32x768xf32, #tpu.memory_space<vmem>>, vector<32x128xf32>,
    %133 = vector.extract_strided_slice %130 {offsets = [0, 128], sizes = [32, 128], strides = [1, 1]} : vector<32x256xf32> to vector<32x128xf32>
    %c0_124 = arith.constant 0 : index
    %c640_125 = arith.constant 640 : index
    %134 = vector.load %arg10[%c0_124, %c640_125] : memref<32x768xf32, #tpu.memory_space<vmem>>, vector<32x128xf32>
    tpu.vector_store %arg10[%c0_124, %c640_125], %133 {strides = array<i32>} : memref<32x768xf32, #tpu.memory_space<vmem>>, vector<32x128xf32>,
    %c1_126 = arith.constant 1 : index
    %c0_127 = arith.constant 0 : index
    %c0_128 = arith.constant 0 : index
    %135 = vector.load %arg4[%c1_126, %c0_127, %c0_128] : memref<6x32x256xbf16, #tpu.memory_space<vmem>>, vector<1x32x256xbf16>
    %136 = vector.shape_cast %135 : vector<1x32x256xbf16> to vector<32x256xbf16>
    %c1_129 = arith.constant 1 : index
    %c0_130 = arith.constant 0 : index
    %c0_131 = arith.constant 0 : index
    %137 = vector.load %arg5[%c1_129, %c0_130, %c0_131] : memref<6x32x1xf32, #tpu.memory_space<vmem>>, vector<1x32x1xf32>
    %138 = vector.shape_cast %137 : vector<1x32x1xf32> to vector<32x1xf32>
    %c0_132 = arith.constant 0 : index
    %c244_133 = arith.constant 244 : index
    %139 = vector.load %arg10[%c0_132, %c244_133] : memref<32x768xf32, #tpu.memory_space<vmem>>, vector<32x128xf32>
    %c0_134 = arith.constant 0 : index
    %c628_135 = arith.constant 628 : index
    %140 = vector.load %arg10[%c0_134, %c628_135] : memref<32x768xf32, #tpu.memory_space<vmem>>, vector<32x128xf32>
    %141 = tpu.concatenate %139, %140 in 1 : vector<32x128xf32>, vector<32x128xf32> -> vector<32x256xf32>
    %c0_136 = arith.constant 0 : index
    %c246_137 = arith.constant 246 : index
    %142 = vector.load %arg10[%c0_136, %c246_137] : memref<32x768xf32, #tpu.memory_space<vmem>>, vector<32x128xf32>
    %c0_138 = arith.constant 0 : index
    %c630_139 = arith.constant 630 : index
    %143 = vector.load %arg10[%c0_138, %c630_139] : memref<32x768xf32, #tpu.memory_space<vmem>>, vector<32x128xf32>
    %144 = tpu.concatenate %142, %143 in 1 : vector<32x128xf32>, vector<32x128xf32> -> vector<32x256xf32>
    %c0_140 = arith.constant 0 : index
    %c248_141 = arith.constant 248 : index
    %145 = vector.load %arg10[%c0_140, %c248_141] : memref<32x768xf32, #tpu.memory_space<vmem>>, vector<32x128xf32>
    %c0_142 = arith.constant 0 : index
    %c632_143 = arith.constant 632 : index
    %146 = vector.load %arg10[%c0_142, %c632_143] : memref<32x768xf32, #tpu.memory_space<vmem>>, vector<32x128xf32>
    %147 = tpu.concatenate %145, %146 in 1 : vector<32x128xf32>, vector<32x128xf32> -> vector<32x256xf32>
    %c0_144 = arith.constant 0 : index
    %c250_145 = arith.constant 250 : index
    %148 = vector.load %arg10[%c0_144, %c250_145] : memref<32x768xf32, #tpu.memory_space<vmem>>, vector<32x128xf32>
    %c0_146 = arith.constant 0 : index
    %c634_147 = arith.constant 634 : index
    %149 = vector.load %arg10[%c0_146, %c634_147] : memref<32x768xf32, #tpu.memory_space<vmem>>, vector<32x128xf32>
    %150 = tpu.concatenate %148, %149 in 1 : vector<32x128xf32>, vector<32x128xf32> -> vector<32x256xf32>
    %c0_148 = arith.constant 0 : index
    %c252_149 = arith.constant 252 : index
    %151 = vector.load %arg10[%c0_148, %c252_149] : memref<32x768xf32, #tpu.memory_space<vmem>>, vector<32x128xf32>
    %c0_150 = arith.constant 0 : index
    %c636_151 = arith.constant 636 : index
    %152 = vector.load %arg10[%c0_150, %c636_151] : memref<32x768xf32, #tpu.memory_space<vmem>>, vector<32x128xf32>
    %153 = tpu.concatenate %151, %152 in 1 : vector<32x128xf32>, vector<32x128xf32> -> vector<32x256xf32>
    %c0_152 = arith.constant 0 : index
    %c254_153 = arith.constant 254 : index
    %154 = vector.load %arg10[%c0_152, %c254_153] : memref<32x768xf32, #tpu.memory_space<vmem>>, vector<32x128xf32>
    %c0_154 = arith.constant 0 : index
    %c638_155 = arith.constant 638 : index
    %155 = vector.load %arg10[%c0_154, %c638_155] : memref<32x768xf32, #tpu.memory_space<vmem>>, vector<32x128xf32>
    %156 = tpu.concatenate %154, %155 in 1 : vector<32x128xf32>, vector<32x128xf32> -> vector<32x256xf32>
    %c0_156 = arith.constant 0 : index
    %c256_157 = arith.constant 256 : index
    %157 = vector.load %arg10[%c0_156, %c256_157] : memref<32x768xf32, #tpu.memory_space<vmem>>, vector<32x128xf32>
    %c0_158 = arith.constant 0 : index
    %c640_159 = arith.constant 640 : index
    %158 = vector.load %arg10[%c0_158, %c640_159] : memref<32x768xf32, #tpu.memory_space<vmem>>, vector<32x128xf32>
    %159 = tpu.concatenate %157, %158 in 1 : vector<32x128xf32>, vector<32x128xf32> -> vector<32x256xf32>
    %160 = tpu.concatenate %141, %144, %147, %150, %153, %156, %159 in 0 : vector<32x256xf32>, vector<32x256xf32>, vector<32x256xf32>, vector<32x256xf32>, vector<32x256xf32>, vector<32x256xf32>, vector<32x256xf32> -> vector<224x256xf32>
    %161 = arith.truncf %160 : vector<224x256xf32> to vector<224x256xbf16>
    %162 = tpu.concatenate %161, %11 in 0 : vector<224x256xbf16>, vector<32x256xbf16> -> vector<256x256xbf16>
    %cst_160 = arith.constant dense<0.000000e+00> : vector<32x256xf32>
    %163 = tpu.matmul %136, %162, %cst_160 {dimension_numbers = #tpu.dot_dimension_numbers<[1], [0], [0], [1], [0, 0, 1, 1], [], []>} : vector<32x256xbf16>, vector<256x256xbf16>, vector<32x256xf32> -> vector<32x256xf32>
    %164 = vector.broadcast %138 : vector<32x1xf32> to vector<32x256xf32>
    %165 = arith.addf %163, %164 : vector<32x256xf32>
    %cst_161 = arith.constant 0.000000e+00 : f32
    %166 = vector.broadcast %cst_161 : f32 to vector<32x256xf32>
    %167 = arith.maximumf %165, %166 : vector<32x256xf32>
    %c0_162 = arith.constant 0 : index
    %c256_163 = arith.constant 256 : index
    %168 = vector.load %arg9[%c0_162, %c256_163] : memref<32x768xf32, #tpu.memory_space<vmem>>, vector<32x128xf32>
    %c0_164 = arith.constant 0 : index
    %c640_165 = arith.constant 640 : index
    %169 = vector.load %arg9[%c0_164, %c640_165] : memref<32x768xf32, #tpu.memory_space<vmem>>, vector<32x128xf32>
    %170 = tpu.concatenate %168, %169 in 1 : vector<32x128xf32>, vector<32x128xf32> -> vector<32x256xf32>
    %171 = arith.addf %167, %170 : vector<32x256xf32>
    %cst_166 = arith.constant 0.000000e+00 : f32
    %172 = vector.broadcast %cst_166 : f32 to vector<32x256xf32>
    %173 = arith.maximumf %171, %172 : vector<32x256xf32>
    %174 = vector.extract_strided_slice %173 {offsets = [0, 0], sizes = [32, 128], strides = [1, 1]} : vector<32x256xf32> to vector<32x128xf32>
    %c0_167 = arith.constant 0 : index
    %c256_168 = arith.constant 256 : index
    %175 = vector.load %arg9[%c0_167, %c256_168] : memref<32x768xf32, #tpu.memory_space<vmem>>, vector<32x128xf32>
    tpu.vector_store %arg9[%c0_167, %c256_168], %174 {strides = array<i32>} : memref<32x768xf32, #tpu.memory_space<vmem>>, vector<32x128xf32>,
    %176 = vector.extract_strided_slice %173 {offsets = [0, 128], sizes = [32, 128], strides = [1, 1]} : vector<32x256xf32> to vector<32x128xf32>
    %c0_169 = arith.constant 0 : index
    %c640_170 = arith.constant 640 : index
    %177 = vector.load %arg9[%c0_169, %c640_170] : memref<32x768xf32, #tpu.memory_space<vmem>>, vector<32x128xf32>
    tpu.vector_store %arg9[%c0_169, %c640_170], %176 {strides = array<i32>} : memref<32x768xf32, #tpu.memory_space<vmem>>, vector<32x128xf32>,
    %c2 = arith.constant 2 : index
    %c0_171 = arith.constant 0 : index
    %c0_172 = arith.constant 0 : index
    %178 = vector.load %arg2[%c2, %c0_171, %c0_172] : memref<6x32x256xbf16, #tpu.memory_space<vmem>>, vector<1x32x256xbf16>
    %179 = vector.shape_cast %178 : vector<1x32x256xbf16> to vector<32x256xbf16>
    %c2_173 = arith.constant 2 : index
    %c0_174 = arith.constant 0 : index
    %c0_175 = arith.constant 0 : index
    %180 = vector.load %arg3[%c2_173, %c0_174, %c0_175] : memref<6x32x1xf32, #tpu.memory_space<vmem>>, vector<1x32x1xf32>
    %181 = vector.shape_cast %180 : vector<1x32x1xf32> to vector<32x1xf32>
    %c0_176 = arith.constant 0 : index
    %c232 = arith.constant 232 : index
    %182 = vector.load %arg9[%c0_176, %c232] : memref<32x768xf32, #tpu.memory_space<vmem>>, vector<32x128xf32>
    %c0_177 = arith.constant 0 : index
    %c616 = arith.constant 616 : index
    %183 = vector.load %arg9[%c0_177, %c616] : memref<32x768xf32, #tpu.memory_space<vmem>>, vector<32x128xf32>
    %184 = tpu.concatenate %182, %183 in 1 : vector<32x128xf32>, vector<32x128xf32> -> vector<32x256xf32>
    %c0_178 = arith.constant 0 : index
    %c236 = arith.constant 236 : index
    %185 = vector.load %arg9[%c0_178, %c236] : memref<32x768xf32, #tpu.memory_space<vmem>>, vector<32x128xf32>
    %c0_179 = arith.constant 0 : index
    %c620 = arith.constant 620 : index
    %186 = vector.load %arg9[%c0_179, %c620] : memref<32x768xf32, #tpu.memory_space<vmem>>, vector<32x128xf32>
    %187 = tpu.concatenate %185, %186 in 1 : vector<32x128xf32>, vector<32x128xf32> -> vector<32x256xf32>
    %c0_180 = arith.constant 0 : index
    %c240 = arith.constant 240 : index
    %188 = vector.load %arg9[%c0_180, %c240] : memref<32x768xf32, #tpu.memory_space<vmem>>, vector<32x128xf32>
    %c0_181 = arith.constant 0 : index
    %c624 = arith.constant 624 : index
    %189 = vector.load %arg9[%c0_181, %c624] : memref<32x768xf32, #tpu.memory_space<vmem>>, vector<32x128xf32>
    %190 = tpu.concatenate %188, %189 in 1 : vector<32x128xf32>, vector<32x128xf32> -> vector<32x256xf32>
    %c0_182 = arith.constant 0 : index
    %c244_183 = arith.constant 244 : index
    %191 = vector.load %arg9[%c0_182, %c244_183] : memref<32x768xf32, #tpu.memory_space<vmem>>, vector<32x128xf32>
    %c0_184 = arith.constant 0 : index
    %c628_185 = arith.constant 628 : index
    %192 = vector.load %arg9[%c0_184, %c628_185] : memref<32x768xf32, #tpu.memory_space<vmem>>, vector<32x128xf32>
    %193 = tpu.concatenate %191, %192 in 1 : vector<32x128xf32>, vector<32x128xf32> -> vector<32x256xf32>
    %c0_186 = arith.constant 0 : index
    %c248_187 = arith.constant 248 : index
    %194 = vector.load %arg9[%c0_186, %c248_187] : memref<32x768xf32, #tpu.memory_space<vmem>>, vector<32x128xf32>
    %c0_188 = arith.constant 0 : index
    %c632_189 = arith.constant 632 : index
    %195 = vector.load %arg9[%c0_188, %c632_189] : memref<32x768xf32, #tpu.memory_space<vmem>>, vector<32x128xf32>
    %196 = tpu.concatenate %194, %195 in 1 : vector<32x128xf32>, vector<32x128xf32> -> vector<32x256xf32>
    %c0_190 = arith.constant 0 : index
    %c252_191 = arith.constant 252 : index
    %197 = vector.load %arg9[%c0_190, %c252_191] : memref<32x768xf32, #tpu.memory_space<vmem>>, vector<32x128xf32>
    %c0_192 = arith.constant 0 : index
    %c636_193 = arith.constant 636 : index
    %198 = vector.load %arg9[%c0_192, %c636_193] : memref<32x768xf32, #tpu.memory_space<vmem>>, vector<32x128xf32>
    %199 = tpu.concatenate %197, %198 in 1 : vector<32x128xf32>, vector<32x128xf32> -> vector<32x256xf32>
    %c0_194 = arith.constant 0 : index
    %c256_195 = arith.constant 256 : index
    %200 = vector.load %arg9[%c0_194, %c256_195] : memref<32x768xf32, #tpu.memory_space<vmem>>, vector<32x128xf32>
    %c0_196 = arith.constant 0 : index
    %c640_197 = arith.constant 640 : index
    %201 = vector.load %arg9[%c0_196, %c640_197] : memref<32x768xf32, #tpu.memory_space<vmem>>, vector<32x128xf32>
    %202 = tpu.concatenate %200, %201 in 1 : vector<32x128xf32>, vector<32x128xf32> -> vector<32x256xf32>
    %203 = tpu.concatenate %184, %187, %190, %193, %196, %199, %202 in 0 : vector<32x256xf32>, vector<32x256xf32>, vector<32x256xf32>, vector<32x256xf32>, vector<32x256xf32>, vector<32x256xf32>, vector<32x256xf32> -> vector<224x256xf32>
    %204 = arith.truncf %203 : vector<224x256xf32> to vector<224x256xbf16>
    %205 = tpu.concatenate %204, %11 in 0 : vector<224x256xbf16>, vector<32x256xbf16> -> vector<256x256xbf16>
    %cst_198 = arith.constant dense<0.000000e+00> : vector<32x256xf32>
    %206 = tpu.matmul %179, %205, %cst_198 {dimension_numbers = #tpu.dot_dimension_numbers<[1], [0], [0], [1], [0, 0, 1, 1], [], []>} : vector<32x256xbf16>, vector<256x256xbf16>, vector<32x256xf32> -> vector<32x256xf32>
    %207 = vector.broadcast %181 : vector<32x1xf32> to vector<32x256xf32>
    %208 = arith.addf %206, %207 : vector<32x256xf32>
    %cst_199 = arith.constant 0.000000e+00 : f32
    %209 = vector.broadcast %cst_199 : f32 to vector<32x256xf32>
    %210 = arith.maximumf %208, %209 : vector<32x256xf32>
    %211 = vector.extract_strided_slice %210 {offsets = [0, 0], sizes = [32, 128], strides = [1, 1]} : vector<32x256xf32> to vector<32x128xf32>
    %c0_200 = arith.constant 0 : index
    %c256_201 = arith.constant 256 : index
    %212 = vector.load %arg10[%c0_200, %c256_201] : memref<32x768xf32, #tpu.memory_space<vmem>>, vector<32x128xf32>
    tpu.vector_store %arg10[%c0_200, %c256_201], %211 {strides = array<i32>} : memref<32x768xf32, #tpu.memory_space<vmem>>, vector<32x128xf32>,
    %213 = vector.extract_strided_slice %210 {offsets = [0, 128], sizes = [32, 128], strides = [1, 1]} : vector<32x256xf32> to vector<32x128xf32>
    %c0_202 = arith.constant 0 : index
    %c640_203 = arith.constant 640 : index
    %214 = vector.load %arg10[%c0_202, %c640_203] : memref<32x768xf32, #tpu.memory_space<vmem>>, vector<32x128xf32>
    tpu.vector_store %arg10[%c0_202, %c640_203], %213 {strides = array<i32>} : memref<32x768xf32, #tpu.memory_space<vmem>>, vector<32x128xf32>,
    %c2_204 = arith.constant 2 : index
    %c0_205 = arith.constant 0 : index
    %c0_206 = arith.constant 0 : index
    %215 = vector.load %arg4[%c2_204, %c0_205, %c0_206] : memref<6x32x256xbf16, #tpu.memory_space<vmem>>, vector<1x32x256xbf16>
    %216 = vector.shape_cast %215 : vector<1x32x256xbf16> to vector<32x256xbf16>
    %c2_207 = arith.constant 2 : index
    %c0_208 = arith.constant 0 : index
    %c0_209 = arith.constant 0 : index
    %217 = vector.load %arg5[%c2_207, %c0_208, %c0_209] : memref<6x32x1xf32, #tpu.memory_space<vmem>>, vector<1x32x1xf32>
    %218 = vector.shape_cast %217 : vector<1x32x1xf32> to vector<32x1xf32>
    %c0_210 = arith.constant 0 : index
    %c232_211 = arith.constant 232 : index
    %219 = vector.load %arg10[%c0_210, %c232_211] : memref<32x768xf32, #tpu.memory_space<vmem>>, vector<32x128xf32>
    %c0_212 = arith.constant 0 : index
    %c616_213 = arith.constant 616 : index
    %220 = vector.load %arg10[%c0_212, %c616_213] : memref<32x768xf32, #tpu.memory_space<vmem>>, vector<32x128xf32>
    %221 = tpu.concatenate %219, %220 in 1 : vector<32x128xf32>, vector<32x128xf32> -> vector<32x256xf32>
    %c0_214 = arith.constant 0 : index
    %c236_215 = arith.constant 236 : index
    %222 = vector.load %arg10[%c0_214, %c236_215] : memref<32x768xf32, #tpu.memory_space<vmem>>, vector<32x128xf32>
    %c0_216 = arith.constant 0 : index
    %c620_217 = arith.constant 620 : index
    %223 = vector.load %arg10[%c0_216, %c620_217] : memref<32x768xf32, #tpu.memory_space<vmem>>, vector<32x128xf32>
    %224 = tpu.concatenate %222, %223 in 1 : vector<32x128xf32>, vector<32x128xf32> -> vector<32x256xf32>
    %c0_218 = arith.constant 0 : index
    %c240_219 = arith.constant 240 : index
    %225 = vector.load %arg10[%c0_218, %c240_219] : memref<32x768xf32, #tpu.memory_space<vmem>>, vector<32x128xf32>
    %c0_220 = arith.constant 0 : index
    %c624_221 = arith.constant 624 : index
    %226 = vector.load %arg10[%c0_220, %c624_221] : memref<32x768xf32, #tpu.memory_space<vmem>>, vector<32x128xf32>
    %227 = tpu.concatenate %225, %226 in 1 : vector<32x128xf32>, vector<32x128xf32> -> vector<32x256xf32>
    %c0_222 = arith.constant 0 : index
    %c244_223 = arith.constant 244 : index
    %228 = vector.load %arg10[%c0_222, %c244_223] : memref<32x768xf32, #tpu.memory_space<vmem>>, vector<32x128xf32>
    %c0_224 = arith.constant 0 : index
    %c628_225 = arith.constant 628 : index
    %229 = vector.load %arg10[%c0_224, %c628_225] : memref<32x768xf32, #tpu.memory_space<vmem>>, vector<32x128xf32>
    %230 = tpu.concatenate %228, %229 in 1 : vector<32x128xf32>, vector<32x128xf32> -> vector<32x256xf32>
    %c0_226 = arith.constant 0 : index
    %c248_227 = arith.constant 248 : index
    %231 = vector.load %arg10[%c0_226, %c248_227] : memref<32x768xf32, #tpu.memory_space<vmem>>, vector<32x128xf32>
    %c0_228 = arith.constant 0 : index
    %c632_229 = arith.constant 632 : index
    %232 = vector.load %arg10[%c0_228, %c632_229] : memref<32x768xf32, #tpu.memory_space<vmem>>, vector<32x128xf32>
    %233 = tpu.concatenate %231, %232 in 1 : vector<32x128xf32>, vector<32x128xf32> -> vector<32x256xf32>
    %c0_230 = arith.constant 0 : index
    %c252_231 = arith.constant 252 : index
    %234 = vector.load %arg10[%c0_230, %c252_231] : memref<32x768xf32, #tpu.memory_space<vmem>>, vector<32x128xf32>
    %c0_232 = arith.constant 0 : index
    %c636_233 = arith.constant 636 : index
    %235 = vector.load %arg10[%c0_232, %c636_233] : memref<32x768xf32, #tpu.memory_space<vmem>>, vector<32x128xf32>
    %236 = tpu.concatenate %234, %235 in 1 : vector<32x128xf32>, vector<32x128xf32> -> vector<32x256xf32>
    %c0_234 = arith.constant 0 : index
    %c256_235 = arith.constant 256 : index
    %237 = vector.load %arg10[%c0_234, %c256_235] : memref<32x768xf32, #tpu.memory_space<vmem>>, vector<32x128xf32>
    %c0_236 = arith.constant 0 : index
    %c640_237 = arith.constant 640 : index
    %238 = vector.load %arg10[%c0_236, %c640_237] : memref<32x768xf32, #tpu.memory_space<vmem>>, vector<32x128xf32>
    %239 = tpu.concatenate %237, %238 in 1 : vector<32x128xf32>, vector<32x128xf32> -> vector<32x256xf32>
    %240 = tpu.concatenate %221, %224, %227, %230, %233, %236, %239 in 0 : vector<32x256xf32>, vector<32x256xf32>, vector<32x256xf32>, vector<32x256xf32>, vector<32x256xf32>, vector<32x256xf32>, vector<32x256xf32> -> vector<224x256xf32>
    %241 = arith.truncf %240 : vector<224x256xf32> to vector<224x256xbf16>
    %242 = tpu.concatenate %241, %11 in 0 : vector<224x256xbf16>, vector<32x256xbf16> -> vector<256x256xbf16>
    %cst_238 = arith.constant dense<0.000000e+00> : vector<32x256xf32>
    %243 = tpu.matmul %216, %242, %cst_238 {dimension_numbers = #tpu.dot_dimension_numbers<[1], [0], [0], [1], [0, 0, 1, 1], [], []>} : vector<32x256xbf16>, vector<256x256xbf16>, vector<32x256xf32> -> vector<32x256xf32>
    %244 = vector.broadcast %218 : vector<32x1xf32> to vector<32x256xf32>
    %245 = arith.addf %243, %244 : vector<32x256xf32>
    %cst_239 = arith.constant 0.000000e+00 : f32
    %246 = vector.broadcast %cst_239 : f32 to vector<32x256xf32>
    %247 = arith.maximumf %245, %246 : vector<32x256xf32>
    %c0_240 = arith.constant 0 : index
    %c256_241 = arith.constant 256 : index
    %248 = vector.load %arg9[%c0_240, %c256_241] : memref<32x768xf32, #tpu.memory_space<vmem>>, vector<32x128xf32>
    %c0_242 = arith.constant 0 : index
    %c640_243 = arith.constant 640 : index
    %249 = vector.load %arg9[%c0_242, %c640_243] : memref<32x768xf32, #tpu.memory_space<vmem>>, vector<32x128xf32>
    %250 = tpu.concatenate %248, %249 in 1 : vector<32x128xf32>, vector<32x128xf32> -> vector<32x256xf32>
    %251 = arith.addf %247, %250 : vector<32x256xf32>
    %cst_244 = arith.constant 0.000000e+00 : f32
    %252 = vector.broadcast %cst_244 : f32 to vector<32x256xf32>
    %253 = arith.maximumf %251, %252 : vector<32x256xf32>
    %254 = vector.extract_strided_slice %253 {offsets = [0, 0], sizes = [32, 128], strides = [1, 1]} : vector<32x256xf32> to vector<32x128xf32>
    %c0_245 = arith.constant 0 : index
    %c256_246 = arith.constant 256 : index
    %255 = vector.load %arg9[%c0_245, %c256_246] : memref<32x768xf32, #tpu.memory_space<vmem>>, vector<32x128xf32>
    tpu.vector_store %arg9[%c0_245, %c256_246], %254 {strides = array<i32>} : memref<32x768xf32, #tpu.memory_space<vmem>>, vector<32x128xf32>,
    %256 = vector.extract_strided_slice %253 {offsets = [0, 128], sizes = [32, 128], strides = [1, 1]} : vector<32x256xf32> to vector<32x128xf32>
    %c0_247 = arith.constant 0 : index
    %c640_248 = arith.constant 640 : index
    %257 = vector.load %arg9[%c0_247, %c640_248] : memref<32x768xf32, #tpu.memory_space<vmem>>, vector<32x128xf32>
    tpu.vector_store %arg9[%c0_247, %c640_248], %256 {strides = array<i32>} : memref<32x768xf32, #tpu.memory_space<vmem>>, vector<32x128xf32>,
    %c3 = arith.constant 3 : index
    %c0_249 = arith.constant 0 : index
    %c0_250 = arith.constant 0 : index
    %258 = vector.load %arg2[%c3, %c0_249, %c0_250] : memref<6x32x256xbf16, #tpu.memory_space<vmem>>, vector<1x32x256xbf16>
    %259 = vector.shape_cast %258 : vector<1x32x256xbf16> to vector<32x256xbf16>
    %c3_251 = arith.constant 3 : index
    %c0_252 = arith.constant 0 : index
    %c0_253 = arith.constant 0 : index
    %260 = vector.load %arg3[%c3_251, %c0_252, %c0_253] : memref<6x32x1xf32, #tpu.memory_space<vmem>>, vector<1x32x1xf32>
    %261 = vector.shape_cast %260 : vector<1x32x1xf32> to vector<32x1xf32>
    %c0_254 = arith.constant 0 : index
    %c208 = arith.constant 208 : index
    %262 = vector.load %arg9[%c0_254, %c208] : memref<32x768xf32, #tpu.memory_space<vmem>>, vector<32x128xf32>
    %c0_255 = arith.constant 0 : index
    %c592 = arith.constant 592 : index
    %263 = vector.load %arg9[%c0_255, %c592] : memref<32x768xf32, #tpu.memory_space<vmem>>, vector<32x128xf32>
    %264 = tpu.concatenate %262, %263 in 1 : vector<32x128xf32>, vector<32x128xf32> -> vector<32x256xf32>
    %c0_256 = arith.constant 0 : index
    %c216 = arith.constant 216 : index
    %265 = vector.load %arg9[%c0_256, %c216] : memref<32x768xf32, #tpu.memory_space<vmem>>, vector<32x128xf32>
    %c0_257 = arith.constant 0 : index
    %c600 = arith.constant 600 : index
    %266 = vector.load %arg9[%c0_257, %c600] : memref<32x768xf32, #tpu.memory_space<vmem>>, vector<32x128xf32>
    %267 = tpu.concatenate %265, %266 in 1 : vector<32x128xf32>, vector<32x128xf32> -> vector<32x256xf32>
    %c0_258 = arith.constant 0 : index
    %c224 = arith.constant 224 : index
    %268 = vector.load %arg9[%c0_258, %c224] : memref<32x768xf32, #tpu.memory_space<vmem>>, vector<32x128xf32>
    %c0_259 = arith.constant 0 : index
    %c608 = arith.constant 608 : index
    %269 = vector.load %arg9[%c0_259, %c608] : memref<32x768xf32, #tpu.memory_space<vmem>>, vector<32x128xf32>
    %270 = tpu.concatenate %268, %269 in 1 : vector<32x128xf32>, vector<32x128xf32> -> vector<32x256xf32>
    %c0_260 = arith.constant 0 : index
    %c232_261 = arith.constant 232 : index
    %271 = vector.load %arg9[%c0_260, %c232_261] : memref<32x768xf32, #tpu.memory_space<vmem>>, vector<32x128xf32>
    %c0_262 = arith.constant 0 : index
    %c616_263 = arith.constant 616 : index
    %272 = vector.load %arg9[%c0_262, %c616_263] : memref<32x768xf32, #tpu.memory_space<vmem>>, vector<32x128xf32>
    %273 = tpu.concatenate %271, %272 in 1 : vector<32x128xf32>, vector<32x128xf32> -> vector<32x256xf32>
    %c0_264 = arith.constant 0 : index
    %c240_265 = arith.constant 240 : index
    %274 = vector.load %arg9[%c0_264, %c240_265] : memref<32x768xf32, #tpu.memory_space<vmem>>, vector<32x128xf32>
    %c0_266 = arith.constant 0 : index
    %c624_267 = arith.constant 624 : index
    %275 = vector.load %arg9[%c0_266, %c624_267] : memref<32x768xf32, #tpu.memory_space<vmem>>, vector<32x128xf32>
    %276 = tpu.concatenate %274, %275 in 1 : vector<32x128xf32>, vector<32x128xf32> -> vector<32x256xf32>
    %c0_268 = arith.constant 0 : index
    %c248_269 = arith.constant 248 : index
    %277 = vector.load %arg9[%c0_268, %c248_269] : memref<32x768xf32, #tpu.memory_space<vmem>>, vector<32x128xf32>
    %c0_270 = arith.constant 0 : index
    %c632_271 = arith.constant 632 : index
    %278 = vector.load %arg9[%c0_270, %c632_271] : memref<32x768xf32, #tpu.memory_space<vmem>>, vector<32x128xf32>
    %279 = tpu.concatenate %277, %278 in 1 : vector<32x128xf32>, vector<32x128xf32> -> vector<32x256xf32>
    %c0_272 = arith.constant 0 : index
    %c256_273 = arith.constant 256 : index
    %280 = vector.load %arg9[%c0_272, %c256_273] : memref<32x768xf32, #tpu.memory_space<vmem>>, vector<32x128xf32>
    %c0_274 = arith.constant 0 : index
    %c640_275 = arith.constant 640 : index
    %281 = vector.load %arg9[%c0_274, %c640_275] : memref<32x768xf32, #tpu.memory_space<vmem>>, vector<32x128xf32>
    %282 = tpu.concatenate %280, %281 in 1 : vector<32x128xf32>, vector<32x128xf32> -> vector<32x256xf32>
    %283 = tpu.concatenate %264, %267, %270, %273, %276, %279, %282 in 0 : vector<32x256xf32>, vector<32x256xf32>, vector<32x256xf32>, vector<32x256xf32>, vector<32x256xf32>, vector<32x256xf32>, vector<32x256xf32> -> vector<224x256xf32>
    %284 = arith.truncf %283 : vector<224x256xf32> to vector<224x256xbf16>
    %285 = tpu.concatenate %284, %11 in 0 : vector<224x256xbf16>, vector<32x256xbf16> -> vector<256x256xbf16>
    %cst_276 = arith.constant dense<0.000000e+00> : vector<32x256xf32>
    %286 = tpu.matmul %259, %285, %cst_276 {dimension_numbers = #tpu.dot_dimension_numbers<[1], [0], [0], [1], [0, 0, 1, 1], [], []>} : vector<32x256xbf16>, vector<256x256xbf16>, vector<32x256xf32> -> vector<32x256xf32>
    %287 = vector.broadcast %261 : vector<32x1xf32> to vector<32x256xf32>
    %288 = arith.addf %286, %287 : vector<32x256xf32>
    %cst_277 = arith.constant 0.000000e+00 : f32
    %289 = vector.broadcast %cst_277 : f32 to vector<32x256xf32>
    %290 = arith.maximumf %288, %289 : vector<32x256xf32>
    %291 = vector.extract_strided_slice %290 {offsets = [0, 0], sizes = [32, 128], strides = [1, 1]} : vector<32x256xf32> to vector<32x128xf32>
    %c0_278 = arith.constant 0 : index
    %c256_279 = arith.constant 256 : index
    %292 = vector.load %arg10[%c0_278, %c256_279] : memref<32x768xf32, #tpu.memory_space<vmem>>, vector<32x128xf32>
    tpu.vector_store %arg10[%c0_278, %c256_279], %291 {strides = array<i32>} : memref<32x768xf32, #tpu.memory_space<vmem>>, vector<32x128xf32>,
    %293 = vector.extract_strided_slice %290 {offsets = [0, 128], sizes = [32, 128], strides = [1, 1]} : vector<32x256xf32> to vector<32x128xf32>
    %c0_280 = arith.constant 0 : index
    %c640_281 = arith.constant 640 : index
    %294 = vector.load %arg10[%c0_280, %c640_281] : memref<32x768xf32, #tpu.memory_space<vmem>>, vector<32x128xf32>
    tpu.vector_store %arg10[%c0_280, %c640_281], %293 {strides = array<i32>} : memref<32x768xf32, #tpu.memory_space<vmem>>, vector<32x128xf32>,
    %c3_282 = arith.constant 3 : index
    %c0_283 = arith.constant 0 : index
    %c0_284 = arith.constant 0 : index
    %295 = vector.load %arg4[%c3_282, %c0_283, %c0_284] : memref<6x32x256xbf16, #tpu.memory_space<vmem>>, vector<1x32x256xbf16>
    %296 = vector.shape_cast %295 : vector<1x32x256xbf16> to vector<32x256xbf16>
    %c3_285 = arith.constant 3 : index
    %c0_286 = arith.constant 0 : index
    %c0_287 = arith.constant 0 : index
    %297 = vector.load %arg5[%c3_285, %c0_286, %c0_287] : memref<6x32x1xf32, #tpu.memory_space<vmem>>, vector<1x32x1xf32>
    %298 = vector.shape_cast %297 : vector<1x32x1xf32> to vector<32x1xf32>
    %c0_288 = arith.constant 0 : index
    %c208_289 = arith.constant 208 : index
    %299 = vector.load %arg10[%c0_288, %c208_289] : memref<32x768xf32, #tpu.memory_space<vmem>>, vector<32x128xf32>
    %c0_290 = arith.constant 0 : index
    %c592_291 = arith.constant 592 : index
    %300 = vector.load %arg10[%c0_290, %c592_291] : memref<32x768xf32, #tpu.memory_space<vmem>>, vector<32x128xf32>
    %301 = tpu.concatenate %299, %300 in 1 : vector<32x128xf32>, vector<32x128xf32> -> vector<32x256xf32>
    %c0_292 = arith.constant 0 : index
    %c216_293 = arith.constant 216 : index
    %302 = vector.load %arg10[%c0_292, %c216_293] : memref<32x768xf32, #tpu.memory_space<vmem>>, vector<32x128xf32>
    %c0_294 = arith.constant 0 : index
    %c600_295 = arith.constant 600 : index
    %303 = vector.load %arg10[%c0_294, %c600_295] : memref<32x768xf32, #tpu.memory_space<vmem>>, vector<32x128xf32>
    %304 = tpu.concatenate %302, %303 in 1 : vector<32x128xf32>, vector<32x128xf32> -> vector<32x256xf32>
    %c0_296 = arith.constant 0 : index
    %c224_297 = arith.constant 224 : index
    %305 = vector.load %arg10[%c0_296, %c224_297] : memref<32x768xf32, #tpu.memory_space<vmem>>, vector<32x128xf32>
    %c0_298 = arith.constant 0 : index
    %c608_299 = arith.constant 608 : index
    %306 = vector.load %arg10[%c0_298, %c608_299] : memref<32x768xf32, #tpu.memory_space<vmem>>, vector<32x128xf32>
    %307 = tpu.concatenate %305, %306 in 1 : vector<32x128xf32>, vector<32x128xf32> -> vector<32x256xf32>
    %c0_300 = arith.constant 0 : index
    %c232_301 = arith.constant 232 : index
    %308 = vector.load %arg10[%c0_300, %c232_301] : memref<32x768xf32, #tpu.memory_space<vmem>>, vector<32x128xf32>
    %c0_302 = arith.constant 0 : index
    %c616_303 = arith.constant 616 : index
    %309 = vector.load %arg10[%c0_302, %c616_303] : memref<32x768xf32, #tpu.memory_space<vmem>>, vector<32x128xf32>
    %310 = tpu.concatenate %308, %309 in 1 : vector<32x128xf32>, vector<32x128xf32> -> vector<32x256xf32>
    %c0_304 = arith.constant 0 : index
    %c240_305 = arith.constant 240 : index
    %311 = vector.load %arg10[%c0_304, %c240_305] : memref<32x768xf32, #tpu.memory_space<vmem>>, vector<32x128xf32>
    %c0_306 = arith.constant 0 : index
    %c624_307 = arith.constant 624 : index
    %312 = vector.load %arg10[%c0_306, %c624_307] : memref<32x768xf32, #tpu.memory_space<vmem>>, vector<32x128xf32>
    %313 = tpu.concatenate %311, %312 in 1 : vector<32x128xf32>, vector<32x128xf32> -> vector<32x256xf32>
    %c0_308 = arith.constant 0 : index
    %c248_309 = arith.constant 248 : index
    %314 = vector.load %arg10[%c0_308, %c248_309] : memref<32x768xf32, #tpu.memory_space<vmem>>, vector<32x128xf32>
    %c0_310 = arith.constant 0 : index
    %c632_311 = arith.constant 632 : index
    %315 = vector.load %arg10[%c0_310, %c632_311] : memref<32x768xf32, #tpu.memory_space<vmem>>, vector<32x128xf32>
    %316 = tpu.concatenate %314, %315 in 1 : vector<32x128xf32>, vector<32x128xf32> -> vector<32x256xf32>
    %c0_312 = arith.constant 0 : index
    %c256_313 = arith.constant 256 : index
    %317 = vector.load %arg10[%c0_312, %c256_313] : memref<32x768xf32, #tpu.memory_space<vmem>>, vector<32x128xf32>
    %c0_314 = arith.constant 0 : index
    %c640_315 = arith.constant 640 : index
    %318 = vector.load %arg10[%c0_314, %c640_315] : memref<32x768xf32, #tpu.memory_space<vmem>>, vector<32x128xf32>
    %319 = tpu.concatenate %317, %318 in 1 : vector<32x128xf32>, vector<32x128xf32> -> vector<32x256xf32>
    %320 = tpu.concatenate %301, %304, %307, %310, %313, %316, %319 in 0 : vector<32x256xf32>, vector<32x256xf32>, vector<32x256xf32>, vector<32x256xf32>, vector<32x256xf32>, vector<32x256xf32>, vector<32x256xf32> -> vector<224x256xf32>
    %321 = arith.truncf %320 : vector<224x256xf32> to vector<224x256xbf16>
    %322 = tpu.concatenate %321, %11 in 0 : vector<224x256xbf16>, vector<32x256xbf16> -> vector<256x256xbf16>
    %cst_316 = arith.constant dense<0.000000e+00> : vector<32x256xf32>
    %323 = tpu.matmul %296, %322, %cst_316 {dimension_numbers = #tpu.dot_dimension_numbers<[1], [0], [0], [1], [0, 0, 1, 1], [], []>} : vector<32x256xbf16>, vector<256x256xbf16>, vector<32x256xf32> -> vector<32x256xf32>
    %324 = vector.broadcast %298 : vector<32x1xf32> to vector<32x256xf32>
    %325 = arith.addf %323, %324 : vector<32x256xf32>
    %cst_317 = arith.constant 0.000000e+00 : f32
    %326 = vector.broadcast %cst_317 : f32 to vector<32x256xf32>
    %327 = arith.maximumf %325, %326 : vector<32x256xf32>
    %c0_318 = arith.constant 0 : index
    %c256_319 = arith.constant 256 : index
    %328 = vector.load %arg9[%c0_318, %c256_319] : memref<32x768xf32, #tpu.memory_space<vmem>>, vector<32x128xf32>
    %c0_320 = arith.constant 0 : index
    %c640_321 = arith.constant 640 : index
    %329 = vector.load %arg9[%c0_320, %c640_321] : memref<32x768xf32, #tpu.memory_space<vmem>>, vector<32x128xf32>
    %330 = tpu.concatenate %328, %329 in 1 : vector<32x128xf32>, vector<32x128xf32> -> vector<32x256xf32>
    %331 = arith.addf %327, %330 : vector<32x256xf32>
    %cst_322 = arith.constant 0.000000e+00 : f32
    %332 = vector.broadcast %cst_322 : f32 to vector<32x256xf32>
    %333 = arith.maximumf %331, %332 : vector<32x256xf32>
    %334 = vector.extract_strided_slice %333 {offsets = [0, 0], sizes = [32, 128], strides = [1, 1]} : vector<32x256xf32> to vector<32x128xf32>
    %c0_323 = arith.constant 0 : index
    %c256_324 = arith.constant 256 : index
    %335 = vector.load %arg9[%c0_323, %c256_324] : memref<32x768xf32, #tpu.memory_space<vmem>>, vector<32x128xf32>
    tpu.vector_store %arg9[%c0_323, %c256_324], %334 {strides = array<i32>} : memref<32x768xf32, #tpu.memory_space<vmem>>, vector<32x128xf32>,
    %336 = vector.extract_strided_slice %333 {offsets = [0, 128], sizes = [32, 128], strides = [1, 1]} : vector<32x256xf32> to vector<32x128xf32>
    %c0_325 = arith.constant 0 : index
    %c640_326 = arith.constant 640 : index
    %337 = vector.load %arg9[%c0_325, %c640_326] : memref<32x768xf32, #tpu.memory_space<vmem>>, vector<32x128xf32>
    tpu.vector_store %arg9[%c0_325, %c640_326], %336 {strides = array<i32>} : memref<32x768xf32, #tpu.memory_space<vmem>>, vector<32x128xf32>,
    %c4 = arith.constant 4 : index
    %c0_327 = arith.constant 0 : index
    %c0_328 = arith.constant 0 : index
    %338 = vector.load %arg2[%c4, %c0_327, %c0_328] : memref<6x32x256xbf16, #tpu.memory_space<vmem>>, vector<1x32x256xbf16>
    %339 = vector.shape_cast %338 : vector<1x32x256xbf16> to vector<32x256xbf16>
    %c4_329 = arith.constant 4 : index
    %c0_330 = arith.constant 0 : index
    %c0_331 = arith.constant 0 : index
    %340 = vector.load %arg3[%c4_329, %c0_330, %c0_331] : memref<6x32x1xf32, #tpu.memory_space<vmem>>, vector<1x32x1xf32>
    %341 = vector.shape_cast %340 : vector<1x32x1xf32> to vector<32x1xf32>
    %c0_332 = arith.constant 0 : index
    %c160 = arith.constant 160 : index
    %342 = vector.load %arg9[%c0_332, %c160] : memref<32x768xf32, #tpu.memory_space<vmem>>, vector<32x128xf32>
    %c0_333 = arith.constant 0 : index
    %c544 = arith.constant 544 : index
    %343 = vector.load %arg9[%c0_333, %c544] : memref<32x768xf32, #tpu.memory_space<vmem>>, vector<32x128xf32>
    %344 = tpu.concatenate %342, %343 in 1 : vector<32x128xf32>, vector<32x128xf32> -> vector<32x256xf32>
    %c0_334 = arith.constant 0 : index
    %c176 = arith.constant 176 : index
    %345 = vector.load %arg9[%c0_334, %c176] : memref<32x768xf32, #tpu.memory_space<vmem>>, vector<32x128xf32>
    %c0_335 = arith.constant 0 : index
    %c560 = arith.constant 560 : index
    %346 = vector.load %arg9[%c0_335, %c560] : memref<32x768xf32, #tpu.memory_space<vmem>>, vector<32x128xf32>
    %347 = tpu.concatenate %345, %346 in 1 : vector<32x128xf32>, vector<32x128xf32> -> vector<32x256xf32>
    %c0_336 = arith.constant 0 : index
    %c192 = arith.constant 192 : index
    %348 = vector.load %arg9[%c0_336, %c192] : memref<32x768xf32, #tpu.memory_space<vmem>>, vector<32x128xf32>
    %c0_337 = arith.constant 0 : index
    %c576 = arith.constant 576 : index
    %349 = vector.load %arg9[%c0_337, %c576] : memref<32x768xf32, #tpu.memory_space<vmem>>, vector<32x128xf32>
    %350 = tpu.concatenate %348, %349 in 1 : vector<32x128xf32>, vector<32x128xf32> -> vector<32x256xf32>
    %c0_338 = arith.constant 0 : index
    %c208_339 = arith.constant 208 : index
    %351 = vector.load %arg9[%c0_338, %c208_339] : memref<32x768xf32, #tpu.memory_space<vmem>>, vector<32x128xf32>
    %c0_340 = arith.constant 0 : index
    %c592_341 = arith.constant 592 : index
    %352 = vector.load %arg9[%c0_340, %c592_341] : memref<32x768xf32, #tpu.memory_space<vmem>>, vector<32x128xf32>
    %353 = tpu.concatenate %351, %352 in 1 : vector<32x128xf32>, vector<32x128xf32> -> vector<32x256xf32>
    %c0_342 = arith.constant 0 : index
    %c224_343 = arith.constant 224 : index
    %354 = vector.load %arg9[%c0_342, %c224_343] : memref<32x768xf32, #tpu.memory_space<vmem>>, vector<32x128xf32>
    %c0_344 = arith.constant 0 : index
    %c608_345 = arith.constant 608 : index
    %355 = vector.load %arg9[%c0_344, %c608_345] : memref<32x768xf32, #tpu.memory_space<vmem>>, vector<32x128xf32>
    %356 = tpu.concatenate %354, %355 in 1 : vector<32x128xf32>, vector<32x128xf32> -> vector<32x256xf32>
    %c0_346 = arith.constant 0 : index
    %c240_347 = arith.constant 240 : index
    %357 = vector.load %arg9[%c0_346, %c240_347] : memref<32x768xf32, #tpu.memory_space<vmem>>, vector<32x128xf32>
    %c0_348 = arith.constant 0 : index
    %c624_349 = arith.constant 624 : index
    %358 = vector.load %arg9[%c0_348, %c624_349] : memref<32x768xf32, #tpu.memory_space<vmem>>, vector<32x128xf32>
    %359 = tpu.concatenate %357, %358 in 1 : vector<32x128xf32>, vector<32x128xf32> -> vector<32x256xf32>
    %c0_350 = arith.constant 0 : index
    %c256_351 = arith.constant 256 : index
    %360 = vector.load %arg9[%c0_350, %c256_351] : memref<32x768xf32, #tpu.memory_space<vmem>>, vector<32x128xf32>
    %c0_352 = arith.constant 0 : index
    %c640_353 = arith.constant 640 : index
    %361 = vector.load %arg9[%c0_352, %c640_353] : memref<32x768xf32, #tpu.memory_space<vmem>>, vector<32x128xf32>
    %362 = tpu.concatenate %360, %361 in 1 : vector<32x128xf32>, vector<32x128xf32> -> vector<32x256xf32>
    %363 = tpu.concatenate %344, %347, %350, %353, %356, %359, %362 in 0 : vector<32x256xf32>, vector<32x256xf32>, vector<32x256xf32>, vector<32x256xf32>, vector<32x256xf32>, vector<32x256xf32>, vector<32x256xf32> -> vector<224x256xf32>
    %364 = arith.truncf %363 : vector<224x256xf32> to vector<224x256xbf16>
    %365 = tpu.concatenate %364, %11 in 0 : vector<224x256xbf16>, vector<32x256xbf16> -> vector<256x256xbf16>
    %cst_354 = arith.constant dense<0.000000e+00> : vector<32x256xf32>
    %366 = tpu.matmul %339, %365, %cst_354 {dimension_numbers = #tpu.dot_dimension_numbers<[1], [0], [0], [1], [0, 0, 1, 1], [], []>} : vector<32x256xbf16>, vector<256x256xbf16>, vector<32x256xf32> -> vector<32x256xf32>
    %367 = vector.broadcast %341 : vector<32x1xf32> to vector<32x256xf32>
    %368 = arith.addf %366, %367 : vector<32x256xf32>
    %cst_355 = arith.constant 0.000000e+00 : f32
    %369 = vector.broadcast %cst_355 : f32 to vector<32x256xf32>
    %370 = arith.maximumf %368, %369 : vector<32x256xf32>
    %371 = vector.extract_strided_slice %370 {offsets = [0, 0], sizes = [32, 128], strides = [1, 1]} : vector<32x256xf32> to vector<32x128xf32>
    %c0_356 = arith.constant 0 : index
    %c256_357 = arith.constant 256 : index
    %372 = vector.load %arg10[%c0_356, %c256_357] : memref<32x768xf32, #tpu.memory_space<vmem>>, vector<32x128xf32>
    tpu.vector_store %arg10[%c0_356, %c256_357], %371 {strides = array<i32>} : memref<32x768xf32, #tpu.memory_space<vmem>>, vector<32x128xf32>,
    %373 = vector.extract_strided_slice %370 {offsets = [0, 128], sizes = [32, 128], strides = [1, 1]} : vector<32x256xf32> to vector<32x128xf32>
    %c0_358 = arith.constant 0 : index
    %c640_359 = arith.constant 640 : index
    %374 = vector.load %arg10[%c0_358, %c640_359] : memref<32x768xf32, #tpu.memory_space<vmem>>, vector<32x128xf32>
    tpu.vector_store %arg10[%c0_358, %c640_359], %373 {strides = array<i32>} : memref<32x768xf32, #tpu.memory_space<vmem>>, vector<32x128xf32>,
    %c4_360 = arith.constant 4 : index
    %c0_361 = arith.constant 0 : index
    %c0_362 = arith.constant 0 : index
    %375 = vector.load %arg4[%c4_360, %c0_361, %c0_362] : memref<6x32x256xbf16, #tpu.memory_space<vmem>>, vector<1x32x256xbf16>
    %376 = vector.shape_cast %375 : vector<1x32x256xbf16> to vector<32x256xbf16>
    %c4_363 = arith.constant 4 : index
    %c0_364 = arith.constant 0 : index
    %c0_365 = arith.constant 0 : index
    %377 = vector.load %arg5[%c4_363, %c0_364, %c0_365] : memref<6x32x1xf32, #tpu.memory_space<vmem>>, vector<1x32x1xf32>
    %378 = vector.shape_cast %377 : vector<1x32x1xf32> to vector<32x1xf32>
    %c0_366 = arith.constant 0 : index
    %c160_367 = arith.constant 160 : index
    %379 = vector.load %arg10[%c0_366, %c160_367] : memref<32x768xf32, #tpu.memory_space<vmem>>, vector<32x128xf32>
    %c0_368 = arith.constant 0 : index
    %c544_369 = arith.constant 544 : index
    %380 = vector.load %arg10[%c0_368, %c544_369] : memref<32x768xf32, #tpu.memory_space<vmem>>, vector<32x128xf32>
    %381 = tpu.concatenate %379, %380 in 1 : vector<32x128xf32>, vector<32x128xf32> -> vector<32x256xf32>
    %c0_370 = arith.constant 0 : index
    %c176_371 = arith.constant 176 : index
    %382 = vector.load %arg10[%c0_370, %c176_371] : memref<32x768xf32, #tpu.memory_space<vmem>>, vector<32x128xf32>
    %c0_372 = arith.constant 0 : index
    %c560_373 = arith.constant 560 : index
    %383 = vector.load %arg10[%c0_372, %c560_373] : memref<32x768xf32, #tpu.memory_space<vmem>>, vector<32x128xf32>
    %384 = tpu.concatenate %382, %383 in 1 : vector<32x128xf32>, vector<32x128xf32> -> vector<32x256xf32>
    %c0_374 = arith.constant 0 : index
    %c192_375 = arith.constant 192 : index
    %385 = vector.load %arg10[%c0_374, %c192_375] : memref<32x768xf32, #tpu.memory_space<vmem>>, vector<32x128xf32>
    %c0_376 = arith.constant 0 : index
    %c576_377 = arith.constant 576 : index
    %386 = vector.load %arg10[%c0_376, %c576_377] : memref<32x768xf32, #tpu.memory_space<vmem>>, vector<32x128xf32>
    %387 = tpu.concatenate %385, %386 in 1 : vector<32x128xf32>, vector<32x128xf32> -> vector<32x256xf32>
    %c0_378 = arith.constant 0 : index
    %c208_379 = arith.constant 208 : index
    %388 = vector.load %arg10[%c0_378, %c208_379] : memref<32x768xf32, #tpu.memory_space<vmem>>, vector<32x128xf32>
    %c0_380 = arith.constant 0 : index
    %c592_381 = arith.constant 592 : index
    %389 = vector.load %arg10[%c0_380, %c592_381] : memref<32x768xf32, #tpu.memory_space<vmem>>, vector<32x128xf32>
    %390 = tpu.concatenate %388, %389 in 1 : vector<32x128xf32>, vector<32x128xf32> -> vector<32x256xf32>
    %c0_382 = arith.constant 0 : index
    %c224_383 = arith.constant 224 : index
    %391 = vector.load %arg10[%c0_382, %c224_383] : memref<32x768xf32, #tpu.memory_space<vmem>>, vector<32x128xf32>
    %c0_384 = arith.constant 0 : index
    %c608_385 = arith.constant 608 : index
    %392 = vector.load %arg10[%c0_384, %c608_385] : memref<32x768xf32, #tpu.memory_space<vmem>>, vector<32x128xf32>
    %393 = tpu.concatenate %391, %392 in 1 : vector<32x128xf32>, vector<32x128xf32> -> vector<32x256xf32>
    %c0_386 = arith.constant 0 : index
    %c240_387 = arith.constant 240 : index
    %394 = vector.load %arg10[%c0_386, %c240_387] : memref<32x768xf32, #tpu.memory_space<vmem>>, vector<32x128xf32>
    %c0_388 = arith.constant 0 : index
    %c624_389 = arith.constant 624 : index
    %395 = vector.load %arg10[%c0_388, %c624_389] : memref<32x768xf32, #tpu.memory_space<vmem>>, vector<32x128xf32>
    %396 = tpu.concatenate %394, %395 in 1 : vector<32x128xf32>, vector<32x128xf32> -> vector<32x256xf32>
    %c0_390 = arith.constant 0 : index
    %c256_391 = arith.constant 256 : index
    %397 = vector.load %arg10[%c0_390, %c256_391] : memref<32x768xf32, #tpu.memory_space<vmem>>, vector<32x128xf32>
    %c0_392 = arith.constant 0 : index
    %c640_393 = arith.constant 640 : index
    %398 = vector.load %arg10[%c0_392, %c640_393] : memref<32x768xf32, #tpu.memory_space<vmem>>, vector<32x128xf32>
    %399 = tpu.concatenate %397, %398 in 1 : vector<32x128xf32>, vector<32x128xf32> -> vector<32x256xf32>
    %400 = tpu.concatenate %381, %384, %387, %390, %393, %396, %399 in 0 : vector<32x256xf32>, vector<32x256xf32>, vector<32x256xf32>, vector<32x256xf32>, vector<32x256xf32>, vector<32x256xf32>, vector<32x256xf32> -> vector<224x256xf32>
    %401 = arith.truncf %400 : vector<224x256xf32> to vector<224x256xbf16>
    %402 = tpu.concatenate %401, %11 in 0 : vector<224x256xbf16>, vector<32x256xbf16> -> vector<256x256xbf16>
    %cst_394 = arith.constant dense<0.000000e+00> : vector<32x256xf32>
    %403 = tpu.matmul %376, %402, %cst_394 {dimension_numbers = #tpu.dot_dimension_numbers<[1], [0], [0], [1], [0, 0, 1, 1], [], []>} : vector<32x256xbf16>, vector<256x256xbf16>, vector<32x256xf32> -> vector<32x256xf32>
    %404 = vector.broadcast %378 : vector<32x1xf32> to vector<32x256xf32>
    %405 = arith.addf %403, %404 : vector<32x256xf32>
    %cst_395 = arith.constant 0.000000e+00 : f32
    %406 = vector.broadcast %cst_395 : f32 to vector<32x256xf32>
    %407 = arith.maximumf %405, %406 : vector<32x256xf32>
    %c0_396 = arith.constant 0 : index
    %c256_397 = arith.constant 256 : index
    %408 = vector.load %arg9[%c0_396, %c256_397] : memref<32x768xf32, #tpu.memory_space<vmem>>, vector<32x128xf32>
    %c0_398 = arith.constant 0 : index
    %c640_399 = arith.constant 640 : index
    %409 = vector.load %arg9[%c0_398, %c640_399] : memref<32x768xf32, #tpu.memory_space<vmem>>, vector<32x128xf32>
    %410 = tpu.concatenate %408, %409 in 1 : vector<32x128xf32>, vector<32x128xf32> -> vector<32x256xf32>
    %411 = arith.addf %407, %410 : vector<32x256xf32>
    %cst_400 = arith.constant 0.000000e+00 : f32
    %412 = vector.broadcast %cst_400 : f32 to vector<32x256xf32>
    %413 = arith.maximumf %411, %412 : vector<32x256xf32>
    %414 = vector.extract_strided_slice %413 {offsets = [0, 0], sizes = [32, 128], strides = [1, 1]} : vector<32x256xf32> to vector<32x128xf32>
    %c0_401 = arith.constant 0 : index
    %c256_402 = arith.constant 256 : index
    %415 = vector.load %arg9[%c0_401, %c256_402] : memref<32x768xf32, #tpu.memory_space<vmem>>, vector<32x128xf32>
    tpu.vector_store %arg9[%c0_401, %c256_402], %414 {strides = array<i32>} : memref<32x768xf32, #tpu.memory_space<vmem>>, vector<32x128xf32>,
    %416 = vector.extract_strided_slice %413 {offsets = [0, 128], sizes = [32, 128], strides = [1, 1]} : vector<32x256xf32> to vector<32x128xf32>
    %c0_403 = arith.constant 0 : index
    %c640_404 = arith.constant 640 : index
    %417 = vector.load %arg9[%c0_403, %c640_404] : memref<32x768xf32, #tpu.memory_space<vmem>>, vector<32x128xf32>
    tpu.vector_store %arg9[%c0_403, %c640_404], %416 {strides = array<i32>} : memref<32x768xf32, #tpu.memory_space<vmem>>, vector<32x128xf32>,
    %c5 = arith.constant 5 : index
    %c0_405 = arith.constant 0 : index
    %c0_406 = arith.constant 0 : index
    %418 = vector.load %arg2[%c5, %c0_405, %c0_406] : memref<6x32x256xbf16, #tpu.memory_space<vmem>>, vector<1x32x256xbf16>
    %419 = vector.shape_cast %418 : vector<1x32x256xbf16> to vector<32x256xbf16>
    %c5_407 = arith.constant 5 : index
    %c0_408 = arith.constant 0 : index
    %c0_409 = arith.constant 0 : index
    %420 = vector.load %arg3[%c5_407, %c0_408, %c0_409] : memref<6x32x1xf32, #tpu.memory_space<vmem>>, vector<1x32x1xf32>
    %421 = vector.shape_cast %420 : vector<1x32x1xf32> to vector<32x1xf32>
    %c0_410 = arith.constant 0 : index
    %c64 = arith.constant 64 : index
    %422 = vector.load %arg9[%c0_410, %c64] : memref<32x768xf32, #tpu.memory_space<vmem>>, vector<32x128xf32>
    %c0_411 = arith.constant 0 : index
    %c448 = arith.constant 448 : index
    %423 = vector.load %arg9[%c0_411, %c448] : memref<32x768xf32, #tpu.memory_space<vmem>>, vector<32x128xf32>
    %424 = tpu.concatenate %422, %423 in 1 : vector<32x128xf32>, vector<32x128xf32> -> vector<32x256xf32>
    %c0_412 = arith.constant 0 : index
    %c96 = arith.constant 96 : index
    %425 = vector.load %arg9[%c0_412, %c96] : memref<32x768xf32, #tpu.memory_space<vmem>>, vector<32x128xf32>
    %c0_413 = arith.constant 0 : index
    %c480 = arith.constant 480 : index
    %426 = vector.load %arg9[%c0_413, %c480] : memref<32x768xf32, #tpu.memory_space<vmem>>, vector<32x128xf32>
    %427 = tpu.concatenate %425, %426 in 1 : vector<32x128xf32>, vector<32x128xf32> -> vector<32x256xf32>
    %c0_414 = arith.constant 0 : index
    %c128 = arith.constant 128 : index
    %428 = vector.load %arg9[%c0_414, %c128] : memref<32x768xf32, #tpu.memory_space<vmem>>, vector<32x128xf32>
    %c0_415 = arith.constant 0 : index
    %c512 = arith.constant 512 : index
    %429 = vector.load %arg9[%c0_415, %c512] : memref<32x768xf32, #tpu.memory_space<vmem>>, vector<32x128xf32>
    %430 = tpu.concatenate %428, %429 in 1 : vector<32x128xf32>, vector<32x128xf32> -> vector<32x256xf32>
    %c0_416 = arith.constant 0 : index
    %c160_417 = arith.constant 160 : index
    %431 = vector.load %arg9[%c0_416, %c160_417] : memref<32x768xf32, #tpu.memory_space<vmem>>, vector<32x128xf32>
    %c0_418 = arith.constant 0 : index
    %c544_419 = arith.constant 544 : index
    %432 = vector.load %arg9[%c0_418, %c544_419] : memref<32x768xf32, #tpu.memory_space<vmem>>, vector<32x128xf32>
    %433 = tpu.concatenate %431, %432 in 1 : vector<32x128xf32>, vector<32x128xf32> -> vector<32x256xf32>
    %c0_420 = arith.constant 0 : index
    %c192_421 = arith.constant 192 : index
    %434 = vector.load %arg9[%c0_420, %c192_421] : memref<32x768xf32, #tpu.memory_space<vmem>>, vector<32x128xf32>
    %c0_422 = arith.constant 0 : index
    %c576_423 = arith.constant 576 : index
    %435 = vector.load %arg9[%c0_422, %c576_423] : memref<32x768xf32, #tpu.memory_space<vmem>>, vector<32x128xf32>
    %436 = tpu.concatenate %434, %435 in 1 : vector<32x128xf32>, vector<32x128xf32> -> vector<32x256xf32>
    %c0_424 = arith.constant 0 : index
    %c224_425 = arith.constant 224 : index
    %437 = vector.load %arg9[%c0_424, %c224_425] : memref<32x768xf32, #tpu.memory_space<vmem>>, vector<32x128xf32>
    %c0_426 = arith.constant 0 : index
    %c608_427 = arith.constant 608 : index
    %438 = vector.load %arg9[%c0_426, %c608_427] : memref<32x768xf32, #tpu.memory_space<vmem>>, vector<32x128xf32>
    %439 = tpu.concatenate %437, %438 in 1 : vector<32x128xf32>, vector<32x128xf32> -> vector<32x256xf32>
    %c0_428 = arith.constant 0 : index
    %c256_429 = arith.constant 256 : index
    %440 = vector.load %arg9[%c0_428, %c256_429] : memref<32x768xf32, #tpu.memory_space<vmem>>, vector<32x128xf32>
    %c0_430 = arith.constant 0 : index
    %c640_431 = arith.constant 640 : index
    %441 = vector.load %arg9[%c0_430, %c640_431] : memref<32x768xf32, #tpu.memory_space<vmem>>, vector<32x128xf32>
    %442 = tpu.concatenate %440, %441 in 1 : vector<32x128xf32>, vector<32x128xf32> -> vector<32x256xf32>
    %443 = tpu.concatenate %424, %427, %430, %433, %436, %439, %442 in 0 : vector<32x256xf32>, vector<32x256xf32>, vector<32x256xf32>, vector<32x256xf32>, vector<32x256xf32>, vector<32x256xf32>, vector<32x256xf32> -> vector<224x256xf32>
    %444 = arith.truncf %443 : vector<224x256xf32> to vector<224x256xbf16>
    %445 = tpu.concatenate %444, %11 in 0 : vector<224x256xbf16>, vector<32x256xbf16> -> vector<256x256xbf16>
    %cst_432 = arith.constant dense<0.000000e+00> : vector<32x256xf32>
    %446 = tpu.matmul %419, %445, %cst_432 {dimension_numbers = #tpu.dot_dimension_numbers<[1], [0], [0], [1], [0, 0, 1, 1], [], []>} : vector<32x256xbf16>, vector<256x256xbf16>, vector<32x256xf32> -> vector<32x256xf32>
    %447 = vector.broadcast %421 : vector<32x1xf32> to vector<32x256xf32>
    %448 = arith.addf %446, %447 : vector<32x256xf32>
    %cst_433 = arith.constant 0.000000e+00 : f32
    %449 = vector.broadcast %cst_433 : f32 to vector<32x256xf32>
    %450 = arith.maximumf %448, %449 : vector<32x256xf32>
    %451 = vector.extract_strided_slice %450 {offsets = [0, 0], sizes = [32, 128], strides = [1, 1]} : vector<32x256xf32> to vector<32x128xf32>
    %c0_434 = arith.constant 0 : index
    %c256_435 = arith.constant 256 : index
    %452 = vector.load %arg10[%c0_434, %c256_435] : memref<32x768xf32, #tpu.memory_space<vmem>>, vector<32x128xf32>
    tpu.vector_store %arg10[%c0_434, %c256_435], %451 {strides = array<i32>} : memref<32x768xf32, #tpu.memory_space<vmem>>, vector<32x128xf32>,
    %453 = vector.extract_strided_slice %450 {offsets = [0, 128], sizes = [32, 128], strides = [1, 1]} : vector<32x256xf32> to vector<32x128xf32>
    %c0_436 = arith.constant 0 : index
    %c640_437 = arith.constant 640 : index
    %454 = vector.load %arg10[%c0_436, %c640_437] : memref<32x768xf32, #tpu.memory_space<vmem>>, vector<32x128xf32>
    tpu.vector_store %arg10[%c0_436, %c640_437], %453 {strides = array<i32>} : memref<32x768xf32, #tpu.memory_space<vmem>>, vector<32x128xf32>,
    %c5_438 = arith.constant 5 : index
    %c0_439 = arith.constant 0 : index
    %c0_440 = arith.constant 0 : index
    %455 = vector.load %arg4[%c5_438, %c0_439, %c0_440] : memref<6x32x256xbf16, #tpu.memory_space<vmem>>, vector<1x32x256xbf16>
    %456 = vector.shape_cast %455 : vector<1x32x256xbf16> to vector<32x256xbf16>
    %c5_441 = arith.constant 5 : index
    %c0_442 = arith.constant 0 : index
    %c0_443 = arith.constant 0 : index
    %457 = vector.load %arg5[%c5_441, %c0_442, %c0_443] : memref<6x32x1xf32, #tpu.memory_space<vmem>>, vector<1x32x1xf32>
    %458 = vector.shape_cast %457 : vector<1x32x1xf32> to vector<32x1xf32>
    %c0_444 = arith.constant 0 : index
    %c64_445 = arith.constant 64 : index
    %459 = vector.load %arg10[%c0_444, %c64_445] : memref<32x768xf32, #tpu.memory_space<vmem>>, vector<32x128xf32>
    %c0_446 = arith.constant 0 : index
    %c448_447 = arith.constant 448 : index
    %460 = vector.load %arg10[%c0_446, %c448_447] : memref<32x768xf32, #tpu.memory_space<vmem>>, vector<32x128xf32>
    %461 = tpu.concatenate %459, %460 in 1 : vector<32x128xf32>, vector<32x128xf32> -> vector<32x256xf32>
    %c0_448 = arith.constant 0 : index
    %c96_449 = arith.constant 96 : index
    %462 = vector.load %arg10[%c0_448, %c96_449] : memref<32x768xf32, #tpu.memory_space<vmem>>, vector<32x128xf32>
    %c0_450 = arith.constant 0 : index
    %c480_451 = arith.constant 480 : index
    %463 = vector.load %arg10[%c0_450, %c480_451] : memref<32x768xf32, #tpu.memory_space<vmem>>, vector<32x128xf32>
    %464 = tpu.concatenate %462, %463 in 1 : vector<32x128xf32>, vector<32x128xf32> -> vector<32x256xf32>
    %c0_452 = arith.constant 0 : index
    %c128_453 = arith.constant 128 : index
    %465 = vector.load %arg10[%c0_452, %c128_453] : memref<32x768xf32, #tpu.memory_space<vmem>>, vector<32x128xf32>
    %c0_454 = arith.constant 0 : index
    %c512_455 = arith.constant 512 : index
    %466 = vector.load %arg10[%c0_454, %c512_455] : memref<32x768xf32, #tpu.memory_space<vmem>>, vector<32x128xf32>
    %467 = tpu.concatenate %465, %466 in 1 : vector<32x128xf32>, vector<32x128xf32> -> vector<32x256xf32>
    %c0_456 = arith.constant 0 : index
    %c160_457 = arith.constant 160 : index
    %468 = vector.load %arg10[%c0_456, %c160_457] : memref<32x768xf32, #tpu.memory_space<vmem>>, vector<32x128xf32>
    %c0_458 = arith.constant 0 : index
    %c544_459 = arith.constant 544 : index
    %469 = vector.load %arg10[%c0_458, %c544_459] : memref<32x768xf32, #tpu.memory_space<vmem>>, vector<32x128xf32>
    %470 = tpu.concatenate %468, %469 in 1 : vector<32x128xf32>, vector<32x128xf32> -> vector<32x256xf32>
    %c0_460 = arith.constant 0 : index
    %c192_461 = arith.constant 192 : index
    %471 = vector.load %arg10[%c0_460, %c192_461] : memref<32x768xf32, #tpu.memory_space<vmem>>, vector<32x128xf32>
    %c0_462 = arith.constant 0 : index
    %c576_463 = arith.constant 576 : index
    %472 = vector.load %arg10[%c0_462, %c576_463] : memref<32x768xf32, #tpu.memory_space<vmem>>, vector<32x128xf32>
    %473 = tpu.concatenate %471, %472 in 1 : vector<32x128xf32>, vector<32x128xf32> -> vector<32x256xf32>
    %c0_464 = arith.constant 0 : index
    %c224_465 = arith.constant 224 : index
    %474 = vector.load %arg10[%c0_464, %c224_465] : memref<32x768xf32, #tpu.memory_space<vmem>>, vector<32x128xf32>
    %c0_466 = arith.constant 0 : index
    %c608_467 = arith.constant 608 : index
    %475 = vector.load %arg10[%c0_466, %c608_467] : memref<32x768xf32, #tpu.memory_space<vmem>>, vector<32x128xf32>
    %476 = tpu.concatenate %474, %475 in 1 : vector<32x128xf32>, vector<32x128xf32> -> vector<32x256xf32>
    %c0_468 = arith.constant 0 : index
    %c256_469 = arith.constant 256 : index
    %477 = vector.load %arg10[%c0_468, %c256_469] : memref<32x768xf32, #tpu.memory_space<vmem>>, vector<32x128xf32>
    %c0_470 = arith.constant 0 : index
    %c640_471 = arith.constant 640 : index
    %478 = vector.load %arg10[%c0_470, %c640_471] : memref<32x768xf32, #tpu.memory_space<vmem>>, vector<32x128xf32>
    %479 = tpu.concatenate %477, %478 in 1 : vector<32x128xf32>, vector<32x128xf32> -> vector<32x256xf32>
    %480 = tpu.concatenate %461, %464, %467, %470, %473, %476, %479 in 0 : vector<32x256xf32>, vector<32x256xf32>, vector<32x256xf32>, vector<32x256xf32>, vector<32x256xf32>, vector<32x256xf32>, vector<32x256xf32> -> vector<224x256xf32>
    %481 = arith.truncf %480 : vector<224x256xf32> to vector<224x256xbf16>
    %482 = tpu.concatenate %481, %11 in 0 : vector<224x256xbf16>, vector<32x256xbf16> -> vector<256x256xbf16>
    %cst_472 = arith.constant dense<0.000000e+00> : vector<32x256xf32>
    %483 = tpu.matmul %456, %482, %cst_472 {dimension_numbers = #tpu.dot_dimension_numbers<[1], [0], [0], [1], [0, 0, 1, 1], [], []>} : vector<32x256xbf16>, vector<256x256xbf16>, vector<32x256xf32> -> vector<32x256xf32>
    %484 = vector.broadcast %458 : vector<32x1xf32> to vector<32x256xf32>
    %485 = arith.addf %483, %484 : vector<32x256xf32>
    %cst_473 = arith.constant 0.000000e+00 : f32
    %486 = vector.broadcast %cst_473 : f32 to vector<32x256xf32>
    %487 = arith.maximumf %485, %486 : vector<32x256xf32>
    %c0_474 = arith.constant 0 : index
    %c256_475 = arith.constant 256 : index
    %488 = vector.load %arg9[%c0_474, %c256_475] : memref<32x768xf32, #tpu.memory_space<vmem>>, vector<32x128xf32>
    %c0_476 = arith.constant 0 : index
    %c640_477 = arith.constant 640 : index
    %489 = vector.load %arg9[%c0_476, %c640_477] : memref<32x768xf32, #tpu.memory_space<vmem>>, vector<32x128xf32>
    %490 = tpu.concatenate %488, %489 in 1 : vector<32x128xf32>, vector<32x128xf32> -> vector<32x256xf32>
    %491 = arith.addf %487, %490 : vector<32x256xf32>
    %cst_478 = arith.constant 0.000000e+00 : f32
    %492 = vector.broadcast %cst_478 : f32 to vector<32x256xf32>
    %493 = arith.maximumf %491, %492 : vector<32x256xf32>
    %494 = vector.extract_strided_slice %493 {offsets = [0, 0], sizes = [32, 128], strides = [1, 1]} : vector<32x256xf32> to vector<32x128xf32>
    %c0_479 = arith.constant 0 : index
    %c256_480 = arith.constant 256 : index
    %495 = vector.load %arg9[%c0_479, %c256_480] : memref<32x768xf32, #tpu.memory_space<vmem>>, vector<32x128xf32>
    tpu.vector_store %arg9[%c0_479, %c256_480], %494 {strides = array<i32>} : memref<32x768xf32, #tpu.memory_space<vmem>>, vector<32x128xf32>,
    %496 = vector.extract_strided_slice %493 {offsets = [0, 128], sizes = [32, 128], strides = [1, 1]} : vector<32x256xf32> to vector<32x128xf32>
    %c0_481 = arith.constant 0 : index
    %c640_482 = arith.constant 640 : index
    %497 = vector.load %arg9[%c0_481, %c640_482] : memref<32x768xf32, #tpu.memory_space<vmem>>, vector<32x128xf32>
    tpu.vector_store %arg9[%c0_481, %c640_482], %496 {strides = array<i32>} : memref<32x768xf32, #tpu.memory_space<vmem>>, vector<32x128xf32>,
    %c0_483 = arith.constant 0 : index
    %c256_484 = arith.constant 256 : index
    %498 = vector.load %arg9[%c0_483, %c256_484] : memref<32x768xf32, #tpu.memory_space<vmem>>, vector<32x128xf32>
    %c0_485 = arith.constant 0 : index
    %c0_486 = arith.constant 0 : index
    %c0_487 = arith.constant 0 : index
    %499 = vector.load %arg8[%c0_485, %c0_486, %c0_487] : memref<2x32x128xf32, #tpu.memory_space<vmem>>, vector<1x32x128xf32>
    %500 = vector.shape_cast %499 : vector<1x32x128xf32> to vector<32x128xf32>
    %501 = vector.shape_cast %498 : vector<32x128xf32> to vector<1x32x128xf32>
    tpu.vector_store %arg8[%c0_485, %c0_486, %c0_487], %501 {strides = array<i32>} : memref<2x32x128xf32, #tpu.memory_space<vmem>>, vector<1x32x128xf32>,
    %c0_488 = arith.constant 0 : index
    %c640_489 = arith.constant 640 : index
    %502 = vector.load %arg9[%c0_488, %c640_489] : memref<32x768xf32, #tpu.memory_space<vmem>>, vector<32x128xf32>
    %c1_490 = arith.constant 1 : index
    %c0_491 = arith.constant 0 : index
    %c0_492 = arith.constant 0 : index
    %503 = vector.load %arg8[%c1_490, %c0_491, %c0_492] : memref<2x32x128xf32, #tpu.memory_space<vmem>>, vector<1x32x128xf32>
    %504 = vector.shape_cast %503 : vector<1x32x128xf32> to vector<32x128xf32>
    %505 = vector.shape_cast %502 : vector<32x128xf32> to vector<1x32x128xf32>
    tpu.vector_store %arg8[%c1_490, %c0_491, %c0_492], %505 {strides = array<i32>} : memref<2x32x128xf32, #tpu.memory_space<vmem>>, vector<1x32x128xf32>,
    return
  }
  func.func @transform_0(%arg0: i32) -> (i32, i32, i32) {
    %c0_i32 = arith.constant 0 : i32
    %c0_i32_0 = arith.constant 0 : i32
    %c0_i32_1 = arith.constant 0 : i32
    return %arg0, %c0_i32, %c0_i32_0 : i32, i32, i32
  }
  func.func @transform_1(%arg0: i32) -> (i32, i32, i32) {
    %c0_i32 = arith.constant 0 : i32
    %c0_i32_0 = arith.constant 0 : i32
    %c0_i32_1 = arith.constant 0 : i32
    %c0_i32_2 = arith.constant 0 : i32
    return %c0_i32, %c0_i32_0, %c0_i32_1 : i32, i32, i32
  }
  func.func @transform_2(%arg0: i32) -> (i32, i32, i32) {
    %c0_i32 = arith.constant 0 : i32
    %c0_i32_0 = arith.constant 0 : i32
    %c0_i32_1 = arith.constant 0 : i32
    %c0_i32_2 = arith.constant 0 : i32
    return %c0_i32, %c0_i32_0, %c0_i32_1 : i32, i32, i32
  }
  func.func @transform_3(%arg0: i32) -> (i32, i32, i32) {
    %c0_i32 = arith.constant 0 : i32
    %c0_i32_0 = arith.constant 0 : i32
    %c0_i32_1 = arith.constant 0 : i32
    %c0_i32_2 = arith.constant 0 : i32
    return %c0_i32, %c0_i32_0, %c0_i32_1 : i32, i32, i32
  }
  func.func @transform_4(%arg0: i32) -> (i32, i32, i32) {
    %c0_i32 = arith.constant 0 : i32
    %c0_i32_0 = arith.constant 0 : i32
    %c0_i32_1 = arith.constant 0 : i32
    %c0_i32_2 = arith.constant 0 : i32
    return %c0_i32, %c0_i32_0, %c0_i32_1 : i32, i32, i32
  }
  func.func @transform_5(%arg0: i32) -> (i32, i32) {
    %c0_i32 = arith.constant 0 : i32
    %c0_i32_0 = arith.constant 0 : i32
    %c0_i32_1 = arith.constant 0 : i32
    return %c0_i32, %c0_i32_0 : i32, i32
  }
  func.func @transform_6(%arg0: i32) -> (i32, i32) {
    %c0_i32 = arith.constant 0 : i32
    %c0_i32_0 = arith.constant 0 : i32
    %c0_i32_1 = arith.constant 0 : i32
    return %c0_i32, %c0_i32_0 : i32, i32
  }
  func.func @transform_7(%arg0: i32) -> (i32, i32, i32) {
    %c0_i32 = arith.constant 0 : i32
    %c0_i32_0 = arith.constant 0 : i32
    %c0_i32_1 = arith.constant 0 : i32
    return %arg0, %c0_i32, %c0_i32_0 : i32, i32, i32
  }
}

</mosaic_0001>

<bundles_post_ra>
// kernel: tpu_custom_call.1
= control target key start
LH: loop header
LB: loop body
LE: loop exit
PB: predicated region body
PF: predicated region fallthrough
CT: control target
= control target key end

     0   :  { %12 = vsyncpa [#allocation5], 0  ;;  %s11930_s0 = inlined_call_operand.hbm [shape: f32[2,32,128], index: 0, kind: input, shape index: {}, may-alias: {0,7}]   ;;  %s11931_s1 = inlined_call_operand.vmem [shape: bf16[6,32,256], index: 1, kind: input, shape index: {}]   ;;  %s11932_s2 = inlined_call_operand.vmem [shape: f32[6,32,1], index: 2, kind: input, shape index: {}]   ;;  %s11933_s3 = inlined_call_operand.vmem [shape: bf16[6,32,256], index: 3, kind: input, shape index: {}]   ;;  %s11934_s4 = inlined_call_operand.vmem [shape: f32[6,32,1], index: 4, kind: input, shape index: {}]   ;;  %s11935_s5 = inlined_call_operand.vmem [shape: bf16[32,32], index: 5, kind: input, shape index: {}]   ;;  %s11936_s6 = inlined_call_operand.vmem [shape: f32[32,1], index: 6, kind: input, shape index: {}]   ;;  %s11937_s7 = inlined_call_operand.hbm [shape: f32[2,32,128], index: 7, kind: output, shape index: {}, may-alias: {0,7}]  }
   0x1   :  { %13 = vsyncpa [#allocation6], 0  ;;  %s8948_s24 = smov [#allocation4]   ;;  %s8900_s28 = scalar_lea.hbm %s11930_s0, 1024 }
   0x2   :  { %s19_s25 = sshll.u32 %s8948_s24, 4  ;;  %p8901_p0 = scmp.ne.s32.totalorder %s11930_s0, %s8900_s28  ;;  %s20_s25 = int_to_ptr.vmem [resolvable:$true] %s19_s25 }
   0x3   :  { %p8904_p1 = scmp.lt.u32.totalorder %s8900_s28, %s11930_s0 }
   0x5   :  { %p8906_p2 = pnand %p8904_p1, %p8901_p0 }
   0x7   :  { %8909 = shalt.err (!%p8906_p2)
}
   0x8   :  { %s8910_s10 = scalar_lea.vmem %s20_s25, 1024  ;;  %p8915_p4 = scmp.lt.s32.totalorder %s20_s25, %s20_s25 }
   0x9   :  { %p8911_p3 = scmp.ne.s32.totalorder %s20_s25, %s8910_s10  ;;  %p8916_p5 = scmp.lt.s32.totalorder %s8910_s10, %s8910_s10 }
   0xb   :  { %p8917_p6 = por %p8916_p5, %p8915_p4 }
   0xd   :  { %p8918_p7 = pnand %p8917_p6, %p8911_p3 }
   0xf   :  { %8921 = shalt.err (!%p8918_p7)
}
  0x10   :  { %s8949_s11 = smov 128   ;;  %s8950_s12 = smov 8  }
  0x11   :  { %25 = dma.hbm_to_vmem [thread:$0]  %s11930_s0, 1024, %s20_s25, [#allocation5], %s8949_s11, %s8949_s11, %s8950_s12  }
  0x12   :  { %8944 = dma.done.wait [#allocation5], 1024  }
  0x13   :  { %8945 = vsyncadd [#allocation5], 4294966272  ;;  %v9027_v0 = vld [vmem:[#allocation4 + $0x20] sm:$0xff]  ;;  %v9031_v2 = vld [vmem:[#allocation4 + $0x28] sm:$0xff]  ;;  %v8951_v3 = vmov 0.0   ;;  %s8952_s0 = smov 6  }
  0x14   :  { %v9029_v1 = vld [vmem:[#allocation4] sm:$0xff]  ;;  %v6064_v4 = vpack.i.bf16 %v9027_v0, %v8951_v3  ;;  %v9037_v6 = vld [vmem:[#allocation4 + $0x8] sm:$0xff]  ;;  %v9039_v7 = vld [vmem:[#allocation4 + $0x30] sm:$0xff]  ;;  %v6069_v8 = vpack.i.bf16 %v9031_v2, %v8951_v3  ;;  %s8953_s15 = smov 5   ;;  %s8954_s16 = smov 4   ;;  %v8958_v20 = vmov 0  }
  0x15   :  { %v6074_v5 = vpack.i.bf16 %v9029_v1, %v8951_v3  ;;  %v6079_v9 = vpack.i.bf16 %v9037_v6, %v8951_v3  ;;  %v9047_v10 = vld [vmem:[#allocation4 + $0x38] sm:$0xff]  ;;  %v9049_v11 = vld [vmem:[#allocation4 + $0x10] sm:$0xff]  ;;  %v6084_v12 = vpack.i.bf16 %v9039_v7, %v8951_v3  ;;  %s8955_s17 = smov 3   ;;  %s8956_s18 = smov 2   ;;  %v8828_v17 = vld [vmem:[%s11931_s1 + $0x4] ss:$8 sps:$4 sm:$0xff]   ;;  %6305 = vset.pattern.permute.xlu1 %v8958_v20  ;;  %6304 = vset.pattern.permute.xlu0 %v8958_v20 }
  0x16   :  { %6065 = vrot.lane.b32.xlu0 %v6064_v4, %s8952_s0  ;;  %v6089_v13 = vpack.i.bf16 %v9047_v10, %v8951_v3  ;;  %v9057_v14 = vld [vmem:[#allocation4 + $0x18] sm:$0xff]  ;;  %v6094_v15 = vpack.i.bf16 %v9049_v11, %v8951_v3  ;;  %s8957_s19 = smov 1   ;;  %525 = vmatprep.mubr.bf16.mxu0 %v8828_v17  ;;  %v95_v18 = vld [vmem:[%s11932_s2] sm:$0xff]  ;;  %v96_v19 = vld [vmem:[%s11932_s2 + $0x8] sm:$0xff]  ;;  %vm139_vm0 = vcmask 48128   ;;  %vm196_vm1 = vcmask 39936  }
  0x17   :  { %6075 = vrot.lane.b32.xlu1 %v6074_v5, %s8952_s0  ;;  %v6099_v16 = vpack.i.bf16 %v9057_v14, %v8951_v3  ;;  %v98_v21 = vld [vmem:[%s11932_s2 + $0x18] sm:$0xff]  ;;  %v97_v22 = vld [vmem:[%s11932_s2 + $0x10] sm:$0xff]  ;;  %vm245_vm2 = vcmask 31744   ;;  %vm294_vm3 = vcmask 23552   ;;  %vm343_vm4 = vcmask 15360   ;;  %s8959_s24 = smov 12  }
  0x18   :  { %vm392_vm5 = vcmask 7168   ;;  %vm1069_vm6 = vcmask 261120   ;;  %s8960_s25 = smov 10   ;;  %vm1203_vm7 = vcmask 97280   ;;  %vm1260_vm8 = vcmask 80896   ;;  %s8961_s14 = smov 24  }
  0x19   :  { %vm1309_vm9 = vcmask 64512   ;;  %s8962_s20 = smov 20   ;;  %s8963_s21 = smov 16   ;;  %vm2164_vm10 = vcmask 195584   ;;  %vm2221_vm11 = vcmask 162816   ;;  %vm2270_vm12 = vcmask 130048  }
  0x1a   :  { %6070 = vrot.lane.b32.xlu0 %v6069_v8, %s8952_s0  ;;  %s8964_s28 = smov 48   ;;  %s8965_s29 = smov 40   ;;  %vm3125_vm13 = vcmask 392192   ;;  %vm3182_vm14 = vcmask 326656   ;;  %vm4085_vm15 = vcmask 785408  }
  0x1b   :  { %6080 = vrot.lane.b32.xlu1 %v6079_v9, %s8952_s0  ;;  %s8966_s30 = smov 32  }
  0x1e   :  { %6085 = vrot.lane.b32.xlu0 %v6084_v12, %s8952_s0 }
  0x1f   :  { %6090 = vrot.lane.b32.xlu1 %v6089_v13, %s8952_s0 }
  0x22   :  { %6095 = vrot.lane.b32.xlu0 %v6094_v15, %s8952_s0 }
  0x23   :  { %6100 = vrot.lane.b32.xlu1 %v6099_v16, %s8952_s0 }
  0x26   :  { %6105 = vrot.lane.b32.xlu0 %v6064_v4, %s8953_s15 }
  0x27   :  { %6110 = vrot.lane.b32.xlu1 %v6069_v8, %s8953_s15 }
  0x2a   :  { %6115 = vrot.lane.b32.xlu0 %v6074_v5, %s8953_s15 }
  0x2b   :  { %6120 = vrot.lane.b32.xlu1 %v6079_v9, %s8953_s15 }
  0x2e   :  { %6125 = vrot.lane.b32.xlu0 %v6084_v12, %s8953_s15 }
  0x2f   :  { %6130 = vrot.lane.b32.xlu1 %v6089_v13, %s8953_s15 }
  0x32   :  { %6135 = vrot.lane.b32.xlu0 %v6094_v15, %s8953_s15 }
  0x33   :  { %6140 = vrot.lane.b32.xlu1 %v6099_v16, %s8953_s15 }
  0x36   :  { %6145 = vrot.lane.b32.xlu0 %v6064_v4, %s8954_s16 }
  0x37   :  { %6150 = vrot.lane.b32.xlu1 %v6069_v8, %s8954_s16 }
  0x3a   :  { %6155 = vrot.lane.b32.xlu0 %v6074_v5, %s8954_s16 }
  0x3b   :  { %6160 = vrot.lane.b32.xlu1 %v6079_v9, %s8954_s16 }
  0x3e   :  { %6165 = vrot.lane.b32.xlu0 %v6084_v12, %s8954_s16 }
  0x3f   :  { %6170 = vrot.lane.b32.xlu1 %v6089_v13, %s8954_s16 }
  0x42   :  { %6175 = vrot.lane.b32.xlu0 %v6094_v15, %s8954_s16 }
  0x43   :  { %6180 = vrot.lane.b32.xlu1 %v6099_v16, %s8954_s16 }
  0x46   :  { %6185 = vrot.lane.b32.xlu0 %v6064_v4, %s8955_s17 }
  0x47   :  { %6190 = vrot.lane.b32.xlu1 %v6069_v8, %s8955_s17 }
  0x4a   :  { %6195 = vrot.lane.b32.xlu0 %v6074_v5, %s8955_s17 }
  0x4b   :  { %6200 = vrot.lane.b32.xlu1 %v6079_v9, %s8955_s17 }
  0x4e   :  { %6205 = vrot.lane.b32.xlu0 %v6084_v12, %s8955_s17 }
  0x4f   :  { %6210 = vrot.lane.b32.xlu1 %v6089_v13, %s8955_s17 }
  0x52   :  { %6215 = vrot.lane.b32.xlu0 %v6094_v15, %s8955_s17 }
  0x53   :  { %6220 = vrot.lane.b32.xlu1 %v6099_v16, %s8955_s17 }
  0x56   :  { %6225 = vrot.lane.b32.xlu0 %v6064_v4, %s8956_s18 }
  0x57   :  { %6230 = vrot.lane.b32.xlu1 %v6069_v8, %s8956_s18 }
  0x5a   :  { %6235 = vrot.lane.b32.xlu0 %v6074_v5, %s8956_s18 }
  0x5b   :  { %6240 = vrot.lane.b32.xlu1 %v6079_v9, %s8956_s18 }
  0x5e   :  { %6245 = vrot.lane.b32.xlu0 %v6084_v12, %s8956_s18 }
  0x5f   :  { %6250 = vrot.lane.b32.xlu1 %v6089_v13, %s8956_s18 }
  0x62   :  { %6255 = vrot.lane.b32.xlu0 %v6094_v15, %s8956_s18 }
  0x63   :  { %6260 = vrot.lane.b32.xlu1 %v6099_v16, %s8956_s18 }
  0x66   :  { %6265 = vrot.lane.b32.xlu0 %v6064_v4, %s8957_s19 }
  0x67   :  { %6270 = vrot.lane.b32.xlu1 %v6069_v8, %s8957_s19 }
  0x6a   :  { %6275 = vrot.lane.b32.xlu0 %v6074_v5, %s8957_s19 }
  0x6b   :  { %6280 = vrot.lane.b32.xlu1 %v6079_v9, %s8957_s19 }
  0x6e   :  { %6285 = vrot.lane.b32.xlu0 %v6084_v12, %s8957_s19 }
  0x6f   :  { %6290 = vrot.lane.b32.xlu1 %v6089_v13, %s8957_s19 }
  0x72   :  { %6295 = vrot.lane.b32.xlu0 %v6094_v15, %s8957_s19 }
  0x73   :  { %6300 = vrot.lane.b32.xlu1 %v6099_v16, %s8957_s19 }
  0x76   :  { %455 = vperm.xlu0 %6304, %v95_v18  }
  0x77   :  { %460 = vperm.xlu1 %6305, %v96_v19  }
  0x7a   :  { %470 = vperm.xlu0 %6304, %v98_v21  }
  0x7b   :  { %465 = vperm.xlu1 %6305, %v97_v22  }
  0x88   :  { %v6066_v23 = vpop.permute.xlu0 %6065 }
  0x89   :  { %v6076_v24 = vpop.permute.xlu1 %6075  ;;  %v6068_v25 = vunpack.i.h.bf16 %v6066_v23  ;;  %v6067_v26 = vunpack.i.l.bf16 %v6066_v23 }
  0x8a   :  { %v6078_v27 = vunpack.i.h.bf16 %v6076_v24  ;;  %v6077_v28 = vunpack.i.l.bf16 %v6076_v24 }
  0x8b   :  { %v172_v35 = vsel %vm139_vm0, %v6067_v26, %v6068_v25 }
  0x8c   :  { %v6071_v29 = vpop.permute.xlu0 %6070  ;;  %v140_v37 = vsel %vm139_vm0, %v6077_v28, %v6078_v27 }
  0x8d   :  { %v6081_v30 = vpop.permute.xlu1 %6080  ;;  %v6073_v31 = vunpack.i.h.bf16 %v6071_v29  ;;  %v6072_v32 = vunpack.i.l.bf16 %v6071_v29 }
  0x8e   :  { %v6083_v33 = vunpack.i.h.bf16 %v6081_v30  ;;  %v6082_v34 = vunpack.i.l.bf16 %v6081_v30 }
  0x8f   :  { %v173_v36 = vsel %vm139_vm0, %v6072_v32, %v6073_v31 }
  0x90   :  { %v141_v38 = vsel %vm139_vm0, %v6082_v34, %v6083_v33  ;;  %v6086_v39 = vpop.permute.xlu0 %6085  ;;  %v426_v41 = vpack.c.bf16 %v173_v36, %v172_v35 }
  0x91   :  { %v6091_v40 = vpop.permute.xlu1 %6090  ;;  %v425_v42 = vpack.c.bf16 %v141_v38, %v140_v37  ;;  %v6088_v43 = vunpack.i.h.bf16 %v6086_v39  ;;  %v6087_v44 = vunpack.i.l.bf16 %v6086_v39 }
  0x92   :  { %v6093_v45 = vunpack.i.h.bf16 %v6091_v40  ;;  %v6092_v46 = vunpack.i.l.bf16 %v6091_v40  ;;  %493 = vmatprep.subr.bf16.mxu0 %v426_v41 }
  0x93   :  { %494 = vmatpush1.bf16.msra.mxu0 %v425_v42  ;;  %v174_v47 = vsel %vm139_vm0, %v6087_v44, %v6088_v43 }
  0x94   :  { %v175_v48 = vsel %vm139_vm0, %v6092_v46, %v6093_v45  ;;  %v6096_v49 = vpop.permute.xlu0 %6095 }
  0x95   :  { %v6101_v50 = vpop.permute.xlu1 %6100  ;;  %v428_v51 = vpack.c.bf16 %v175_v48, %v174_v47  ;;  %v6098_v52 = vunpack.i.h.bf16 %v6096_v49  ;;  %v6097_v53 = vunpack.i.l.bf16 %v6096_v49 }
  0x96   :  { %v6103_v54 = vunpack.i.h.bf16 %v6101_v50  ;;  %v6102_v55 = vunpack.i.l.bf16 %v6101_v50 }
  0x97   :  { %495 = vmatprep.subr.bf16.mxu0 %v428_v51  ;;  %v142_v56 = vsel %vm139_vm0, %v6097_v53, %v6098_v52 }
  0x98   :  { %v143_v57 = vsel %vm139_vm0, %v6102_v55, %v6103_v54  ;;  %v6106_v58 = vpop.permute.xlu0 %6105 }
  0x99   :  { %v6111_v59 = vpop.permute.xlu1 %6110  ;;  %v427_v60 = vpack.c.bf16 %v143_v57, %v142_v56  ;;  %v6108_v61 = vunpack.i.h.bf16 %v6106_v58  ;;  %v6107_v62 = vunpack.i.l.bf16 %v6106_v58 }
  0x9a   :  { %v6113_v63 = vunpack.i.h.bf16 %v6111_v59  ;;  %v6112_v4 = vunpack.i.l.bf16 %v6111_v59 }
  0x9b   :  { %496 = vmatpush1.bf16.msra.mxu0 %v427_v60  ;;  %v221_v5 = vsel %vm196_vm1, %v6107_v62, %v6108_v61 }
  0x9c   :  { %v222_v8 = vsel %vm196_vm1, %v6112_v4, %v6113_v63  ;;  %v6116_v9 = vpop.permute.xlu0 %6115 }
  0x9d   :  { %v6121_v12 = vpop.permute.xlu1 %6120  ;;  %v430_v13 = vpack.c.bf16 %v222_v8, %v221_v5  ;;  %v6118_v15 = vunpack.i.h.bf16 %v6116_v9  ;;  %v6117_v16 = vunpack.i.l.bf16 %v6116_v9 }
  0x9e   :  { %v6123_v17 = vunpack.i.h.bf16 %v6121_v12  ;;  %v6122_v18 = vunpack.i.l.bf16 %v6121_v12 }
  0x9f   :  { %497 = vmatprep.subr.bf16.mxu0 %v430_v13  ;;  %v197_v19 = vsel %vm196_vm1, %v6117_v16, %v6118_v15 }
  0xa0   :  { %v198_v21 = vsel %vm196_vm1, %v6122_v18, %v6123_v17  ;;  %v6126_v22 = vpop.permute.xlu0 %6125 }
  0xa1   :  { %v6131_v23 = vpop.permute.xlu1 %6130  ;;  %v429_v24 = vpack.c.bf16 %v198_v21, %v197_v19  ;;  %v6128_v25 = vunpack.i.h.bf16 %v6126_v22  ;;  %v6127_v26 = vunpack.i.l.bf16 %v6126_v22 }
  0xa2   :  { %v6133_v27 = vunpack.i.h.bf16 %v6131_v23  ;;  %v6132_v28 = vunpack.i.l.bf16 %v6131_v23 }
  0xa3   :  { %498 = vmatpush1.bf16.msra.mxu0 %v429_v24  ;;  %v223_v29 = vsel %vm196_vm1, %v6127_v26, %v6128_v25 }
  0xa4   :  { %v224_v30 = vsel %vm196_vm1, %v6132_v28, %v6133_v27  ;;  %v6136_v31 = vpop.permute.xlu0 %6135 }
  0xa5   :  { %v6141_v32 = vpop.permute.xlu1 %6140  ;;  %v432_v33 = vpack.c.bf16 %v224_v30, %v223_v29  ;;  %v6138_v34 = vunpack.i.h.bf16 %v6136_v31  ;;  %v6137_v35 = vunpack.i.l.bf16 %v6136_v31 }
  0xa6   :  { %v6143_v36 = vunpack.i.h.bf16 %v6141_v32  ;;  %v6142_v37 = vunpack.i.l.bf16 %v6141_v32 }
  0xa7   :  { %499 = vmatprep.subr.bf16.mxu0 %v432_v33  ;;  %v199_v38 = vsel %vm196_vm1, %v6137_v35, %v6138_v34 }
  0xa8   :  { %v200_v39 = vsel %vm196_vm1, %v6142_v37, %v6143_v36  ;;  %v6146_v40 = vpop.permute.xlu0 %6145 }
  0xa9   :  { %v6151_v41 = vpop.permute.xlu1 %6150  ;;  %v431_v42 = vpack.c.bf16 %v200_v39, %v199_v38  ;;  %v6148_v43 = vunpack.i.h.bf16 %v6146_v40  ;;  %v6147_v44 = vunpack.i.l.bf16 %v6146_v40 }
  0xaa   :  { %v6153_v45 = vunpack.i.h.bf16 %v6151_v41  ;;  %v6152_v46 = vunpack.i.l.bf16 %v6151_v41 }
  0xab   :  { %500 = vmatpush1.bf16.msra.mxu0 %v431_v42  ;;  %v270_v47 = vsel %vm245_vm2, %v6147_v44, %v6148_v43 }
  0xac   :  { %v271_v48 = vsel %vm245_vm2, %v6152_v46, %v6153_v45  ;;  %v6156_v49 = vpop.permute.xlu0 %6155 }
  0xad   :  { %v6161_v50 = vpop.permute.xlu1 %6160  ;;  %v434_v51 = vpack.c.bf16 %v271_v48, %v270_v47  ;;  %v6158_v52 = vunpack.i.h.bf16 %v6156_v49  ;;  %v6157_v53 = vunpack.i.l.bf16 %v6156_v49 }
  0xae   :  { %v6163_v54 = vunpack.i.h.bf16 %v6161_v50  ;;  %v6162_v55 = vunpack.i.l.bf16 %v6161_v50 }
  0xaf   :  { %501 = vmatprep.subr.bf16.mxu0 %v434_v51  ;;  %v246_v56 = vsel %vm245_vm2, %v6157_v53, %v6158_v52 }
  0xb0   :  { %v247_v57 = vsel %vm245_vm2, %v6162_v55, %v6163_v54  ;;  %v6166_v58 = vpop.permute.xlu0 %6165 }
  0xb1   :  { %v6171_v59 = vpop.permute.xlu1 %6170  ;;  %v433_v60 = vpack.c.bf16 %v247_v57, %v246_v56  ;;  %v6168_v61 = vunpack.i.h.bf16 %v6166_v58  ;;  %v6167_v62 = vunpack.i.l.bf16 %v6166_v58 }
  0xb2   :  { %v6173_v63 = vunpack.i.h.bf16 %v6171_v59  ;;  %v6172_v4 = vunpack.i.l.bf16 %v6171_v59 }
  0xb3   :  { %502 = vmatpush1.bf16.msra.mxu0 %v433_v60  ;;  %v272_v5 = vsel %vm245_vm2, %v6167_v62, %v6168_v61 }
  0xb4   :  { %v273_v8 = vsel %vm245_vm2, %v6172_v4, %v6173_v63  ;;  %v6176_v9 = vpop.permute.xlu0 %6175 }
  0xb5   :  { %v6181_v12 = vpop.permute.xlu1 %6180  ;;  %v436_v13 = vpack.c.bf16 %v273_v8, %v272_v5  ;;  %v6178_v15 = vunpack.i.h.bf16 %v6176_v9  ;;  %v6177_v16 = vunpack.i.l.bf16 %v6176_v9 }
  0xb6   :  { %v6183_v17 = vunpack.i.h.bf16 %v6181_v12  ;;  %v6182_v18 = vunpack.i.l.bf16 %v6181_v12 }
  0xb7   :  { %503 = vmatprep.subr.bf16.mxu0 %v436_v13  ;;  %v248_v19 = vsel %vm245_vm2, %v6177_v16, %v6178_v15 }
  0xb8   :  { %v249_v21 = vsel %vm245_vm2, %v6182_v18, %v6183_v17  ;;  %v6186_v22 = vpop.permute.xlu0 %6185 }
  0xb9   :  { %v6191_v23 = vpop.permute.xlu1 %6190  ;;  %v435_v24 = vpack.c.bf16 %v249_v21, %v248_v19  ;;  %v6188_v25 = vunpack.i.h.bf16 %v6186_v22  ;;  %v6187_v26 = vunpack.i.l.bf16 %v6186_v22 }
  0xba   :  { %v6193_v27 = vunpack.i.h.bf16 %v6191_v23  ;;  %v6192_v28 = vunpack.i.l.bf16 %v6191_v23 }
  0xbb   :  { %504 = vmatpush1.bf16.msra.mxu0 %v435_v24  ;;  %v319_v29 = vsel %vm294_vm3, %v6187_v26, %v6188_v25 }
  0xbc   :  { %v320_v30 = vsel %vm294_vm3, %v6192_v28, %v6193_v27  ;;  %v6196_v31 = vpop.permute.xlu0 %6195 }
  0xbd   :  { %v6201_v32 = vpop.permute.xlu1 %6200  ;;  %v438_v33 = vpack.c.bf16 %v320_v30, %v319_v29  ;;  %v6198_v34 = vunpack.i.h.bf16 %v6196_v31  ;;  %v6197_v35 = vunpack.i.l.bf16 %v6196_v31 }
  0xbe   :  { %v6203_v36 = vunpack.i.h.bf16 %v6201_v32  ;;  %v6202_v37 = vunpack.i.l.bf16 %v6201_v32 }
  0xbf   :  { %505 = vmatprep.subr.bf16.mxu0 %v438_v33  ;;  %v295_v38 = vsel %vm294_vm3, %v6197_v35, %v6198_v34 }
  0xc0   :  { %v296_v39 = vsel %vm294_vm3, %v6202_v37, %v6203_v36  ;;  %v6206_v40 = vpop.permute.xlu0 %6205 }
  0xc1   :  { %v6211_v41 = vpop.permute.xlu1 %6210  ;;  %v437_v42 = vpack.c.bf16 %v296_v39, %v295_v38  ;;  %v6208_v43 = vunpack.i.h.bf16 %v6206_v40  ;;  %v6207_v44 = vunpack.i.l.bf16 %v6206_v40 }
  0xc2   :  { %v6213_v45 = vunpack.i.h.bf16 %v6211_v41  ;;  %v6212_v46 = vunpack.i.l.bf16 %v6211_v41 }
  0xc3   :  { %506 = vmatpush1.bf16.msra.mxu0 %v437_v42  ;;  %v321_v47 = vsel %vm294_vm3, %v6207_v44, %v6208_v43 }
  0xc4   :  { %v322_v48 = vsel %vm294_vm3, %v6212_v46, %v6213_v45  ;;  %v6216_v49 = vpop.permute.xlu0 %6215 }
  0xc5   :  { %v6221_v50 = vpop.permute.xlu1 %6220  ;;  %v440_v51 = vpack.c.bf16 %v322_v48, %v321_v47  ;;  %v6218_v52 = vunpack.i.h.bf16 %v6216_v49  ;;  %v6217_v53 = vunpack.i.l.bf16 %v6216_v49 }
  0xc6   :  { %v6223_v54 = vunpack.i.h.bf16 %v6221_v50  ;;  %v6222_v55 = vunpack.i.l.bf16 %v6221_v50 }
  0xc7   :  { %507 = vmatprep.subr.bf16.mxu0 %v440_v51  ;;  %v297_v56 = vsel %vm294_vm3, %v6217_v53, %v6218_v52 }
  0xc8   :  { %v298_v57 = vsel %vm294_vm3, %v6222_v55, %v6223_v54  ;;  %v6226_v58 = vpop.permute.xlu0 %6225 }
  0xc9   :  { %v6231_v59 = vpop.permute.xlu1 %6230  ;;  %v439_v60 = vpack.c.bf16 %v298_v57, %v297_v56  ;;  %v6228_v61 = vunpack.i.h.bf16 %v6226_v58  ;;  %v6227_v62 = vunpack.i.l.bf16 %v6226_v58 }
  0xca   :  { %v6233_v63 = vunpack.i.h.bf16 %v6231_v59  ;;  %v6232_v4 = vunpack.i.l.bf16 %v6231_v59 }
  0xcb   :  { %508 = vmatpush1.bf16.msra.mxu0 %v439_v60  ;;  %v368_v5 = vsel %vm343_vm4, %v6227_v62, %v6228_v61 }
  0xcc   :  { %v369_v8 = vsel %vm343_vm4, %v6232_v4, %v6233_v63  ;;  %v6236_v9 = vpop.permute.xlu0 %6235 }
  0xcd   :  { %v6241_v12 = vpop.permute.xlu1 %6240  ;;  %v442_v13 = vpack.c.bf16 %v369_v8, %v368_v5  ;;  %v6238_v15 = vunpack.i.h.bf16 %v6236_v9  ;;  %v6237_v16 = vunpack.i.l.bf16 %v6236_v9 }
  0xce   :  { %v6243_v17 = vunpack.i.h.bf16 %v6241_v12  ;;  %v6242_v18 = vunpack.i.l.bf16 %v6241_v12 }
  0xcf   :  { %509 = vmatprep.subr.bf16.mxu0 %v442_v13  ;;  %v344_v19 = vsel %vm343_vm4, %v6237_v16, %v6238_v15 }
  0xd0   :  { %v345_v21 = vsel %vm343_vm4, %v6242_v18, %v6243_v17  ;;  %v6246_v22 = vpop.permute.xlu0 %6245 }
  0xd1   :  { %v6251_v23 = vpop.permute.xlu1 %6250  ;;  %v441_v24 = vpack.c.bf16 %v345_v21, %v344_v19  ;;  %v6248_v25 = vunpack.i.h.bf16 %v6246_v22  ;;  %v6247_v26 = vunpack.i.l.bf16 %v6246_v22  ;;  %v450_v22 = vpack.c.bf16 %v9031_v2, %v9027_v0  ;;  %v8829_v0 = vld [vmem:[%s11931_s1 + $0x14] ss:$8 sps:$4 sm:$0xff]   ;;  %v8832_v2 = vld [vmem:[%s11935_s5] sm:$0xff]  }
  0xd2   :  { %v6253_v27 = vunpack.i.h.bf16 %v6251_v23  ;;  %v6252_v28 = vunpack.i.l.bf16 %v6251_v23 }
  0xd3   :  { %510 = vmatpush1.bf16.msra.mxu0 %v441_v24  ;;  %v370_v29 = vsel %vm343_vm4, %v6247_v26, %v6248_v25  ;;  %v449_v24 = vpack.c.bf16 %v9037_v6, %v9029_v1  ;;  %v452_v25 = vpack.c.bf16 %v9047_v10, %v9039_v7  ;;  %v451_v26 = vpack.c.bf16 %v9057_v14, %v9049_v11  ;;  %v8831_v1 = vld [vmem:[%s11931_s1 + $0x10] ss:$8 sps:$4 sm:$0xff]   ;;  %v8833_v6 = vld [vmem:[%s11935_s5 + $0x8] sm:$0xff]   ;;  %s8968_s5 = smov 80  }
  0xd4   :  { %v371_v30 = vsel %vm343_vm4, %v6252_v28, %v6253_v27  ;;  %v6256_v31 = vpop.permute.xlu0 %6255  ;;  %v8826_v27 = vld [vmem:[%s11931_s1] ss:$8 sps:$4 sm:$0xff]  }
  0xd5   :  { %v6261_v32 = vpop.permute.xlu1 %6260  ;;  %v444_v33 = vpack.c.bf16 %v371_v30, %v370_v29  ;;  %v6258_v34 = vunpack.i.h.bf16 %v6256_v31  ;;  %v6257_v35 = vunpack.i.l.bf16 %v6256_v31 }
  0xd6   :  { %v6263_v36 = vunpack.i.h.bf16 %v6261_v32  ;;  %v6262_v37 = vunpack.i.l.bf16 %v6261_v32 }
  0xd7   :  { %511 = vmatprep.subr.bf16.mxu0 %v444_v33  ;;  %v346_v38 = vsel %vm343_vm4, %v6257_v35, %v6258_v34 }
  0xd8   :  { %v347_v39 = vsel %vm343_vm4, %v6262_v37, %v6263_v36  ;;  %v6266_v40 = vpop.permute.xlu0 %6265 }
  0xd9   :  { %v6271_v41 = vpop.permute.xlu1 %6270  ;;  %v443_v42 = vpack.c.bf16 %v347_v39, %v346_v38  ;;  %v6268_v43 = vunpack.i.h.bf16 %v6266_v40  ;;  %v6267_v44 = vunpack.i.l.bf16 %v6266_v40 }
  0xda   :  { %v6273_v45 = vunpack.i.h.bf16 %v6271_v41  ;;  %v6272_v46 = vunpack.i.l.bf16 %v6271_v41 }
  0xdb   :  { %512 = vmatpush1.bf16.msra.mxu0 %v443_v42  ;;  %v417_v47 = vsel %vm392_vm5, %v6267_v44, %v6268_v43 }
  0xdc   :  { %v418_v48 = vsel %vm392_vm5, %v6272_v46, %v6273_v45  ;;  %v6276_v49 = vpop.permute.xlu0 %6275 }
  0xdd   :  { %v6281_v50 = vpop.permute.xlu1 %6280  ;;  %v446_v51 = vpack.c.bf16 %v418_v48, %v417_v47  ;;  %v6278_v52 = vunpack.i.h.bf16 %v6276_v49  ;;  %v6277_v53 = vunpack.i.l.bf16 %v6276_v49 }
  0xde   :  { %v6283_v54 = vunpack.i.h.bf16 %v6281_v50  ;;  %v6282_v55 = vunpack.i.l.bf16 %v6281_v50 }
  0xdf   :  { %513 = vmatprep.subr.bf16.mxu0 %v446_v51  ;;  %v393_v56 = vsel %vm392_vm5, %v6277_v53, %v6278_v52 }
  0xe0   :  { %v394_v57 = vsel %vm392_vm5, %v6282_v55, %v6283_v54  ;;  %v6286_v58 = vpop.permute.xlu0 %6285 }
  0xe1   :  { %v6291_v59 = vpop.permute.xlu1 %6290  ;;  %v445_v60 = vpack.c.bf16 %v394_v57, %v393_v56  ;;  %v6288_v61 = vunpack.i.h.bf16 %v6286_v58  ;;  %v6287_v62 = vunpack.i.l.bf16 %v6286_v58 }
  0xe2   :  { %v6293_v63 = vunpack.i.h.bf16 %v6291_v59  ;;  %v6292_v4 = vunpack.i.l.bf16 %v6291_v59 }
  0xe3   :  { %514 = vmatpush1.bf16.msra.mxu0 %v445_v60  ;;  %v419_v5 = vsel %vm392_vm5, %v6287_v62, %v6288_v61 }
  0xe4   :  { %v420_v8 = vsel %vm392_vm5, %v6292_v4, %v6293_v63  ;;  %v6296_v9 = vpop.permute.xlu0 %6295  ;;  %v566_v63 = vld [vmem:[%s11934_s4] sm:$0xff]  ;;  %v567_v4 = vld [vmem:[%s11934_s4 + $0x8] sm:$0xff] }
  0xe5   :  { %v6301_v12 = vpop.permute.xlu1 %6300  ;;  %v448_v13 = vpack.c.bf16 %v420_v8, %v419_v5  ;;  %v6298_v15 = vunpack.i.h.bf16 %v6296_v9  ;;  %v6297_v16 = vunpack.i.l.bf16 %v6296_v9  ;;  %v8836_v5 = vld [vmem:[%s11933_s3 + $0x4] ss:$8 sps:$4 sm:$0xff]  }
  0xe6   :  { %v6303_v17 = vunpack.i.h.bf16 %v6301_v12  ;;  %v6302_v18 = vunpack.i.l.bf16 %v6301_v12  ;;  %v1035_v8 = vld [vmem:[%s11936_s6] sm:$0xff]  ;;  %990 = vmatprep.mubr.bf16.mxu1 %v8836_v5  ;;  %v1036_v9 = vld [vmem:[%s11936_s6 + $0x8] sm:$0xff] }
  0xe7   :  { %515 = vmatprep.subr.bf16.mxu0 %v448_v13  ;;  %v395_v19 = vsel %vm392_vm5, %v6297_v16, %v6298_v15  ;;  %v568_v15 = vld [vmem:[%s11934_s4 + $0x10] sm:$0xff] }
  0xe8   :  { %v396_v21 = vsel %vm392_vm5, %v6302_v18, %v6303_v17  ;;  %v569_v18 = vld [vmem:[%s11934_s4 + $0x18] sm:$0xff] }
  0xe9   :  { %v447_v23 = vpack.c.bf16 %v396_v21, %v395_v19  ;;  %v1037_v19 = vld [vmem:[%s11936_s6 + $0x10] sm:$0xff]  ;;  %v1038_v21 = vld [vmem:[%s11936_s6 + $0x18] sm:$0xff] }
  0xeb   :  { %516 = vmatpush1.bf16.msra.mxu0 %v447_v23 }
  0xec   :  { %517 = vmatprep.subr.bf16.mxu0 %v450_v22 }
  0xef   :  { %518 = vmatpush1.bf16.msra.mxu0 %v449_v24 }
  0xf0   :  { %519 = vmatprep.subr.bf16.mxu0 %v452_v25 }
  0xf3   :  { %520 = vmatpush1.bf16.msra.mxu0 %v451_v26 }
  0xf4   :  { %1076 = vmatprep.subr.bf16.mxu0 %v450_v22 }
  0xf5   :  { %v456_v7 = vpop.permute.xlu0 %455 }
  0xf6   :  { %526 = vmatmul.mubr.bf16.vlgmr.msra.gmra.mrb[0].mxu0 %v8826_v27  ;;  %v461_v28 = vpop.permute.xlu1 %460 }
  0xf7   :  { %535 = vmatprep.mubr.bf16.mxu0 %v8829_v0  ;;  %1077 = vmatpush1.bf16.msra.mxu0 %v449_v24 }
  0xf8   :  { %1078 = vmatprep.subr.bf16.mxu0 %v452_v25 }
  0xf9   :  { %v471_v38 = vpop.permute.xlu0 %470 }
  0xfa   :  { %v466_v44 = vpop.permute.xlu1 %465 }
  0xfb   :  { %1079 = vmatpush1.bf16.msra.mxu0 %v451_v26 }
  0xfe   :  { %536 = vmatmul.mubr.bf16.gmra.mrb[4].mxu0 %v8831_v1 }
  0xff   :  { %1108 = vmatprep.mubr.bf16.mxu0 %v8958_v20 }
 0x106   :  { %5918 = vmatmul.mubr.msk.bf16.vlgmr.msra.gmra.mrb[8].mxu0 %vm1069_vm6, %v8832_v2 }
 0x107   :  { %1118 = vmatprep.mubr.bf16.mxu0 %v8958_v20 }
 0x10e   :  { %5919 = vmatmul.mubr.msk.bf16.gmra.mrb[12].mxu0 %vm1069_vm6, %v8833_v6 }
 0x1c9   :  { %v527_v10 = vpop.f32.mrb[0].mxu0 }
 0x1ca   :  { %v528_v11 = vadd.f32 %v527_v10, %v456_v7  ;;  %v529_v14 = vpop.f32.mrb[1].mxu0 }
 0x1cb   :  { %v531_v29 = vpop.f32.mrb[2].mxu0  ;;  %v530_v43 = vadd.f32 %v529_v14, %v456_v7 }
 0x1cc   :  { %v546_v30 = vmax.f32 %v528_v11, 0.0  ;;  %v532_v31 = vadd.f32 %v531_v29, %v461_v28  ;;  %v533_v32 = vpop.f32.mrb[3].mxu0 }
 0x1cd   :  { %v534_v39 = vadd.f32 %v533_v32, %v461_v28  ;;  %v547_v50 = vmax.f32 %v530_v43, 0.0 }
 0x1ce   :  { %v548_v33 = vmax.f32 %v532_v31, 0.0  ;;  %v9200_v34 = vpack.i.bf16 %v546_v30, %v8951_v3 }
 0x1cf   :  { %v549_v47 = vmax.f32 %v534_v39, 0.0  ;;  %v6326_v57 = vpack.i.bf16 %v547_v50, %v8951_v3 }
 0x1d0   :  { %6307 = vrot.lane.b32.xlu1 %v9200_v34, %s8952_s0  ;;  %v9205_v20 = vpack.i.bf16 %v548_v33, %v8951_v3  ;;  %v9221_v54 = vpack.c.bf16 %v548_v33, %v546_v30 }
 0x1d1   :  { %v537_v35 = vpop.f32.mrb[4].mxu0  ;;  %v9219_v53 = vpack.c.bf16 %v549_v47, %v547_v50  ;;  %v6366_v58 = vpack.i.bf16 %v549_v47, %v8951_v3 }
 0x1d2   :  { %v539_v36 = vpop.f32.mrb[5].mxu0  ;;  %6347 = vrot.lane.b32.xlu0 %v9205_v20, %s8952_s0  ;;  %v538_v45 = vadd.f32 %v537_v35, %v466_v44 }
 0x1d3   :  { %v541_v37 = vpop.f32.mrb[6].mxu0  ;;  %v540_v46 = vadd.f32 %v539_v36, %v466_v44 }
 0x1d4   :  { %v543_v40 = vpop.f32.mrb[7].mxu0  ;;  %6312 = vrot.lane.b32.xlu1 %v9200_v34, %s8953_s15  ;;  %v542_v41 = vadd.f32 %v541_v37, %v471_v38  ;;  %v550_v51 = vmax.f32 %v538_v45, 0.0 }
 0x1d5   :  { %v544_v42 = vadd.f32 %v543_v40, %v471_v38  ;;  %v551_v52 = vmax.f32 %v540_v46, 0.0 }
 0x1d6   :  { %6352 = vrot.lane.b32.xlu0 %v9205_v20, %s8953_s15  ;;  %v552_v48 = vmax.f32 %v542_v41, 0.0  ;;  %v6386_v59 = vpack.i.bf16 %v550_v51, %v8951_v3 }
 0x1d7   :  { %v553_v49 = vmax.f32 %v544_v42, 0.0  ;;  %v6406_v61 = vpack.i.bf16 %v551_v52, %v8951_v3 }
 0x1d8   :  { %6317 = vrot.lane.b32.xlu1 %v9200_v34, %s8954_s16  ;;  %v9225_v56 = vpack.c.bf16 %v552_v48, %v550_v51  ;;  %v6431_v60 = vpack.i.bf16 %v552_v48, %v8951_v3 }
 0x1d9   :  { %v9223_v55 = vpack.c.bf16 %v553_v49, %v551_v52  ;;  %v6451_v62 = vpack.i.bf16 %v553_v49, %v8951_v3  ;;  %v9294_v12 = vpop.f32.mrb[8].mxu0 }
 0x1da   :  { %6357 = vrot.lane.b32.xlu0 %v9205_v20, %s8954_s16  ;;  %v9296_v13 = vpop.f32.mrb[9].mxu0 }
 0x1db   :  { %v9301_v16 = vpop.f32.mrb[10].mxu0 }
 0x1dc   :  { %6322 = vrot.lane.b32.xlu1 %v9200_v34, %s8955_s17  ;;  %v9303_v17 = vpop.f32.mrb[11].mxu0 }
 0x1de   :  { %6362 = vrot.lane.b32.xlu0 %v9205_v20, %s8955_s17 }
 0x1e0   :  { %6327 = vrot.lane.b32.xlu1 %v6326_v57, %s8952_s0 }
 0x1e1   :  { %v9314_v22 = vpop.f32.mrb[12].mxu0 }
 0x1e2   :  { %6367 = vrot.lane.b32.xlu0 %v6366_v58, %s8952_s0  ;;  %v9316_v23 = vpop.f32.mrb[13].mxu0 }
 0x1e3   :  { %v9318_v24 = vpop.f32.mrb[14].mxu0 }
 0x1e4   :  { %6332 = vrot.lane.b32.xlu1 %v6326_v57, %s8953_s15  ;;  %v9320_v25 = vpop.f32.mrb[15].mxu0 }
 0x1e6   :  { %6372 = vrot.lane.b32.xlu0 %v6366_v58, %s8953_s15 }
 0x1e8   :  { %6337 = vrot.lane.b32.xlu1 %v6326_v57, %s8954_s16 }
 0x1ea   :  { %6377 = vrot.lane.b32.xlu0 %v6366_v58, %s8954_s16 }
 0x1ec   :  { %6342 = vrot.lane.b32.xlu1 %v6326_v57, %s8955_s17 }
 0x1ee   :  { %6382 = vrot.lane.b32.xlu0 %v6366_v58, %s8955_s17 }
 0x1f0   :  { %6387 = vrot.lane.b32.xlu1 %v6386_v59, %s8952_s0 }
 0x1f2   :  { %6432 = vrot.lane.b32.xlu0 %v6431_v60, %s8952_s0 }
 0x1f4   :  { %6392 = vrot.lane.b32.xlu1 %v6386_v59, %s8953_s15 }
 0x1f6   :  { %6437 = vrot.lane.b32.xlu0 %v6431_v60, %s8953_s15 }
 0x1f8   :  { %6397 = vrot.lane.b32.xlu1 %v6386_v59, %s8954_s16 }
 0x1fa   :  { %6442 = vrot.lane.b32.xlu0 %v6431_v60, %s8954_s16 }
 0x1fc   :  { %6402 = vrot.lane.b32.xlu1 %v6386_v59, %s8955_s17 }
 0x1fe   :  { %6447 = vrot.lane.b32.xlu0 %v6431_v60, %s8955_s17 }
 0x200   :  { %6407 = vrot.lane.b32.xlu1 %v6406_v61, %s8952_s0 }
 0x202   :  { %6452 = vrot.lane.b32.xlu0 %v6451_v62, %s8952_s0 }
 0x204   :  { %6412 = vrot.lane.b32.xlu1 %v6326_v57, %s8956_s18 }
 0x206   :  { %6457 = vrot.lane.b32.xlu0 %v6366_v58, %s8956_s18 }
 0x208   :  { %6417 = vrot.lane.b32.xlu1 %v6406_v61, %s8953_s15 }
 0x20a   :  { %6467 = vrot.lane.b32.xlu0 %v6451_v62, %s8953_s15 }
 0x20c   :  { %6422 = vrot.lane.b32.xlu1 %v6406_v61, %s8954_s16 }
 0x20e   :  { %6472 = vrot.lane.b32.xlu0 %v9205_v20, %s8956_s18 }
 0x210   :  { %6427 = vrot.lane.b32.xlu1 %v6406_v61, %s8955_s17 }
 0x212   :  { %6487 = vrot.lane.b32.xlu0 %v6451_v62, %s8954_s16 }
 0x214   :  { %6462 = vrot.lane.b32.xlu1 %v9200_v34, %s8956_s18 }
 0x216   :  { %6492 = vrot.lane.b32.xlu0 %v6431_v60, %s8956_s18 }
 0x218   :  { %6477 = vrot.lane.b32.xlu1 %v6406_v61, %s8956_s18 }
 0x21a   :  { %6502 = vrot.lane.b32.xlu0 %v6451_v62, %s8955_s17 }
 0x21c   :  { %6482 = vrot.lane.b32.xlu1 %v6386_v59, %s8956_s18 }
 0x21e   :  { %6507 = vrot.lane.b32.xlu0 %v6366_v58, %s8957_s19 }
 0x220   :  { %6497 = vrot.lane.b32.xlu1 %v6326_v57, %s8957_s19 }
 0x222   :  { %6517 = vrot.lane.b32.xlu0 %v6451_v62, %s8956_s18 }
 0x224   :  { %6512 = vrot.lane.b32.xlu1 %v9200_v34, %s8957_s19 }
 0x226   :  { %6522 = vrot.lane.b32.xlu0 %v9205_v20, %s8957_s19 }
 0x228   :  { %6527 = vrot.lane.b32.xlu1 %v6406_v61, %s8957_s19 }
 0x22a   :  { %6537 = vrot.lane.b32.xlu0 %v6451_v62, %s8957_s19 }
 0x22c   :  { %6532 = vrot.lane.b32.xlu1 %v6386_v59, %s8957_s19 }
 0x22e   :  { %6542 = vrot.lane.b32.xlu0 %v6431_v60, %s8957_s19 }
 0x230   :  { %920 = vperm.xlu1 %6305, %v566_v63  }
 0x232   :  { %925 = vperm.xlu0 %6304, %v567_v4  }
 0x234   :  { %1041 = vperm.xlu1 %6305, %v1035_v8  }
 0x236   :  { %1046 = vperm.xlu0 %6304, %v1036_v9  }
 0x238   :  { %930 = vperm.xlu1 %6305, %v568_v15  }
 0x23a   :  { %935 = vperm.xlu0 %6304, %v569_v18  }
 0x23c   :  { %1051 = vperm.xlu1 %6305, %v1037_v19  }
 0x23e   :  { %1056 = vperm.xlu0 %6304, %v1038_v21  }
 0x242   :  { %v6308_v26 = vpop.permute.xlu1 %6307 }
 0x243   :  { %v6310_v31 = vunpack.i.h.bf16 %v6308_v26  ;;  %v6309_v32 = vunpack.i.l.bf16 %v6308_v26 }
 0x244   :  { %v6348_v27 = vpop.permute.xlu0 %6347 }
 0x245   :  { %v6350_v11 = vunpack.i.h.bf16 %v6348_v27  ;;  %v6349_v14 = vunpack.i.l.bf16 %v6348_v27  ;;  %v610_v41 = vsel %vm139_vm0, %v6309_v32, %v6310_v31 }
 0x246   :  { %v9322_v0 = vpop.permute.xlu1 %6312 }
 0x247   :  { %v611_v36 = vsel %vm139_vm0, %v6349_v14, %v6350_v11  ;;  %v6315_v27 = vunpack.i.h.bf16 %v9322_v0  ;;  %v6314_v11 = vunpack.i.l.bf16 %v9322_v0 }
 0x248   :  { %v9324_v1 = vpop.permute.xlu0 %6352  ;;  %v890_v42 = vpack.c.bf16 %v611_v36, %v610_v41 }
 0x249   :  { %v6355_v4 = vunpack.i.h.bf16 %v9324_v1  ;;  %v6354_v5 = vunpack.i.l.bf16 %v9324_v1 }
 0x24a   :  { %v9326_v2 = vpop.permute.xlu1 %6317 }
 0x24b   :  { %v667_v0 = vsel %vm196_vm1, %v6354_v5, %v6355_v4  ;;  %v6320_v36 = vunpack.i.h.bf16 %v9326_v2 }
 0x24c   :  { %v9328_v6 = vpop.permute.xlu0 %6357 }
 0x24e   :  { %v9330_v7 = vpop.permute.xlu1 %6322 }
 0x250   :  { %v9332_v10 = vpop.permute.xlu0 %6362 }
 0x252   :  { %v6328_v28 = vpop.permute.xlu1 %6327 }
 0x253   :  { %v6330_v29 = vunpack.i.h.bf16 %v6328_v28  ;;  %v6329_v30 = vunpack.i.l.bf16 %v6328_v28 }
 0x254   :  { %v6368_v33 = vpop.permute.xlu0 %6367 }
 0x255   :  { %v6370_v34 = vunpack.i.h.bf16 %v6368_v33  ;;  %v6369_v20 = vunpack.i.l.bf16 %v6368_v33  ;;  %v642_v37 = vsel %vm139_vm0, %v6329_v30, %v6330_v29 }
 0x256   :  { %v6333_v35 = vpop.permute.xlu1 %6332 }
 0x257   :  { %v643_v38 = vsel %vm139_vm0, %v6369_v20, %v6370_v34  ;;  %v6335_v15 = vunpack.i.h.bf16 %v6333_v35  ;;  %v6334_v18 = vunpack.i.l.bf16 %v6333_v35 }
 0x258   :  { %v6373_v39 = vpop.permute.xlu0 %6372  ;;  %v891_v40 = vpack.c.bf16 %v643_v38, %v642_v37 }
 0x259   :  { %v6375_v59 = vunpack.i.h.bf16 %v6373_v39  ;;  %v6374_v60 = vunpack.i.l.bf16 %v6373_v39  ;;  %v690_v35 = vsel %vm196_vm1, %v6334_v18, %v6335_v15  ;;  %v666_v39 = vsel %vm196_vm1, %v6314_v11, %v6315_v27 }
 0x25a   :  { %v9338_v43 = vpop.permute.xlu1 %6337  ;;  %958 = vmatprep.subr.bf16.mxu1 %v891_v40 }
 0x25b   :  { %959 = vmatpush1.bf16.msra.mxu1 %v890_v42  ;;  %v691_v31 = vsel %vm196_vm1, %v6374_v60, %v6375_v59  ;;  %v6319_v59 = vunpack.i.l.bf16 %v9326_v2  ;;  %v6339_v4 = vunpack.i.l.bf16 %v9338_v43 }
 0x25c   :  { %v9340_v44 = vpop.permute.xlu0 %6377  ;;  %v895_v38 = vpack.c.bf16 %v691_v31, %v690_v35 }
 0x25d   :  { %v6380_v40 = vunpack.i.h.bf16 %v9340_v44  ;;  %v6379_v41 = vunpack.i.l.bf16 %v9340_v44  ;;  %v6360_v44 = vunpack.i.h.bf16 %v9328_v6 }
 0x25e   :  { %v9342_v45 = vpop.permute.xlu1 %6342 }
 0x260   :  { %v9344_v46 = vpop.permute.xlu0 %6382 }
 0x262   :  { %v6388_v47 = vpop.permute.xlu1 %6387 }
 0x263   :  { %v6390_v19 = vunpack.i.h.bf16 %v6388_v47  ;;  %v6389_v21 = vunpack.i.l.bf16 %v6388_v47 }
 0x264   :  { %v6433_v48 = vpop.permute.xlu0 %6432 }
 0x265   :  { %v6435_v61 = vunpack.i.h.bf16 %v6433_v48  ;;  %v6434_v62 = vunpack.i.l.bf16 %v6433_v48  ;;  %v612_v20 = vsel %vm139_vm0, %v6389_v21, %v6390_v19  ;;  %v739_v21 = vsel %vm245_vm2, %v6379_v41, %v6380_v40 }
 0x266   :  { %v9346_v49 = vpop.permute.xlu1 %6392  ;;  %v6345_v40 = vunpack.i.h.bf16 %v9342_v45  ;;  %v6344_v41 = vunpack.i.l.bf16 %v9342_v45 }
 0x267   :  { %v613_v30 = vsel %vm139_vm0, %v6434_v62, %v6435_v61  ;;  %v894_v62 = vpack.c.bf16 %v667_v0, %v666_v39  ;;  %v6395_v5 = vunpack.i.h.bf16 %v9346_v49 }
 0x268   :  { %v6438_v50 = vpop.permute.xlu0 %6437  ;;  %v892_v37 = vpack.c.bf16 %v613_v30, %v612_v20 }
 0x269   :  { %v6440_v42 = vunpack.i.h.bf16 %v6438_v50  ;;  %v6439_v47 = vunpack.i.l.bf16 %v6438_v50  ;;  %v6359_v50 = vunpack.i.l.bf16 %v9328_v6  ;;  %v714_v6 = vsel %vm245_vm2, %v6319_v59, %v6320_v36 }
 0x26a   :  { %v9348_v51 = vpop.permute.xlu1 %6397  ;;  %v6364_v36 = vunpack.i.l.bf16 %v9332_v10 }
 0x26b   :  { %v669_v19 = vsel %vm196_vm1, %v6439_v47, %v6440_v42  ;;  %v6400_v42 = vunpack.i.h.bf16 %v9348_v51 }
 0x26c   :  { %v9350_v52 = vpop.permute.xlu0 %6442 }
 0x26d   :  { %v6445_v20 = vunpack.i.h.bf16 %v9350_v52  ;;  %v6444_v35 = vunpack.i.l.bf16 %v9350_v52  ;;  %v6324_v52 = vunpack.i.l.bf16 %v9330_v7 }
 0x26e   :  { %v9352_v57 = vpop.permute.xlu1 %6402 }
 0x270   :  { %v9354_v58 = vpop.permute.xlu0 %6447 }
 0x272   :  { %v6408_v63 = vpop.permute.xlu1 %6407 }
 0x273   :  { %v6410_v8 = vunpack.i.h.bf16 %v6408_v63  ;;  %v6409_v9 = vunpack.i.l.bf16 %v6408_v63  ;;  %v6340_v63 = vunpack.i.h.bf16 %v9338_v43 }
 0x274   :  { %v6453_v26 = vpop.permute.xlu0 %6452 }
 0x275   :  { %v6455_v14 = vunpack.i.h.bf16 %v6453_v26  ;;  %v6454_v28 = vunpack.i.l.bf16 %v6453_v26  ;;  %v644_v1 = vsel %vm139_vm0, %v6409_v9, %v6410_v8  ;;  %v6394_v8 = vunpack.i.l.bf16 %v9346_v49 }
 0x276   :  { %v9360_v29 = vpop.permute.xlu1 %6412 }
 0x277   :  { %v645_v32 = vsel %vm139_vm0, %v6454_v28, %v6455_v14  ;;  %v668_v11 = vsel %vm196_vm1, %v6394_v8, %v6395_v5  ;;  %v738_v14 = vsel %vm245_vm2, %v6339_v4, %v6340_v63  ;;  %v6325_v28 = vunpack.i.h.bf16 %v9330_v7 }
 0x278   :  { %v9366_v33 = vpop.permute.xlu0 %6457  ;;  %v893_v34 = vpack.c.bf16 %v645_v32, %v644_v1  ;;  %v896_v30 = vpack.c.bf16 %v669_v19, %v668_v11  ;;  %v899_v31 = vpack.c.bf16 %v739_v21, %v738_v14  ;;  %v715_v1 = vsel %vm245_vm2, %v6359_v50, %v6360_v44 }
 0x279   :  { %v6385_v32 = vunpack.i.h.bf16 %v9344_v46  ;;  %v786_v7 = vsel %vm294_vm3, %v6344_v41, %v6345_v40  ;;  %v762_v50 = vsel %vm294_vm3, %v6324_v52, %v6325_v28  ;;  %v6459_v19 = vunpack.i.l.bf16 %v9366_v33 }
 0x27a   :  { %v6418_v48 = vpop.permute.xlu1 %6417  ;;  %960 = vmatprep.subr.bf16.mxu1 %v893_v34  ;;  %v6384_v34 = vunpack.i.l.bf16 %v9344_v46  ;;  %v6399_v46 = vunpack.i.l.bf16 %v9348_v51  ;;  %v6405_v11 = vunpack.i.h.bf16 %v9352_v57  ;;  %v6404_v14 = vunpack.i.l.bf16 %v9352_v57 }
 0x27b   :  { %v6420_v60 = vunpack.i.h.bf16 %v6418_v48  ;;  %v6419_v61 = vunpack.i.l.bf16 %v6418_v48  ;;  %961 = vmatpush1.bf16.msra.mxu1 %v892_v37  ;;  %v6365_v37 = vunpack.i.h.bf16 %v9332_v10  ;;  %v717_v10 = vsel %vm245_vm2, %v6444_v35, %v6445_v20 }
 0x27c   :  { %v6468_v9 = vpop.permute.xlu0 %6467  ;;  %962 = vmatprep.subr.bf16.mxu1 %v895_v38  ;;  %v716_v5 = vsel %vm245_vm2, %v6399_v46, %v6400_v42  ;;  %v6414_v28 = vunpack.i.l.bf16 %v9360_v29 }
 0x27d   :  { %v6470_v15 = vunpack.i.h.bf16 %v6468_v9  ;;  %v6469_v2 = vunpack.i.l.bf16 %v6468_v9  ;;  %v692_v43 = vsel %vm196_vm1, %v6419_v61, %v6420_v60  ;;  %v898_v60 = vpack.c.bf16 %v715_v1, %v714_v6 }
 0x27e   :  { %v6423_v18 = vpop.permute.xlu1 %6422  ;;  %v763_v8 = vsel %vm294_vm3, %v6364_v36, %v6365_v37  ;;  %v900_v9 = vpack.c.bf16 %v717_v10, %v716_v5  ;;  %v6415_v6 = vunpack.i.h.bf16 %v9360_v29 }
 0x27f   :  { %963 = vmatpush1.bf16.msra.mxu1 %v894_v62  ;;  %v693_v26 = vsel %vm196_vm1, %v6469_v2, %v6470_v15  ;;  %v6425_v38 = vunpack.i.h.bf16 %v6423_v18  ;;  %v6424_v39 = vunpack.i.l.bf16 %v6423_v18  ;;  %v787_v62 = vsel %vm294_vm3, %v6384_v34, %v6385_v32 }
 0x280   :  { %v9386_v27 = vpop.permute.xlu0 %6472  ;;  %v897_v49 = vpack.c.bf16 %v693_v26, %v692_v43  ;;  %v903_v44 = vpack.c.bf16 %v787_v62, %v786_v7  ;;  %v6450_v15 = vunpack.i.h.bf16 %v9354_v58  ;;  %v6449_v2 = vunpack.i.l.bf16 %v9354_v58 }
 0x281   :  { %v740_v63 = vsel %vm245_vm2, %v6424_v39, %v6425_v38  ;;  %v6460_v18 = vunpack.i.h.bf16 %v9366_v33  ;;  %v6475_v35 = vunpack.i.h.bf16 %v9386_v27  ;;  %v764_v38 = vsel %vm294_vm3, %v6404_v14, %v6405_v11 }
 0x282   :  { %v6428_v0 = vpop.permute.xlu1 %6427  ;;  %964 = vmatprep.subr.bf16.mxu1 %v897_v49  ;;  %v902_v49 = vpack.c.bf16 %v763_v8, %v762_v50  ;;  %v765_v34 = vsel %vm294_vm3, %v6449_v2, %v6450_v15  ;;  %v834_v39 = vsel %vm343_vm4, %v6414_v28, %v6415_v6  ;;  %vm4191_vm1 = vcmask 523264  }
 0x283   :  { %965 = vmatpush1.bf16.msra.mxu1 %v896_v30  ;;  %v6430_v43 = vunpack.i.h.bf16 %v6428_v0  ;;  %v6429_v26 = vunpack.i.l.bf16 %v6428_v0  ;;  %v835_v20 = vsel %vm343_vm4, %v6459_v19, %v6460_v18  ;;  %v6474_v0 = vunpack.i.l.bf16 %v9386_v27 }
 0x284   :  { %v6488_v47 = vpop.permute.xlu0 %6487  ;;  %966 = vmatprep.subr.bf16.mxu1 %v899_v31  ;;  %v904_v40 = vpack.c.bf16 %v765_v34, %v764_v38  ;;  %v907_v41 = vpack.c.bf16 %v835_v20, %v834_v39 }
 0x285   :  { %v6490_v48 = vunpack.i.h.bf16 %v6488_v47  ;;  %v6489_v59 = vunpack.i.l.bf16 %v6488_v47  ;;  %v788_v57 = vsel %vm294_vm3, %v6429_v26, %v6430_v43 }
 0x286   :  { %v6463_v61 = vpop.permute.xlu1 %6462 }
 0x287   :  { %967 = vmatpush1.bf16.msra.mxu1 %v898_v60  ;;  %v741_v45 = vsel %vm245_vm2, %v6489_v59, %v6490_v48  ;;  %v6465_v58 = vunpack.i.h.bf16 %v6463_v61  ;;  %v6464_v31 = vunpack.i.l.bf16 %v6463_v61  ;;  %v811_v61 = vsel %vm343_vm4, %v6474_v0, %v6475_v35 }
 0x288   :  { %v9408_v4 = vpop.permute.xlu0 %6492  ;;  %v901_v51 = vpack.c.bf16 %v741_v45, %v740_v63 }
 0x289   :  { %v810_v42 = vsel %vm343_vm4, %v6464_v31, %v6465_v58  ;;  %v6495_v10 = vunpack.i.h.bf16 %v9408_v4  ;;  %v6494_v62 = vunpack.i.l.bf16 %v9408_v4 }
 0x28a   :  { %v6478_v21 = vpop.permute.xlu1 %6477  ;;  %968 = vmatprep.subr.bf16.mxu1 %v901_v51  ;;  %v906_v45 = vpack.c.bf16 %v811_v61, %v810_v42 }
 0x28b   :  { %969 = vmatpush1.bf16.msra.mxu1 %v900_v9  ;;  %v6480_v46 = vunpack.i.h.bf16 %v6478_v21  ;;  %v6479_v47 = vunpack.i.l.bf16 %v6478_v21  ;;  %v813_v43 = vsel %vm343_vm4, %v6494_v62, %v6495_v10 }
 0x28c   :  { %v6503_v30 = vpop.permute.xlu0 %6502  ;;  %970 = vmatprep.subr.bf16.mxu1 %v903_v44 }
 0x28d   :  { %v6505_v1 = vunpack.i.h.bf16 %v6503_v30  ;;  %v6504_v33 = vunpack.i.l.bf16 %v6503_v30  ;;  %v836_v44 = vsel %vm343_vm4, %v6479_v47, %v6480_v46  ;;  %v8834_v47 = vld [vmem:[%s11933_s3] ss:$8 sps:$4 sm:$0xff]  }
 0x28e   :  { %v6483_v32 = vpop.permute.xlu1 %6482 }
 0x28f   :  { %971 = vmatpush1.bf16.msra.mxu1 %v902_v49  ;;  %v789_v29 = vsel %vm294_vm3, %v6504_v33, %v6505_v1  ;;  %v6485_v52 = vunpack.i.h.bf16 %v6483_v32  ;;  %v6484_v48 = vunpack.i.l.bf16 %v6483_v32 }
 0x290   :  { %v6508_v37 = vpop.permute.xlu0 %6507  ;;  %v905_v36 = vpack.c.bf16 %v789_v29, %v788_v57 }
 0x291   :  { %v6510_v51 = vunpack.i.h.bf16 %v6508_v37  ;;  %v6509_v5 = vunpack.i.l.bf16 %v6508_v37  ;;  %v812_v50 = vsel %vm343_vm4, %v6484_v48, %v6485_v52  ;;  %v8837_v52 = vld [vmem:[%s11933_s3 + $0x14] ss:$8 sps:$4 sm:$0xff]  }
 0x292   :  { %v6498_v27 = vpop.permute.xlu1 %6497  ;;  %972 = vmatprep.subr.bf16.mxu1 %v905_v36  ;;  %v908_v11 = vpack.c.bf16 %v813_v43, %v812_v50 }
 0x293   :  { %v6500_v59 = vunpack.i.h.bf16 %v6498_v27  ;;  %v6499_v60 = vunpack.i.l.bf16 %v6498_v27  ;;  %973 = vmatpush1.bf16.msra.mxu1 %v904_v40  ;;  %v883_v14 = vsel %vm392_vm5, %v6509_v5, %v6510_v51 }
 0x294   :  { %v6518_v63 = vpop.permute.xlu0 %6517  ;;  %974 = vmatprep.subr.bf16.mxu1 %v907_v41 }
 0x295   :  { %v6520_v7 = vunpack.i.h.bf16 %v6518_v63  ;;  %v6519_v8 = vunpack.i.l.bf16 %v6518_v63  ;;  %v882_v19 = vsel %vm392_vm5, %v6499_v60, %v6500_v59 }
 0x296   :  { %v6513_v9 = vpop.permute.xlu1 %6512  ;;  %v911_v28 = vpack.c.bf16 %v883_v14, %v882_v19 }
 0x297   :  { %v6515_v15 = vunpack.i.h.bf16 %v6513_v9  ;;  %v6514_v2 = vunpack.i.l.bf16 %v6513_v9  ;;  %975 = vmatpush1.bf16.msra.mxu1 %v906_v45  ;;  %v837_v18 = vsel %vm343_vm4, %v6519_v8, %v6520_v7 }
 0x298   :  { %v6523_v4 = vpop.permute.xlu0 %6522  ;;  %v909_v21 = vpack.c.bf16 %v837_v18, %v836_v44 }
 0x299   :  { %v6525_v26 = vunpack.i.h.bf16 %v6523_v4  ;;  %v6524_v49 = vunpack.i.l.bf16 %v6523_v4  ;;  %v858_v31 = vsel %vm392_vm5, %v6514_v2, %v6515_v15 }
 0x29a   :  { %v6528_v6 = vpop.permute.xlu1 %6527  ;;  %976 = vmatprep.subr.bf16.mxu1 %v909_v21 }
 0x29b   :  { %v6530_v30 = vunpack.i.h.bf16 %v6528_v6  ;;  %v6529_v58 = vunpack.i.l.bf16 %v6528_v6  ;;  %977 = vmatpush1.bf16.msra.mxu1 %v908_v11  ;;  %v859_v1 = vsel %vm392_vm5, %v6524_v49, %v6525_v26 }
 0x29c   :  { %v6538_v33 = vpop.permute.xlu0 %6537  ;;  %978 = vmatprep.subr.bf16.mxu1 %v911_v28  ;;  %v910_v32 = vpack.c.bf16 %v859_v1, %v858_v31 }
 0x29d   :  { %v6540_v34 = vunpack.i.h.bf16 %v6538_v33  ;;  %v6539_v20 = vunpack.i.l.bf16 %v6538_v33  ;;  %v884_v29 = vsel %vm392_vm5, %v6529_v58, %v6530_v30 }
 0x29e   :  { %v6533_v35 = vpop.permute.xlu1 %6532 }
 0x29f   :  { %v6535_v0 = vunpack.i.h.bf16 %v6533_v35  ;;  %v6534_v57 = vunpack.i.l.bf16 %v6533_v35  ;;  %979 = vmatpush1.bf16.msra.mxu1 %v910_v32  ;;  %v885_v37 = vsel %vm392_vm5, %v6539_v20, %v6540_v34 }
 0x2a0   :  { %v6543_v36 = vpop.permute.xlu0 %6542  ;;  %v913_v38 = vpack.c.bf16 %v885_v37, %v884_v29 }
 0x2a1   :  { %v6545_v39 = vunpack.i.h.bf16 %v6543_v36  ;;  %v6544_v40 = vunpack.i.l.bf16 %v6543_v36  ;;  %v860_v41 = vsel %vm392_vm5, %v6534_v57, %v6535_v0 }
 0x2a2   :  { %980 = vmatprep.subr.bf16.mxu1 %v913_v38 }
 0x2a3   :  { %v861_v42 = vsel %vm392_vm5, %v6544_v40, %v6545_v39 }
 0x2a4   :  { %v912_v46 = vpack.c.bf16 %v861_v42, %v860_v41 }
 0x2a6   :  { %981 = vmatpush1.bf16.msra.mxu1 %v912_v46 }
 0x2a7   :  { %982 = vmatprep.subr.bf16.mxu1 %v9219_v53  ;;  %v8839_v53 = vld [vmem:[%s11933_s3 + $0x10] ss:$8 sps:$4 sm:$0xff]  }
 0x2aa   :  { %983 = vmatpush1.bf16.msra.mxu1 %v9221_v54 }
 0x2ab   :  { %984 = vmatprep.subr.bf16.mxu1 %v9223_v55 }
 0x2ae   :  { %985 = vmatpush1.bf16.msra.mxu1 %v9225_v56 }
 0x2af   :  { %v921_v54 = vpop.permute.xlu1 %920 }
 0x2b1   :  { %991 = vmatmul.mubr.bf16.vlgmr.msra.gmra.mrb[0].mxu1 %v8834_v47  ;;  %v926_v48 = vpop.permute.xlu0 %925 }
 0x2b2   :  { %1000 = vmatprep.mubr.bf16.mxu1 %v8837_v52 }
 0x2b3   :  { %v1042_v55 = vpop.permute.xlu1 %1041 }
 0x2b4   :  { %v1111_v63 = vadd.f32 %v9294_v12, %v1042_v55  ;;  %v1113_v7 = vadd.f32 %v9296_v13, %v1042_v55  ;;  %v5925_v55 = vld [vmem:[%s11932_s2 + $0x28] sm:$0xff] }
 0x2b5   :  { %v1047_v27 = vpop.permute.xlu0 %1046 }
 0x2b6   :  { %v1115_v50 = vadd.f32 %v9301_v16, %v1047_v27  ;;  %v1117_v18 = vadd.f32 %v9303_v17, %v1047_v27  ;;  %v8842_v27 = vld [vmem:[%s11931_s1 + $0x24] ss:$8 sps:$4 sm:$0xff]  }
 0x2b7   :  { %v931_v10 = vpop.permute.xlu1 %930 }
 0x2b9   :  { %1001 = vmatmul.mubr.bf16.gmra.mrb[4].mxu1 %v8839_v53  ;;  %v936_v8 = vpop.permute.xlu0 %935 }
 0x2ba   :  { %1586 = vmatprep.mubr.bf16.mxu1 %v8842_v27 }
 0x2bb   :  { %v1052_v12 = vpop.permute.xlu1 %1051 }
 0x2bc   :  { %v1121_v17 = vadd.f32 %v9314_v22, %v1052_v12  ;;  %v1123_v32 = vadd.f32 %v9316_v23, %v1052_v12 }
 0x2bd   :  { %v1057_v16 = vpop.permute.xlu0 %1056 }
 0x2be   :  { %v1125_v35 = vadd.f32 %v9318_v24, %v1057_v16  ;;  %v1127_v22 = vadd.f32 %v9320_v25, %v1057_v16 }
 0x384   :  { %v992_v59 = vpop.f32.mrb[0].mxu1 }
 0x385   :  { %v993_v60 = vadd.f32 %v992_v59, %v921_v54  ;;  %v994_v61 = vpop.f32.mrb[1].mxu1  ;;  %v5926_v59 = vld [vmem:[%s11932_s2 + $0x30] sm:$0xff] }
 0x386   :  { %v995_v56 = vadd.f32 %v994_v61, %v921_v54  ;;  %v996_v62 = vpop.f32.mrb[2].mxu1 }
 0x387   :  { %v1011_v45 = vmax.f32 %v993_v60, 0.0  ;;  %v997_v51 = vadd.f32 %v996_v62, %v926_v48  ;;  %v998_v5 = vpop.f32.mrb[3].mxu1  ;;  %v5927_v60 = vld [vmem:[%s11932_s2 + $0x38] sm:$0xff] }
 0x388   :  { %v1012_v9 = vmax.f32 %v995_v56, 0.0  ;;  %v999_v44 = vadd.f32 %v998_v5, %v926_v48  ;;  %v5924_v48 = vld [vmem:[%s11932_s2 + $0x20] sm:$0xff] }
 0x389   :  { %v1129_v15 = vadd.f32 %v1111_v63, %v1011_v45  ;;  %v1013_v2 = vmax.f32 %v997_v51, 0.0 }
 0x38a   :  { %v1130_v19 = vadd.f32 %v1113_v7, %v1012_v9  ;;  %v1014_v4 = vmax.f32 %v999_v44, 0.0 }
 0x38b   :  { %v9463_v21 = vmax.f32 %v1129_v15, 0.0  ;;  %v1131_v43 = vadd.f32 %v1115_v50, %v1013_v2 }
 0x38c   :  { %v1132_v26 = vadd.f32 %v1117_v18, %v1014_v4  ;;  %v1002_v49 = vpop.f32.mrb[4].mxu1  ;;  %v9489_v23 = vmax.f32 %v1130_v19, 0.0 }
 0x38d   :  { %v9465_v11 = vmax.f32 %v1131_v43, 0.0  ;;  %v1003_v13 = vadd.f32 %v1002_v49, %v931_v10  ;;  %v1004_v14 = vpop.f32.mrb[5].mxu1  ;;  %v9469_v6 = vpack.i.bf16 %v9463_v21, %v8951_v3 }
 0x38e   :  { %v1005_v28 = vadd.f32 %v1004_v14, %v931_v10  ;;  %v1006_v30 = vpop.f32.mrb[6].mxu1  ;;  %v9493_v24 = vmax.f32 %v1132_v26, 0.0  ;;  %v6566_v25 = vpack.i.bf16 %v9489_v23, %v8951_v3 }
 0x38f   :  { %v1015_v58 = vmax.f32 %v1003_v13, 0.0  ;;  %v1007_v31 = vadd.f32 %v1006_v30, %v936_v8  ;;  %v1008_v1 = vpop.f32.mrb[7].mxu1  ;;  %6547 = vrot.lane.b32.xlu1 %v9469_v6, %s8959_s24  ;;  %v9476_v33 = vpack.i.bf16 %v9465_v11, %v8951_v3 }
 0x390   :  { %v1016_v34 = vmax.f32 %v1005_v28, 0.0  ;;  %v1009_v20 = vadd.f32 %v1008_v1, %v936_v8  ;;  %v6606_v39 = vpack.i.bf16 %v9493_v24, %v8951_v3 }
 0x391   :  { %v1133_v0 = vadd.f32 %v1121_v17, %v1015_v58  ;;  %v1017_v57 = vmax.f32 %v1007_v31, 0.0  ;;  %6587 = vrot.lane.b32.xlu0 %v9476_v33, %s8959_s24 }
 0x392   :  { %v1134_v29 = vadd.f32 %v1123_v32, %v1016_v34  ;;  %v1018_v37 = vmax.f32 %v1009_v20, 0.0 }
 0x393   :  { %v1135_v36 = vadd.f32 %v1125_v35, %v1017_v57  ;;  %6552 = vrot.lane.b32.xlu1 %v9469_v6, %s8960_s25  ;;  %v9508_v40 = vmax.f32 %v1133_v0, 0.0 }
 0x394   :  { %v1136_v38 = vadd.f32 %v1127_v22, %v1018_v37  ;;  %v9524_v47 = vmax.f32 %v1134_v29, 0.0 }
 0x395   :  { %6592 = vrot.lane.b32.xlu0 %v9476_v33, %s8960_s25  ;;  %v9511_v41 = vmax.f32 %v1135_v36, 0.0  ;;  %v6626_v42 = vpack.i.bf16 %v9508_v40, %v8951_v3 }
 0x396   :  { %v9527_v52 = vmax.f32 %v1136_v38, 0.0  ;;  %v6646_v53 = vpack.i.bf16 %v9524_v47, %v8951_v3 }
 0x397   :  { %6557 = vrot.lane.b32.xlu1 %v9469_v6, %s8950_s12  ;;  %v6671_v46 = vpack.i.bf16 %v9511_v41, %v8951_v3 }
 0x398   :  { %v6691_v54 = vpack.i.bf16 %v9527_v52, %v8951_v3 }
 0x399   :  { %6597 = vrot.lane.b32.xlu0 %v9476_v33, %s8950_s12 }
 0x39b   :  { %6562 = vrot.lane.b32.xlu1 %v9469_v6, %s8952_s0 }
 0x39d   :  { %6602 = vrot.lane.b32.xlu0 %v9476_v33, %s8952_s0 }
 0x39f   :  { %6567 = vrot.lane.b32.xlu1 %v6566_v25, %s8959_s24 }
 0x3a1   :  { %6607 = vrot.lane.b32.xlu0 %v6606_v39, %s8959_s24 }
 0x3a3   :  { %6572 = vrot.lane.b32.xlu1 %v6566_v25, %s8960_s25 }
 0x3a5   :  { %6612 = vrot.lane.b32.xlu0 %v6606_v39, %s8960_s25 }
 0x3a7   :  { %6577 = vrot.lane.b32.xlu1 %v6566_v25, %s8950_s12 }
 0x3a9   :  { %6617 = vrot.lane.b32.xlu0 %v6606_v39, %s8950_s12 }
 0x3ab   :  { %6582 = vrot.lane.b32.xlu1 %v6566_v25, %s8952_s0 }
 0x3ad   :  { %6622 = vrot.lane.b32.xlu0 %v6606_v39, %s8952_s0 }
 0x3af   :  { %6627 = vrot.lane.b32.xlu1 %v6626_v42, %s8959_s24 }
 0x3b1   :  { %6672 = vrot.lane.b32.xlu0 %v6671_v46, %s8959_s24 }
 0x3b3   :  { %6632 = vrot.lane.b32.xlu1 %v6626_v42, %s8960_s25 }
 0x3b5   :  { %6677 = vrot.lane.b32.xlu0 %v6671_v46, %s8960_s25 }
 0x3b7   :  { %6637 = vrot.lane.b32.xlu1 %v6626_v42, %s8950_s12 }
 0x3b9   :  { %6682 = vrot.lane.b32.xlu0 %v6671_v46, %s8950_s12 }
 0x3bb   :  { %6642 = vrot.lane.b32.xlu1 %v6626_v42, %s8952_s0 }
 0x3bd   :  { %6687 = vrot.lane.b32.xlu0 %v6671_v46, %s8952_s0 }
 0x3bf   :  { %6647 = vrot.lane.b32.xlu1 %v6646_v53, %s8959_s24 }
 0x3c1   :  { %6692 = vrot.lane.b32.xlu0 %v6691_v54, %s8959_s24 }
 0x3c3   :  { %6652 = vrot.lane.b32.xlu1 %v6566_v25, %s8954_s16 }
 0x3c5   :  { %6697 = vrot.lane.b32.xlu0 %v6606_v39, %s8954_s16 }
 0x3c7   :  { %6657 = vrot.lane.b32.xlu1 %v6646_v53, %s8960_s25 }
 0x3c9   :  { %6707 = vrot.lane.b32.xlu0 %v6691_v54, %s8960_s25 }
 0x3cb   :  { %6662 = vrot.lane.b32.xlu1 %v6646_v53, %s8950_s12 }
 0x3cd   :  { %6712 = vrot.lane.b32.xlu0 %v9476_v33, %s8954_s16 }
 0x3cf   :  { %6667 = vrot.lane.b32.xlu1 %v6646_v53, %s8952_s0 }
 0x3d1   :  { %6727 = vrot.lane.b32.xlu0 %v6691_v54, %s8950_s12 }
 0x3d3   :  { %6702 = vrot.lane.b32.xlu1 %v9469_v6, %s8954_s16 }
 0x3d5   :  { %6732 = vrot.lane.b32.xlu0 %v6671_v46, %s8954_s16 }
 0x3d7   :  { %6717 = vrot.lane.b32.xlu1 %v6646_v53, %s8954_s16 }
 0x3d9   :  { %6742 = vrot.lane.b32.xlu0 %v6691_v54, %s8952_s0 }
 0x3db   :  { %6722 = vrot.lane.b32.xlu1 %v6626_v42, %s8954_s16 }
 0x3dd   :  { %6747 = vrot.lane.b32.xlu0 %v6606_v39, %s8956_s18 }
 0x3df   :  { %6737 = vrot.lane.b32.xlu1 %v6566_v25, %s8956_s18 }
 0x3e1   :  { %6757 = vrot.lane.b32.xlu0 %v6691_v54, %s8954_s16 }
 0x3e3   :  { %6752 = vrot.lane.b32.xlu1 %v9469_v6, %s8956_s18 }
 0x3e5   :  { %6762 = vrot.lane.b32.xlu0 %v9476_v33, %s8956_s18 }
 0x3e7   :  { %6767 = vrot.lane.b32.xlu1 %v6646_v53, %s8956_s18 }
 0x3e9   :  { %6777 = vrot.lane.b32.xlu0 %v6691_v54, %s8956_s18 }
 0x3eb   :  { %6772 = vrot.lane.b32.xlu1 %v6626_v42, %s8956_s18 }
 0x3ed   :  { %6782 = vrot.lane.b32.xlu0 %v6671_v46, %s8956_s18 }
 0x3ef   :  { %1516 = vperm.xlu1 %6305, %v5924_v48  }
 0x3f1   :  { %1521 = vperm.xlu0 %6304, %v5925_v55  }
 0x3f3   :  { %1526 = vperm.xlu1 %6305, %v5926_v59  }
 0x3f5   :  { %1531 = vperm.xlu0 %6304, %v5927_v60  }
 0x401   :  { %v6548_v61 = vpop.permute.xlu1 %6547 }
 0x402   :  { %v6550_v15 = vunpack.i.h.bf16 %v6548_v61  ;;  %v6549_v2 = vunpack.i.l.bf16 %v6548_v61 }
 0x403   :  { %v6588_v10 = vpop.permute.xlu0 %6587 }
 0x404   :  { %v6590_v7 = vunpack.i.h.bf16 %v6588_v10  ;;  %v6589_v8 = vunpack.i.l.bf16 %v6588_v10  ;;  %v1204_v13 = vsel %vm1203_vm7, %v6549_v2, %v6550_v15 }
 0x405   :  { %v9578_v56 = vpop.permute.xlu1 %6552 }
 0x406   :  { %v1205_v43 = vsel %vm1203_vm7, %v6589_v8, %v6590_v7  ;;  %v6555_v27 = vunpack.i.h.bf16 %v9578_v56  ;;  %v6554_v59 = vunpack.i.l.bf16 %v9578_v56 }
 0x407   :  { %v9580_v62 = vpop.permute.xlu0 %6592  ;;  %v1486_v16 = vpack.c.bf16 %v1205_v43, %v1204_v13 }
 0x408   :  { %v6595_v38 = vunpack.i.h.bf16 %v9580_v62  ;;  %v6594_v25 = vunpack.i.l.bf16 %v9580_v62 }
 0x409   :  { %v9582_v63 = vpop.permute.xlu1 %6557 }
 0x40b   :  { %v9584_v45 = vpop.permute.xlu0 %6597 }
 0x40d   :  { %v9586_v51 = vpop.permute.xlu1 %6562 }
 0x40f   :  { %v9588_v5 = vpop.permute.xlu0 %6602 }
 0x411   :  { %v6568_v9 = vpop.permute.xlu1 %6567 }
 0x412   :  { %v6570_v44 = vunpack.i.h.bf16 %v6568_v9  ;;  %v6569_v50 = vunpack.i.l.bf16 %v6568_v9 }
 0x413   :  { %v6608_v18 = vpop.permute.xlu0 %6607 }
 0x414   :  { %v6610_v19 = vunpack.i.h.bf16 %v6608_v18  ;;  %v6609_v4 = vunpack.i.l.bf16 %v6608_v18  ;;  %v1236_v26 = vsel %vm1203_vm7, %v6569_v50, %v6570_v44  ;;  %v1262_v44 = vsel %vm1260_vm8, %v6594_v25, %v6595_v38 }
 0x415   :  { %v6573_v12 = vpop.permute.xlu1 %6572  ;;  %v1261_v18 = vsel %vm1260_vm8, %v6554_v59, %v6555_v27  ;;  %v6565_v27 = vunpack.i.h.bf16 %v9586_v51 }
 0x416   :  { %v1237_v49 = vsel %vm1203_vm7, %v6609_v4, %v6610_v19  ;;  %v6575_v46 = vunpack.i.h.bf16 %v6573_v12  ;;  %v6574_v53 = vunpack.i.l.bf16 %v6573_v12  ;;  %v6560_v19 = vunpack.i.h.bf16 %v9582_v63 }
 0x417   :  { %v6613_v14 = vpop.permute.xlu0 %6612  ;;  %v1487_v6 = vpack.c.bf16 %v1237_v49, %v1236_v26 }
 0x418   :  { %v6615_v57 = vunpack.i.h.bf16 %v6613_v14  ;;  %v6614_v22 = vunpack.i.l.bf16 %v6613_v14  ;;  %v1285_v2 = vsel %vm1260_vm8, %v6574_v53, %v6575_v46 }
 0x419   :  { %v9594_v28 = vpop.permute.xlu1 %6577  ;;  %1554 = vmatprep.subr.bf16.mxu1 %v1487_v6  ;;  %v6559_v6 = vunpack.i.l.bf16 %v9582_v63 }
 0x41a   :  { %1555 = vmatpush1.bf16.msra.mxu1 %v1486_v16  ;;  %v1286_v8 = vsel %vm1260_vm8, %v6614_v22, %v6615_v57  ;;  %v6580_v57 = vunpack.i.h.bf16 %v9594_v28  ;;  %v6579_v22 = vunpack.i.l.bf16 %v9594_v28 }
 0x41b   :  { %v9596_v30 = vpop.permute.xlu0 %6617  ;;  %v1491_v43 = vpack.c.bf16 %v1286_v8, %v1285_v2 }
 0x41c   :  { %v6620_v12 = vunpack.i.h.bf16 %v9596_v30  ;;  %v6619_v26 = vunpack.i.l.bf16 %v9596_v30  ;;  %v6600_v30 = vunpack.i.h.bf16 %v9584_v45 }
 0x41d   :  { %v9598_v17 = vpop.permute.xlu1 %6582 }
 0x41f   :  { %v9600_v58 = vpop.permute.xlu0 %6622 }
 0x421   :  { %v6628_v31 = vpop.permute.xlu1 %6627 }
 0x422   :  { %v6630_v54 = vunpack.i.h.bf16 %v6628_v31  ;;  %v6629_v48 = vunpack.i.l.bf16 %v6628_v31 }
 0x423   :  { %v6673_v1 = vpop.permute.xlu0 %6672 }
 0x424   :  { %v6675_v29 = vunpack.i.h.bf16 %v6673_v1  ;;  %v6674_v37 = vunpack.i.l.bf16 %v6673_v1  ;;  %v1206_v50 = vsel %vm1203_vm7, %v6629_v48, %v6630_v54  ;;  %v1490_v1 = vpack.c.bf16 %v1262_v44, %v1261_v18 }
 0x425   :  { %v9602_v33 = vpop.permute.xlu1 %6632  ;;  %v6605_v44 = vunpack.i.h.bf16 %v9588_v5  ;;  %v6585_v18 = vunpack.i.h.bf16 %v9598_v17 }
 0x426   :  { %v1207_v10 = vsel %vm1203_vm7, %v6674_v37, %v6675_v29  ;;  %v6635_v29 = vunpack.i.h.bf16 %v9602_v33  ;;  %v6634_v37 = vunpack.i.l.bf16 %v9602_v33  ;;  %v1310_v33 = vsel %vm1309_vm9, %v6559_v6, %v6560_v19 }
 0x427   :  { %v6678_v32 = vpop.permute.xlu0 %6677  ;;  %v1488_v4 = vpack.c.bf16 %v1207_v10, %v1206_v50  ;;  %v6624_v10 = vunpack.i.l.bf16 %v9600_v58  ;;  %v6604_v50 = vunpack.i.l.bf16 %v9588_v5  ;;  %v6584_v19 = vunpack.i.l.bf16 %v9598_v17 }
 0x428   :  { %v6680_v49 = vunpack.i.h.bf16 %v6678_v32  ;;  %v6679_v13 = vunpack.i.l.bf16 %v6678_v32  ;;  %v6599_v32 = vunpack.i.l.bf16 %v9584_v45  ;;  %v1263_v53 = vsel %vm1260_vm8, %v6634_v37, %v6635_v29 }
 0x429   :  { %v9604_v34 = vpop.permute.xlu1 %6637  ;;  %v1334_v45 = vsel %vm1309_vm9, %v6579_v22, %v6580_v57 }
 0x42a   :  { %v1264_v25 = vsel %vm1260_vm8, %v6679_v13, %v6680_v49 }
 0x42b   :  { %v9606_v20 = vpop.permute.xlu0 %6682  ;;  %v1492_v59 = vpack.c.bf16 %v1264_v25, %v1263_v53 }
 0x42c   :  { %v6685_v8 = vunpack.i.h.bf16 %v9606_v20 }
 0x42d   :  { %v9608_v35 = vpop.permute.xlu1 %6642 }
 0x42f   :  { %v9610_v0 = vpop.permute.xlu0 %6687 }
 0x430   :  { %v6690_v37 = vunpack.i.h.bf16 %v9610_v0 }
 0x431   :  { %v6648_v36 = vpop.permute.xlu1 %6647 }
 0x432   :  { %v6650_v39 = vunpack.i.h.bf16 %v6648_v36  ;;  %v6649_v42 = vunpack.i.l.bf16 %v6648_v36 }
 0x433   :  { %v6693_v55 = vpop.permute.xlu0 %6692 }
 0x434   :  { %v6695_v60 = vunpack.i.h.bf16 %v6693_v55  ;;  %v6694_v61 = vunpack.i.l.bf16 %v6693_v55  ;;  %v1238_v62 = vsel %vm1203_vm7, %v6649_v42, %v6650_v39  ;;  %v1335_v42 = vsel %vm1309_vm9, %v6619_v26, %v6620_v12 }
 0x435   :  { %v9617_v7 = vpop.permute.xlu1 %6652  ;;  %v1311_v55 = vsel %vm1309_vm9, %v6599_v32, %v6600_v30 }
 0x436   :  { %v1239_v9 = vsel %vm1203_vm7, %v6694_v61, %v6695_v60  ;;  %v1495_v60 = vpack.c.bf16 %v1335_v42, %v1334_v45  ;;  %v6625_v61 = vunpack.i.h.bf16 %v9600_v58  ;;  %v6639_v58 = vunpack.i.l.bf16 %v9604_v34 }
 0x437   :  { %v9624_v15 = vpop.permute.xlu0 %6697  ;;  %v1489_v56 = vpack.c.bf16 %v1239_v9, %v1238_v62  ;;  %v6684_v62 = vunpack.i.l.bf16 %v9606_v20  ;;  %v6564_v20 = vunpack.i.l.bf16 %v9586_v51  ;;  %v1494_v49 = vpack.c.bf16 %v1311_v55, %v1310_v33 }
 0x438   :  { %v6700_v30 = vunpack.i.h.bf16 %v9624_v15  ;;  %v6699_v32 = vunpack.i.l.bf16 %v9624_v15  ;;  %v6645_v42 = vunpack.i.h.bf16 %v9608_v35  ;;  %v6654_v33 = vunpack.i.l.bf16 %v9617_v7 }
 0x439   :  { %v6658_v14 = vpop.permute.xlu1 %6657  ;;  %1556 = vmatprep.subr.bf16.mxu1 %v1489_v56  ;;  %v1313_v5 = vsel %vm1309_vm9, %v6684_v62, %v6685_v8  ;;  %v1358_v57 = vsel %vm139_vm0, %v6564_v20, %v6565_v27 }
 0x43a   :  { %v6660_v16 = vunpack.i.h.bf16 %v6658_v14  ;;  %v6659_v31 = vunpack.i.l.bf16 %v6658_v14  ;;  %1557 = vmatpush1.bf16.msra.mxu1 %v1488_v4  ;;  %v6640_v4 = vunpack.i.h.bf16 %v9604_v34  ;;  %v1383_v14 = vsel %vm139_vm0, %v6624_v10, %v6625_v61 }
 0x43b   :  { %v6708_v36 = vpop.permute.xlu0 %6707  ;;  %1558 = vmatprep.subr.bf16.mxu1 %v1491_v43 }
 0x43c   :  { %v6710_v38 = vunpack.i.h.bf16 %v6708_v36  ;;  %v6709_v63 = vunpack.i.l.bf16 %v6708_v36  ;;  %v1287_v28 = vsel %vm1260_vm8, %v6659_v31, %v6660_v16  ;;  %v1359_v16 = vsel %vm139_vm0, %v6604_v50, %v6605_v44 }
 0x43d   :  { %v6663_v39 = vpop.permute.xlu1 %6662  ;;  %v1312_v34 = vsel %vm1309_vm9, %v6639_v58, %v6640_v4  ;;  %v6689_v36 = vunpack.i.l.bf16 %v9610_v0 }
 0x43e   :  { %1559 = vmatpush1.bf16.msra.mxu1 %v1490_v1  ;;  %v1288_v46 = vsel %vm1260_vm8, %v6709_v63, %v6710_v38  ;;  %v6665_v56 = vunpack.i.h.bf16 %v6663_v39  ;;  %v6664_v2 = vunpack.i.l.bf16 %v6663_v39  ;;  %v1382_v1 = vsel %vm139_vm0, %v6584_v19, %v6585_v18 }
 0x43f   :  { %v9644_v54 = vpop.permute.xlu0 %6712  ;;  %v1493_v48 = vpack.c.bf16 %v1288_v46, %v1287_v28  ;;  %v1496_v22 = vpack.c.bf16 %v1313_v5, %v1312_v34  ;;  %v1499_v29 = vpack.c.bf16 %v1383_v14, %v1382_v1  ;;  %v1498_v39 = vpack.c.bf16 %v1359_v16, %v1358_v57 }
 0x440   :  { %v1336_v6 = vsel %vm1309_vm9, %v6664_v2, %v6665_v56  ;;  %v6644_v28 = vunpack.i.l.bf16 %v9608_v35  ;;  %v6655_v46 = vunpack.i.h.bf16 %v9617_v7  ;;  %v1361_v55 = vsel %vm139_vm0, %v6689_v36, %v6690_v37 }
 0x441   :  { %v6668_v9 = vpop.permute.xlu1 %6667  ;;  %1560 = vmatprep.subr.bf16.mxu1 %v1493_v48  ;;  %v6714_v61 = vunpack.i.l.bf16 %v9644_v54 }
 0x442   :  { %1561 = vmatpush1.bf16.msra.mxu1 %v1492_v59  ;;  %v6670_v63 = vunpack.i.h.bf16 %v6668_v9  ;;  %v6669_v25 = vunpack.i.l.bf16 %v6668_v9  ;;  %v1431_v59 = vsel %vm245_vm2, %v6699_v32, %v6700_v30  ;;  %v1360_v10 = vsel %vm139_vm0, %v6644_v28, %v6645_v42 }
 0x443   :  { %v6728_v43 = vpop.permute.xlu0 %6727  ;;  %1562 = vmatprep.subr.bf16.mxu1 %v1495_v60  ;;  %v6715_v60 = vunpack.i.h.bf16 %v9644_v54  ;;  %v1430_v9 = vsel %vm245_vm2, %v6654_v33, %v6655_v46  ;;  %v1500_v50 = vpack.c.bf16 %v1361_v55, %v1360_v10 }
 0x444   :  { %v6730_v12 = vunpack.i.h.bf16 %v6728_v43  ;;  %v6729_v26 = vunpack.i.l.bf16 %v6728_v43  ;;  %v1384_v35 = vsel %vm139_vm0, %v6669_v25, %v6670_v63  ;;  %v1503_v56 = vpack.c.bf16 %v1431_v59, %v1430_v9 }
 0x445   :  { %v6703_v13 = vpop.permute.xlu1 %6702  ;;  %v1407_v58 = vsel %vm245_vm2, %v6714_v61, %v6715_v60 }
 0x446   :  { %1563 = vmatpush1.bf16.msra.mxu1 %v1494_v49  ;;  %v1337_v17 = vsel %vm1309_vm9, %v6729_v26, %v6730_v12  ;;  %v6705_v0 = vunpack.i.h.bf16 %v6703_v13  ;;  %v6704_v48 = vunpack.i.l.bf16 %v6703_v13 }
 0x447   :  { %v9666_v31 = vpop.permute.xlu0 %6732  ;;  %v1497_v51 = vpack.c.bf16 %v1337_v17, %v1336_v6 }
 0x448   :  { %v1406_v44 = vsel %vm245_vm2, %v6704_v48, %v6705_v0  ;;  %v6735_v12 = vunpack.i.h.bf16 %v9666_v31  ;;  %v6734_v26 = vunpack.i.l.bf16 %v9666_v31 }
 0x449   :  { %v6718_v38 = vpop.permute.xlu1 %6717  ;;  %1564 = vmatprep.subr.bf16.mxu1 %v1497_v51  ;;  %v1502_v5 = vpack.c.bf16 %v1407_v58, %v1406_v44  ;;  %v1511_v44 = vpack.c.bf16 %v9493_v24, %v9489_v23 }
 0x44a   :  { %1565 = vmatpush1.bf16.msra.mxu1 %v1496_v22  ;;  %v6720_v2 = vunpack.i.h.bf16 %v6718_v38  ;;  %v6719_v18 = vunpack.i.l.bf16 %v6718_v38  ;;  %v1409_v31 = vsel %vm245_vm2, %v6734_v26, %v6735_v12 }
 0x44b   :  { %v6743_v53 = vpop.permute.xlu0 %6742  ;;  %1566 = vmatprep.subr.bf16.mxu1 %v1499_v29 }
 0x44c   :  { %v6745_v45 = vunpack.i.h.bf16 %v6743_v53  ;;  %v6744_v15 = vunpack.i.l.bf16 %v6743_v53  ;;  %v1432_v51 = vsel %vm245_vm2, %v6719_v18, %v6720_v2  ;;  %v1512_v2 = vpack.c.bf16 %v9511_v41, %v9508_v40  ;;  %v8840_v18 = vld [vmem:[%s11931_s1 + $0x20] ss:$8 sps:$4 sm:$0xff]  }
 0x44d   :  { %v6723_v27 = vpop.permute.xlu1 %6722 }
 0x44e   :  { %1567 = vmatpush1.bf16.msra.mxu1 %v1498_v39  ;;  %v1385_v7 = vsel %vm139_vm0, %v6744_v15, %v6745_v45  ;;  %v6725_v19 = vunpack.i.h.bf16 %v6723_v27  ;;  %v6724_v4 = vunpack.i.l.bf16 %v6723_v27 }
 0x44f   :  { %v6748_v8 = vpop.permute.xlu0 %6747  ;;  %v1501_v62 = vpack.c.bf16 %v1385_v7, %v1384_v35 }
 0x450   :  { %v6750_v13 = vunpack.i.h.bf16 %v6748_v8  ;;  %v6749_v14 = vunpack.i.l.bf16 %v6748_v8  ;;  %v1408_v16 = vsel %vm245_vm2, %v6724_v4, %v6725_v19  ;;  %v8843_v19 = vld [vmem:[%s11931_s1 + $0x34] ss:$8 sps:$4 sm:$0xff]   ;;  %v8845_v4 = vld [vmem:[%s11931_s1 + $0x30] ss:$8 sps:$4 sm:$0xff]  }
 0x451   :  { %v6738_v54 = vpop.permute.xlu1 %6737  ;;  %1568 = vmatprep.subr.bf16.mxu1 %v1501_v62  ;;  %v1504_v38 = vpack.c.bf16 %v1409_v31, %v1408_v16 }
 0x452   :  { %v6740_v43 = vunpack.i.h.bf16 %v6738_v54  ;;  %v6739_v20 = vunpack.i.l.bf16 %v6738_v54  ;;  %1569 = vmatpush1.bf16.msra.mxu1 %v1500_v50  ;;  %v1479_v63 = vsel %vm343_vm4, %v6749_v14, %v6750_v13  ;;  %v1510_v50 = vpack.c.bf16 %v9465_v11, %v9463_v21 }
 0x453   :  { %v6758_v49 = vpop.permute.xlu0 %6757  ;;  %1570 = vmatprep.subr.bf16.mxu1 %v1503_v56  ;;  %v1513_v56 = vpack.c.bf16 %v9527_v52, %v9524_v47 }
 0x454   :  { %v6760_v6 = vunpack.i.h.bf16 %v6758_v49  ;;  %v6759_v17 = vunpack.i.l.bf16 %v6758_v49  ;;  %v1478_v29 = vsel %vm343_vm4, %v6739_v20, %v6740_v43 }
 0x455   :  { %v6753_v34 = vpop.permute.xlu1 %6752  ;;  %v1507_v39 = vpack.c.bf16 %v1479_v63, %v1478_v29 }
 0x456   :  { %v6755_v1 = vunpack.i.h.bf16 %v6753_v34  ;;  %v6754_v57 = vunpack.i.l.bf16 %v6753_v34  ;;  %1571 = vmatpush1.bf16.msra.mxu1 %v1502_v5  ;;  %v1433_v22 = vsel %vm245_vm2, %v6759_v17, %v6760_v6 }
 0x457   :  { %v6763_v37 = vpop.permute.xlu0 %6762  ;;  %v1505_v36 = vpack.c.bf16 %v1433_v22, %v1432_v51 }
 0x458   :  { %v6765_v30 = vunpack.i.h.bf16 %v6763_v37  ;;  %v6764_v32 = vunpack.i.l.bf16 %v6763_v37  ;;  %v1454_v42 = vsel %vm343_vm4, %v6754_v57, %v6755_v1 }
 0x459   :  { %v6768_v25 = vpop.permute.xlu1 %6767  ;;  %1572 = vmatprep.subr.bf16.mxu1 %v1505_v36 }
 0x45a   :  { %v1455_v28 = vsel %vm343_vm4, %v6764_v32, %v6765_v30  ;;  %v6770_v46 = vunpack.i.h.bf16 %v6768_v25  ;;  %v6769_v33 = vunpack.i.l.bf16 %v6768_v25  ;;  %1573 = vmatpush1.bf16.msra.mxu1 %v1504_v38 }
 0x45b   :  { %v6778_v53 = vpop.permute.xlu0 %6777  ;;  %1574 = vmatprep.subr.bf16.mxu1 %v1507_v39  ;;  %v1506_v0 = vpack.c.bf16 %v1455_v28, %v1454_v42 }
 0x45c   :  { %v6780_v48 = vunpack.i.h.bf16 %v6778_v53  ;;  %v6779_v45 = vunpack.i.l.bf16 %v6778_v53  ;;  %v1480_v59 = vsel %vm343_vm4, %v6769_v33, %v6770_v46 }
 0x45d   :  { %v6773_v15 = vpop.permute.xlu1 %6772 }
 0x45e   :  { %v6775_v55 = vunpack.i.h.bf16 %v6773_v15  ;;  %v6774_v27 = vunpack.i.l.bf16 %v6773_v15  ;;  %1575 = vmatpush1.bf16.msra.mxu1 %v1506_v0  ;;  %v1481_v60 = vsel %vm343_vm4, %v6779_v45, %v6780_v48 }
 0x45f   :  { %v6783_v61 = vpop.permute.xlu0 %6782  ;;  %v1509_v35 = vpack.c.bf16 %v1481_v60, %v1480_v59  ;;  %v5936_v60 = vld [vmem:[%s11934_s4 + $0x20] sm:$0xff] }
 0x460   :  { %v6785_v7 = vunpack.i.h.bf16 %v6783_v61  ;;  %v6784_v10 = vunpack.i.l.bf16 %v6783_v61  ;;  %v1456_v8 = vsel %vm343_vm4, %v6774_v27, %v6775_v55  ;;  %v5937_v61 = vld [vmem:[%s11934_s4 + $0x28] sm:$0xff] }
 0x461   :  { %1576 = vmatprep.subr.bf16.mxu1 %v1509_v35  ;;  %v8848_v35 = vld [vmem:[%s11933_s3 + $0x24] ss:$8 sps:$4 sm:$0xff]  }
 0x462   :  { %v1457_v62 = vsel %vm343_vm4, %v6784_v10, %v6785_v7  ;;  %v5938_v7 = vld [vmem:[%s11934_s4 + $0x30] sm:$0xff]  ;;  %2053 = vmatprep.mubr.bf16.mxu0 %v8848_v35  ;;  %v5939_v10 = vld [vmem:[%s11934_s4 + $0x38] sm:$0xff] }
 0x463   :  { %v1508_v9 = vpack.c.bf16 %v1457_v62, %v1456_v8 }
 0x465   :  { %1577 = vmatpush1.bf16.msra.mxu1 %v1508_v9 }
 0x466   :  { %1578 = vmatprep.subr.bf16.mxu1 %v1511_v44 }
 0x469   :  { %1579 = vmatpush1.bf16.msra.mxu1 %v1510_v50 }
 0x46a   :  { %1580 = vmatprep.subr.bf16.mxu1 %v1513_v56 }
 0x46d   :  { %1581 = vmatpush1.bf16.msra.mxu1 %v1512_v2 }
 0x46e   :  { %v1517_v54 = vpop.permute.xlu1 %1516 }
 0x470   :  { %1587 = vmatmul.mubr.bf16.vlgmr.msra.gmra.mrb[8].mxu1 %v8840_v18  ;;  %v1522_v12 = vpop.permute.xlu0 %1521 }
 0x471   :  { %1596 = vmatprep.mubr.bf16.mxu1 %v8843_v19 }
 0x472   :  { %v1527_v37 = vpop.permute.xlu1 %1526 }
 0x474   :  { %v1532_v1 = vpop.permute.xlu0 %1531 }
 0x478   :  { %1597 = vmatmul.mubr.bf16.gmra.mrb[12].mxu1 %v8845_v4 }
 0x543   :  { %v1588_v58 = vpop.f32.mrb[8].mxu1 }
 0x544   :  { %v1589_v43 = vadd.f32 %v1588_v58, %v1517_v54  ;;  %v1590_v20 = vpop.f32.mrb[9].mxu1 }
 0x545   :  { %v1592_v26 = vpop.f32.mrb[10].mxu1  ;;  %v1591_v36 = vadd.f32 %v1590_v20, %v1517_v54 }
 0x546   :  { %v1607_v49 = vmax.f32 %v1589_v43, 0.0  ;;  %v1593_v5 = vadd.f32 %v1592_v26, %v1522_v12  ;;  %v1594_v13 = vpop.f32.mrb[11].mxu1 }
 0x547   :  { %v1595_v57 = vadd.f32 %v1594_v13, %v1522_v12  ;;  %v1608_v39 = vmax.f32 %v1591_v36, 0.0 }
 0x548   :  { %v1609_v14 = vmax.f32 %v1593_v5, 0.0  ;;  %v9720_v6 = vpack.i.bf16 %v1607_v49, %v8951_v3 }
 0x549   :  { %v1610_v38 = vmax.f32 %v1595_v57, 0.0  ;;  %v6806_v48 = vpack.i.bf16 %v1608_v39, %v8951_v3 }
 0x54a   :  { %6787 = vrot.lane.b32.xlu1 %v9720_v6, %s8959_s24  ;;  %v9725_v17 = vpack.i.bf16 %v1609_v14, %v8951_v3  ;;  %v9741_v33 = vpack.c.bf16 %v1609_v14, %v1607_v49 }
 0x54b   :  { %v1598_v16 = vpop.f32.mrb[12].mxu1  ;;  %v9739_v46 = vpack.c.bf16 %v1610_v38, %v1608_v39  ;;  %v6846_v45 = vpack.i.bf16 %v1610_v38, %v8951_v3 }
 0x54c   :  { %v1600_v34 = vpop.f32.mrb[13].mxu1  ;;  %6827 = vrot.lane.b32.xlu0 %v9725_v17, %s8959_s24  ;;  %v1599_v30 = vadd.f32 %v1598_v16, %v1527_v37 }
 0x54d   :  { %v1602_v51 = vpop.f32.mrb[14].mxu1  ;;  %v1601_v32 = vadd.f32 %v1600_v34, %v1527_v37 }
 0x54e   :  { %v1604_v22 = vpop.f32.mrb[15].mxu1  ;;  %6792 = vrot.lane.b32.xlu1 %v9720_v6, %s8960_s25  ;;  %v1603_v29 = vadd.f32 %v1602_v51, %v1532_v1  ;;  %v1611_v42 = vmax.f32 %v1599_v30, 0.0 }
 0x54f   :  { %v1605_v31 = vadd.f32 %v1604_v22, %v1532_v1  ;;  %v1612_v28 = vmax.f32 %v1601_v32, 0.0 }
 0x550   :  { %6832 = vrot.lane.b32.xlu0 %v9725_v17, %s8960_s25  ;;  %v1613_v63 = vmax.f32 %v1603_v29, 0.0  ;;  %v6866_v15 = vpack.i.bf16 %v1611_v42, %v8951_v3 }
 0x551   :  { %v1614_v25 = vmax.f32 %v1605_v31, 0.0  ;;  %v6886_v27 = vpack.i.bf16 %v1612_v28, %v8951_v3 }
 0x552   :  { %6797 = vrot.lane.b32.xlu1 %v9720_v6, %s8950_s12  ;;  %v9745_v0 = vpack.c.bf16 %v1613_v63, %v1611_v42  ;;  %v6911_v55 = vpack.i.bf16 %v1613_v63, %v8951_v3 }
 0x553   :  { %v9743_v53 = vpack.c.bf16 %v1614_v25, %v1612_v28  ;;  %v6931_v59 = vpack.i.bf16 %v1614_v25, %v8951_v3 }
 0x554   :  { %6837 = vrot.lane.b32.xlu0 %v9725_v17, %s8950_s12 }
 0x556   :  { %6802 = vrot.lane.b32.xlu1 %v9720_v6, %s8952_s0 }
 0x558   :  { %6842 = vrot.lane.b32.xlu0 %v9725_v17, %s8952_s0 }
 0x55a   :  { %6807 = vrot.lane.b32.xlu1 %v6806_v48, %s8959_s24 }
 0x55c   :  { %6847 = vrot.lane.b32.xlu0 %v6846_v45, %s8959_s24 }
 0x55e   :  { %6812 = vrot.lane.b32.xlu1 %v6806_v48, %s8960_s25 }
 0x560   :  { %6852 = vrot.lane.b32.xlu0 %v6846_v45, %s8960_s25 }
 0x562   :  { %6817 = vrot.lane.b32.xlu1 %v6806_v48, %s8950_s12 }
 0x564   :  { %6857 = vrot.lane.b32.xlu0 %v6846_v45, %s8950_s12 }
 0x566   :  { %6822 = vrot.lane.b32.xlu1 %v6806_v48, %s8952_s0 }
 0x568   :  { %6862 = vrot.lane.b32.xlu0 %v6846_v45, %s8952_s0 }
 0x56a   :  { %6867 = vrot.lane.b32.xlu1 %v6866_v15, %s8959_s24 }
 0x56c   :  { %6912 = vrot.lane.b32.xlu0 %v6911_v55, %s8959_s24 }
 0x56e   :  { %6872 = vrot.lane.b32.xlu1 %v6866_v15, %s8960_s25 }
 0x570   :  { %6917 = vrot.lane.b32.xlu0 %v6911_v55, %s8960_s25 }
 0x572   :  { %6877 = vrot.lane.b32.xlu1 %v6866_v15, %s8950_s12 }
 0x574   :  { %6922 = vrot.lane.b32.xlu0 %v6911_v55, %s8950_s12 }
 0x576   :  { %6882 = vrot.lane.b32.xlu1 %v6866_v15, %s8952_s0 }
 0x578   :  { %6927 = vrot.lane.b32.xlu0 %v6911_v55, %s8952_s0 }
 0x57a   :  { %6887 = vrot.lane.b32.xlu1 %v6886_v27, %s8959_s24 }
 0x57c   :  { %6932 = vrot.lane.b32.xlu0 %v6931_v59, %s8959_s24 }
 0x57e   :  { %6892 = vrot.lane.b32.xlu1 %v6806_v48, %s8954_s16 }
 0x580   :  { %6937 = vrot.lane.b32.xlu0 %v6846_v45, %s8954_s16 }
 0x582   :  { %6897 = vrot.lane.b32.xlu1 %v6886_v27, %s8960_s25 }
 0x584   :  { %6947 = vrot.lane.b32.xlu0 %v6931_v59, %s8960_s25 }
 0x586   :  { %6902 = vrot.lane.b32.xlu1 %v6886_v27, %s8950_s12 }
 0x588   :  { %6952 = vrot.lane.b32.xlu0 %v9725_v17, %s8954_s16 }
 0x58a   :  { %6907 = vrot.lane.b32.xlu1 %v6886_v27, %s8952_s0 }
 0x58c   :  { %6967 = vrot.lane.b32.xlu0 %v6931_v59, %s8950_s12 }
 0x58e   :  { %6942 = vrot.lane.b32.xlu1 %v9720_v6, %s8954_s16 }
 0x590   :  { %6972 = vrot.lane.b32.xlu0 %v6911_v55, %s8954_s16 }
 0x592   :  { %6957 = vrot.lane.b32.xlu1 %v6886_v27, %s8954_s16 }
 0x594   :  { %6982 = vrot.lane.b32.xlu0 %v6931_v59, %s8952_s0  ;;  %s8967_s0 = smov 96  }
 0x596   :  { %6962 = vrot.lane.b32.xlu1 %v6866_v15, %s8954_s16 }
 0x598   :  { %6987 = vrot.lane.b32.xlu0 %v6846_v45, %s8956_s18 }
 0x59a   :  { %6977 = vrot.lane.b32.xlu1 %v6806_v48, %s8956_s18 }
 0x59c   :  { %6997 = vrot.lane.b32.xlu0 %v6931_v59, %s8954_s16 }
 0x59e   :  { %6992 = vrot.lane.b32.xlu1 %v9720_v6, %s8956_s18 }
 0x5a0   :  { %7002 = vrot.lane.b32.xlu0 %v9725_v17, %s8956_s18 }
 0x5a2   :  { %7007 = vrot.lane.b32.xlu1 %v6886_v27, %s8956_s18 }
 0x5a4   :  { %7017 = vrot.lane.b32.xlu0 %v6931_v59, %s8956_s18 }
 0x5a6   :  { %7012 = vrot.lane.b32.xlu1 %v6866_v15, %s8956_s18 }
 0x5a8   :  { %7022 = vrot.lane.b32.xlu0 %v6911_v55, %s8956_s18 }
 0x5aa   :  { %1983 = vperm.xlu1 %6305, %v5936_v60  }
 0x5ac   :  { %1988 = vperm.xlu0 %6304, %v5937_v61  }
 0x5ae   :  { %1993 = vperm.xlu1 %6305, %v5938_v7  }
 0x5b0   :  { %1998 = vperm.xlu0 %6304, %v5939_v10  }
 0x5bc   :  { %v6788_v8 = vpop.permute.xlu1 %6787 }
 0x5bd   :  { %v6790_v20 = vunpack.i.h.bf16 %v6788_v8  ;;  %v6789_v12 = vunpack.i.l.bf16 %v6788_v8 }
 0x5be   :  { %v6828_v62 = vpop.permute.xlu0 %6827 }
 0x5bf   :  { %v6830_v19 = vunpack.i.h.bf16 %v6828_v62  ;;  %v6829_v4 = vunpack.i.l.bf16 %v6828_v62  ;;  %v1673_v16 = vsel %vm1203_vm7, %v6789_v12, %v6790_v20 }
 0x5c0   :  { %v9814_v9 = vpop.permute.xlu1 %6792 }
 0x5c1   :  { %v1674_v13 = vsel %vm1203_vm7, %v6829_v4, %v6830_v19  ;;  %v6795_v62 = vunpack.i.h.bf16 %v9814_v9  ;;  %v6794_v19 = vunpack.i.l.bf16 %v9814_v9 }
 0x5c2   :  { %v6833_v44 = vpop.permute.xlu0 %6832  ;;  %v1953_v1 = vpack.c.bf16 %v1674_v13, %v1673_v16 }
 0x5c3   :  { %v6835_v55 = vunpack.i.h.bf16 %v6833_v44  ;;  %v6834_v27 = vunpack.i.l.bf16 %v6833_v44 }
 0x5c4   :  { %v9816_v50 = vpop.permute.xlu1 %6797 }
 0x5c6   :  { %v9818_v56 = vpop.permute.xlu0 %6837 }
 0x5c8   :  { %v9820_v2 = vpop.permute.xlu1 %6802 }
 0x5ca   :  { %v9822_v18 = vpop.permute.xlu0 %6842 }
 0x5cc   :  { %v6808_v54 = vpop.permute.xlu1 %6807 }
 0x5cd   :  { %v6810_v58 = vunpack.i.h.bf16 %v6808_v54  ;;  %v6809_v43 = vunpack.i.l.bf16 %v6808_v54 }
 0x5ce   :  { %v6848_v26 = vpop.permute.xlu0 %6847 }
 0x5cf   :  { %v6850_v49 = vunpack.i.h.bf16 %v6848_v26  ;;  %v6849_v5 = vunpack.i.l.bf16 %v6848_v26  ;;  %v1705_v6 = vsel %vm1203_vm7, %v6809_v43, %v6810_v58  ;;  %v1730_v26 = vsel %vm1260_vm8, %v6834_v27, %v6835_v55 }
 0x5d0   :  { %v6813_v14 = vpop.permute.xlu1 %6812 }
 0x5d1   :  { %v1706_v17 = vsel %vm1203_vm7, %v6849_v5, %v6850_v49  ;;  %v6815_v61 = vunpack.i.h.bf16 %v6813_v14  ;;  %v6814_v35 = vunpack.i.l.bf16 %v6813_v14  ;;  %v1729_v14 = vsel %vm1260_vm8, %v6794_v19, %v6795_v62 }
 0x5d2   :  { %v6853_v34 = vpop.permute.xlu0 %6852  ;;  %v1954_v51 = vpack.c.bf16 %v1706_v17, %v1705_v6  ;;  %v6800_v6 = vunpack.i.h.bf16 %v9816_v50 }
 0x5d3   :  { %v6855_v42 = vunpack.i.h.bf16 %v6853_v34  ;;  %v6854_v28 = vunpack.i.l.bf16 %v6853_v34  ;;  %v1753_v9 = vsel %vm1260_vm8, %v6814_v35, %v6815_v61 }
 0x5d4   :  { %v9828_v57 = vpop.permute.xlu1 %6817  ;;  %2021 = vmatprep.subr.bf16.mxu0 %v1954_v51 }
 0x5d5   :  { %2022 = vmatpush1.bf16.msra.mxu0 %v1953_v1  ;;  %v1754_v20 = vsel %vm1260_vm8, %v6854_v28, %v6855_v42  ;;  %v6799_v42 = vunpack.i.l.bf16 %v9816_v50  ;;  %v6819_v55 = vunpack.i.l.bf16 %v9828_v57 }
 0x5d6   :  { %v9830_v22 = vpop.permute.xlu0 %6857  ;;  %v1958_v16 = vpack.c.bf16 %v1754_v20, %v1753_v9 }
 0x5d7   :  { %v6860_v34 = vunpack.i.h.bf16 %v9830_v22  ;;  %v6859_v51 = vunpack.i.l.bf16 %v9830_v22  ;;  %v6840_v22 = vunpack.i.h.bf16 %v9818_v56 }
 0x5d8   :  { %v9832_v29 = vpop.permute.xlu1 %6822 }
 0x5da   :  { %v9834_v31 = vpop.permute.xlu0 %6862 }
 0x5dc   :  { %v6868_v37 = vpop.permute.xlu1 %6867 }
 0x5dd   :  { %v6870_v7 = vunpack.i.h.bf16 %v6868_v37  ;;  %v6869_v10 = vunpack.i.l.bf16 %v6868_v37 }
 0x5de   :  { %v6913_v36 = vpop.permute.xlu0 %6912 }
 0x5df   :  { %v6915_v48 = vunpack.i.h.bf16 %v6913_v36  ;;  %v6914_v45 = vunpack.i.l.bf16 %v6913_v36  ;;  %v1675_v49 = vsel %vm1203_vm7, %v6869_v10, %v6870_v7  ;;  %v1802_v10 = vsel %vm1309_vm9, %v6859_v51, %v6860_v34 }
 0x5e0   :  { %v9836_v30 = vpop.permute.xlu1 %6872  ;;  %v6825_v34 = vunpack.i.h.bf16 %v9832_v29  ;;  %v6824_v51 = vunpack.i.l.bf16 %v9832_v29 }
 0x5e1   :  { %v1676_v58 = vsel %vm1203_vm7, %v6914_v45, %v6915_v48  ;;  %v1957_v45 = vpack.c.bf16 %v1730_v26, %v1729_v14  ;;  %v6875_v27 = vunpack.i.h.bf16 %v9836_v30  ;;  %v6864_v26 = vunpack.i.l.bf16 %v9834_v31 }
 0x5e2   :  { %v6918_v32 = vpop.permute.xlu0 %6917  ;;  %v1955_v17 = vpack.c.bf16 %v1676_v58, %v1675_v49  ;;  %v6805_v58 = vunpack.i.h.bf16 %v9820_v2  ;;  %v6845_v14 = vunpack.i.h.bf16 %v9822_v18 }
 0x5e3   :  { %v6920_v1 = vunpack.i.h.bf16 %v6918_v32  ;;  %v6919_v37 = vunpack.i.l.bf16 %v6918_v32  ;;  %v6839_v32 = vunpack.i.l.bf16 %v9818_v56 }
 0x5e4   :  { %v9838_v38 = vpop.permute.xlu1 %6877 }
 0x5e5   :  { %v1732_v35 = vsel %vm1260_vm8, %v6919_v37, %v6920_v1  ;;  %v6880_v1 = vunpack.i.h.bf16 %v9838_v38 }
 0x5e6   :  { %v9840_v63 = vpop.permute.xlu0 %6922 }
 0x5e7   :  { %v6925_v49 = vunpack.i.h.bf16 %v9840_v63 }
 0x5e8   :  { %v9842_v25 = vpop.permute.xlu1 %6882 }
 0x5ea   :  { %v9844_v39 = vpop.permute.xlu0 %6927 }
 0x5ec   :  { %v6888_v15 = vpop.permute.xlu1 %6887 }
 0x5ed   :  { %v6890_v59 = vunpack.i.h.bf16 %v6888_v15  ;;  %v6889_v60 = vunpack.i.l.bf16 %v6888_v15  ;;  %v6820_v15 = vunpack.i.h.bf16 %v9828_v57 }
 0x5ee   :  { %v6933_v8 = vpop.permute.xlu0 %6932 }
 0x5ef   :  { %v6935_v4 = vunpack.i.h.bf16 %v6933_v8  ;;  %v6934_v54 = vunpack.i.l.bf16 %v6933_v8  ;;  %v1707_v44 = vsel %vm1203_vm7, %v6889_v60, %v6890_v59  ;;  %v6874_v59 = vunpack.i.l.bf16 %v9836_v30 }
 0x5f0   :  { %v9849_v43 = vpop.permute.xlu1 %6892  ;;  %v1777_v30 = vsel %vm1309_vm9, %v6799_v42, %v6800_v6  ;;  %v1801_v56 = vsel %vm1309_vm9, %v6819_v55, %v6820_v15  ;;  %v6844_v6 = vunpack.i.l.bf16 %v9822_v18 }
 0x5f1   :  { %v1708_v12 = vsel %vm1203_vm7, %v6934_v54, %v6935_v4  ;;  %v1731_v62 = vsel %vm1260_vm8, %v6874_v59, %v6875_v27  ;;  %v1778_v54 = vsel %vm1309_vm9, %v6839_v32, %v6840_v22  ;;  %v1849_v59 = vsel %vm139_vm0, %v6824_v51, %v6825_v34 }
 0x5f2   :  { %v9856_v5 = vpop.permute.xlu0 %6937  ;;  %v1956_v13 = vpack.c.bf16 %v1708_v12, %v1707_v44  ;;  %v1959_v20 = vpack.c.bf16 %v1732_v35, %v1731_v62  ;;  %v1962_v44 = vpack.c.bf16 %v1802_v10, %v1801_v56  ;;  %v6865_v12 = vunpack.i.h.bf16 %v9834_v31 }
 0x5f3   :  { %v6879_v31 = vunpack.i.l.bf16 %v9838_v38  ;;  %v1826_v55 = vsel %vm139_vm0, %v6844_v6, %v6845_v14  ;;  %v6940_v35 = vunpack.i.h.bf16 %v9856_v5  ;;  %v6885_v62 = vunpack.i.h.bf16 %v9842_v25 }
 0x5f4   :  { %v6898_v36 = vpop.permute.xlu1 %6897  ;;  %2023 = vmatprep.subr.bf16.mxu0 %v1956_v13  ;;  %v6924_v13 = vunpack.i.l.bf16 %v9840_v63  ;;  %v6804_v63 = vunpack.i.l.bf16 %v9820_v2  ;;  %v6895_v56 = vunpack.i.h.bf16 %v9849_v43 }
 0x5f5   :  { %v6900_v28 = vunpack.i.h.bf16 %v6898_v36  ;;  %v6899_v48 = vunpack.i.l.bf16 %v6898_v36  ;;  %2024 = vmatpush1.bf16.msra.mxu0 %v1955_v17  ;;  %v1779_v38 = vsel %vm1309_vm9, %v6879_v31, %v6880_v1 }
 0x5f6   :  { %v6948_v60 = vpop.permute.xlu0 %6947  ;;  %2025 = vmatprep.subr.bf16.mxu0 %v1958_v16  ;;  %v1780_v18 = vsel %vm1309_vm9, %v6924_v13, %v6925_v49 }
 0x5f7   :  { %v6950_v61 = vunpack.i.h.bf16 %v6948_v60  ;;  %v6949_v50 = vunpack.i.l.bf16 %v6948_v60  ;;  %v1755_v57 = vsel %vm1260_vm8, %v6899_v48, %v6900_v28  ;;  %v1961_v28 = vpack.c.bf16 %v1778_v54, %v1777_v30 }
 0x5f8   :  { %v6903_v7 = vpop.permute.xlu1 %6902  ;;  %v1825_v60 = vsel %vm139_vm0, %v6804_v63, %v6805_v58  ;;  %v1963_v22 = vpack.c.bf16 %v1780_v18, %v1779_v38  ;;  %v6894_v54 = vunpack.i.l.bf16 %v9849_v43 }
 0x5f9   :  { %2026 = vmatpush1.bf16.msra.mxu0 %v1957_v45  ;;  %v1756_v8 = vsel %vm1260_vm8, %v6949_v50, %v6950_v61  ;;  %v6905_v17 = vunpack.i.h.bf16 %v6903_v7  ;;  %v6904_v16 = vunpack.i.l.bf16 %v6903_v7  ;;  %v1850_v45 = vsel %vm139_vm0, %v6864_v26, %v6865_v12 }
 0x5fa   :  { %v9876_v19 = vpop.permute.xlu0 %6952  ;;  %v1960_v4 = vpack.c.bf16 %v1756_v8, %v1755_v57  ;;  %v1966_v32 = vpack.c.bf16 %v1850_v45, %v1849_v59  ;;  %v6930_v61 = vunpack.i.h.bf16 %v9844_v39  ;;  %v6929_v50 = vunpack.i.l.bf16 %v9844_v39 }
 0x5fb   :  { %v1803_v15 = vsel %vm1309_vm9, %v6904_v16, %v6905_v17  ;;  %v6939_v7 = vunpack.i.l.bf16 %v9856_v5  ;;  %v1965_v30 = vpack.c.bf16 %v1826_v55, %v1825_v60  ;;  %v6955_v13 = vunpack.i.h.bf16 %v9876_v19 }
 0x5fc   :  { %v6908_v9 = vpop.permute.xlu1 %6907  ;;  %2027 = vmatprep.subr.bf16.mxu0 %v1960_v4  ;;  %v6884_v4 = vunpack.i.l.bf16 %v9842_v25  ;;  %v1828_v12 = vsel %vm139_vm0, %v6929_v50, %v6930_v61  ;;  %v1897_v16 = vsel %vm245_vm2, %v6894_v54, %v6895_v56 }
 0x5fd   :  { %2028 = vmatpush1.bf16.msra.mxu0 %v1959_v20  ;;  %v6910_v57 = vunpack.i.h.bf16 %v6908_v9  ;;  %v6909_v8 = vunpack.i.l.bf16 %v6908_v9  ;;  %v1898_v49 = vsel %vm245_vm2, %v6939_v7, %v6940_v35  ;;  %v6954_v9 = vunpack.i.l.bf16 %v9876_v19 }
 0x5fe   :  { %v6968_v37 = vpop.permute.xlu0 %6967  ;;  %2029 = vmatprep.subr.bf16.mxu0 %v1962_v44  ;;  %v1827_v14 = vsel %vm139_vm0, %v6884_v4, %v6885_v62  ;;  %v1970_v1 = vpack.c.bf16 %v1898_v49, %v1897_v16 }
 0x5ff   :  { %v6970_v36 = vunpack.i.h.bf16 %v6968_v37  ;;  %v6969_v42 = vunpack.i.l.bf16 %v6968_v37  ;;  %v1851_v25 = vsel %vm139_vm0, %v6909_v8, %v6910_v57  ;;  %v1967_v51 = vpack.c.bf16 %v1828_v12, %v1827_v14 }
 0x600   :  { %v6943_v48 = vpop.permute.xlu1 %6942 }
 0x601   :  { %2030 = vmatpush1.bf16.msra.mxu0 %v1961_v28  ;;  %v1804_v29 = vsel %vm1309_vm9, %v6969_v42, %v6970_v36  ;;  %v6945_v39 = vunpack.i.h.bf16 %v6943_v48  ;;  %v6944_v20 = vunpack.i.l.bf16 %v6943_v48  ;;  %v1874_v42 = vsel %vm245_vm2, %v6954_v9, %v6955_v13 }
 0x602   :  { %v9898_v27 = vpop.permute.xlu0 %6972  ;;  %v1964_v2 = vpack.c.bf16 %v1804_v29, %v1803_v15 }
 0x603   :  { %v1873_v34 = vsel %vm245_vm2, %v6944_v20, %v6945_v39  ;;  %v6975_v48 = vunpack.i.h.bf16 %v9898_v27  ;;  %v6974_v45 = vunpack.i.l.bf16 %v9898_v27 }
 0x604   :  { %v6958_v10 = vpop.permute.xlu1 %6957  ;;  %2031 = vmatprep.subr.bf16.mxu0 %v1964_v2  ;;  %v1969_v29 = vpack.c.bf16 %v1874_v42, %v1873_v34 }
 0x605   :  { %2032 = vmatpush1.bf16.msra.mxu0 %v1963_v22  ;;  %v6960_v31 = vunpack.i.h.bf16 %v6958_v10  ;;  %v6959_v37 = vunpack.i.l.bf16 %v6958_v10  ;;  %v1876_v27 = vsel %vm245_vm2, %v6974_v45, %v6975_v48 }
 0x606   :  { %v6983_v58 = vpop.permute.xlu0 %6982  ;;  %2033 = vmatprep.subr.bf16.mxu0 %v1966_v32 }
 0x607   :  { %v6985_v44 = vunpack.i.h.bf16 %v6983_v58  ;;  %v6984_v5 = vunpack.i.l.bf16 %v6983_v58  ;;  %v1899_v32 = vsel %vm245_vm2, %v6959_v37, %v6960_v31  ;;  %v8846_v37 = vld [vmem:[%s11933_s3 + $0x20] ss:$8 sps:$4 sm:$0xff]  }
 0x608   :  { %v6963_v26 = vpop.permute.xlu1 %6962 }
 0x609   :  { %2034 = vmatpush1.bf16.msra.mxu0 %v1965_v30  ;;  %v1852_v43 = vsel %vm139_vm0, %v6984_v5, %v6985_v44  ;;  %v6965_v63 = vunpack.i.h.bf16 %v6963_v26  ;;  %v6964_v36 = vunpack.i.l.bf16 %v6963_v26  ;;  %vm4142_vm0 = vcmask 654336  }
 0x60a   :  { %v6988_v6 = vpop.permute.xlu0 %6987  ;;  %v1968_v17 = vpack.c.bf16 %v1852_v43, %v1851_v25 }
 0x60b   :  { %v6990_v55 = vunpack.i.h.bf16 %v6988_v6  ;;  %v6989_v38 = vunpack.i.l.bf16 %v6988_v6  ;;  %v1875_v60 = vsel %vm245_vm2, %v6964_v36, %v6965_v63  ;;  %v8849_v63 = vld [vmem:[%s11933_s3 + $0x34] ss:$8 sps:$4 sm:$0xff]  }
 0x60c   :  { %v6978_v19 = vpop.permute.xlu1 %6977  ;;  %2035 = vmatprep.subr.bf16.mxu0 %v1968_v17  ;;  %v1971_v62 = vpack.c.bf16 %v1876_v27, %v1875_v60 }
 0x60d   :  { %v6980_v28 = vunpack.i.h.bf16 %v6978_v19  ;;  %v6979_v18 = vunpack.i.l.bf16 %v6978_v19  ;;  %2036 = vmatpush1.bf16.msra.mxu0 %v1967_v51  ;;  %v1946_v4 = vsel %vm343_vm4, %v6989_v38, %v6990_v55 }
 0x60e   :  { %v6998_v15 = vpop.permute.xlu0 %6997  ;;  %2037 = vmatprep.subr.bf16.mxu0 %v1970_v1 }
 0x60f   :  { %v7000_v2 = vunpack.i.h.bf16 %v6998_v15  ;;  %v6999_v59 = vunpack.i.l.bf16 %v6998_v15  ;;  %v1945_v7 = vsel %vm343_vm4, %v6979_v18, %v6980_v28 }
 0x610   :  { %v6993_v22 = vpop.permute.xlu1 %6992  ;;  %v1974_v54 = vpack.c.bf16 %v1946_v4, %v1945_v7 }
 0x611   :  { %v6995_v61 = vunpack.i.h.bf16 %v6993_v22  ;;  %v6994_v50 = vunpack.i.l.bf16 %v6993_v22  ;;  %2038 = vmatpush1.bf16.msra.mxu0 %v1969_v29  ;;  %v1900_v35 = vsel %vm245_vm2, %v6999_v59, %v7000_v2 }
 0x612   :  { %v7003_v10 = vpop.permute.xlu0 %7002  ;;  %v1972_v57 = vpack.c.bf16 %v1900_v35, %v1899_v32 }
 0x613   :  { %v7005_v8 = vunpack.i.h.bf16 %v7003_v10  ;;  %v7004_v30 = vunpack.i.l.bf16 %v7003_v10  ;;  %v1921_v58 = vsel %vm343_vm4, %v6994_v50, %v6995_v61 }
 0x614   :  { %v7008_v56 = vpop.permute.xlu1 %7007  ;;  %2039 = vmatprep.subr.bf16.mxu0 %v1972_v57 }
 0x615   :  { %v1922_v39 = vsel %vm343_vm4, %v7004_v30, %v7005_v8  ;;  %v7010_v20 = vunpack.i.h.bf16 %v7008_v56  ;;  %v7009_v44 = vunpack.i.l.bf16 %v7008_v56  ;;  %2040 = vmatpush1.bf16.msra.mxu0 %v1971_v62 }
 0x616   :  { %v7018_v5 = vpop.permute.xlu0 %7017  ;;  %2041 = vmatprep.subr.bf16.mxu0 %v1974_v54  ;;  %v1973_v12 = vpack.c.bf16 %v1922_v39, %v1921_v58 }
 0x617   :  { %v7020_v26 = vunpack.i.h.bf16 %v7018_v5  ;;  %v7019_v49 = vunpack.i.l.bf16 %v7018_v5  ;;  %v1947_v43 = vsel %vm343_vm4, %v7009_v44, %v7010_v20 }
 0x618   :  { %v7013_v13 = vpop.permute.xlu1 %7012 }
 0x619   :  { %v7015_v9 = vunpack.i.h.bf16 %v7013_v13  ;;  %v7014_v25 = vunpack.i.l.bf16 %v7013_v13  ;;  %2042 = vmatpush1.bf16.msra.mxu0 %v1973_v12  ;;  %v1948_v14 = vsel %vm343_vm4, %v7019_v49, %v7020_v26 }
 0x61a   :  { %v7023_v6 = vpop.permute.xlu0 %7022  ;;  %v1976_v17 = vpack.c.bf16 %v1948_v14, %v1947_v43 }
 0x61b   :  { %v7025_v16 = vunpack.i.h.bf16 %v7023_v6  ;;  %v7024_v34 = vunpack.i.l.bf16 %v7023_v6  ;;  %v1923_v51 = vsel %vm343_vm4, %v7014_v25, %v7015_v9  ;;  %v5949_v6 = vld [vmem:[%s11932_s2 + $0x48] sm:$0xff] }
 0x61c   :  { %2043 = vmatprep.subr.bf16.mxu0 %v1976_v17  ;;  %v8854_v17 = vld [vmem:[%s11931_s1 + $0x44] ss:$8 sps:$4 sm:$0xff]  }
 0x61d   :  { %v1924_v1 = vsel %vm343_vm4, %v7024_v34, %v7025_v16  ;;  %v5950_v16 = vld [vmem:[%s11932_s2 + $0x50] sm:$0xff]  ;;  %2547 = vmatprep.mubr.bf16.mxu1 %v8854_v17  ;;  %v5951_v34 = vld [vmem:[%s11932_s2 + $0x58] sm:$0xff] }
 0x61e   :  { %v1975_v31 = vpack.c.bf16 %v1924_v1, %v1923_v51 }
 0x620   :  { %2044 = vmatpush1.bf16.msra.mxu0 %v1975_v31 }
 0x621   :  { %2045 = vmatprep.subr.bf16.mxu0 %v9739_v46  ;;  %v8851_v46 = vld [vmem:[%s11933_s3 + $0x30] ss:$8 sps:$4 sm:$0xff]  }
 0x624   :  { %2046 = vmatpush1.bf16.msra.mxu0 %v9741_v33 }
 0x625   :  { %2047 = vmatprep.subr.bf16.mxu0 %v9743_v53 }
 0x628   :  { %2048 = vmatpush1.bf16.msra.mxu0 %v9745_v0 }
 0x629   :  { %v1984_v33 = vpop.permute.xlu1 %1983 }
 0x62b   :  { %2054 = vmatmul.mubr.bf16.vlgmr.msra.gmra.mrb[16].mxu0 %v8846_v37  ;;  %v1989_v42 = vpop.permute.xlu0 %1988 }
 0x62c   :  { %2063 = vmatprep.mubr.bf16.mxu0 %v8849_v63 }
 0x62f   :  { %v1999_v30 = vpop.permute.xlu0 %1998 }
 0x633   :  { %2064 = vmatmul.mubr.bf16.gmra.mrb[20].mxu0 %v8851_v46 }
 0x6fe   :  { %v2055_v36 = vpop.f32.mrb[16].mxu0 }
 0x6ff   :  { %v2056_v53 = vadd.f32 %v2055_v36, %v1984_v33  ;;  %v2057_v19 = vpop.f32.mrb[17].mxu0 }
 0x700   :  { %v2059_v28 = vpop.f32.mrb[18].mxu0  ;;  %v2058_v2 = vadd.f32 %v2057_v19, %v1984_v33 }
 0x701   :  { %v2074_v18 = vmax.f32 %v2056_v53, 0.0  ;;  %v2060_v48 = vadd.f32 %v2059_v28, %v1989_v42  ;;  %v2061_v0 = vpop.f32.mrb[19].mxu0 }
 0x702   :  { %v2062_v61 = vadd.f32 %v2061_v0, %v1989_v42 }
 0x703   :  { %v2090_v45 = vadd.f32 %v2074_v18, %v9463_v21  ;;  %v2076_v15 = vmax.f32 %v2060_v48, 0.0 }
 0x704   :  { %v2077_v35 = vmax.f32 %v2062_v61, 0.0 }
 0x705   :  { %v9948_v29 = vmax.f32 %v2090_v45, 0.0  ;;  %v2092_v55 = vadd.f32 %v2076_v15, %v9465_v11  ;;  %v2075_v11 = vmax.f32 %v2058_v2, 0.0 }
 0x706   :  { %v2065_v38 = vpop.f32.mrb[20].mxu0  ;;  %v2093_v27 = vadd.f32 %v2077_v35, %v9493_v24 }
 0x707   :  { %v9951_v59 = vmax.f32 %v2092_v55, 0.0  ;;  %v2067_v60 = vpop.f32.mrb[21].mxu0  ;;  %v9955_v22 = vpack.i.bf16 %v9948_v29, %v8951_v3  ;;  %v2091_v7 = vadd.f32 %v2075_v11, %v9489_v23  ;;  %v1994_v23 = vpop.permute.xlu1 %1993 }
 0x708   :  { %v2069_v32 = vpop.f32.mrb[22].mxu0  ;;  %v9977_v57 = vmax.f32 %v2093_v27, 0.0  ;;  %v2066_v8 = vadd.f32 %v2065_v38, %v1994_v23  ;;  %v2068_v5 = vadd.f32 %v2067_v60, %v1994_v23 }
 0x709   :  { %v2071_v50 = vpop.f32.mrb[23].mxu0  ;;  %7027 = vrot.lane.b32.xlu1 %v9955_v22, %s8961_s14  ;;  %v9961_v21 = vpack.i.bf16 %v9951_v59, %v8951_v3  ;;  %v9973_v10 = vmax.f32 %v2091_v7, 0.0  ;;  %v2070_v62 = vadd.f32 %v2069_v32, %v1999_v30 }
 0x70a   :  { %v7086_v4 = vpack.i.bf16 %v9977_v57, %v8951_v3  ;;  %v2078_v56 = vmax.f32 %v2066_v8, 0.0  ;;  %v2072_v12 = vadd.f32 %v2071_v50, %v1999_v30  ;;  %v2079_v26 = vmax.f32 %v2068_v5, 0.0 }
 0x70b   :  { %7067 = vrot.lane.b32.xlu0 %v9961_v21, %s8961_s14  ;;  %v7046_v24 = vpack.i.bf16 %v9973_v10, %v8951_v3  ;;  %v2080_v54 = vmax.f32 %v2070_v62, 0.0 }
 0x70c   :  { %v2094_v58 = vadd.f32 %v2078_v56, %v9508_v40  ;;  %v2081_v49 = vmax.f32 %v2072_v12, 0.0  ;;  %v2095_v13 = vadd.f32 %v2079_v26, %v9524_v47 }
 0x70d   :  { %7032 = vrot.lane.b32.xlu1 %v9955_v22, %s8962_s20  ;;  %v2096_v39 = vadd.f32 %v2080_v54, %v9511_v41 }
 0x70e   :  { %v9994_v20 = vmax.f32 %v2094_v58, 0.0  ;;  %v2097_v9 = vadd.f32 %v2081_v49, %v9527_v52  ;;  %v10012_v25 = vmax.f32 %v2095_v13, 0.0  ;;  %v5948_v52 = vld [vmem:[%s11932_s2 + $0x40] sm:$0xff] }
 0x70f   :  { %7072 = vrot.lane.b32.xlu0 %v9961_v21, %s8962_s20  ;;  %v9997_v44 = vmax.f32 %v2096_v39, 0.0 }
 0x710   :  { %v7106_v40 = vpack.i.bf16 %v9994_v20, %v8951_v3  ;;  %v10015_v43 = vmax.f32 %v2097_v9, 0.0  ;;  %v7126_v14 = vpack.i.bf16 %v10012_v25, %v8951_v3 }
 0x711   :  { %7037 = vrot.lane.b32.xlu1 %v9955_v22, %s8963_s21  ;;  %v7151_v41 = vpack.i.bf16 %v9997_v44, %v8951_v3 }
 0x712   :  { %v7171_v47 = vpack.i.bf16 %v10015_v43, %v8951_v3 }
 0x713   :  { %7077 = vrot.lane.b32.xlu0 %v9961_v21, %s8963_s21 }
 0x715   :  { %7042 = vrot.lane.b32.xlu1 %v9955_v22, %s8959_s24 }
 0x717   :  { %7082 = vrot.lane.b32.xlu0 %v9961_v21, %s8959_s24 }
 0x719   :  { %7047 = vrot.lane.b32.xlu1 %v7046_v24, %s8961_s14 }
 0x71b   :  { %7087 = vrot.lane.b32.xlu0 %v7086_v4, %s8961_s14 }
 0x71d   :  { %7052 = vrot.lane.b32.xlu1 %v7046_v24, %s8962_s20 }
 0x71f   :  { %7092 = vrot.lane.b32.xlu0 %v7086_v4, %s8962_s20 }
 0x721   :  { %7057 = vrot.lane.b32.xlu1 %v7046_v24, %s8963_s21 }
 0x723   :  { %7097 = vrot.lane.b32.xlu0 %v7086_v4, %s8963_s21 }
 0x725   :  { %7062 = vrot.lane.b32.xlu1 %v7046_v24, %s8959_s24 }
 0x727   :  { %7102 = vrot.lane.b32.xlu0 %v7086_v4, %s8959_s24 }
 0x729   :  { %7107 = vrot.lane.b32.xlu1 %v7106_v40, %s8961_s14 }
 0x72b   :  { %7152 = vrot.lane.b32.xlu0 %v7151_v41, %s8961_s14 }
 0x72d   :  { %7112 = vrot.lane.b32.xlu1 %v7106_v40, %s8962_s20 }
 0x72f   :  { %7157 = vrot.lane.b32.xlu0 %v7151_v41, %s8962_s20 }
 0x731   :  { %7117 = vrot.lane.b32.xlu1 %v7106_v40, %s8963_s21 }
 0x733   :  { %7162 = vrot.lane.b32.xlu0 %v7151_v41, %s8963_s21 }
 0x735   :  { %7122 = vrot.lane.b32.xlu1 %v7106_v40, %s8959_s24 }
 0x737   :  { %7167 = vrot.lane.b32.xlu0 %v7151_v41, %s8959_s24 }
 0x739   :  { %7127 = vrot.lane.b32.xlu1 %v7126_v14, %s8961_s14 }
 0x73b   :  { %7172 = vrot.lane.b32.xlu0 %v7171_v47, %s8961_s14 }
 0x73d   :  { %7132 = vrot.lane.b32.xlu1 %v7046_v24, %s8950_s12 }
 0x73f   :  { %7177 = vrot.lane.b32.xlu0 %v7086_v4, %s8950_s12 }
 0x741   :  { %7137 = vrot.lane.b32.xlu1 %v7126_v14, %s8962_s20 }
 0x743   :  { %7187 = vrot.lane.b32.xlu0 %v7171_v47, %s8962_s20 }
 0x745   :  { %7142 = vrot.lane.b32.xlu1 %v7126_v14, %s8963_s21 }
 0x747   :  { %7192 = vrot.lane.b32.xlu0 %v9961_v21, %s8950_s12 }
 0x749   :  { %7147 = vrot.lane.b32.xlu1 %v7126_v14, %s8959_s24 }
 0x74b   :  { %7207 = vrot.lane.b32.xlu0 %v7171_v47, %s8963_s21 }
 0x74d   :  { %7182 = vrot.lane.b32.xlu1 %v9955_v22, %s8950_s12 }
 0x74f   :  { %7212 = vrot.lane.b32.xlu0 %v7151_v41, %s8950_s12 }
 0x751   :  { %7197 = vrot.lane.b32.xlu1 %v7126_v14, %s8950_s12 }
 0x753   :  { %7222 = vrot.lane.b32.xlu0 %v7171_v47, %s8959_s24 }
 0x755   :  { %7202 = vrot.lane.b32.xlu1 %v7106_v40, %s8950_s12 }
 0x757   :  { %7227 = vrot.lane.b32.xlu0 %v7086_v4, %s8954_s16 }
 0x759   :  { %7217 = vrot.lane.b32.xlu1 %v7046_v24, %s8954_s16 }
 0x75b   :  { %7237 = vrot.lane.b32.xlu0 %v7171_v47, %s8950_s12 }
 0x75d   :  { %7232 = vrot.lane.b32.xlu1 %v9955_v22, %s8954_s16 }
 0x75f   :  { %7242 = vrot.lane.b32.xlu0 %v9961_v21, %s8954_s16 }
 0x761   :  { %7247 = vrot.lane.b32.xlu1 %v7126_v14, %s8954_s16 }
 0x763   :  { %7257 = vrot.lane.b32.xlu0 %v7171_v47, %s8954_s16 }
 0x765   :  { %7252 = vrot.lane.b32.xlu1 %v7106_v40, %s8954_s16 }
 0x767   :  { %7262 = vrot.lane.b32.xlu0 %v7151_v41, %s8954_s16 }
 0x769   :  { %2477 = vperm.xlu1 %6305, %v5948_v52  }
 0x76b   :  { %2482 = vperm.xlu0 %6304, %v5949_v6  }
 0x76d   :  { %2487 = vperm.xlu1 %6305, %v5950_v16  }
 0x76f   :  { %2492 = vperm.xlu0 %6304, %v5951_v34  }
 0x77b   :  { %v7028_v51 = vpop.permute.xlu1 %7027 }
 0x77c   :  { %v7030_v48 = vunpack.i.h.bf16 %v7028_v51  ;;  %v7029_v0 = vunpack.i.l.bf16 %v7028_v51 }
 0x77d   :  { %v7068_v1 = vpop.permute.xlu0 %7067 }
 0x77e   :  { %v7070_v53 = vunpack.i.h.bf16 %v7068_v1  ;;  %v7069_v19 = vunpack.i.l.bf16 %v7068_v1  ;;  %v2165_v32 = vsel %vm2164_vm10, %v7029_v0, %v7030_v48 }
 0x77f   :  { %v10066_v31 = vpop.permute.xlu1 %7032 }
 0x780   :  { %v2166_v38 = vsel %vm2164_vm10, %v7069_v19, %v7070_v53  ;;  %v7035_v17 = vunpack.i.h.bf16 %v10066_v31  ;;  %v7034_v16 = vunpack.i.l.bf16 %v10066_v31 }
 0x781   :  { %v10068_v37 = vpop.permute.xlu0 %7072  ;;  %v2447_v21 = vpack.c.bf16 %v2166_v38, %v2165_v32 }
 0x782   :  { %v7075_v41 = vunpack.i.h.bf16 %v10068_v37  ;;  %v7074_v26 = vunpack.i.l.bf16 %v10068_v37 }
 0x783   :  { %v10070_v63 = vpop.permute.xlu1 %7037 }
 0x785   :  { %v10072_v46 = vpop.permute.xlu0 %7077 }
 0x787   :  { %v10074_v33 = vpop.permute.xlu1 %7042 }
 0x789   :  { %v10076_v36 = vpop.permute.xlu0 %7082 }
 0x78b   :  { %v7048_v42 = vpop.permute.xlu1 %7047 }
 0x78c   :  { %v7050_v28 = vunpack.i.h.bf16 %v7048_v42  ;;  %v7049_v18 = vunpack.i.l.bf16 %v7048_v42 }
 0x78d   :  { %v7088_v45 = vpop.permute.xlu0 %7087 }
 0x78e   :  { %v7090_v15 = vunpack.i.h.bf16 %v7088_v45  ;;  %v7089_v55 = vunpack.i.l.bf16 %v7088_v45  ;;  %v2197_v60 = vsel %vm2164_vm10, %v7049_v18, %v7050_v28  ;;  %v2223_v28 = vsel %vm2221_vm11, %v7074_v26, %v7075_v41 }
 0x78f   :  { %v7053_v2 = vpop.permute.xlu1 %7052  ;;  %v2222_v45 = vsel %vm2221_vm11, %v7034_v16, %v7035_v17  ;;  %v7045_v17 = vunpack.i.h.bf16 %v10074_v33 }
 0x790   :  { %v2198_v22 = vsel %vm2164_vm10, %v7089_v55, %v7090_v15  ;;  %v7055_v9 = vunpack.i.h.bf16 %v7053_v2  ;;  %v7054_v14 = vunpack.i.l.bf16 %v7053_v2  ;;  %v7040_v15 = vunpack.i.h.bf16 %v10070_v63 }
 0x791   :  { %v7093_v61 = vpop.permute.xlu0 %7092  ;;  %v2448_v50 = vpack.c.bf16 %v2198_v22, %v2197_v60 }
 0x792   :  { %v7095_v58 = vunpack.i.h.bf16 %v7093_v61  ;;  %v7094_v39 = vunpack.i.l.bf16 %v7093_v61  ;;  %v2246_v0 = vsel %vm2221_vm11, %v7054_v14, %v7055_v9 }
 0x793   :  { %v10082_v11 = vpop.permute.xlu1 %7057  ;;  %2515 = vmatprep.subr.bf16.mxu1 %v2448_v50  ;;  %v7039_v50 = vunpack.i.l.bf16 %v10070_v63 }
 0x794   :  { %2516 = vmatpush1.bf16.msra.mxu1 %v2447_v21  ;;  %v2247_v19 = vsel %vm2221_vm11, %v7094_v39, %v7095_v58  ;;  %v7060_v58 = vunpack.i.h.bf16 %v10082_v11  ;;  %v7059_v39 = vunpack.i.l.bf16 %v10082_v11 }
 0x795   :  { %v10084_v35 = vpop.permute.xlu0 %7097  ;;  %v2452_v38 = vpack.c.bf16 %v2247_v19, %v2246_v0 }
 0x796   :  { %v7100_v2 = vunpack.i.h.bf16 %v10084_v35  ;;  %v7099_v60 = vunpack.i.l.bf16 %v10084_v35  ;;  %v7080_v35 = vunpack.i.h.bf16 %v10072_v46 }
 0x797   :  { %v10086_v7 = vpop.permute.xlu1 %7062 }
 0x799   :  { %v10088_v27 = vpop.permute.xlu0 %7102 }
 0x79b   :  { %v7108_v23 = vpop.permute.xlu1 %7107 }
 0x79c   :  { %v7110_v47 = vunpack.i.h.bf16 %v7108_v23  ;;  %v7109_v52 = vunpack.i.l.bf16 %v7108_v23 }
 0x79d   :  { %v7153_v8 = vpop.permute.xlu0 %7152 }
 0x79e   :  { %v7155_v5 = vunpack.i.h.bf16 %v7153_v8  ;;  %v7154_v40 = vunpack.i.l.bf16 %v7153_v8  ;;  %v2167_v18 = vsel %vm2164_vm10, %v7109_v52, %v7110_v47  ;;  %v2451_v8 = vpack.c.bf16 %v2223_v28, %v2222_v45 }
 0x79f   :  { %v10090_v24 = vpop.permute.xlu1 %7112  ;;  %v7085_v28 = vunpack.i.h.bf16 %v10076_v36  ;;  %v7065_v45 = vunpack.i.h.bf16 %v10086_v7 }
 0x7a0   :  { %v2168_v1 = vsel %vm2164_vm10, %v7154_v40, %v7155_v5  ;;  %v7115_v5 = vunpack.i.h.bf16 %v10090_v24  ;;  %v7114_v40 = vunpack.i.l.bf16 %v10090_v24  ;;  %v2271_v24 = vsel %vm2270_vm12, %v7039_v50, %v7040_v15 }
 0x7a1   :  { %v7158_v30 = vpop.permute.xlu0 %7157  ;;  %v2449_v55 = vpack.c.bf16 %v2168_v1, %v2167_v18  ;;  %v7104_v1 = vunpack.i.l.bf16 %v10088_v27  ;;  %v7084_v18 = vunpack.i.l.bf16 %v10076_v36  ;;  %v7064_v15 = vunpack.i.l.bf16 %v10086_v7 }
 0x7a2   :  { %v7160_v22 = vunpack.i.h.bf16 %v7158_v30  ;;  %v7159_v32 = vunpack.i.l.bf16 %v7158_v30  ;;  %v7079_v30 = vunpack.i.l.bf16 %v10072_v46  ;;  %v2224_v14 = vsel %vm2221_vm11, %v7114_v40, %v7115_v5 }
 0x7a3   :  { %v10092_v62 = vpop.permute.xlu1 %7117  ;;  %v2295_v46 = vsel %vm2270_vm12, %v7059_v39, %v7060_v58 }
 0x7a4   :  { %v2225_v26 = vsel %vm2221_vm11, %v7159_v32, %v7160_v22 }
 0x7a5   :  { %v10094_v4 = vpop.permute.xlu0 %7162  ;;  %v2453_v16 = vpack.c.bf16 %v2225_v26, %v2224_v14 }
 0x7a6   :  { %v7165_v19 = vunpack.i.h.bf16 %v10094_v4 }
 0x7a7   :  { %v10096_v56 = vpop.permute.xlu1 %7122 }
 0x7a9   :  { %v10098_v54 = vpop.permute.xlu0 %7167 }
 0x7aa   :  { %v7170_v40 = vunpack.i.h.bf16 %v10098_v54 }
 0x7ab   :  { %v7128_v12 = vpop.permute.xlu1 %7127 }
 0x7ac   :  { %v7130_v49 = vunpack.i.h.bf16 %v7128_v12  ;;  %v7129_v13 = vunpack.i.l.bf16 %v7128_v12 }
 0x7ad   :  { %v7173_v6 = vpop.permute.xlu0 %7172 }
 0x7ae   :  { %v7175_v34 = vunpack.i.h.bf16 %v7173_v6  ;;  %v7174_v51 = vunpack.i.l.bf16 %v7173_v6  ;;  %v2199_v37 = vsel %vm2164_vm10, %v7129_v13, %v7130_v49  ;;  %v2296_v13 = vsel %vm2270_vm12, %v7099_v60, %v7100_v2 }
 0x7af   :  { %v10105_v53 = vpop.permute.xlu1 %7132  ;;  %v2272_v6 = vsel %vm2270_vm12, %v7079_v30, %v7080_v35 }
 0x7b0   :  { %v2200_v42 = vsel %vm2164_vm10, %v7174_v51, %v7175_v34  ;;  %v2456_v34 = vpack.c.bf16 %v2296_v13, %v2295_v46  ;;  %v7105_v51 = vunpack.i.h.bf16 %v10088_v27  ;;  %v7119_v27 = vunpack.i.l.bf16 %v10092_v62 }
 0x7b1   :  { %v10112_v48 = vpop.permute.xlu0 %7177  ;;  %v2450_v31 = vpack.c.bf16 %v2200_v42, %v2199_v37  ;;  %v7164_v37 = vunpack.i.l.bf16 %v10094_v4  ;;  %v7044_v4 = vunpack.i.l.bf16 %v10074_v33  ;;  %v2455_v22 = vpack.c.bf16 %v2272_v6, %v2271_v24 }
 0x7b2   :  { %v7180_v35 = vunpack.i.h.bf16 %v10112_v48  ;;  %v7179_v30 = vunpack.i.l.bf16 %v10112_v48  ;;  %v7125_v13 = vunpack.i.h.bf16 %v10096_v56  ;;  %v7134_v24 = vunpack.i.l.bf16 %v10105_v53 }
 0x7b3   :  { %v7138_v61 = vpop.permute.xlu1 %7137  ;;  %2517 = vmatprep.subr.bf16.mxu1 %v2450_v31  ;;  %v2274_v36 = vsel %vm2270_vm12, %v7164_v37, %v7165_v19  ;;  %v2319_v58 = vsel %vm1203_vm7, %v7044_v4, %v7045_v17 }
 0x7b4   :  { %v7140_v21 = vunpack.i.h.bf16 %v7138_v61  ;;  %v7139_v23 = vunpack.i.l.bf16 %v7138_v61  ;;  %2518 = vmatpush1.bf16.msra.mxu1 %v2449_v55  ;;  %v7120_v55 = vunpack.i.h.bf16 %v10092_v62  ;;  %v2344_v61 = vsel %vm1203_vm7, %v7104_v1, %v7105_v51 }
 0x7b5   :  { %v7188_v12 = vpop.permute.xlu0 %7187  ;;  %2519 = vmatprep.subr.bf16.mxu1 %v2452_v38 }
 0x7b6   :  { %v7190_v41 = vunpack.i.h.bf16 %v7188_v12  ;;  %v7189_v63 = vunpack.i.l.bf16 %v7188_v12  ;;  %v2248_v11 = vsel %vm2221_vm11, %v7139_v23, %v7140_v21  ;;  %v2320_v21 = vsel %vm1203_vm7, %v7084_v18, %v7085_v28 }
 0x7b7   :  { %v7143_v49 = vpop.permute.xlu1 %7142  ;;  %v2273_v62 = vsel %vm2270_vm12, %v7119_v27, %v7120_v55  ;;  %v7169_v12 = vunpack.i.l.bf16 %v10098_v54 }
 0x7b8   :  { %2520 = vmatpush1.bf16.msra.mxu1 %v2451_v8  ;;  %v2249_v9 = vsel %vm2221_vm11, %v7189_v63, %v7190_v41  ;;  %v7145_v31 = vunpack.i.h.bf16 %v7143_v49  ;;  %v7144_v0 = vunpack.i.l.bf16 %v7143_v49  ;;  %v2343_v8 = vsel %vm1203_vm7, %v7064_v15, %v7065_v45 }
 0x7b9   :  { %v10132_v47 = vpop.permute.xlu0 %7192  ;;  %v2454_v52 = vpack.c.bf16 %v2249_v9, %v2248_v11  ;;  %v2457_v39 = vpack.c.bf16 %v2274_v36, %v2273_v62  ;;  %v2460_v5 = vpack.c.bf16 %v2344_v61, %v2343_v8  ;;  %v2459_v49 = vpack.c.bf16 %v2320_v21, %v2319_v58 }
 0x7ba   :  { %v2297_v50 = vsel %vm2270_vm12, %v7144_v0, %v7145_v31  ;;  %v7124_v11 = vunpack.i.l.bf16 %v10096_v56  ;;  %v7135_v9 = vunpack.i.h.bf16 %v10105_v53  ;;  %v2322_v6 = vsel %vm1203_vm7, %v7169_v12, %v7170_v40 }
 0x7bb   :  { %v7148_v42 = vpop.permute.xlu1 %7147  ;;  %2521 = vmatprep.subr.bf16.mxu1 %v2454_v52  ;;  %v7194_v51 = vunpack.i.l.bf16 %v10132_v47 }
 0x7bc   :  { %2522 = vmatpush1.bf16.msra.mxu1 %v2453_v16  ;;  %v7150_v63 = vunpack.i.h.bf16 %v7148_v42  ;;  %v7149_v26 = vunpack.i.l.bf16 %v7148_v42  ;;  %v2392_v16 = vsel %vm1309_vm9, %v7179_v30, %v7180_v35  ;;  %v2321_v1 = vsel %vm1203_vm7, %v7124_v11, %v7125_v13 }
 0x7bd   :  { %v7208_v38 = vpop.permute.xlu0 %7207  ;;  %2523 = vmatprep.subr.bf16.mxu1 %v2456_v34  ;;  %v7195_v34 = vunpack.i.h.bf16 %v10132_v47  ;;  %v2391_v42 = vsel %vm1309_vm9, %v7134_v24, %v7135_v9  ;;  %v2461_v18 = vpack.c.bf16 %v2322_v6, %v2321_v1 }
 0x7be   :  { %v7210_v2 = vunpack.i.h.bf16 %v7208_v38  ;;  %v7209_v60 = vunpack.i.l.bf16 %v7208_v38  ;;  %v2345_v56 = vsel %vm1203_vm7, %v7149_v26, %v7150_v63  ;;  %v2464_v31 = vpack.c.bf16 %v2392_v16, %v2391_v42 }
 0x7bf   :  { %v7183_v32 = vpop.permute.xlu1 %7182  ;;  %v2368_v27 = vsel %vm1309_vm9, %v7194_v51, %v7195_v34 }
 0x7c0   :  { %2524 = vmatpush1.bf16.msra.mxu1 %v2455_v22  ;;  %v2298_v7 = vsel %vm2270_vm12, %v7209_v60, %v7210_v2  ;;  %v7185_v54 = vunpack.i.h.bf16 %v7183_v32  ;;  %v7184_v52 = vunpack.i.l.bf16 %v7183_v32 }
 0x7c1   :  { %v10154_v23 = vpop.permute.xlu0 %7212  ;;  %v2458_v33 = vpack.c.bf16 %v2298_v7, %v2297_v50 }
 0x7c2   :  { %v2367_v28 = vsel %vm1309_vm9, %v7184_v52, %v7185_v54  ;;  %v7215_v2 = vunpack.i.h.bf16 %v10154_v23  ;;  %v7214_v60 = vunpack.i.l.bf16 %v10154_v23 }
 0x7c3   :  { %v7198_v41 = vpop.permute.xlu1 %7197  ;;  %2525 = vmatprep.subr.bf16.mxu1 %v2458_v33  ;;  %v2463_v36 = vpack.c.bf16 %v2368_v27, %v2367_v28  ;;  %v2472_v28 = vpack.c.bf16 %v9977_v57, %v9973_v10 }
 0x7c4   :  { %2526 = vmatpush1.bf16.msra.mxu1 %v2457_v39  ;;  %v7200_v0 = vunpack.i.h.bf16 %v7198_v41  ;;  %v7199_v45 = vunpack.i.l.bf16 %v7198_v41  ;;  %v2370_v23 = vsel %vm1309_vm9, %v7214_v60, %v7215_v2 }
 0x7c5   :  { %v7223_v14 = vpop.permute.xlu0 %7222  ;;  %2527 = vmatprep.subr.bf16.mxu1 %v2460_v5 }
 0x7c6   :  { %v7225_v46 = vunpack.i.h.bf16 %v7223_v14  ;;  %v7224_v48 = vunpack.i.l.bf16 %v7223_v14  ;;  %v2393_v33 = vsel %vm1309_vm9, %v7199_v45, %v7200_v0  ;;  %v2473_v0 = vpack.c.bf16 %v9997_v44, %v9994_v20  ;;  %v8852_v45 = vld [vmem:[%s11931_s1 + $0x40] ss:$8 sps:$4 sm:$0xff]  }
 0x7c7   :  { %v7203_v17 = vpop.permute.xlu1 %7202 }
 0x7c8   :  { %2528 = vmatpush1.bf16.msra.mxu1 %v2459_v49  ;;  %v2346_v53 = vsel %vm1203_vm7, %v7224_v48, %v7225_v46  ;;  %v7205_v15 = vunpack.i.h.bf16 %v7203_v17  ;;  %v7204_v55 = vunpack.i.l.bf16 %v7203_v17 }
 0x7c9   :  { %v7228_v19 = vpop.permute.xlu0 %7227  ;;  %v2462_v37 = vpack.c.bf16 %v2346_v53, %v2345_v56 }
 0x7ca   :  { %v7230_v32 = vunpack.i.h.bf16 %v7228_v19  ;;  %v7229_v61 = vunpack.i.l.bf16 %v7228_v19  ;;  %v2369_v21 = vsel %vm1309_vm9, %v7204_v55, %v7205_v15  ;;  %v8855_v15 = vld [vmem:[%s11931_s1 + $0x54] ss:$8 sps:$4 sm:$0xff]   ;;  %v8857_v55 = vld [vmem:[%s11931_s1 + $0x50] ss:$8 sps:$4 sm:$0xff]  }
 0x7cb   :  { %v7218_v47 = vpop.permute.xlu1 %7217  ;;  %2529 = vmatprep.subr.bf16.mxu1 %v2462_v37  ;;  %v2465_v41 = vpack.c.bf16 %v2370_v23, %v2369_v21 }
 0x7cc   :  { %v7220_v38 = vunpack.i.h.bf16 %v7218_v47  ;;  %v7219_v4 = vunpack.i.l.bf16 %v7218_v47  ;;  %2530 = vmatpush1.bf16.msra.mxu1 %v2461_v18  ;;  %v2440_v63 = vsel %vm245_vm2, %v7229_v61, %v7230_v32  ;;  %v2471_v18 = vpack.c.bf16 %v9951_v59, %v9948_v29 }
 0x7cd   :  { %v7238_v22 = vpop.permute.xlu0 %7237  ;;  %2531 = vmatprep.subr.bf16.mxu1 %v2464_v31  ;;  %v2474_v31 = vpack.c.bf16 %v10015_v43, %v10012_v25 }
 0x7ce   :  { %v7240_v50 = vunpack.i.h.bf16 %v7238_v22  ;;  %v7239_v7 = vunpack.i.l.bf16 %v7238_v22  ;;  %v2439_v5 = vsel %vm245_vm2, %v7219_v4, %v7220_v38 }
 0x7cf   :  { %v7233_v62 = vpop.permute.xlu1 %7232  ;;  %v2468_v49 = vpack.c.bf16 %v2440_v63, %v2439_v5 }
 0x7d0   :  { %v7235_v8 = vunpack.i.h.bf16 %v7233_v62  ;;  %v7234_v58 = vunpack.i.l.bf16 %v7233_v62  ;;  %2532 = vmatpush1.bf16.msra.mxu1 %v2463_v36  ;;  %v2394_v39 = vsel %vm1309_vm9, %v7239_v7, %v7240_v50 }
 0x7d1   :  { %v7243_v40 = vpop.permute.xlu0 %7242  ;;  %v2466_v12 = vpack.c.bf16 %v2394_v39, %v2393_v33 }
 0x7d2   :  { %v7245_v35 = vunpack.i.h.bf16 %v7243_v40  ;;  %v7244_v30 = vunpack.i.l.bf16 %v7243_v40  ;;  %v2415_v13 = vsel %vm245_vm2, %v7234_v58, %v7235_v8 }
 0x7d3   :  { %v7248_v26 = vpop.permute.xlu1 %7247  ;;  %2533 = vmatprep.subr.bf16.mxu1 %v2466_v12 }
 0x7d4   :  { %v2416_v11 = vsel %vm245_vm2, %v7244_v30, %v7245_v35  ;;  %v7250_v9 = vunpack.i.h.bf16 %v7248_v26  ;;  %v7249_v24 = vunpack.i.l.bf16 %v7248_v26  ;;  %2534 = vmatpush1.bf16.msra.mxu1 %v2465_v41 }
 0x7d5   :  { %v7258_v14 = vpop.permute.xlu0 %7257  ;;  %2535 = vmatprep.subr.bf16.mxu1 %v2468_v49  ;;  %v2467_v54 = vpack.c.bf16 %v2416_v11, %v2415_v13 }
 0x7d6   :  { %v7260_v52 = vunpack.i.h.bf16 %v7258_v14  ;;  %v7259_v46 = vunpack.i.l.bf16 %v7258_v14  ;;  %v2441_v16 = vsel %vm245_vm2, %v7249_v24, %v7250_v9 }
 0x7d7   :  { %v7253_v48 = vpop.permute.xlu1 %7252 }
 0x7d8   :  { %v7255_v6 = vunpack.i.h.bf16 %v7253_v48  ;;  %v7254_v17 = vunpack.i.l.bf16 %v7253_v48  ;;  %2536 = vmatpush1.bf16.msra.mxu1 %v2467_v54  ;;  %v2442_v34 = vsel %vm245_vm2, %v7259_v46, %v7260_v52 }
 0x7d9   :  { %v7263_v51 = vpop.permute.xlu0 %7262  ;;  %v2470_v56 = vpack.c.bf16 %v2442_v34, %v2441_v16  ;;  %v5960_v34 = vld [vmem:[%s11934_s4 + $0x40] sm:$0xff] }
 0x7da   :  { %v7265_v53 = vunpack.i.h.bf16 %v7263_v51  ;;  %v7264_v1 = vunpack.i.l.bf16 %v7263_v51  ;;  %v2417_v19 = vsel %vm245_vm2, %v7254_v17, %v7255_v6  ;;  %v5961_v51 = vld [vmem:[%s11934_s4 + $0x48] sm:$0xff] }
 0x7db   :  { %2537 = vmatprep.subr.bf16.mxu1 %v2470_v56  ;;  %v8860_v56 = vld [vmem:[%s11933_s3 + $0x44] ss:$8 sps:$4 sm:$0xff]  }
 0x7dc   :  { %v2418_v37 = vsel %vm245_vm2, %v7264_v1, %v7265_v53  ;;  %v5962_v53 = vld [vmem:[%s11934_s4 + $0x50] sm:$0xff]  ;;  %3014 = vmatprep.mubr.bf16.mxu0 %v8860_v56  ;;  %v5963_v1 = vld [vmem:[%s11934_s4 + $0x58] sm:$0xff] }
 0x7dd   :  { %v2469_v42 = vpack.c.bf16 %v2418_v37, %v2417_v19 }
 0x7df   :  { %2538 = vmatpush1.bf16.msra.mxu1 %v2469_v42 }
 0x7e0   :  { %2539 = vmatprep.subr.bf16.mxu1 %v2472_v28 }
 0x7e3   :  { %2540 = vmatpush1.bf16.msra.mxu1 %v2471_v18 }
 0x7e4   :  { %2541 = vmatprep.subr.bf16.mxu1 %v2474_v31 }
 0x7e7   :  { %2542 = vmatpush1.bf16.msra.mxu1 %v2473_v0 }
 0x7e8   :  { %v2478_v47 = vpop.permute.xlu1 %2477 }
 0x7ea   :  { %2548 = vmatmul.mubr.bf16.vlgmr.msra.gmra.mrb[16].mxu1 %v8852_v45  ;;  %v2483_v2 = vpop.permute.xlu0 %2482 }
 0x7eb   :  { %2557 = vmatprep.mubr.bf16.mxu1 %v8855_v15 }
 0x7ec   :  { %v2488_v40 = vpop.permute.xlu1 %2487 }
 0x7ee   :  { %v2493_v8 = vpop.permute.xlu0 %2492 }
 0x7f2   :  { %2558 = vmatmul.mubr.bf16.gmra.mrb[20].mxu1 %v8857_v55 }
 0x8bd   :  { %v2549_v27 = vpop.f32.mrb[16].mxu1 }
 0x8be   :  { %v2550_v38 = vadd.f32 %v2549_v27, %v2478_v47  ;;  %v2551_v4 = vpop.f32.mrb[17].mxu1 }
 0x8bf   :  { %v2553_v60 = vpop.f32.mrb[18].mxu1  ;;  %v2552_v12 = vadd.f32 %v2551_v4, %v2478_v47 }
 0x8c0   :  { %v2568_v22 = vmax.f32 %v2550_v38, 0.0  ;;  %v2554_v36 = vadd.f32 %v2553_v60, %v2483_v2  ;;  %v2555_v32 = vpop.f32.mrb[19].mxu1 }
 0x8c1   :  { %v2556_v58 = vadd.f32 %v2555_v32, %v2483_v2  ;;  %v2569_v49 = vmax.f32 %v2552_v12, 0.0 }
 0x8c2   :  { %v2570_v61 = vmax.f32 %v2554_v36, 0.0  ;;  %v10208_v50 = vpack.i.bf16 %v2568_v22, %v8951_v3 }
 0x8c3   :  { %v2571_v41 = vmax.f32 %v2556_v58, 0.0  ;;  %v7286_v52 = vpack.i.bf16 %v2569_v49, %v8951_v3 }
 0x8c4   :  { %7267 = vrot.lane.b32.xlu1 %v10208_v50, %s8961_s14  ;;  %v10213_v7 = vpack.i.bf16 %v2570_v61, %v8951_v3  ;;  %v10229_v24 = vpack.c.bf16 %v2570_v61, %v2568_v22 }
 0x8c5   :  { %v2559_v21 = vpop.f32.mrb[20].mxu1  ;;  %v10227_v9 = vpack.c.bf16 %v2571_v41, %v2569_v49  ;;  %v7326_v46 = vpack.i.bf16 %v2571_v41, %v8951_v3 }
 0x8c6   :  { %v2561_v62 = vpop.f32.mrb[21].mxu1  ;;  %7307 = vrot.lane.b32.xlu0 %v10213_v7, %s8961_s14  ;;  %v2560_v35 = vadd.f32 %v2559_v21, %v2488_v40 }
 0x8c7   :  { %v2563_v33 = vpop.f32.mrb[22].mxu1  ;;  %v2562_v30 = vadd.f32 %v2561_v62, %v2488_v40 }
 0x8c8   :  { %v2565_v39 = vpop.f32.mrb[23].mxu1  ;;  %7272 = vrot.lane.b32.xlu1 %v10208_v50, %s8962_s20  ;;  %v2564_v5 = vadd.f32 %v2563_v33, %v2493_v8  ;;  %v2572_v13 = vmax.f32 %v2560_v35, 0.0 }
 0x8c9   :  { %v2566_v23 = vadd.f32 %v2565_v39, %v2493_v8  ;;  %v2573_v11 = vmax.f32 %v2562_v30, 0.0 }
 0x8ca   :  { %7312 = vrot.lane.b32.xlu0 %v10213_v7, %s8962_s20  ;;  %v2574_v63 = vmax.f32 %v2564_v5, 0.0  ;;  %v7346_v48 = vpack.i.bf16 %v2572_v13, %v8951_v3 }
 0x8cb   :  { %v2575_v26 = vmax.f32 %v2566_v23, 0.0  ;;  %v7366_v17 = vpack.i.bf16 %v2573_v11, %v8951_v3 }
 0x8cc   :  { %7277 = vrot.lane.b32.xlu1 %v10208_v50, %s8963_s21  ;;  %v10233_v54 = vpack.c.bf16 %v2574_v63, %v2572_v13  ;;  %v7391_v6 = vpack.i.bf16 %v2574_v63, %v8951_v3 }
 0x8cd   :  { %v10231_v14 = vpack.c.bf16 %v2575_v26, %v2573_v11  ;;  %v7411_v16 = vpack.i.bf16 %v2575_v26, %v8951_v3 }
 0x8ce   :  { %7317 = vrot.lane.b32.xlu0 %v10213_v7, %s8963_s21 }
 0x8d0   :  { %7282 = vrot.lane.b32.xlu1 %v10208_v50, %s8959_s24 }
 0x8d2   :  { %7322 = vrot.lane.b32.xlu0 %v10213_v7, %s8959_s24 }
 0x8d4   :  { %7287 = vrot.lane.b32.xlu1 %v7286_v52, %s8961_s14 }
 0x8d6   :  { %7327 = vrot.lane.b32.xlu0 %v7326_v46, %s8961_s14 }
 0x8d8   :  { %7292 = vrot.lane.b32.xlu1 %v7286_v52, %s8962_s20 }
 0x8da   :  { %7332 = vrot.lane.b32.xlu0 %v7326_v46, %s8962_s20 }
 0x8dc   :  { %7297 = vrot.lane.b32.xlu1 %v7286_v52, %s8963_s21 }
 0x8de   :  { %7337 = vrot.lane.b32.xlu0 %v7326_v46, %s8963_s21 }
 0x8e0   :  { %7302 = vrot.lane.b32.xlu1 %v7286_v52, %s8959_s24 }
 0x8e2   :  { %7342 = vrot.lane.b32.xlu0 %v7326_v46, %s8959_s24 }
 0x8e4   :  { %7347 = vrot.lane.b32.xlu1 %v7346_v48, %s8961_s14 }
 0x8e6   :  { %7392 = vrot.lane.b32.xlu0 %v7391_v6, %s8961_s14 }
 0x8e8   :  { %7352 = vrot.lane.b32.xlu1 %v7346_v48, %s8962_s20 }
 0x8ea   :  { %7397 = vrot.lane.b32.xlu0 %v7391_v6, %s8962_s20 }
 0x8ec   :  { %7357 = vrot.lane.b32.xlu1 %v7346_v48, %s8963_s21 }
 0x8ee   :  { %7402 = vrot.lane.b32.xlu0 %v7391_v6, %s8963_s21 }
 0x8f0   :  { %7362 = vrot.lane.b32.xlu1 %v7346_v48, %s8959_s24 }
 0x8f2   :  { %7407 = vrot.lane.b32.xlu0 %v7391_v6, %s8959_s24 }
 0x8f4   :  { %7367 = vrot.lane.b32.xlu1 %v7366_v17, %s8961_s14 }
 0x8f6   :  { %7412 = vrot.lane.b32.xlu0 %v7411_v16, %s8961_s14 }
 0x8f8   :  { %7372 = vrot.lane.b32.xlu1 %v7286_v52, %s8950_s12 }
 0x8fa   :  { %7417 = vrot.lane.b32.xlu0 %v7326_v46, %s8950_s12 }
 0x8fc   :  { %7377 = vrot.lane.b32.xlu1 %v7366_v17, %s8962_s20 }
 0x8fe   :  { %7427 = vrot.lane.b32.xlu0 %v7411_v16, %s8962_s20 }
 0x900   :  { %7382 = vrot.lane.b32.xlu1 %v7366_v17, %s8963_s21 }
 0x902   :  { %7432 = vrot.lane.b32.xlu0 %v10213_v7, %s8950_s12 }
 0x904   :  { %7387 = vrot.lane.b32.xlu1 %v7366_v17, %s8959_s24 }
 0x906   :  { %7447 = vrot.lane.b32.xlu0 %v7411_v16, %s8963_s21 }
 0x908   :  { %7422 = vrot.lane.b32.xlu1 %v10208_v50, %s8950_s12 }
 0x90a   :  { %7452 = vrot.lane.b32.xlu0 %v7391_v6, %s8950_s12 }
 0x90c   :  { %7437 = vrot.lane.b32.xlu1 %v7366_v17, %s8950_s12 }
 0x90e   :  { %7462 = vrot.lane.b32.xlu0 %v7411_v16, %s8959_s24 }
 0x910   :  { %7442 = vrot.lane.b32.xlu1 %v7346_v48, %s8950_s12 }
 0x912   :  { %7467 = vrot.lane.b32.xlu0 %v7326_v46, %s8954_s16 }
 0x914   :  { %7457 = vrot.lane.b32.xlu1 %v7286_v52, %s8954_s16 }
 0x916   :  { %7477 = vrot.lane.b32.xlu0 %v7411_v16, %s8950_s12 }
 0x918   :  { %7472 = vrot.lane.b32.xlu1 %v10208_v50, %s8954_s16 }
 0x91a   :  { %7482 = vrot.lane.b32.xlu0 %v10213_v7, %s8954_s16 }
 0x91c   :  { %7487 = vrot.lane.b32.xlu1 %v7366_v17, %s8954_s16 }
 0x91e   :  { %7497 = vrot.lane.b32.xlu0 %v7411_v16, %s8954_s16 }
 0x920   :  { %7492 = vrot.lane.b32.xlu1 %v7346_v48, %s8954_s16 }
 0x922   :  { %7502 = vrot.lane.b32.xlu0 %v7391_v6, %s8954_s16  ;;  %s8969_s16 = smov 64  }
 0x924   :  { %2944 = vperm.xlu1 %6305, %v5960_v34  }
 0x926   :  { %2949 = vperm.xlu0 %6304, %v5961_v51  }
 0x928   :  { %2954 = vperm.xlu1 %6305, %v5962_v53  }
 0x92a   :  { %2959 = vperm.xlu0 %6304, %v5963_v1  }
 0x936   :  { %v7268_v19 = vpop.permute.xlu1 %7267 }
 0x937   :  { %v7270_v4 = vunpack.i.h.bf16 %v7268_v19  ;;  %v7269_v2 = vunpack.i.l.bf16 %v7268_v19 }
 0x938   :  { %v7308_v37 = vpop.permute.xlu0 %7307 }
 0x939   :  { %v7310_v15 = vunpack.i.h.bf16 %v7308_v37  ;;  %v7309_v55 = vunpack.i.l.bf16 %v7308_v37  ;;  %v2634_v21 = vsel %vm2164_vm10, %v7269_v2, %v7270_v4 }
 0x93a   :  { %v10302_v42 = vpop.permute.xlu1 %7272 }
 0x93b   :  { %v2635_v32 = vsel %vm2164_vm10, %v7309_v55, %v7310_v15  ;;  %v7275_v37 = vunpack.i.h.bf16 %v10302_v42  ;;  %v7274_v15 = vunpack.i.l.bf16 %v10302_v42 }
 0x93c   :  { %v7313_v28 = vpop.permute.xlu0 %7312  ;;  %v2914_v8 = vpack.c.bf16 %v2635_v32, %v2634_v21 }
 0x93d   :  { %v7315_v6 = vunpack.i.h.bf16 %v7313_v28  ;;  %v7314_v17 = vunpack.i.l.bf16 %v7313_v28 }
 0x93e   :  { %v10304_v18 = vpop.permute.xlu1 %7277 }
 0x940   :  { %v10306_v31 = vpop.permute.xlu0 %7317 }
 0x942   :  { %v10308_v0 = vpop.permute.xlu1 %7282 }
 0x944   :  { %v10310_v45 = vpop.permute.xlu0 %7322 }
 0x946   :  { %v7288_v47 = vpop.permute.xlu1 %7287 }
 0x947   :  { %v7290_v27 = vunpack.i.h.bf16 %v7288_v47  ;;  %v7289_v38 = vunpack.i.l.bf16 %v7288_v47 }
 0x948   :  { %v7328_v60 = vpop.permute.xlu0 %7327 }
 0x949   :  { %v7330_v22 = vunpack.i.h.bf16 %v7328_v60  ;;  %v7329_v36 = vunpack.i.l.bf16 %v7328_v60  ;;  %v2666_v50 = vsel %vm2164_vm10, %v7289_v38, %v7290_v27  ;;  %v2691_v60 = vsel %vm2221_vm11, %v7314_v17, %v7315_v6 }
 0x94a   :  { %v7293_v61 = vpop.permute.xlu1 %7292 }
 0x94b   :  { %v2667_v7 = vsel %vm2164_vm10, %v7329_v36, %v7330_v22  ;;  %v7295_v51 = vunpack.i.h.bf16 %v7293_v61  ;;  %v7294_v56 = vunpack.i.l.bf16 %v7293_v61  ;;  %v2690_v61 = vsel %vm2221_vm11, %v7274_v15, %v7275_v37 }
 0x94c   :  { %v7333_v62 = vpop.permute.xlu0 %7332  ;;  %v2915_v33 = vpack.c.bf16 %v2667_v7, %v2666_v50  ;;  %v7280_v50 = vunpack.i.h.bf16 %v10304_v18 }
 0x94d   :  { %v7335_v13 = vunpack.i.h.bf16 %v7333_v62  ;;  %v7334_v11 = vunpack.i.l.bf16 %v7333_v62  ;;  %v2714_v42 = vsel %vm2221_vm11, %v7294_v56, %v7295_v51 }
 0x94e   :  { %v10316_v58 = vpop.permute.xlu1 %7297  ;;  %2982 = vmatprep.subr.bf16.mxu0 %v2915_v33 }
 0x94f   :  { %2983 = vmatpush1.bf16.msra.mxu0 %v2914_v8  ;;  %v2715_v4 = vsel %vm2221_vm11, %v7334_v11, %v7335_v13  ;;  %v7279_v13 = vunpack.i.l.bf16 %v10304_v18  ;;  %v7299_v6 = vunpack.i.l.bf16 %v10316_v58 }
 0x950   :  { %v10318_v39 = vpop.permute.xlu0 %7337  ;;  %v2919_v21 = vpack.c.bf16 %v2715_v4, %v2714_v42 }
 0x951   :  { %v7340_v62 = vunpack.i.h.bf16 %v10318_v39  ;;  %v7339_v33 = vunpack.i.l.bf16 %v10318_v39  ;;  %v7320_v39 = vunpack.i.h.bf16 %v10306_v31 }
 0x952   :  { %v10320_v5 = vpop.permute.xlu1 %7302 }
 0x954   :  { %v10322_v23 = vpop.permute.xlu0 %7342 }
 0x956   :  { %v7348_v40 = vpop.permute.xlu1 %7347 }
 0x957   :  { %v7350_v53 = vunpack.i.h.bf16 %v7348_v40  ;;  %v7349_v1 = vunpack.i.l.bf16 %v7348_v40 }
 0x958   :  { %v7393_v12 = vpop.permute.xlu0 %7392 }
 0x959   :  { %v7395_v52 = vunpack.i.h.bf16 %v7393_v12  ;;  %v7394_v46 = vunpack.i.l.bf16 %v7393_v12  ;;  %v2636_v22 = vsel %vm2164_vm10, %v7349_v1, %v7350_v53  ;;  %v2763_v1 = vsel %vm2270_vm12, %v7339_v33, %v7340_v62 }
 0x95a   :  { %v10324_v35 = vpop.permute.xlu1 %7352  ;;  %v7305_v62 = vunpack.i.h.bf16 %v10320_v5  ;;  %v7304_v33 = vunpack.i.l.bf16 %v10320_v5 }
 0x95b   :  { %v2637_v27 = vsel %vm2164_vm10, %v7394_v46, %v7395_v52  ;;  %v2918_v46 = vpack.c.bf16 %v2691_v60, %v2690_v61  ;;  %v7355_v17 = vunpack.i.h.bf16 %v10324_v35  ;;  %v7344_v60 = vunpack.i.l.bf16 %v10322_v23 }
 0x95c   :  { %v7398_v30 = vpop.permute.xlu0 %7397  ;;  %v2916_v7 = vpack.c.bf16 %v2637_v27, %v2636_v22  ;;  %v7285_v27 = vunpack.i.h.bf16 %v10308_v0  ;;  %v7325_v61 = vunpack.i.h.bf16 %v10310_v45 }
 0x95d   :  { %v7400_v8 = vunpack.i.h.bf16 %v7398_v30  ;;  %v7399_v40 = vunpack.i.l.bf16 %v7398_v30  ;;  %v7319_v30 = vunpack.i.l.bf16 %v10306_v31 }
 0x95e   :  { %v10326_v41 = vpop.permute.xlu1 %7357 }
 0x95f   :  { %v2693_v56 = vsel %vm2221_vm11, %v7399_v40, %v7400_v8  ;;  %v7360_v8 = vunpack.i.h.bf16 %v10326_v41 }
 0x960   :  { %v10328_v63 = vpop.permute.xlu0 %7402 }
 0x961   :  { %v7405_v22 = vunpack.i.h.bf16 %v10328_v63 }
 0x962   :  { %v10330_v26 = vpop.permute.xlu1 %7362 }
 0x964   :  { %v10332_v49 = vpop.permute.xlu0 %7407 }
 0x966   :  { %v7368_v48 = vpop.permute.xlu1 %7367 }
 0x967   :  { %v7370_v16 = vunpack.i.h.bf16 %v7368_v48  ;;  %v7369_v34 = vunpack.i.l.bf16 %v7368_v48  ;;  %v7300_v48 = vunpack.i.h.bf16 %v10316_v58 }
 0x968   :  { %v7413_v19 = vpop.permute.xlu0 %7412 }
 0x969   :  { %v7415_v55 = vunpack.i.h.bf16 %v7413_v19  ;;  %v7414_v47 = vunpack.i.l.bf16 %v7413_v19  ;;  %v2668_v28 = vsel %vm2164_vm10, %v7369_v34, %v7370_v16  ;;  %v7354_v16 = vunpack.i.l.bf16 %v10324_v35 }
 0x96a   :  { %v10337_v38 = vpop.permute.xlu1 %7372  ;;  %v2738_v35 = vsel %vm2270_vm12, %v7279_v13, %v7280_v50  ;;  %v2762_v31 = vsel %vm2270_vm12, %v7299_v6, %v7300_v48  ;;  %v7324_v50 = vunpack.i.l.bf16 %v10310_v45 }
 0x96b   :  { %v2669_v2 = vsel %vm2164_vm10, %v7414_v47, %v7415_v55  ;;  %v2692_v37 = vsel %vm2221_vm11, %v7354_v16, %v7355_v17  ;;  %v2739_v47 = vsel %vm2270_vm12, %v7319_v30, %v7320_v39  ;;  %v2810_v16 = vsel %vm1203_vm7, %v7304_v33, %v7305_v62 }
 0x96c   :  { %v10344_v36 = vpop.permute.xlu0 %7417  ;;  %v2917_v32 = vpack.c.bf16 %v2669_v2, %v2668_v28  ;;  %v2920_v4 = vpack.c.bf16 %v2693_v56, %v2692_v37  ;;  %v2923_v28 = vpack.c.bf16 %v2763_v1, %v2762_v31  ;;  %v7345_v2 = vunpack.i.h.bf16 %v10322_v23 }
 0x96d   :  { %v7359_v23 = vunpack.i.l.bf16 %v10326_v41  ;;  %v2787_v6 = vsel %vm1203_vm7, %v7324_v50, %v7325_v61  ;;  %v7420_v56 = vunpack.i.h.bf16 %v10344_v36  ;;  %v7365_v37 = vunpack.i.h.bf16 %v10330_v26 }
 0x96e   :  { %v7378_v12 = vpop.permute.xlu1 %7377  ;;  %2984 = vmatprep.subr.bf16.mxu0 %v2917_v32  ;;  %v7404_v32 = vunpack.i.l.bf16 %v10328_v63  ;;  %v7284_v63 = vunpack.i.l.bf16 %v10308_v0  ;;  %v7375_v31 = vunpack.i.h.bf16 %v10337_v38 }
 0x96f   :  { %v7380_v11 = vunpack.i.h.bf16 %v7378_v12  ;;  %v7379_v52 = vunpack.i.l.bf16 %v7378_v12  ;;  %2985 = vmatpush1.bf16.msra.mxu0 %v2916_v7  ;;  %v2740_v41 = vsel %vm2270_vm12, %v7359_v23, %v7360_v8 }
 0x970   :  { %v7428_v34 = vpop.permute.xlu0 %7427  ;;  %2986 = vmatprep.subr.bf16.mxu0 %v2919_v21  ;;  %v2741_v45 = vsel %vm2270_vm12, %v7404_v32, %v7405_v22 }
 0x971   :  { %v7430_v51 = vunpack.i.h.bf16 %v7428_v34  ;;  %v7429_v18 = vunpack.i.l.bf16 %v7428_v34  ;;  %v2716_v58 = vsel %vm2221_vm11, %v7379_v52, %v7380_v11  ;;  %v2922_v11 = vpack.c.bf16 %v2739_v47, %v2738_v35 }
 0x972   :  { %v7383_v53 = vpop.permute.xlu1 %7382  ;;  %v2786_v34 = vsel %vm1203_vm7, %v7284_v63, %v7285_v27  ;;  %v2924_v39 = vpack.c.bf16 %v2741_v45, %v2740_v41  ;;  %v7374_v47 = vunpack.i.l.bf16 %v10337_v38 }
 0x973   :  { %2987 = vmatpush1.bf16.msra.mxu0 %v2918_v46  ;;  %v2717_v19 = vsel %vm2221_vm11, %v7429_v18, %v7430_v51  ;;  %v7385_v7 = vunpack.i.h.bf16 %v7383_v53  ;;  %v7384_v21 = vunpack.i.l.bf16 %v7383_v53  ;;  %v2811_v46 = vsel %vm1203_vm7, %v7344_v60, %v7345_v2 }
 0x974   :  { %v10364_v15 = vpop.permute.xlu0 %7432  ;;  %v2921_v55 = vpack.c.bf16 %v2717_v19, %v2716_v58  ;;  %v2927_v30 = vpack.c.bf16 %v2811_v46, %v2810_v16  ;;  %v7410_v51 = vunpack.i.h.bf16 %v10332_v49  ;;  %v7409_v18 = vunpack.i.l.bf16 %v10332_v49 }
 0x975   :  { %v2764_v48 = vsel %vm2270_vm12, %v7384_v21, %v7385_v7  ;;  %v7419_v53 = vunpack.i.l.bf16 %v10344_v36  ;;  %v2926_v35 = vpack.c.bf16 %v2787_v6, %v2786_v34  ;;  %v7435_v32 = vunpack.i.h.bf16 %v10364_v15 }
 0x976   :  { %v7388_v42 = vpop.permute.xlu1 %7387  ;;  %2988 = vmatprep.subr.bf16.mxu0 %v2921_v55  ;;  %v7364_v55 = vunpack.i.l.bf16 %v10330_v26  ;;  %v2789_v2 = vsel %vm1203_vm7, %v7409_v18, %v7410_v51  ;;  %v2858_v21 = vsel %vm1309_vm9, %v7374_v47, %v7375_v31 }
 0x977   :  { %2989 = vmatpush1.bf16.msra.mxu0 %v2920_v4  ;;  %v7390_v58 = vunpack.i.h.bf16 %v7388_v42  ;;  %v7389_v19 = vunpack.i.l.bf16 %v7388_v42  ;;  %v2859_v22 = vsel %vm1309_vm9, %v7419_v53, %v7420_v56  ;;  %v7434_v42 = vunpack.i.l.bf16 %v10364_v15 }
 0x978   :  { %v7448_v40 = vpop.permute.xlu0 %7447  ;;  %2990 = vmatprep.subr.bf16.mxu0 %v2923_v28  ;;  %v2788_v61 = vsel %vm1203_vm7, %v7364_v55, %v7365_v37  ;;  %v2931_v8 = vpack.c.bf16 %v2859_v22, %v2858_v21 }
 0x979   :  { %v7450_v12 = vunpack.i.h.bf16 %v7448_v40  ;;  %v7449_v13 = vunpack.i.l.bf16 %v7448_v40  ;;  %v2812_v26 = vsel %vm1203_vm7, %v7389_v19, %v7390_v58  ;;  %v2928_v33 = vpack.c.bf16 %v2789_v2, %v2788_v61 }
 0x97a   :  { %v7423_v52 = vpop.permute.xlu1 %7422 }
 0x97b   :  { %2991 = vmatpush1.bf16.msra.mxu0 %v2922_v11  ;;  %v2765_v5 = vsel %vm2270_vm12, %v7449_v13, %v7450_v12  ;;  %v7425_v49 = vunpack.i.h.bf16 %v7423_v52  ;;  %v7424_v4 = vunpack.i.l.bf16 %v7423_v52  ;;  %v2835_v13 = vsel %vm1309_vm9, %v7434_v42, %v7435_v32 }
 0x97c   :  { %v10386_v17 = vpop.permute.xlu0 %7452  ;;  %v2925_v0 = vpack.c.bf16 %v2765_v5, %v2764_v48 }
 0x97d   :  { %v2834_v62 = vsel %vm1309_vm9, %v7424_v4, %v7425_v49  ;;  %v7455_v52 = vunpack.i.h.bf16 %v10386_v17  ;;  %v7454_v46 = vunpack.i.l.bf16 %v10386_v17 }
 0x97e   :  { %v7438_v1 = vpop.permute.xlu1 %7437  ;;  %2992 = vmatprep.subr.bf16.mxu0 %v2925_v0  ;;  %v2930_v5 = vpack.c.bf16 %v2835_v13, %v2834_v62 }
 0x97f   :  { %2993 = vmatpush1.bf16.msra.mxu0 %v2924_v39  ;;  %v7440_v23 = vunpack.i.h.bf16 %v7438_v1  ;;  %v7439_v40 = vunpack.i.l.bf16 %v7438_v1  ;;  %v2837_v17 = vsel %vm1309_vm9, %v7454_v46, %v7455_v52 }
 0x980   :  { %v7463_v27 = vpop.permute.xlu0 %7462  ;;  %2994 = vmatprep.subr.bf16.mxu0 %v2927_v30 }
 0x981   :  { %v7465_v28 = vunpack.i.h.bf16 %v7463_v27  ;;  %v7464_v36 = vunpack.i.l.bf16 %v7463_v27  ;;  %v2860_v30 = vsel %vm1309_vm9, %v7439_v40, %v7440_v23  ;;  %v8858_v40 = vld [vmem:[%s11933_s3 + $0x40] ss:$8 sps:$4 sm:$0xff]  }
 0x982   :  { %v7443_v60 = vpop.permute.xlu1 %7442 }
 0x983   :  { %2995 = vmatpush1.bf16.msra.mxu0 %v2926_v35  ;;  %v2813_v38 = vsel %vm1203_vm7, %v7464_v36, %v7465_v28  ;;  %v7445_v63 = vunpack.i.h.bf16 %v7443_v60  ;;  %v7444_v12 = vunpack.i.l.bf16 %v7443_v60 }
 0x984   :  { %v7468_v50 = vpop.permute.xlu0 %7467  ;;  %v2929_v7 = vpack.c.bf16 %v2813_v38, %v2812_v26 }
 0x985   :  { %v7470_v6 = vunpack.i.h.bf16 %v7468_v50  ;;  %v7469_v41 = vunpack.i.l.bf16 %v7468_v50  ;;  %v2836_v34 = vsel %vm1309_vm9, %v7444_v12, %v7445_v63  ;;  %v8861_v63 = vld [vmem:[%s11933_s3 + $0x54] ss:$8 sps:$4 sm:$0xff]  }
 0x986   :  { %v7458_v15 = vpop.permute.xlu1 %7457  ;;  %2996 = vmatprep.subr.bf16.mxu0 %v2929_v7  ;;  %v2932_v37 = vpack.c.bf16 %v2837_v17, %v2836_v34 }
 0x987   :  { %v7460_v11 = vunpack.i.h.bf16 %v7458_v15  ;;  %v7459_v45 = vunpack.i.l.bf16 %v7458_v15  ;;  %2997 = vmatpush1.bf16.msra.mxu0 %v2928_v33  ;;  %v2907_v55 = vsel %vm245_vm2, %v7469_v41, %v7470_v6 }
 0x988   :  { %v7478_v48 = vpop.permute.xlu0 %7477  ;;  %2998 = vmatprep.subr.bf16.mxu0 %v2931_v8 }
 0x989   :  { %v7480_v0 = vunpack.i.h.bf16 %v7478_v48  ;;  %v7479_v16 = vunpack.i.l.bf16 %v7478_v48  ;;  %v2906_v53 = vsel %vm245_vm2, %v7459_v45, %v7460_v11 }
 0x98a   :  { %v7473_v39 = vpop.permute.xlu1 %7472  ;;  %v2935_v47 = vpack.c.bf16 %v2907_v55, %v2906_v53 }
 0x98b   :  { %v7475_v51 = vunpack.i.h.bf16 %v7473_v39  ;;  %v7474_v18 = vunpack.i.l.bf16 %v7473_v39  ;;  %2999 = vmatpush1.bf16.msra.mxu0 %v2930_v5  ;;  %v2861_v56 = vsel %vm1309_vm9, %v7479_v16, %v7480_v0 }
 0x98c   :  { %v7483_v1 = vpop.permute.xlu0 %7482  ;;  %v2933_v58 = vpack.c.bf16 %v2861_v56, %v2860_v30 }
 0x98d   :  { %v7485_v19 = vunpack.i.h.bf16 %v7483_v1  ;;  %v7484_v35 = vunpack.i.l.bf16 %v7483_v1  ;;  %v2882_v27 = vsel %vm245_vm2, %v7474_v18, %v7475_v51 }
 0x98e   :  { %v7488_v31 = vpop.permute.xlu1 %7487  ;;  %3000 = vmatprep.subr.bf16.mxu0 %v2933_v58 }
 0x98f   :  { %v2883_v49 = vsel %vm245_vm2, %v7484_v35, %v7485_v19  ;;  %v7490_v4 = vunpack.i.h.bf16 %v7488_v31  ;;  %v7489_v28 = vunpack.i.l.bf16 %v7488_v31  ;;  %3001 = vmatpush1.bf16.msra.mxu0 %v2932_v37 }
 0x990   :  { %v7498_v36 = vpop.permute.xlu0 %7497  ;;  %3002 = vmatprep.subr.bf16.mxu0 %v2935_v47  ;;  %v2934_v2 = vpack.c.bf16 %v2883_v49, %v2882_v27 }
 0x991   :  { %v7500_v60 = vunpack.i.h.bf16 %v7498_v36  ;;  %v7499_v22 = vunpack.i.l.bf16 %v7498_v36  ;;  %v2908_v38 = vsel %vm245_vm2, %v7489_v28, %v7490_v4 }
 0x992   :  { %v7493_v32 = vpop.permute.xlu1 %7492 }
 0x993   :  { %v7495_v42 = vunpack.i.h.bf16 %v7493_v32  ;;  %v7494_v26 = vunpack.i.l.bf16 %v7493_v32  ;;  %3003 = vmatpush1.bf16.msra.mxu0 %v2934_v2  ;;  %v2909_v61 = vsel %vm245_vm2, %v7499_v22, %v7500_v60 }
 0x994   :  { %v7503_v50 = vpop.permute.xlu0 %7502  ;;  %v2937_v7 = vpack.c.bf16 %v2909_v61, %v2908_v38 }
 0x995   :  { %v7505_v21 = vunpack.i.h.bf16 %v7503_v50  ;;  %v7504_v62 = vunpack.i.l.bf16 %v7503_v50  ;;  %v2884_v33 = vsel %vm245_vm2, %v7494_v26, %v7495_v42  ;;  %v5973_v50 = vld [vmem:[%s11932_s2 + $0x68] sm:$0xff] }
 0x996   :  { %3004 = vmatprep.subr.bf16.mxu0 %v2937_v7  ;;  %v8866_v7 = vld [vmem:[%s11931_s1 + $0x64] ss:$8 sps:$4 sm:$0xff]  }
 0x997   :  { %v2885_v8 = vsel %vm245_vm2, %v7504_v62, %v7505_v21  ;;  %v5974_v21 = vld [vmem:[%s11932_s2 + $0x70] sm:$0xff]  ;;  %3507 = vmatprep.mubr.bf16.mxu1 %v8866_v7  ;;  %v5975_v62 = vld [vmem:[%s11932_s2 + $0x78] sm:$0xff] }
 0x998   :  { %v2936_v23 = vpack.c.bf16 %v2885_v8, %v2884_v33 }
 0x99a   :  { %3005 = vmatpush1.bf16.msra.mxu0 %v2936_v23 }
 0x99b   :  { %3006 = vmatprep.subr.bf16.mxu0 %v10227_v9  ;;  %v8863_v9 = vld [vmem:[%s11933_s3 + $0x50] ss:$8 sps:$4 sm:$0xff]  }
 0x99e   :  { %3007 = vmatpush1.bf16.msra.mxu0 %v10229_v24 }
 0x99f   :  { %3008 = vmatprep.subr.bf16.mxu0 %v10231_v14 }
 0x9a2   :  { %3009 = vmatpush1.bf16.msra.mxu0 %v10233_v54 }
 0x9a3   :  { %v2945_v24 = vpop.permute.xlu1 %2944 }
 0x9a5   :  { %3015 = vmatmul.mubr.bf16.vlgmr.msra.gmra.mrb[24].mxu0 %v8858_v40  ;;  %v2950_v13 = vpop.permute.xlu0 %2949 }
 0x9a6   :  { %3024 = vmatprep.mubr.bf16.mxu0 %v8861_v63 }
 0x9a9   :  { %v2960_v35 = vpop.permute.xlu0 %2959 }
 0x9ad   :  { %3025 = vmatmul.mubr.bf16.gmra.mrb[28].mxu0 %v8863_v9 }
 0xa78   :  { %v3016_v12 = vpop.f32.mrb[24].mxu0 }
 0xa79   :  { %v3017_v14 = vadd.f32 %v3016_v12, %v2945_v24  ;;  %v3018_v15 = vpop.f32.mrb[25].mxu0 }
 0xa7a   :  { %v3020_v11 = vpop.f32.mrb[26].mxu0  ;;  %v3019_v0 = vadd.f32 %v3018_v15, %v2945_v24 }
 0xa7b   :  { %v3035_v45 = vmax.f32 %v3017_v14, 0.0  ;;  %v3021_v52 = vadd.f32 %v3020_v11, %v2950_v13  ;;  %v3022_v54 = vpop.f32.mrb[27].mxu0 }
 0xa7c   :  { %v3023_v51 = vadd.f32 %v3022_v54, %v2950_v13 }
 0xa7d   :  { %v3051_v46 = vadd.f32 %v3035_v45, %v9948_v29  ;;  %v3037_v48 = vmax.f32 %v3021_v52, 0.0 }
 0xa7e   :  { %v3038_v56 = vmax.f32 %v3023_v51, 0.0 }
 0xa7f   :  { %v10436_v5 = vmax.f32 %v3051_v46, 0.0  ;;  %v3053_v6 = vadd.f32 %v3037_v48, %v9951_v59  ;;  %v3036_v59 = vmax.f32 %v3019_v0, 0.0 }
 0xa80   :  { %v3026_v41 = vpop.f32.mrb[28].mxu0  ;;  %v3054_v17 = vadd.f32 %v3038_v56, %v9977_v57 }
 0xa81   :  { %v10439_v16 = vmax.f32 %v3053_v6, 0.0  ;;  %v3028_v34 = vpop.f32.mrb[29].mxu0  ;;  %v10443_v39 = vpack.i.bf16 %v10436_v5, %v8951_v3  ;;  %v3052_v53 = vadd.f32 %v3036_v59, %v9973_v10  ;;  %v2955_v10 = vpop.permute.xlu1 %2954 }
 0xa82   :  { %v3030_v30 = vpop.f32.mrb[30].mxu0  ;;  %v10465_v58 = vmax.f32 %v3054_v17, 0.0  ;;  %v3027_v19 = vadd.f32 %v3026_v41, %v2955_v10  ;;  %v3029_v36 = vadd.f32 %v3028_v34, %v2955_v10 }
 0xa83   :  { %v3032_v18 = vpop.f32.mrb[31].mxu0  ;;  %7507 = vrot.lane.b32.xlu1 %v10443_v39, %s8964_s28  ;;  %v10449_v29 = vpack.i.bf16 %v10439_v16, %v8951_v3  ;;  %v10461_v1 = vmax.f32 %v3052_v53, 0.0  ;;  %v3031_v37 = vadd.f32 %v3030_v30, %v2960_v35 }
 0xa84   :  { %v7566_v55 = vpack.i.bf16 %v10465_v58, %v8951_v3  ;;  %v3039_v31 = vmax.f32 %v3027_v19, 0.0  ;;  %v3033_v2 = vadd.f32 %v3032_v18, %v2960_v35  ;;  %v3040_v60 = vmax.f32 %v3029_v36, 0.0 }
 0xa85   :  { %7547 = vrot.lane.b32.xlu0 %v10449_v29, %s8964_s28  ;;  %v7526_v57 = vpack.i.bf16 %v10461_v1, %v8951_v3  ;;  %v3041_v47 = vmax.f32 %v3031_v37, 0.0 }
 0xa86   :  { %v3055_v27 = vadd.f32 %v3039_v31, %v9994_v20  ;;  %v3042_v22 = vmax.f32 %v3033_v2, 0.0  ;;  %v3056_v32 = vadd.f32 %v3040_v60, %v10012_v25 }
 0xa87   :  { %7512 = vrot.lane.b32.xlu1 %v10443_v39, %s8965_s29  ;;  %v3057_v49 = vadd.f32 %v3041_v47, %v9997_v44 }
 0xa88   :  { %v10482_v4 = vmax.f32 %v3055_v27, 0.0  ;;  %v3058_v42 = vadd.f32 %v3042_v22, %v10015_v43  ;;  %v10500_v26 = vmax.f32 %v3056_v32, 0.0  ;;  %v5972_v43 = vld [vmem:[%s11932_s2 + $0x60] sm:$0xff] }
 0xa89   :  { %7552 = vrot.lane.b32.xlu0 %v10449_v29, %s8965_s29  ;;  %v10485_v28 = vmax.f32 %v3057_v49, 0.0 }
 0xa8a   :  { %v7586_v20 = vpack.i.bf16 %v10482_v4, %v8951_v3  ;;  %v10503_v38 = vmax.f32 %v3058_v42, 0.0  ;;  %v7606_v61 = vpack.i.bf16 %v10500_v26, %v8951_v3 }
 0xa8b   :  { %7517 = vrot.lane.b32.xlu1 %v10443_v39, %s8966_s30  ;;  %v7631_v44 = vpack.i.bf16 %v10485_v28, %v8951_v3 }
 0xa8c   :  { %v7651_v25 = vpack.i.bf16 %v10503_v38, %v8951_v3 }
 0xa8d   :  { %7557 = vrot.lane.b32.xlu0 %v10449_v29, %s8966_s30 }
 0xa8f   :  { %7522 = vrot.lane.b32.xlu1 %v10443_v39, %s8961_s14 }
 0xa91   :  { %7562 = vrot.lane.b32.xlu0 %v10449_v29, %s8961_s14 }
 0xa93   :  { %7527 = vrot.lane.b32.xlu1 %v7526_v57, %s8964_s28 }
 0xa95   :  { %7567 = vrot.lane.b32.xlu0 %v7566_v55, %s8964_s28 }
 0xa97   :  { %7532 = vrot.lane.b32.xlu1 %v7526_v57, %s8965_s29 }
 0xa99   :  { %7572 = vrot.lane.b32.xlu0 %v7566_v55, %s8965_s29 }
 0xa9b   :  { %7537 = vrot.lane.b32.xlu1 %v7526_v57, %s8966_s30 }
 0xa9d   :  { %7577 = vrot.lane.b32.xlu0 %v7566_v55, %s8966_s30 }
 0xa9f   :  { %7542 = vrot.lane.b32.xlu1 %v7526_v57, %s8961_s14 }
 0xaa1   :  { %7582 = vrot.lane.b32.xlu0 %v7566_v55, %s8961_s14 }
 0xaa3   :  { %7587 = vrot.lane.b32.xlu1 %v7586_v20, %s8964_s28 }
 0xaa5   :  { %7632 = vrot.lane.b32.xlu0 %v7631_v44, %s8964_s28 }
 0xaa7   :  { %7592 = vrot.lane.b32.xlu1 %v7586_v20, %s8965_s29 }
 0xaa9   :  { %7637 = vrot.lane.b32.xlu0 %v7631_v44, %s8965_s29 }
 0xaab   :  { %7597 = vrot.lane.b32.xlu1 %v7586_v20, %s8966_s30 }
 0xaad   :  { %7642 = vrot.lane.b32.xlu0 %v7631_v44, %s8966_s30 }
 0xaaf   :  { %7602 = vrot.lane.b32.xlu1 %v7586_v20, %s8961_s14 }
 0xab1   :  { %7647 = vrot.lane.b32.xlu0 %v7631_v44, %s8961_s14 }
 0xab3   :  { %7607 = vrot.lane.b32.xlu1 %v7606_v61, %s8964_s28 }
 0xab5   :  { %7652 = vrot.lane.b32.xlu0 %v7651_v25, %s8964_s28 }
 0xab7   :  { %7612 = vrot.lane.b32.xlu1 %v7526_v57, %s8963_s21 }
 0xab9   :  { %7657 = vrot.lane.b32.xlu0 %v7566_v55, %s8963_s21 }
 0xabb   :  { %7617 = vrot.lane.b32.xlu1 %v7606_v61, %s8965_s29 }
 0xabd   :  { %7667 = vrot.lane.b32.xlu0 %v7651_v25, %s8965_s29 }
 0xabf   :  { %7622 = vrot.lane.b32.xlu1 %v7606_v61, %s8966_s30 }
 0xac1   :  { %7672 = vrot.lane.b32.xlu0 %v10449_v29, %s8963_s21 }
 0xac3   :  { %7627 = vrot.lane.b32.xlu1 %v7606_v61, %s8961_s14 }
 0xac5   :  { %7687 = vrot.lane.b32.xlu0 %v7651_v25, %s8966_s30 }
 0xac7   :  { %7662 = vrot.lane.b32.xlu1 %v10443_v39, %s8963_s21 }
 0xac9   :  { %7692 = vrot.lane.b32.xlu0 %v7631_v44, %s8963_s21 }
 0xacb   :  { %7677 = vrot.lane.b32.xlu1 %v7606_v61, %s8963_s21 }
 0xacd   :  { %7702 = vrot.lane.b32.xlu0 %v7651_v25, %s8961_s14 }
 0xacf   :  { %7682 = vrot.lane.b32.xlu1 %v7586_v20, %s8963_s21 }
 0xad1   :  { %7707 = vrot.lane.b32.xlu0 %v7566_v55, %s8950_s12 }
 0xad3   :  { %7697 = vrot.lane.b32.xlu1 %v7526_v57, %s8950_s12 }
 0xad5   :  { %7717 = vrot.lane.b32.xlu0 %v7651_v25, %s8963_s21 }
 0xad7   :  { %7712 = vrot.lane.b32.xlu1 %v10443_v39, %s8950_s12 }
 0xad9   :  { %7722 = vrot.lane.b32.xlu0 %v10449_v29, %s8950_s12 }
 0xadb   :  { %7727 = vrot.lane.b32.xlu1 %v7606_v61, %s8950_s12 }
 0xadd   :  { %7737 = vrot.lane.b32.xlu0 %v7651_v25, %s8950_s12 }
 0xadf   :  { %7732 = vrot.lane.b32.xlu1 %v7586_v20, %s8950_s12 }
 0xae1   :  { %7742 = vrot.lane.b32.xlu0 %v7631_v44, %s8950_s12 }
 0xae3   :  { %3437 = vperm.xlu1 %6305, %v5972_v43  }
 0xae5   :  { %3442 = vperm.xlu0 %6304, %v5973_v50  }
 0xae7   :  { %3447 = vperm.xlu1 %6305, %v5974_v21  }
 0xae9   :  { %3452 = vperm.xlu0 %6304, %v5975_v62  }
 0xaf5   :  { %v7508_v33 = vpop.permute.xlu1 %7507 }
 0xaf6   :  { %v7510_v52 = vunpack.i.h.bf16 %v7508_v33  ;;  %v7509_v54 = vunpack.i.l.bf16 %v7508_v33 }
 0xaf7   :  { %v7548_v8 = vpop.permute.xlu0 %7547 }
 0xaf8   :  { %v7550_v14 = vunpack.i.h.bf16 %v7548_v8  ;;  %v7549_v15 = vunpack.i.l.bf16 %v7548_v8  ;;  %v3126_v30 = vsel %vm3125_vm13, %v7509_v54, %v7510_v52 }
 0xaf9   :  { %v10554_v23 = vpop.permute.xlu1 %7512 }
 0xafa   :  { %v3127_v41 = vsel %vm3125_vm13, %v7549_v15, %v7550_v14  ;;  %v7515_v7 = vunpack.i.h.bf16 %v10554_v23  ;;  %v7514_v21 = vunpack.i.l.bf16 %v10554_v23 }
 0xafb   :  { %v10556_v40 = vpop.permute.xlu0 %7552  ;;  %v3407_v29 = vpack.c.bf16 %v3127_v41, %v3126_v30 }
 0xafc   :  { %v7555_v44 = vunpack.i.h.bf16 %v10556_v40  ;;  %v7554_v60 = vunpack.i.l.bf16 %v10556_v40 }
 0xafd   :  { %v10558_v63 = vpop.permute.xlu1 %7517 }
 0xaff   :  { %v10560_v9 = vpop.permute.xlu0 %7557 }
 0xb01   :  { %v10562_v24 = vpop.permute.xlu1 %7522 }
 0xb03   :  { %v10564_v12 = vpop.permute.xlu0 %7562 }
 0xb05   :  { %v7528_v13 = vpop.permute.xlu1 %7527 }
 0xb06   :  { %v7530_v11 = vunpack.i.h.bf16 %v7528_v13  ;;  %v7529_v45 = vunpack.i.l.bf16 %v7528_v13 }
 0xb07   :  { %v7568_v46 = vpop.permute.xlu0 %7567 }
 0xb08   :  { %v7570_v48 = vunpack.i.h.bf16 %v7568_v46  ;;  %v7569_v6 = vunpack.i.l.bf16 %v7568_v46  ;;  %v3158_v34 = vsel %vm3125_vm13, %v7529_v45, %v7530_v11  ;;  %v3184_v11 = vsel %vm3182_vm14, %v7554_v60, %v7555_v44 }
 0xb09   :  { %v7533_v0 = vpop.permute.xlu1 %7532  ;;  %v3183_v46 = vsel %vm3182_vm14, %v7514_v21, %v7515_v7  ;;  %v7525_v7 = vunpack.i.h.bf16 %v10562_v24 }
 0xb0a   :  { %v3159_v39 = vsel %vm3125_vm13, %v7569_v6, %v7570_v48  ;;  %v7535_v42 = vunpack.i.h.bf16 %v7533_v0  ;;  %v7534_v61 = vunpack.i.l.bf16 %v7533_v0  ;;  %v7520_v48 = vunpack.i.h.bf16 %v10558_v63 }
 0xb0b   :  { %v7573_v51 = vpop.permute.xlu0 %7572  ;;  %v3408_v18 = vpack.c.bf16 %v3159_v39, %v3158_v34 }
 0xb0c   :  { %v7575_v27 = vunpack.i.h.bf16 %v7573_v51  ;;  %v7574_v49 = vunpack.i.l.bf16 %v7573_v51  ;;  %v3207_v23 = vsel %vm3182_vm14, %v7534_v61, %v7535_v42 }
 0xb0d   :  { %v10570_v59 = vpop.permute.xlu1 %7537  ;;  %3475 = vmatprep.subr.bf16.mxu1 %v3408_v18  ;;  %v7519_v18 = vunpack.i.l.bf16 %v10558_v63 }
 0xb0e   :  { %3476 = vmatpush1.bf16.msra.mxu1 %v3407_v29  ;;  %v3208_v15 = vsel %vm3182_vm14, %v7574_v49, %v7575_v27  ;;  %v7540_v27 = vunpack.i.h.bf16 %v10570_v59  ;;  %v7539_v49 = vunpack.i.l.bf16 %v10570_v59 }
 0xb0f   :  { %v10572_v56 = vpop.permute.xlu0 %7577  ;;  %v3412_v41 = vpack.c.bf16 %v3208_v15, %v3207_v23 }
 0xb10   :  { %v7580_v0 = vunpack.i.h.bf16 %v10572_v56  ;;  %v7579_v34 = vunpack.i.l.bf16 %v10572_v56  ;;  %v7560_v56 = vunpack.i.h.bf16 %v10560_v9 }
 0xb11   :  { %v10574_v53 = vpop.permute.xlu1 %7542 }
 0xb13   :  { %v10576_v17 = vpop.permute.xlu0 %7582 }
 0xb15   :  { %v7588_v10 = vpop.permute.xlu1 %7587 }
 0xb16   :  { %v7590_v25 = vunpack.i.h.bf16 %v7588_v10  ;;  %v7589_v43 = vunpack.i.l.bf16 %v7588_v10 }
 0xb17   :  { %v7633_v19 = vpop.permute.xlu0 %7632 }
 0xb18   :  { %v7635_v36 = vunpack.i.h.bf16 %v7633_v19  ;;  %v7634_v20 = vunpack.i.l.bf16 %v7633_v19  ;;  %v3128_v45 = vsel %vm3125_vm13, %v7589_v43, %v7590_v25  ;;  %v3411_v19 = vpack.c.bf16 %v3184_v11, %v3183_v46 }
 0xb19   :  { %v10578_v57 = vpop.permute.xlu1 %7592  ;;  %v7565_v11 = vunpack.i.h.bf16 %v10564_v12  ;;  %v7545_v46 = vunpack.i.h.bf16 %v10574_v53 }
 0xb1a   :  { %v3129_v8 = vsel %vm3125_vm13, %v7634_v20, %v7635_v36  ;;  %v7595_v36 = vunpack.i.h.bf16 %v10578_v57  ;;  %v7594_v20 = vunpack.i.l.bf16 %v10578_v57  ;;  %v3231_v57 = vsel %vm1069_vm6, %v7519_v18, %v7520_v48 }
 0xb1b   :  { %v7638_v35 = vpop.permute.xlu0 %7637  ;;  %v3409_v6 = vpack.c.bf16 %v3129_v8, %v3128_v45  ;;  %v7584_v8 = vunpack.i.l.bf16 %v10576_v17  ;;  %v7564_v45 = vunpack.i.l.bf16 %v10564_v12  ;;  %v7544_v48 = vunpack.i.l.bf16 %v10574_v53 }
 0xb1c   :  { %v7640_v39 = vunpack.i.h.bf16 %v7638_v35  ;;  %v7639_v30 = vunpack.i.l.bf16 %v7638_v35  ;;  %v7559_v35 = vunpack.i.l.bf16 %v10560_v9  ;;  %v3185_v61 = vsel %vm3182_vm14, %v7594_v20, %v7595_v36 }
 0xb1d   :  { %v10580_v37 = vpop.permute.xlu1 %7597  ;;  %v3255_v9 = vsel %vm1069_vm6, %v7539_v49, %v7540_v27 }
 0xb1e   :  { %v3186_v60 = vsel %vm3182_vm14, %v7639_v30, %v7640_v39 }
 0xb1f   :  { %v10582_v55 = vpop.permute.xlu0 %7642  ;;  %v3413_v21 = vpack.c.bf16 %v3186_v60, %v3185_v61 }
 0xb20   :  { %v7645_v15 = vunpack.i.h.bf16 %v10582_v55 }
 0xb21   :  { %v10584_v31 = vpop.permute.xlu1 %7602 }
 0xb23   :  { %v10586_v47 = vpop.permute.xlu0 %7647 }
 0xb24   :  { %v7650_v20 = vunpack.i.h.bf16 %v10586_v47 }
 0xb25   :  { %v7608_v2 = vpop.permute.xlu1 %7607 }
 0xb26   :  { %v7610_v22 = vunpack.i.h.bf16 %v7608_v2  ;;  %v7609_v32 = vunpack.i.l.bf16 %v7608_v2 }
 0xb27   :  { %v7653_v50 = vpop.permute.xlu0 %7652 }
 0xb28   :  { %v7655_v62 = vunpack.i.h.bf16 %v7653_v50  ;;  %v7654_v33 = vunpack.i.l.bf16 %v7653_v50  ;;  %v3160_v40 = vsel %vm3125_vm13, %v7609_v32, %v7610_v22  ;;  %v3256_v32 = vsel %vm1069_vm6, %v7579_v34, %v7580_v0 }
 0xb29   :  { %v10593_v14 = vpop.permute.xlu1 %7612  ;;  %v3232_v50 = vsel %vm1069_vm6, %v7559_v35, %v7560_v56 }
 0xb2a   :  { %v3161_v13 = vsel %vm3125_vm13, %v7654_v33, %v7655_v62  ;;  %v3416_v62 = vpack.c.bf16 %v3256_v32, %v3255_v9  ;;  %v7585_v33 = vunpack.i.h.bf16 %v10576_v17  ;;  %v7599_v17 = vunpack.i.l.bf16 %v10580_v37 }
 0xb2b   :  { %v10600_v52 = vpop.permute.xlu0 %7657  ;;  %v3410_v54 = vpack.c.bf16 %v3161_v13, %v3160_v40  ;;  %v7644_v40 = vunpack.i.l.bf16 %v10582_v55  ;;  %v7524_v55 = vunpack.i.l.bf16 %v10562_v24  ;;  %v3415_v39 = vpack.c.bf16 %v3232_v50, %v3231_v57 }
 0xb2c   :  { %v7660_v56 = vunpack.i.h.bf16 %v10600_v52  ;;  %v7659_v35 = vunpack.i.l.bf16 %v10600_v52  ;;  %v7605_v32 = vunpack.i.h.bf16 %v10584_v31  ;;  %v7614_v57 = vunpack.i.l.bf16 %v10593_v14 }
 0xb2d   :  { %v7618_v51 = vpop.permute.xlu1 %7617  ;;  %3477 = vmatprep.subr.bf16.mxu1 %v3410_v54  ;;  %v3234_v12 = vsel %vm1069_vm6, %v7644_v40, %v7645_v15  ;;  %v3279_v27 = vsel %vm2164_vm10, %v7524_v55, %v7525_v7 }
 0xb2e   :  { %v7620_v29 = vunpack.i.h.bf16 %v7618_v51  ;;  %v7619_v10 = vunpack.i.l.bf16 %v7618_v51  ;;  %3478 = vmatpush1.bf16.msra.mxu1 %v3409_v6  ;;  %v7600_v6 = vunpack.i.h.bf16 %v10580_v37  ;;  %v3304_v51 = vsel %vm2164_vm10, %v7584_v8, %v7585_v33 }
 0xb2f   :  { %v7668_v2 = vpop.permute.xlu0 %7667  ;;  %3479 = vmatprep.subr.bf16.mxu1 %v3412_v41 }
 0xb30   :  { %v7670_v44 = vunpack.i.h.bf16 %v7668_v2  ;;  %v7669_v63 = vunpack.i.l.bf16 %v7668_v2  ;;  %v3209_v59 = vsel %vm3182_vm14, %v7619_v10, %v7620_v29  ;;  %v3280_v29 = vsel %vm2164_vm10, %v7564_v45, %v7565_v11 }
 0xb31   :  { %v7623_v22 = vpop.permute.xlu1 %7622  ;;  %v3233_v37 = vsel %vm1069_vm6, %v7599_v17, %v7600_v6  ;;  %v7649_v2 = vunpack.i.l.bf16 %v10586_v47 }
 0xb32   :  { %3480 = vmatpush1.bf16.msra.mxu1 %v3411_v19  ;;  %v3210_v42 = vsel %vm3182_vm14, %v7669_v63, %v7670_v44  ;;  %v7625_v54 = vunpack.i.h.bf16 %v7623_v22  ;;  %v7624_v23 = vunpack.i.l.bf16 %v7623_v22  ;;  %v3303_v19 = vsel %vm2164_vm10, %v7544_v48, %v7545_v46 }
 0xb33   :  { %v10620_v25 = vpop.permute.xlu0 %7672  ;;  %v3414_v43 = vpack.c.bf16 %v3210_v42, %v3209_v59  ;;  %v3417_v49 = vpack.c.bf16 %v3234_v12, %v3233_v37  ;;  %v3420_v36 = vpack.c.bf16 %v3304_v51, %v3303_v19  ;;  %v3419_v22 = vpack.c.bf16 %v3280_v29, %v3279_v27 }
 0xb34   :  { %v3257_v18 = vsel %vm1069_vm6, %v7624_v23, %v7625_v54  ;;  %v7604_v59 = vunpack.i.l.bf16 %v10584_v31  ;;  %v7615_v42 = vunpack.i.h.bf16 %v10593_v14  ;;  %v3282_v50 = vsel %vm2164_vm10, %v7649_v2, %v7650_v20 }
 0xb35   :  { %v7628_v13 = vpop.permute.xlu1 %7627  ;;  %3481 = vmatprep.subr.bf16.mxu1 %v3414_v43  ;;  %v7674_v33 = vunpack.i.l.bf16 %v10620_v25 }
 0xb36   :  { %3482 = vmatpush1.bf16.msra.mxu1 %v3413_v21  ;;  %v7630_v63 = vunpack.i.h.bf16 %v7628_v13  ;;  %v7629_v60 = vunpack.i.l.bf16 %v7628_v13  ;;  %v3352_v21 = vsel %vm2270_vm12, %v7659_v35, %v7660_v56  ;;  %v3281_v8 = vsel %vm2164_vm10, %v7604_v59, %v7605_v32 }
 0xb37   :  { %v7688_v41 = vpop.permute.xlu0 %7687  ;;  %3483 = vmatprep.subr.bf16.mxu1 %v3416_v62  ;;  %v7675_v62 = vunpack.i.h.bf16 %v10620_v25  ;;  %v3351_v13 = vsel %vm2270_vm12, %v7614_v57, %v7615_v42  ;;  %v3421_v45 = vpack.c.bf16 %v3282_v50, %v3281_v8 }
 0xb38   :  { %v7690_v0 = vunpack.i.h.bf16 %v7688_v41  ;;  %v7689_v34 = vunpack.i.l.bf16 %v7688_v41  ;;  %v3305_v31 = vsel %vm2164_vm10, %v7629_v60, %v7630_v63  ;;  %v3424_v54 = vpack.c.bf16 %v3352_v21, %v3351_v13 }
 0xb39   :  { %v7663_v30 = vpop.permute.xlu1 %7662  ;;  %v3328_v17 = vsel %vm2270_vm12, %v7674_v33, %v7675_v62 }
 0xb3a   :  { %3484 = vmatpush1.bf16.msra.mxu1 %v3415_v39  ;;  %v3258_v53 = vsel %vm1069_vm6, %v7689_v34, %v7690_v0  ;;  %v7665_v47 = vunpack.i.h.bf16 %v7663_v30  ;;  %v7664_v43 = vunpack.i.l.bf16 %v7663_v30 }
 0xb3b   :  { %v10642_v10 = vpop.permute.xlu0 %7692  ;;  %v3418_v24 = vpack.c.bf16 %v3258_v53, %v3257_v18 }
 0xb3c   :  { %v3327_v11 = vsel %vm2270_vm12, %v7664_v43, %v7665_v47  ;;  %v7695_v0 = vunpack.i.h.bf16 %v10642_v10  ;;  %v7694_v34 = vunpack.i.l.bf16 %v10642_v10 }
 0xb3d   :  { %v7678_v44 = vpop.permute.xlu1 %7677  ;;  %3485 = vmatprep.subr.bf16.mxu1 %v3418_v24  ;;  %v3423_v12 = vpack.c.bf16 %v3328_v17, %v3327_v11  ;;  %v3432_v11 = vpack.c.bf16 %v10465_v58, %v10461_v1 }
 0xb3e   :  { %3486 = vmatpush1.bf16.msra.mxu1 %v3417_v49  ;;  %v7680_v23 = vunpack.i.h.bf16 %v7678_v44  ;;  %v7679_v46 = vunpack.i.l.bf16 %v7678_v44  ;;  %v3330_v10 = vsel %vm2270_vm12, %v7694_v34, %v7695_v0 }
 0xb3f   :  { %v7703_v61 = vpop.permute.xlu0 %7702  ;;  %3487 = vmatprep.subr.bf16.mxu1 %v3420_v36 }
 0xb40   :  { %v7705_v9 = vunpack.i.h.bf16 %v7703_v61  ;;  %v7704_v52 = vunpack.i.l.bf16 %v7703_v61  ;;  %v3353_v24 = vsel %vm2270_vm12, %v7679_v46, %v7680_v23  ;;  %v3433_v23 = vpack.c.bf16 %v10485_v28, %v10482_v4  ;;  %v8864_v46 = vld [vmem:[%s11931_s1 + $0x60] ss:$8 sps:$4 sm:$0xff]  }
 0xb41   :  { %v7683_v7 = vpop.permute.xlu1 %7682 }
 0xb42   :  { %3488 = vmatpush1.bf16.msra.mxu1 %v3419_v22  ;;  %v3306_v14 = vsel %vm2164_vm10, %v7704_v52, %v7705_v9  ;;  %v7685_v48 = vunpack.i.h.bf16 %v7683_v7  ;;  %v7684_v6 = vunpack.i.l.bf16 %v7683_v7 }
 0xb43   :  { %v7708_v15 = vpop.permute.xlu0 %7707  ;;  %v3422_v40 = vpack.c.bf16 %v3306_v14, %v3305_v31 }
 0xb44   :  { %v7710_v30 = vunpack.i.h.bf16 %v7708_v15  ;;  %v7709_v51 = vunpack.i.l.bf16 %v7708_v15  ;;  %v3329_v29 = vsel %vm2270_vm12, %v7684_v6, %v7685_v48  ;;  %v8867_v48 = vld [vmem:[%s11931_s1 + $0x74] ss:$8 sps:$4 sm:$0xff]   ;;  %v8869_v6 = vld [vmem:[%s11931_s1 + $0x70] ss:$8 sps:$4 sm:$0xff]  }
 0xb45   :  { %v7698_v25 = vpop.permute.xlu1 %7697  ;;  %3489 = vmatprep.subr.bf16.mxu1 %v3422_v40  ;;  %v3425_v44 = vpack.c.bf16 %v3330_v10, %v3329_v29 }
 0xb46   :  { %v7700_v41 = vunpack.i.h.bf16 %v7698_v25  ;;  %v7699_v55 = vunpack.i.l.bf16 %v7698_v25  ;;  %3490 = vmatpush1.bf16.msra.mxu1 %v3421_v45  ;;  %v3400_v63 = vsel %vm1309_vm9, %v7709_v51, %v7710_v30  ;;  %v3431_v45 = vpack.c.bf16 %v10439_v16, %v10436_v5 }
 0xb47   :  { %v7718_v39 = vpop.permute.xlu0 %7717  ;;  %3491 = vmatprep.subr.bf16.mxu1 %v3424_v54  ;;  %v3434_v54 = vpack.c.bf16 %v10503_v38, %v10500_v26 }
 0xb48   :  { %v7720_v18 = vunpack.i.h.bf16 %v7718_v39  ;;  %v7719_v53 = vunpack.i.l.bf16 %v7718_v39  ;;  %v3399_v36 = vsel %vm1309_vm9, %v7699_v55, %v7700_v41 }
 0xb49   :  { %v7713_v37 = vpop.permute.xlu1 %7712  ;;  %v3428_v22 = vpack.c.bf16 %v3400_v63, %v3399_v36 }
 0xb4a   :  { %v7715_v19 = vunpack.i.h.bf16 %v7713_v37  ;;  %v7714_v27 = vunpack.i.l.bf16 %v7713_v37  ;;  %3492 = vmatpush1.bf16.msra.mxu1 %v3423_v12  ;;  %v3354_v49 = vsel %vm2270_vm12, %v7719_v53, %v7720_v18 }
 0xb4b   :  { %v7723_v20 = vpop.permute.xlu0 %7722  ;;  %v3426_v2 = vpack.c.bf16 %v3354_v49, %v3353_v24 }
 0xb4c   :  { %v7725_v56 = vunpack.i.h.bf16 %v7723_v20  ;;  %v7724_v35 = vunpack.i.l.bf16 %v7723_v20  ;;  %v3375_v32 = vsel %vm1309_vm9, %v7714_v27, %v7715_v19 }
 0xb4d   :  { %v7728_v60 = vpop.permute.xlu1 %7727  ;;  %3493 = vmatprep.subr.bf16.mxu1 %v3426_v2 }
 0xb4e   :  { %v3376_v59 = vsel %vm1309_vm9, %v7724_v35, %v7725_v56  ;;  %v7730_v42 = vunpack.i.h.bf16 %v7728_v60  ;;  %v7729_v57 = vunpack.i.l.bf16 %v7728_v60  ;;  %3494 = vmatpush1.bf16.msra.mxu1 %v3425_v44 }
 0xb4f   :  { %v7738_v61 = vpop.permute.xlu0 %7737  ;;  %3495 = vmatprep.subr.bf16.mxu1 %v3428_v22  ;;  %v3427_v47 = vpack.c.bf16 %v3376_v59, %v3375_v32 }
 0xb50   :  { %v7740_v43 = vunpack.i.h.bf16 %v7738_v61  ;;  %v7739_v9 = vunpack.i.l.bf16 %v7738_v61  ;;  %v3401_v21 = vsel %vm1309_vm9, %v7729_v57, %v7730_v42 }
 0xb51   :  { %v7733_v52 = vpop.permute.xlu1 %7732 }
 0xb52   :  { %v7735_v50 = vunpack.i.h.bf16 %v7733_v52  ;;  %v7734_v7 = vunpack.i.l.bf16 %v7733_v52  ;;  %3496 = vmatpush1.bf16.msra.mxu1 %v3427_v47  ;;  %v3402_v62 = vsel %vm1309_vm9, %v7739_v9, %v7740_v43 }
 0xb53   :  { %v7743_v33 = vpop.permute.xlu0 %7742  ;;  %v3430_v31 = vpack.c.bf16 %v3402_v62, %v3401_v21  ;;  %v5984_v62 = vld [vmem:[%s11934_s4 + $0x60] sm:$0xff] }
 0xb54   :  { %v7745_v14 = vunpack.i.h.bf16 %v7743_v33  ;;  %v7744_v8 = vunpack.i.l.bf16 %v7743_v33  ;;  %v3377_v15 = vsel %vm1309_vm9, %v7734_v7, %v7735_v50  ;;  %v5985_v33 = vld [vmem:[%s11934_s4 + $0x68] sm:$0xff] }
 0xb55   :  { %3497 = vmatprep.subr.bf16.mxu1 %v3430_v31  ;;  %v8872_v31 = vld [vmem:[%s11933_s3 + $0x64] ss:$8 sps:$4 sm:$0xff]  }
 0xb56   :  { %v3378_v40 = vsel %vm1309_vm9, %v7744_v8, %v7745_v14  ;;  %v5986_v14 = vld [vmem:[%s11934_s4 + $0x70] sm:$0xff]  ;;  %3974 = vmatprep.mubr.bf16.mxu0 %v8872_v31  ;;  %v5987_v8 = vld [vmem:[%s11934_s4 + $0x78] sm:$0xff] }
 0xb57   :  { %v3429_v13 = vpack.c.bf16 %v3378_v40, %v3377_v15 }
 0xb59   :  { %3498 = vmatpush1.bf16.msra.mxu1 %v3429_v13 }
 0xb5a   :  { %3499 = vmatprep.subr.bf16.mxu1 %v3432_v11 }
 0xb5d   :  { %3500 = vmatpush1.bf16.msra.mxu1 %v3431_v45 }
 0xb5e   :  { %3501 = vmatprep.subr.bf16.mxu1 %v3434_v54 }
 0xb61   :  { %3502 = vmatpush1.bf16.msra.mxu1 %v3433_v23 }
 0xb62   :  { %v3438_v25 = vpop.permute.xlu1 %3437 }
 0xb64   :  { %3508 = vmatmul.mubr.bf16.vlgmr.msra.gmra.mrb[24].mxu1 %v8864_v46  ;;  %v3443_v0 = vpop.permute.xlu0 %3442 }
 0xb65   :  { %3517 = vmatprep.mubr.bf16.mxu1 %v8867_v48 }
 0xb66   :  { %v3448_v20 = vpop.permute.xlu1 %3447 }
 0xb68   :  { %v3453_v19 = vpop.permute.xlu0 %3452 }
 0xb6c   :  { %3518 = vmatmul.mubr.bf16.gmra.mrb[28].mxu1 %v8869_v6 }
 0xc37   :  { %v3509_v17 = vpop.f32.mrb[24].mxu1 }
 0xc38   :  { %v3510_v41 = vadd.f32 %v3509_v17, %v3438_v25  ;;  %v3511_v55 = vpop.f32.mrb[25].mxu1 }
 0xc39   :  { %v3513_v34 = vpop.f32.mrb[26].mxu1  ;;  %v3512_v2 = vadd.f32 %v3511_v55, %v3438_v25 }
 0xc3a   :  { %v3528_v39 = vmax.f32 %v3510_v41, 0.0  ;;  %v3514_v12 = vadd.f32 %v3513_v34, %v3443_v0  ;;  %v3515_v30 = vpop.f32.mrb[27].mxu1 }
 0xc3b   :  { %v3516_v27 = vadd.f32 %v3515_v30, %v3443_v0  ;;  %v3529_v22 = vmax.f32 %v3512_v2, 0.0 }
 0xc3c   :  { %v3530_v51 = vmax.f32 %v3514_v12, 0.0  ;;  %v10696_v18 = vpack.i.bf16 %v3528_v39, %v8951_v3 }
 0xc3d   :  { %v3531_v44 = vmax.f32 %v3516_v27, 0.0  ;;  %v7766_v43 = vpack.i.bf16 %v3529_v22, %v8951_v3 }
 0xc3e   :  { %7747 = vrot.lane.b32.xlu1 %v10696_v18, %s8964_s28  ;;  %v10701_v53 = vpack.i.bf16 %v3530_v51, %v8951_v3  ;;  %v10717_v57 = vpack.c.bf16 %v3530_v51, %v3528_v39 }
 0xc3f   :  { %v3519_v29 = vpop.f32.mrb[28].mxu1  ;;  %v10715_v42 = vpack.c.bf16 %v3531_v44, %v3529_v22  ;;  %v7806_v9 = vpack.i.bf16 %v3531_v44, %v8951_v3 }
 0xc40   :  { %v3521_v37 = vpop.f32.mrb[29].mxu1  ;;  %7787 = vrot.lane.b32.xlu0 %v10701_v53, %s8964_s28  ;;  %v3520_v56 = vadd.f32 %v3519_v29, %v3448_v20 }
 0xc41   :  { %v3523_v24 = vpop.f32.mrb[30].mxu1  ;;  %v3522_v35 = vadd.f32 %v3521_v37, %v3448_v20 }
 0xc42   :  { %v3525_v49 = vpop.f32.mrb[31].mxu1  ;;  %7752 = vrot.lane.b32.xlu1 %v10696_v18, %s8965_s29  ;;  %v3524_v36 = vadd.f32 %v3523_v24, %v3453_v19  ;;  %v3532_v32 = vmax.f32 %v3520_v56, 0.0 }
 0xc43   :  { %v3526_v10 = vadd.f32 %v3525_v49, %v3453_v19  ;;  %v3533_v59 = vmax.f32 %v3522_v35, 0.0 }
 0xc44   :  { %7792 = vrot.lane.b32.xlu0 %v10701_v53, %s8965_s29  ;;  %v3534_v63 = vmax.f32 %v3524_v36, 0.0  ;;  %v7826_v52 = vpack.i.bf16 %v3532_v32, %v8951_v3 }
 0xc45   :  { %v3535_v60 = vmax.f32 %v3526_v10, 0.0  ;;  %v7846_v7 = vpack.i.bf16 %v3533_v59, %v8951_v3 }
 0xc46   :  { %7757 = vrot.lane.b32.xlu1 %v10696_v18, %s8966_s30  ;;  %v10721_v47 = vpack.c.bf16 %v3534_v63, %v3532_v32  ;;  %v7871_v50 = vpack.i.bf16 %v3534_v63, %v8951_v3 }
 0xc47   :  { %v10719_v61 = vpack.c.bf16 %v3535_v60, %v3533_v59  ;;  %v7891_v21 = vpack.i.bf16 %v3535_v60, %v8951_v3 }
 0xc48   :  { %7797 = vrot.lane.b32.xlu0 %v10701_v53, %s8966_s30 }
 0xc4a   :  { %7762 = vrot.lane.b32.xlu1 %v10696_v18, %s8961_s14 }
 0xc4c   :  { %7802 = vrot.lane.b32.xlu0 %v10701_v53, %s8961_s14 }
 0xc4e   :  { %7767 = vrot.lane.b32.xlu1 %v7766_v43, %s8964_s28 }
 0xc50   :  { %7807 = vrot.lane.b32.xlu0 %v7806_v9, %s8964_s28 }
 0xc52   :  { %7772 = vrot.lane.b32.xlu1 %v7766_v43, %s8965_s29 }
 0xc54   :  { %7812 = vrot.lane.b32.xlu0 %v7806_v9, %s8965_s29 }
 0xc56   :  { %7777 = vrot.lane.b32.xlu1 %v7766_v43, %s8966_s30 }
 0xc58   :  { %7817 = vrot.lane.b32.xlu0 %v7806_v9, %s8966_s30 }
 0xc5a   :  { %7782 = vrot.lane.b32.xlu1 %v7766_v43, %s8961_s14 }
 0xc5c   :  { %7822 = vrot.lane.b32.xlu0 %v7806_v9, %s8961_s14 }
 0xc5e   :  { %7827 = vrot.lane.b32.xlu1 %v7826_v52, %s8964_s28 }
 0xc60   :  { %7872 = vrot.lane.b32.xlu0 %v7871_v50, %s8964_s28 }
 0xc62   :  { %7832 = vrot.lane.b32.xlu1 %v7826_v52, %s8965_s29 }
 0xc64   :  { %7877 = vrot.lane.b32.xlu0 %v7871_v50, %s8965_s29 }
 0xc66   :  { %7837 = vrot.lane.b32.xlu1 %v7826_v52, %s8966_s30 }
 0xc68   :  { %7882 = vrot.lane.b32.xlu0 %v7871_v50, %s8966_s30 }
 0xc6a   :  { %7842 = vrot.lane.b32.xlu1 %v7826_v52, %s8961_s14 }
 0xc6c   :  { %7887 = vrot.lane.b32.xlu0 %v7871_v50, %s8961_s14 }
 0xc6e   :  { %7847 = vrot.lane.b32.xlu1 %v7846_v7, %s8964_s28 }
 0xc70   :  { %7892 = vrot.lane.b32.xlu0 %v7891_v21, %s8964_s28 }
 0xc72   :  { %7852 = vrot.lane.b32.xlu1 %v7766_v43, %s8963_s21 }
 0xc74   :  { %7897 = vrot.lane.b32.xlu0 %v7806_v9, %s8963_s21 }
 0xc76   :  { %7857 = vrot.lane.b32.xlu1 %v7846_v7, %s8965_s29 }
 0xc78   :  { %7907 = vrot.lane.b32.xlu0 %v7891_v21, %s8965_s29 }
 0xc7a   :  { %7862 = vrot.lane.b32.xlu1 %v7846_v7, %s8966_s30 }
 0xc7c   :  { %7912 = vrot.lane.b32.xlu0 %v10701_v53, %s8963_s21 }
 0xc7e   :  { %7867 = vrot.lane.b32.xlu1 %v7846_v7, %s8961_s14 }
 0xc80   :  { %7927 = vrot.lane.b32.xlu0 %v7891_v21, %s8966_s30 }
 0xc82   :  { %7902 = vrot.lane.b32.xlu1 %v10696_v18, %s8963_s21 }
 0xc84   :  { %7932 = vrot.lane.b32.xlu0 %v7871_v50, %s8963_s21 }
 0xc86   :  { %7917 = vrot.lane.b32.xlu1 %v7846_v7, %s8963_s21 }
 0xc88   :  { %7942 = vrot.lane.b32.xlu0 %v7891_v21, %s8961_s14 }
 0xc8a   :  { %7922 = vrot.lane.b32.xlu1 %v7826_v52, %s8963_s21 }
 0xc8c   :  { %7947 = vrot.lane.b32.xlu0 %v7806_v9, %s8950_s12 }
 0xc8e   :  { %7937 = vrot.lane.b32.xlu1 %v7766_v43, %s8950_s12 }
 0xc90   :  { %7957 = vrot.lane.b32.xlu0 %v7891_v21, %s8963_s21 }
 0xc92   :  { %7952 = vrot.lane.b32.xlu1 %v10696_v18, %s8950_s12 }
 0xc94   :  { %7962 = vrot.lane.b32.xlu0 %v10701_v53, %s8950_s12 }
 0xc96   :  { %7967 = vrot.lane.b32.xlu1 %v7846_v7, %s8950_s12 }
 0xc98   :  { %7977 = vrot.lane.b32.xlu0 %v7891_v21, %s8950_s12 }
 0xc9a   :  { %7972 = vrot.lane.b32.xlu1 %v7826_v52, %s8950_s12 }
 0xc9c   :  { %7982 = vrot.lane.b32.xlu0 %v7871_v50, %s8950_s12 }
 0xc9e   :  { %3904 = vperm.xlu1 %6305, %v5984_v62  }
 0xca0   :  { %3909 = vperm.xlu0 %6304, %v5985_v33  }
 0xca2   :  { %3914 = vperm.xlu1 %6305, %v5986_v14  }
 0xca4   :  { %3919 = vperm.xlu0 %6304, %v5987_v8  }
 0xcb0   :  { %v7748_v15 = vpop.permute.xlu1 %7747 }
 0xcb1   :  { %v7750_v55 = vunpack.i.h.bf16 %v7748_v15  ;;  %v7749_v0 = vunpack.i.l.bf16 %v7748_v15 }
 0xcb2   :  { %v7788_v40 = vpop.permute.xlu0 %7787 }
 0xcb3   :  { %v7790_v48 = vunpack.i.h.bf16 %v7788_v40  ;;  %v7789_v6 = vunpack.i.l.bf16 %v7788_v40  ;;  %v3594_v29 = vsel %vm3125_vm13, %v7749_v0, %v7750_v55 }
 0xcb4   :  { %v10790_v13 = vpop.permute.xlu1 %7752 }
 0xcb5   :  { %v3595_v30 = vsel %vm3125_vm13, %v7789_v6, %v7790_v48  ;;  %v7755_v40 = vunpack.i.h.bf16 %v10790_v13  ;;  %v7754_v48 = vunpack.i.l.bf16 %v10790_v13 }
 0xcb6   :  { %v7793_v11 = vpop.permute.xlu0 %7792  ;;  %v3874_v19 = vpack.c.bf16 %v3595_v30, %v3594_v29 }
 0xcb7   :  { %v7795_v50 = vunpack.i.h.bf16 %v7793_v11  ;;  %v7794_v7 = vunpack.i.l.bf16 %v7793_v11 }
 0xcb8   :  { %v10792_v45 = vpop.permute.xlu1 %7757 }
 0xcba   :  { %v10794_v54 = vpop.permute.xlu0 %7797 }
 0xcbc   :  { %v10796_v23 = vpop.permute.xlu1 %7762 }
 0xcbe   :  { %v10798_v46 = vpop.permute.xlu0 %7802 }
 0xcc0   :  { %v7768_v25 = vpop.permute.xlu1 %7767 }
 0xcc1   :  { %v7770_v17 = vunpack.i.h.bf16 %v7768_v25  ;;  %v7769_v41 = vunpack.i.l.bf16 %v7768_v25 }
 0xcc2   :  { %v7808_v34 = vpop.permute.xlu0 %7807 }
 0xcc3   :  { %v7810_v39 = vunpack.i.h.bf16 %v7808_v34  ;;  %v7809_v12 = vunpack.i.l.bf16 %v7808_v34  ;;  %v3626_v18 = vsel %vm3125_vm13, %v7769_v41, %v7770_v17  ;;  %v3651_v34 = vsel %vm3182_vm14, %v7794_v7, %v7795_v50 }
 0xcc4   :  { %v7773_v51 = vpop.permute.xlu1 %7772 }
 0xcc5   :  { %v3627_v53 = vsel %vm3125_vm13, %v7809_v12, %v7810_v39  ;;  %v7775_v33 = vunpack.i.h.bf16 %v7773_v51  ;;  %v7774_v31 = vunpack.i.l.bf16 %v7773_v51  ;;  %v3650_v51 = vsel %vm3182_vm14, %v7754_v48, %v7755_v40 }
 0xcc6   :  { %v7813_v37 = vpop.permute.xlu0 %7812  ;;  %v3875_v24 = vpack.c.bf16 %v3627_v53, %v3626_v18  ;;  %v7760_v18 = vunpack.i.h.bf16 %v10792_v45 }
 0xcc7   :  { %v7815_v32 = vunpack.i.h.bf16 %v7813_v37  ;;  %v7814_v59 = vunpack.i.l.bf16 %v7813_v37  ;;  %v3674_v13 = vsel %vm3182_vm14, %v7774_v31, %v7775_v33 }
 0xcc8   :  { %v10804_v27 = vpop.permute.xlu1 %7777  ;;  %3942 = vmatprep.subr.bf16.mxu0 %v3875_v24 }
 0xcc9   :  { %3943 = vmatpush1.bf16.msra.mxu0 %v3874_v19  ;;  %v3675_v55 = vsel %vm3182_vm14, %v7814_v59, %v7815_v32  ;;  %v7759_v32 = vunpack.i.l.bf16 %v10792_v45  ;;  %v7779_v50 = vunpack.i.l.bf16 %v10804_v27 }
 0xcca   :  { %v10806_v49 = vpop.permute.xlu0 %7817  ;;  %v3879_v29 = vpack.c.bf16 %v3675_v55, %v3674_v13 }
 0xccb   :  { %v7820_v37 = vunpack.i.h.bf16 %v10806_v49  ;;  %v7819_v24 = vunpack.i.l.bf16 %v10806_v49  ;;  %v7800_v49 = vunpack.i.h.bf16 %v10794_v54 }
 0xccc   :  { %v10808_v36 = vpop.permute.xlu1 %7782 }
 0xcce   :  { %v10810_v10 = vpop.permute.xlu0 %7822 }
 0xcd0   :  { %v7828_v20 = vpop.permute.xlu1 %7827 }
 0xcd1   :  { %v7830_v14 = vunpack.i.h.bf16 %v7828_v20  ;;  %v7829_v8 = vunpack.i.l.bf16 %v7828_v20 }
 0xcd2   :  { %v7873_v2 = vpop.permute.xlu0 %7872 }
 0xcd3   :  { %v7875_v43 = vunpack.i.h.bf16 %v7873_v2  ;;  %v7874_v9 = vunpack.i.l.bf16 %v7873_v2  ;;  %v3596_v39 = vsel %vm3125_vm13, %v7829_v8, %v7830_v14  ;;  %v3723_v8 = vsel %vm1069_vm6, %v7819_v24, %v7820_v37 }
 0xcd4   :  { %v10812_v56 = vpop.permute.xlu1 %7832  ;;  %v7785_v37 = vunpack.i.h.bf16 %v10808_v36  ;;  %v7784_v24 = vunpack.i.l.bf16 %v10808_v36 }
 0xcd5   :  { %v3597_v17 = vsel %vm3125_vm13, %v7874_v9, %v7875_v43  ;;  %v3878_v9 = vpack.c.bf16 %v3651_v34, %v3650_v51  ;;  %v7835_v7 = vunpack.i.h.bf16 %v10812_v56  ;;  %v7824_v34 = vunpack.i.l.bf16 %v10810_v10 }
 0xcd6   :  { %v7878_v35 = vpop.permute.xlu0 %7877  ;;  %v3876_v53 = vpack.c.bf16 %v3597_v17, %v3596_v39  ;;  %v7765_v17 = vunpack.i.h.bf16 %v10796_v23  ;;  %v7805_v51 = vunpack.i.h.bf16 %v10798_v46 }
 0xcd7   :  { %v7880_v19 = vunpack.i.h.bf16 %v7878_v35  ;;  %v7879_v20 = vunpack.i.l.bf16 %v7878_v35  ;;  %v7799_v35 = vunpack.i.l.bf16 %v10794_v54 }
 0xcd8   :  { %v10814_v44 = vpop.permute.xlu1 %7837 }
 0xcd9   :  { %v3653_v31 = vsel %vm3182_vm14, %v7879_v20, %v7880_v19  ;;  %v7840_v19 = vunpack.i.h.bf16 %v10814_v44 }
 0xcda   :  { %v10816_v63 = vpop.permute.xlu0 %7882 }
 0xcdb   :  { %v7885_v39 = vunpack.i.h.bf16 %v10816_v63 }
 0xcdc   :  { %v10818_v60 = vpop.permute.xlu1 %7842 }
 0xcde   :  { %v10820_v22 = vpop.permute.xlu0 %7887 }
 0xce0   :  { %v7848_v52 = vpop.permute.xlu1 %7847 }
 0xce1   :  { %v7850_v21 = vunpack.i.h.bf16 %v7848_v52  ;;  %v7849_v62 = vunpack.i.l.bf16 %v7848_v52  ;;  %v7780_v52 = vunpack.i.h.bf16 %v10804_v27 }
 0xce2   :  { %v7893_v15 = vpop.permute.xlu0 %7892 }
 0xce3   :  { %v7895_v6 = vunpack.i.h.bf16 %v7893_v15  ;;  %v7894_v25 = vunpack.i.l.bf16 %v7893_v15  ;;  %v3628_v11 = vsel %vm3125_vm13, %v7849_v62, %v7850_v21  ;;  %v7834_v21 = vunpack.i.l.bf16 %v10812_v56 }
 0xce4   :  { %v10825_v41 = vpop.permute.xlu1 %7852  ;;  %v3698_v56 = vsel %vm1069_vm6, %v7759_v32, %v7760_v18  ;;  %v3722_v54 = vsel %vm1069_vm6, %v7779_v50, %v7780_v52  ;;  %v7804_v18 = vunpack.i.l.bf16 %v10798_v46 }
 0xce5   :  { %v3629_v0 = vsel %vm3125_vm13, %v7894_v25, %v7895_v6  ;;  %v3652_v40 = vsel %vm3182_vm14, %v7834_v21, %v7835_v7  ;;  %v3699_v25 = vsel %vm1069_vm6, %v7799_v35, %v7800_v49  ;;  %v3770_v21 = vsel %vm2164_vm10, %v7784_v24, %v7785_v37 }
 0xce6   :  { %v10832_v12 = vpop.permute.xlu0 %7897  ;;  %v3877_v30 = vpack.c.bf16 %v3629_v0, %v3628_v11  ;;  %v3880_v55 = vpack.c.bf16 %v3653_v31, %v3652_v40  ;;  %v3883_v11 = vpack.c.bf16 %v3723_v8, %v3722_v54  ;;  %v7825_v0 = vunpack.i.h.bf16 %v10810_v10 }
 0xce7   :  { %v7839_v10 = vunpack.i.l.bf16 %v10814_v44  ;;  %v3747_v50 = vsel %vm2164_vm10, %v7804_v18, %v7805_v51  ;;  %v7900_v31 = vunpack.i.h.bf16 %v10832_v12  ;;  %v7845_v40 = vunpack.i.h.bf16 %v10818_v60 }
 0xce8   :  { %v7858_v2 = vpop.permute.xlu1 %7857  ;;  %3944 = vmatprep.subr.bf16.mxu0 %v3877_v30  ;;  %v7884_v30 = vunpack.i.l.bf16 %v10816_v63  ;;  %v7764_v63 = vunpack.i.l.bf16 %v10796_v23  ;;  %v7855_v54 = vunpack.i.h.bf16 %v10825_v41 }
 0xce9   :  { %v7860_v59 = vunpack.i.h.bf16 %v7858_v2  ;;  %v7859_v43 = vunpack.i.l.bf16 %v7858_v2  ;;  %3945 = vmatpush1.bf16.msra.mxu0 %v3876_v53  ;;  %v3700_v44 = vsel %vm1069_vm6, %v7839_v10, %v7840_v19 }
 0xcea   :  { %v7908_v62 = vpop.permute.xlu0 %7907  ;;  %3946 = vmatprep.subr.bf16.mxu0 %v3879_v29  ;;  %v3701_v46 = vsel %vm1069_vm6, %v7884_v30, %v7885_v39 }
 0xceb   :  { %v7910_v33 = vunpack.i.h.bf16 %v7908_v62  ;;  %v7909_v45 = vunpack.i.l.bf16 %v7908_v62  ;;  %v3676_v27 = vsel %vm3182_vm14, %v7859_v43, %v7860_v59  ;;  %v3882_v59 = vpack.c.bf16 %v3699_v25, %v3698_v56 }
 0xcec   :  { %v7863_v14 = vpop.permute.xlu1 %7862  ;;  %v3746_v62 = vsel %vm2164_vm10, %v7764_v63, %v7765_v17  ;;  %v3884_v49 = vpack.c.bf16 %v3701_v46, %v3700_v44  ;;  %v7854_v25 = vunpack.i.l.bf16 %v10825_v41 }
 0xced   :  { %3947 = vmatpush1.bf16.msra.mxu0 %v3878_v9  ;;  %v3677_v15 = vsel %vm3182_vm14, %v7909_v45, %v7910_v33  ;;  %v7865_v53 = vunpack.i.h.bf16 %v7863_v14  ;;  %v7864_v29 = vunpack.i.l.bf16 %v7863_v14  ;;  %v3771_v9 = vsel %vm2164_vm10, %v7824_v34, %v7825_v0 }
 0xcee   :  { %v10852_v48 = vpop.permute.xlu0 %7912  ;;  %v3881_v6 = vpack.c.bf16 %v3677_v15, %v3676_v27  ;;  %v3887_v35 = vpack.c.bf16 %v3771_v9, %v3770_v21  ;;  %v7890_v33 = vunpack.i.h.bf16 %v10820_v22  ;;  %v7889_v45 = vunpack.i.l.bf16 %v10820_v22 }
 0xcef   :  { %v3724_v52 = vsel %vm1069_vm6, %v7864_v29, %v7865_v53  ;;  %v7899_v14 = vunpack.i.l.bf16 %v10832_v12  ;;  %v3886_v56 = vpack.c.bf16 %v3747_v50, %v3746_v62  ;;  %v7915_v30 = vunpack.i.h.bf16 %v10852_v48 }
 0xcf0   :  { %v7868_v13 = vpop.permute.xlu1 %7867  ;;  %3948 = vmatprep.subr.bf16.mxu0 %v3881_v6  ;;  %v7844_v6 = vunpack.i.l.bf16 %v10818_v60  ;;  %v3749_v0 = vsel %vm2164_vm10, %v7889_v45, %v7890_v33  ;;  %v3818_v29 = vsel %vm2270_vm12, %v7854_v25, %v7855_v54 }
 0xcf1   :  { %3949 = vmatpush1.bf16.msra.mxu0 %v3880_v55  ;;  %v7870_v27 = vunpack.i.h.bf16 %v7868_v13  ;;  %v7869_v15 = vunpack.i.l.bf16 %v7868_v13  ;;  %v3819_v39 = vsel %vm2270_vm12, %v7899_v14, %v7900_v31  ;;  %v7914_v13 = vunpack.i.l.bf16 %v10852_v48 }
 0xcf2   :  { %v7928_v20 = vpop.permute.xlu0 %7927  ;;  %3950 = vmatprep.subr.bf16.mxu0 %v3883_v11  ;;  %v3748_v51 = vsel %vm2164_vm10, %v7844_v6, %v7845_v40  ;;  %v3891_v19 = vpack.c.bf16 %v3819_v39, %v3818_v29 }
 0xcf3   :  { %v7930_v2 = vunpack.i.h.bf16 %v7928_v20  ;;  %v7929_v32 = vunpack.i.l.bf16 %v7928_v20  ;;  %v3772_v60 = vsel %vm2164_vm10, %v7869_v15, %v7870_v27  ;;  %v3888_v24 = vpack.c.bf16 %v3749_v0, %v3748_v51 }
 0xcf4   :  { %v7903_v43 = vpop.permute.xlu1 %7902 }
 0xcf5   :  { %3951 = vmatpush1.bf16.msra.mxu0 %v3882_v59  ;;  %v3725_v36 = vsel %vm1069_vm6, %v7929_v32, %v7930_v2  ;;  %v7905_v22 = vunpack.i.h.bf16 %v7903_v43  ;;  %v7904_v55 = vunpack.i.l.bf16 %v7903_v43  ;;  %v3795_v32 = vsel %vm2270_vm12, %v7914_v13, %v7915_v30 }
 0xcf6   :  { %v10874_v7 = vpop.permute.xlu0 %7932  ;;  %v3885_v23 = vpack.c.bf16 %v3725_v36, %v3724_v52 }
 0xcf7   :  { %v3794_v37 = vsel %vm2270_vm12, %v7904_v55, %v7905_v22  ;;  %v7935_v43 = vunpack.i.h.bf16 %v10874_v7  ;;  %v7934_v9 = vunpack.i.l.bf16 %v10874_v7 }
 0xcf8   :  { %v7918_v8 = vpop.permute.xlu1 %7917  ;;  %3952 = vmatprep.subr.bf16.mxu0 %v3885_v23  ;;  %v3890_v36 = vpack.c.bf16 %v3795_v32, %v3794_v37 }
 0xcf9   :  { %3953 = vmatpush1.bf16.msra.mxu0 %v3884_v49  ;;  %v7920_v10 = vunpack.i.h.bf16 %v7918_v8  ;;  %v7919_v20 = vunpack.i.l.bf16 %v7918_v8  ;;  %v3797_v7 = vsel %vm2270_vm12, %v7934_v9, %v7935_v43 }
 0xcfa   :  { %v7943_v17 = vpop.permute.xlu0 %7942  ;;  %3954 = vmatprep.subr.bf16.mxu0 %v3887_v35 }
 0xcfb   :  { %v7945_v11 = vunpack.i.h.bf16 %v7943_v17  ;;  %v7944_v12 = vunpack.i.l.bf16 %v7943_v17  ;;  %v3820_v35 = vsel %vm2270_vm12, %v7919_v20, %v7920_v10  ;;  %v8870_v20 = vld [vmem:[%s11933_s3 + $0x60] ss:$8 sps:$4 sm:$0xff]  }
 0xcfc   :  { %v7923_v34 = vpop.permute.xlu1 %7922 }
 0xcfd   :  { %3955 = vmatpush1.bf16.msra.mxu0 %v3886_v56  ;;  %v3773_v41 = vsel %vm2164_vm10, %v7944_v12, %v7945_v11  ;;  %v7925_v63 = vunpack.i.h.bf16 %v7923_v34  ;;  %v7924_v2 = vunpack.i.l.bf16 %v7923_v34 }
 0xcfe   :  { %v7948_v18 = vpop.permute.xlu0 %7947  ;;  %v3889_v53 = vpack.c.bf16 %v3773_v41, %v3772_v60 }
 0xcff   :  { %v7950_v50 = vunpack.i.h.bf16 %v7948_v18  ;;  %v7949_v44 = vunpack.i.l.bf16 %v7948_v18  ;;  %v3796_v62 = vsel %vm2270_vm12, %v7924_v2, %v7925_v63  ;;  %v8873_v63 = vld [vmem:[%s11933_s3 + $0x74] ss:$8 sps:$4 sm:$0xff]  }
 0xd00   :  { %v7938_v48 = vpop.permute.xlu1 %7937  ;;  %3956 = vmatprep.subr.bf16.mxu0 %v3889_v53  ;;  %v3892_v40 = vpack.c.bf16 %v3797_v7, %v3796_v62 }
 0xd01   :  { %v7940_v59 = vunpack.i.h.bf16 %v7938_v48  ;;  %v7939_v46 = vunpack.i.l.bf16 %v7938_v48  ;;  %3957 = vmatpush1.bf16.msra.mxu0 %v3888_v24  ;;  %v3867_v6 = vsel %vm1309_vm9, %v7949_v44, %v7950_v50 }
 0xd02   :  { %v7958_v52 = vpop.permute.xlu0 %7957  ;;  %3958 = vmatprep.subr.bf16.mxu0 %v3891_v19 }
 0xd03   :  { %v7960_v23 = vunpack.i.h.bf16 %v7958_v52  ;;  %v7959_v21 = vunpack.i.l.bf16 %v7958_v52  ;;  %v3866_v14 = vsel %vm1309_vm9, %v7939_v46, %v7940_v59 }
 0xd04   :  { %v7953_v49 = vpop.permute.xlu1 %7952  ;;  %v3895_v25 = vpack.c.bf16 %v3867_v6, %v3866_v14 }
 0xd05   :  { %v7955_v33 = vunpack.i.h.bf16 %v7953_v49  ;;  %v7954_v45 = vunpack.i.l.bf16 %v7953_v49  ;;  %3959 = vmatpush1.bf16.msra.mxu0 %v3890_v36  ;;  %v3821_v31 = vsel %vm2270_vm12, %v7959_v21, %v7960_v23 }
 0xd06   :  { %v7963_v8 = vpop.permute.xlu0 %7962  ;;  %v3893_v27 = vpack.c.bf16 %v3821_v31, %v3820_v35 }
 0xd07   :  { %v7965_v15 = vunpack.i.h.bf16 %v7963_v8  ;;  %v7964_v56 = vunpack.i.l.bf16 %v7963_v8  ;;  %v3842_v17 = vsel %vm1309_vm9, %v7954_v45, %v7955_v33 }
 0xd08   :  { %v7968_v54 = vpop.permute.xlu1 %7967  ;;  %3960 = vmatprep.subr.bf16.mxu0 %v3893_v27 }
 0xd09   :  { %v3843_v22 = vsel %vm1309_vm9, %v7964_v56, %v7965_v15  ;;  %v7970_v55 = vunpack.i.h.bf16 %v7968_v54  ;;  %v7969_v11 = vunpack.i.l.bf16 %v7968_v54  ;;  %3961 = vmatpush1.bf16.msra.mxu0 %v3892_v40 }
 0xd0a   :  { %v7978_v12 = vpop.permute.xlu0 %7977  ;;  %3962 = vmatprep.subr.bf16.mxu0 %v3895_v25  ;;  %v3894_v0 = vpack.c.bf16 %v3843_v22, %v3842_v17 }
 0xd0b   :  { %v7980_v34 = vunpack.i.h.bf16 %v7978_v12  ;;  %v7979_v39 = vunpack.i.l.bf16 %v7978_v12  ;;  %v3868_v41 = vsel %vm1309_vm9, %v7969_v11, %v7970_v55 }
 0xd0c   :  { %v7973_v30 = vpop.permute.xlu1 %7972 }
 0xd0d   :  { %v7975_v13 = vunpack.i.h.bf16 %v7973_v30  ;;  %v7974_v60 = vunpack.i.l.bf16 %v7973_v30  ;;  %3963 = vmatpush1.bf16.msra.mxu0 %v3894_v0  ;;  %v3869_v51 = vsel %vm1309_vm9, %v7979_v39, %v7980_v34 }
 0xd0e   :  { %v7983_v18 = vpop.permute.xlu0 %7982  ;;  %v3897_v53 = vpack.c.bf16 %v3869_v51, %v3868_v41 }
 0xd0f   :  { %v7985_v29 = vunpack.i.h.bf16 %v7983_v18  ;;  %v7984_v37 = vunpack.i.l.bf16 %v7983_v18  ;;  %v3844_v24 = vsel %vm1309_vm9, %v7974_v60, %v7975_v13  ;;  %v5997_v18 = vld [vmem:[%s11932_s2 + $0x88] sm:$0xff] }
 0xd10   :  { %3964 = vmatprep.subr.bf16.mxu0 %v3897_v53  ;;  %v8878_v53 = vld [vmem:[%s11931_s1 + $0x84] ss:$8 sps:$4 sm:$0xff]  }
 0xd11   :  { %v3845_v19 = vsel %vm1309_vm9, %v7984_v37, %v7985_v29  ;;  %v5998_v29 = vld [vmem:[%s11932_s2 + $0x90] sm:$0xff]  ;;  %4468 = vmatprep.mubr.bf16.mxu1 %v8878_v53  ;;  %v5999_v37 = vld [vmem:[%s11932_s2 + $0x98] sm:$0xff] }
 0xd12   :  { %v3896_v10 = vpack.c.bf16 %v3845_v19, %v3844_v24 }
 0xd14   :  { %3965 = vmatpush1.bf16.msra.mxu0 %v3896_v10 }
 0xd15   :  { %3966 = vmatprep.subr.bf16.mxu0 %v10715_v42  ;;  %v8875_v42 = vld [vmem:[%s11933_s3 + $0x70] ss:$8 sps:$4 sm:$0xff]  }
 0xd18   :  { %3967 = vmatpush1.bf16.msra.mxu0 %v10717_v57 }
 0xd19   :  { %3968 = vmatprep.subr.bf16.mxu0 %v10719_v61 }
 0xd1c   :  { %3969 = vmatpush1.bf16.msra.mxu0 %v10721_v47 }
 0xd1d   :  { %v3905_v57 = vpop.permute.xlu1 %3904 }
 0xd1f   :  { %3975 = vmatmul.mubr.bf16.vlgmr.msra.gmra.mrb[32].mxu0 %v8870_v20  ;;  %v3910_v32 = vpop.permute.xlu0 %3909 }
 0xd20   :  { %3984 = vmatprep.mubr.bf16.mxu0 %v8873_v63 }
 0xd23   :  { %v3920_v56 = vpop.permute.xlu0 %3919 }
 0xd27   :  { %3985 = vmatmul.mubr.bf16.gmra.mrb[36].mxu0 %v8875_v42 }
 0xdf2   :  { %v3976_v2 = vpop.f32.mrb[32].mxu0 }
 0xdf3   :  { %v3977_v61 = vadd.f32 %v3976_v2, %v3905_v57  ;;  %v3978_v48 = vpop.f32.mrb[33].mxu0 }
 0xdf4   :  { %v3980_v59 = vpop.f32.mrb[34].mxu0  ;;  %v3979_v23 = vadd.f32 %v3978_v48, %v3905_v57 }
 0xdf5   :  { %v3995_v46 = vmax.f32 %v3977_v61, 0.0  ;;  %v3981_v43 = vadd.f32 %v3980_v59, %v3910_v32  ;;  %v3982_v47 = vpop.f32.mrb[35].mxu0 }
 0xdf6   :  { %v3983_v33 = vadd.f32 %v3982_v47, %v3910_v32 }
 0xdf7   :  { %v4011_v9 = vadd.f32 %v3995_v46, %v10436_v5  ;;  %v3997_v52 = vmax.f32 %v3981_v43, 0.0 }
 0xdf8   :  { %v3998_v31 = vmax.f32 %v3983_v33, 0.0 }
 0xdf9   :  { %v10924_v36 = vmax.f32 %v4011_v9, 0.0  ;;  %v4013_v50 = vadd.f32 %v3997_v52, %v10439_v16  ;;  %v3996_v16 = vmax.f32 %v3979_v23, 0.0 }
 0xdfa   :  { %v3986_v44 = vpop.f32.mrb[36].mxu0  ;;  %v4014_v7 = vadd.f32 %v3998_v31, %v10465_v58 }
 0xdfb   :  { %v10927_v21 = vmax.f32 %v4013_v50, 0.0  ;;  %v3988_v62 = vpop.f32.mrb[37].mxu0  ;;  %v10931_v49 = vpack.i.bf16 %v10924_v36, %v8951_v3  ;;  %v4012_v14 = vadd.f32 %v3996_v16, %v10461_v1  ;;  %v3915_v1 = vpop.permute.xlu1 %3914 }
 0xdfc   :  { %v3990_v35 = vpop.f32.mrb[38].mxu0  ;;  %v10953_v27 = vmax.f32 %v4014_v7, 0.0  ;;  %v3987_v15 = vadd.f32 %v3986_v44, %v3915_v1  ;;  %v3989_v12 = vadd.f32 %v3988_v62, %v3915_v1 }
 0xdfd   :  { %v3992_v45 = vpop.f32.mrb[39].mxu0  ;;  %7987 = vrot.lane.b32.xlu1 %v10931_v49, %s8967_s0  ;;  %v10937_v5 = vpack.i.bf16 %v10927_v21, %v8951_v3  ;;  %v10949_v8 = vmax.f32 %v4012_v14, 0.0  ;;  %v3991_v40 = vadd.f32 %v3990_v35, %v3920_v56 }
 0xdfe   :  { %v8046_v6 = vpack.i.bf16 %v10953_v27, %v8951_v3  ;;  %v3999_v54 = vmax.f32 %v3987_v15, 0.0  ;;  %v3993_v0 = vadd.f32 %v3992_v45, %v3920_v56  ;;  %v4000_v34 = vmax.f32 %v3989_v12, 0.0 }
 0xdff   :  { %8027 = vrot.lane.b32.xlu0 %v10937_v5, %s8967_s0  ;;  %v8006_v58 = vpack.i.bf16 %v10949_v8, %v8951_v3  ;;  %v4001_v25 = vmax.f32 %v3991_v40, 0.0 }
 0xe00   :  { %v4015_v17 = vadd.f32 %v3999_v54, %v10482_v4  ;;  %v4002_v39 = vmax.f32 %v3993_v0, 0.0  ;;  %v4016_v30 = vadd.f32 %v4000_v34, %v10500_v26 }
 0xe01   :  { %7992 = vrot.lane.b32.xlu1 %v10931_v49, %s8968_s5  ;;  %v4017_v22 = vadd.f32 %v4001_v25, %v10485_v28 }
 0xe02   :  { %v10970_v55 = vmax.f32 %v4015_v17, 0.0  ;;  %v4018_v13 = vadd.f32 %v4002_v39, %v10503_v38  ;;  %v10988_v60 = vmax.f32 %v4016_v30, 0.0  ;;  %v5996_v38 = vld [vmem:[%s11932_s2 + $0x80] sm:$0xff] }
 0xe03   :  { %8032 = vrot.lane.b32.xlu0 %v10937_v5, %s8968_s5  ;;  %v10973_v11 = vmax.f32 %v4017_v22, 0.0 }
 0xe04   :  { %v8066_v4 = vpack.i.bf16 %v10970_v55, %v8951_v3  ;;  %v10991_v41 = vmax.f32 %v4018_v13, 0.0  ;;  %v8086_v51 = vpack.i.bf16 %v10988_v60, %v8951_v3 }
 0xe05   :  { %7997 = vrot.lane.b32.xlu1 %v10931_v49, %s8969_s16  ;;  %v8111_v28 = vpack.i.bf16 %v10973_v11, %v8951_v3 }
 0xe06   :  { %v8131_v26 = vpack.i.bf16 %v10991_v41, %v8951_v3 }
 0xe07   :  { %8037 = vrot.lane.b32.xlu0 %v10937_v5, %s8969_s16 }
 0xe09   :  { %8002 = vrot.lane.b32.xlu1 %v10931_v49, %s8964_s28 }
 0xe0b   :  { %8042 = vrot.lane.b32.xlu0 %v10937_v5, %s8964_s28 }
 0xe0d   :  { %8007 = vrot.lane.b32.xlu1 %v8006_v58, %s8967_s0 }
 0xe0f   :  { %8047 = vrot.lane.b32.xlu0 %v8046_v6, %s8967_s0 }
 0xe11   :  { %8012 = vrot.lane.b32.xlu1 %v8006_v58, %s8968_s5 }
 0xe13   :  { %8052 = vrot.lane.b32.xlu0 %v8046_v6, %s8968_s5 }
 0xe15   :  { %8017 = vrot.lane.b32.xlu1 %v8006_v58, %s8969_s16 }
 0xe17   :  { %8057 = vrot.lane.b32.xlu0 %v8046_v6, %s8969_s16 }
 0xe19   :  { %8022 = vrot.lane.b32.xlu1 %v8006_v58, %s8964_s28 }
 0xe1b   :  { %8062 = vrot.lane.b32.xlu0 %v8046_v6, %s8964_s28 }
 0xe1d   :  { %8067 = vrot.lane.b32.xlu1 %v8066_v4, %s8967_s0 }
 0xe1f   :  { %8112 = vrot.lane.b32.xlu0 %v8111_v28, %s8967_s0 }
 0xe21   :  { %8072 = vrot.lane.b32.xlu1 %v8066_v4, %s8968_s5 }
 0xe23   :  { %8117 = vrot.lane.b32.xlu0 %v8111_v28, %s8968_s5 }
 0xe25   :  { %8077 = vrot.lane.b32.xlu1 %v8066_v4, %s8969_s16 }
 0xe27   :  { %8122 = vrot.lane.b32.xlu0 %v8111_v28, %s8969_s16 }
 0xe29   :  { %8082 = vrot.lane.b32.xlu1 %v8066_v4, %s8964_s28 }
 0xe2b   :  { %8127 = vrot.lane.b32.xlu0 %v8111_v28, %s8964_s28 }
 0xe2d   :  { %8087 = vrot.lane.b32.xlu1 %v8086_v51, %s8967_s0 }
 0xe2f   :  { %8132 = vrot.lane.b32.xlu0 %v8131_v26, %s8967_s0 }
 0xe31   :  { %8092 = vrot.lane.b32.xlu1 %v8006_v58, %s8966_s30 }
 0xe33   :  { %8137 = vrot.lane.b32.xlu0 %v8046_v6, %s8966_s30 }
 0xe35   :  { %8097 = vrot.lane.b32.xlu1 %v8086_v51, %s8968_s5 }
 0xe37   :  { %8147 = vrot.lane.b32.xlu0 %v8131_v26, %s8968_s5 }
 0xe39   :  { %8102 = vrot.lane.b32.xlu1 %v8086_v51, %s8969_s16 }
 0xe3b   :  { %8152 = vrot.lane.b32.xlu0 %v10937_v5, %s8966_s30 }
 0xe3d   :  { %8107 = vrot.lane.b32.xlu1 %v8086_v51, %s8964_s28 }
 0xe3f   :  { %8167 = vrot.lane.b32.xlu0 %v8131_v26, %s8969_s16 }
 0xe41   :  { %8142 = vrot.lane.b32.xlu1 %v10931_v49, %s8966_s30 }
 0xe43   :  { %8172 = vrot.lane.b32.xlu0 %v8111_v28, %s8966_s30 }
 0xe45   :  { %8157 = vrot.lane.b32.xlu1 %v8086_v51, %s8966_s30 }
 0xe47   :  { %8182 = vrot.lane.b32.xlu0 %v8131_v26, %s8964_s28 }
 0xe49   :  { %8162 = vrot.lane.b32.xlu1 %v8066_v4, %s8966_s30 }
 0xe4b   :  { %8187 = vrot.lane.b32.xlu0 %v8046_v6, %s8963_s21 }
 0xe4d   :  { %8177 = vrot.lane.b32.xlu1 %v8006_v58, %s8963_s21 }
 0xe4f   :  { %8197 = vrot.lane.b32.xlu0 %v8131_v26, %s8966_s30 }
 0xe51   :  { %8192 = vrot.lane.b32.xlu1 %v10931_v49, %s8963_s21 }
 0xe53   :  { %8202 = vrot.lane.b32.xlu0 %v10937_v5, %s8963_s21 }
 0xe55   :  { %8207 = vrot.lane.b32.xlu1 %v8086_v51, %s8963_s21 }
 0xe57   :  { %8217 = vrot.lane.b32.xlu0 %v8131_v26, %s8963_s21 }
 0xe59   :  { %8212 = vrot.lane.b32.xlu1 %v8066_v4, %s8963_s21 }
 0xe5b   :  { %8222 = vrot.lane.b32.xlu0 %v8111_v28, %s8963_s21 }
 0xe5d   :  { %4398 = vperm.xlu1 %6305, %v5996_v38  }
 0xe5f   :  { %4403 = vperm.xlu0 %6304, %v5997_v18  }
 0xe61   :  { %4408 = vperm.xlu1 %6305, %v5998_v29  }
 0xe63   :  { %4413 = vperm.xlu0 %6304, %v5999_v37  }
 0xe6f   :  { %v7988_v24 = vpop.permute.xlu1 %7987 }
 0xe70   :  { %v7990_v43 = vunpack.i.h.bf16 %v7988_v24  ;;  %v7989_v47 = vunpack.i.l.bf16 %v7988_v24 }
 0xe71   :  { %v8028_v19 = vpop.permute.xlu0 %8027 }
 0xe72   :  { %v8030_v61 = vunpack.i.h.bf16 %v8028_v19  ;;  %v8029_v48 = vunpack.i.l.bf16 %v8028_v19  ;;  %v4086_v35 = vsel %vm4085_vm15, %v7989_v47, %v7990_v43 }
 0xe73   :  { %v11042_v10 = vpop.permute.xlu1 %7992 }
 0xe74   :  { %v4087_v44 = vsel %vm4085_vm15, %v8029_v48, %v8030_v61  ;;  %v7995_v53 = vunpack.i.h.bf16 %v11042_v10  ;;  %v7994_v29 = vunpack.i.l.bf16 %v11042_v10 }
 0xe75   :  { %v11044_v20 = vpop.permute.xlu0 %8032  ;;  %v4368_v5 = vpack.c.bf16 %v4087_v44, %v4086_v35 }
 0xe76   :  { %v8035_v28 = vunpack.i.h.bf16 %v11044_v20  ;;  %v8034_v34 = vunpack.i.l.bf16 %v11044_v20 }
 0xe77   :  { %v11046_v63 = vpop.permute.xlu1 %7997 }
 0xe79   :  { %v11048_v42 = vpop.permute.xlu0 %8037 }
 0xe7b   :  { %v11050_v57 = vpop.permute.xlu1 %8002 }
 0xe7d   :  { %v11052_v2 = vpop.permute.xlu0 %8042 }
 0xe7f   :  { %v8008_v32 = vpop.permute.xlu1 %8007 }
 0xe80   :  { %v8010_v59 = vunpack.i.h.bf16 %v8008_v32  ;;  %v8009_v46 = vunpack.i.l.bf16 %v8008_v32 }
 0xe81   :  { %v8048_v9 = vpop.permute.xlu0 %8047 }
 0xe82   :  { %v8050_v52 = vunpack.i.h.bf16 %v8048_v9  ;;  %v8049_v50 = vunpack.i.l.bf16 %v8048_v9  ;;  %v4118_v62 = vsel %vm4085_vm15, %v8009_v46, %v8010_v59  ;;  %v4144_v59 = vsel %vm4142_vm0, %v8034_v34, %v8035_v28 }
 0xe83   :  { %v8013_v23 = vpop.permute.xlu1 %8012  ;;  %v4143_v9 = vsel %vm4142_vm0, %v7994_v29, %v7995_v53  ;;  %v8005_v53 = vunpack.i.h.bf16 %v11050_v57 }
 0xe84   :  { %v4119_v49 = vsel %vm4085_vm15, %v8049_v50, %v8050_v52  ;;  %v8015_v13 = vunpack.i.h.bf16 %v8013_v23  ;;  %v8014_v51 = vunpack.i.l.bf16 %v8013_v23  ;;  %v8000_v52 = vunpack.i.h.bf16 %v11046_v63 }
 0xe85   :  { %v8053_v33 = vpop.permute.xlu0 %8052  ;;  %v4369_v45 = vpack.c.bf16 %v4119_v49, %v4118_v62 }
 0xe86   :  { %v8055_v17 = vunpack.i.h.bf16 %v8053_v33  ;;  %v8054_v22 = vunpack.i.l.bf16 %v8053_v33  ;;  %v4167_v47 = vsel %vm4142_vm0, %v8014_v51, %v8015_v13 }
 0xe87   :  { %v11058_v16 = vpop.permute.xlu1 %8017  ;;  %4436 = vmatprep.subr.bf16.mxu1 %v4369_v45  ;;  %v7999_v45 = vunpack.i.l.bf16 %v11046_v63 }
 0xe88   :  { %4437 = vmatpush1.bf16.msra.mxu1 %v4368_v5  ;;  %v4168_v48 = vsel %vm4142_vm0, %v8054_v22, %v8055_v17  ;;  %v8020_v17 = vunpack.i.h.bf16 %v11058_v16  ;;  %v8019_v22 = vunpack.i.l.bf16 %v11058_v16 }
 0xe89   :  { %v11060_v31 = vpop.permute.xlu0 %8057  ;;  %v4373_v44 = vpack.c.bf16 %v4168_v48, %v4167_v47 }
 0xe8a   :  { %v8060_v23 = vunpack.i.h.bf16 %v11060_v31  ;;  %v8059_v62 = vunpack.i.l.bf16 %v11060_v31  ;;  %v8040_v31 = vunpack.i.h.bf16 %v11048_v42 }
 0xe8b   :  { %v11062_v14 = vpop.permute.xlu1 %8022 }
 0xe8d   :  { %v11064_v7 = vpop.permute.xlu0 %8062 }
 0xe8f   :  { %v8068_v1 = vpop.permute.xlu1 %8067 }
 0xe90   :  { %v8070_v26 = vunpack.i.h.bf16 %v8068_v1  ;;  %v8069_v38 = vunpack.i.l.bf16 %v8068_v1 }
 0xe91   :  { %v8113_v15 = vpop.permute.xlu0 %8112 }
 0xe92   :  { %v8115_v12 = vunpack.i.h.bf16 %v8113_v15  ;;  %v8114_v4 = vunpack.i.l.bf16 %v8113_v15  ;;  %v4088_v46 = vsel %vm4085_vm15, %v8069_v38, %v8070_v26  ;;  %v4372_v15 = vpack.c.bf16 %v4144_v59, %v4143_v9 }
 0xe93   :  { %v11066_v58 = vpop.permute.xlu1 %8072  ;;  %v8045_v59 = vunpack.i.h.bf16 %v11052_v2  ;;  %v8025_v9 = vunpack.i.h.bf16 %v11062_v14 }
 0xe94   :  { %v4089_v19 = vsel %vm4085_vm15, %v8114_v4, %v8115_v12  ;;  %v8075_v12 = vunpack.i.h.bf16 %v11066_v58  ;;  %v8074_v4 = vunpack.i.l.bf16 %v11066_v58  ;;  %v4192_v58 = vsel %vm4191_vm1, %v7999_v45, %v8000_v52 }
 0xe95   :  { %v8118_v56 = vpop.permute.xlu0 %8117  ;;  %v4370_v50 = vpack.c.bf16 %v4089_v19, %v4088_v46  ;;  %v8064_v19 = vunpack.i.l.bf16 %v11064_v7  ;;  %v8044_v46 = vunpack.i.l.bf16 %v11052_v2  ;;  %v8024_v52 = vunpack.i.l.bf16 %v11062_v14 }
 0xe96   :  { %v8120_v49 = vunpack.i.h.bf16 %v8118_v56  ;;  %v8119_v35 = vunpack.i.l.bf16 %v8118_v56  ;;  %v8039_v56 = vunpack.i.l.bf16 %v11048_v42  ;;  %v4145_v51 = vsel %vm4142_vm0, %v8074_v4, %v8075_v12 }
 0xe97   :  { %v11068_v40 = vpop.permute.xlu1 %8077  ;;  %v4216_v42 = vsel %vm4191_vm1, %v8019_v22, %v8020_v17 }
 0xe98   :  { %v4146_v34 = vsel %vm4142_vm0, %v8119_v35, %v8120_v49 }
 0xe99   :  { %v11070_v6 = vpop.permute.xlu0 %8122  ;;  %v4374_v29 = vpack.c.bf16 %v4146_v34, %v4145_v51 }
 0xe9a   :  { %v8125_v48 = vunpack.i.h.bf16 %v11070_v6 }
 0xe9b   :  { %v11072_v54 = vpop.permute.xlu1 %8082 }
 0xe9d   :  { %v11074_v25 = vpop.permute.xlu0 %8127 }
 0xe9e   :  { %v8130_v4 = vunpack.i.h.bf16 %v11074_v25 }
 0xe9f   :  { %v8088_v0 = vpop.permute.xlu1 %8087 }
 0xea0   :  { %v8090_v39 = vunpack.i.h.bf16 %v8088_v0  ;;  %v8089_v30 = vunpack.i.l.bf16 %v8088_v0 }
 0xea1   :  { %v8133_v18 = vpop.permute.xlu0 %8132 }
 0xea2   :  { %v8135_v37 = vunpack.i.h.bf16 %v8133_v18  ;;  %v8134_v24 = vunpack.i.l.bf16 %v8133_v18  ;;  %v4120_v20 = vsel %vm4085_vm15, %v8089_v30, %v8090_v39  ;;  %v4217_v30 = vsel %vm4191_vm1, %v8059_v62, %v8060_v23 }
 0xea3   :  { %v11081_v61 = vpop.permute.xlu1 %8092  ;;  %v4193_v18 = vsel %vm4191_vm1, %v8039_v56, %v8040_v31 }
 0xea4   :  { %v4121_v32 = vsel %vm4085_vm15, %v8134_v24, %v8135_v37  ;;  %v4377_v37 = vpack.c.bf16 %v4217_v30, %v4216_v42  ;;  %v8065_v24 = vunpack.i.h.bf16 %v11064_v7  ;;  %v8079_v7 = vunpack.i.l.bf16 %v11068_v40 }
 0xea5   :  { %v11088_v43 = vpop.permute.xlu0 %8137  ;;  %v4371_v10 = vpack.c.bf16 %v4121_v32, %v4120_v20  ;;  %v8124_v20 = vunpack.i.l.bf16 %v11070_v6  ;;  %v8004_v6 = vunpack.i.l.bf16 %v11050_v57  ;;  %v4376_v49 = vpack.c.bf16 %v4193_v18, %v4192_v58 }
 0xea6   :  { %v8140_v31 = vunpack.i.h.bf16 %v11088_v43  ;;  %v8139_v56 = vunpack.i.l.bf16 %v11088_v43  ;;  %v8085_v30 = vunpack.i.h.bf16 %v11072_v54  ;;  %v8094_v58 = vunpack.i.l.bf16 %v11081_v61 }
 0xea7   :  { %v8098_v33 = vpop.permute.xlu1 %8097  ;;  %4438 = vmatprep.subr.bf16.mxu1 %v4371_v10  ;;  %v4195_v2 = vsel %vm4191_vm1, %v8124_v20, %v8125_v48  ;;  %v4240_v17 = vsel %vm3125_vm13, %v8004_v6, %v8005_v53 }
 0xea8   :  { %v8100_v5 = vunpack.i.h.bf16 %v8098_v33  ;;  %v8099_v1 = vunpack.i.l.bf16 %v8098_v33  ;;  %4439 = vmatpush1.bf16.msra.mxu1 %v4370_v50  ;;  %v8080_v50 = vunpack.i.h.bf16 %v11068_v40  ;;  %v4265_v33 = vsel %vm3125_vm13, %v8064_v19, %v8065_v24 }
 0xea9   :  { %v8148_v0 = vpop.permute.xlu0 %8147  ;;  %4440 = vmatprep.subr.bf16.mxu1 %v4373_v44 }
 0xeaa   :  { %v8150_v28 = vunpack.i.h.bf16 %v8148_v0  ;;  %v8149_v63 = vunpack.i.l.bf16 %v8148_v0  ;;  %v4169_v16 = vsel %vm4142_vm0, %v8099_v1, %v8100_v5  ;;  %v4241_v5 = vsel %vm3125_vm13, %v8044_v46, %v8045_v59 }
 0xeab   :  { %v8103_v39 = vpop.permute.xlu1 %8102  ;;  %v4194_v40 = vsel %vm4191_vm1, %v8079_v7, %v8080_v50  ;;  %v8129_v0 = vunpack.i.l.bf16 %v11074_v25 }
 0xeac   :  { %4441 = vmatpush1.bf16.msra.mxu1 %v4372_v15  ;;  %v4170_v13 = vsel %vm4142_vm0, %v8149_v63, %v8150_v28  ;;  %v8105_v10 = vunpack.i.h.bf16 %v8103_v39  ;;  %v8104_v47 = vunpack.i.l.bf16 %v8103_v39  ;;  %v4264_v15 = vsel %vm3125_vm13, %v8024_v52, %v8025_v9 }
 0xead   :  { %v11108_v26 = vpop.permute.xlu0 %8152  ;;  %v4375_v38 = vpack.c.bf16 %v4170_v13, %v4169_v16  ;;  %v4378_v22 = vpack.c.bf16 %v4195_v2, %v4194_v40  ;;  %v4381_v12 = vpack.c.bf16 %v4265_v33, %v4264_v15  ;;  %v4380_v39 = vpack.c.bf16 %v4241_v5, %v4240_v17 }
 0xeae   :  { %v4218_v45 = vsel %vm4191_vm1, %v8104_v47, %v8105_v10  ;;  %v8084_v16 = vunpack.i.l.bf16 %v11072_v54  ;;  %v8095_v13 = vunpack.i.h.bf16 %v11081_v61  ;;  %v4243_v18 = vsel %vm3125_vm13, %v8129_v0, %v8130_v4 }
 0xeaf   :  { %v8108_v32 = vpop.permute.xlu1 %8107  ;;  %4442 = vmatprep.subr.bf16.mxu1 %v4375_v38  ;;  %v8154_v24 = vunpack.i.l.bf16 %v11108_v26 }
 0xeb0   :  { %4443 = vmatpush1.bf16.msra.mxu1 %v4374_v29  ;;  %v8110_v63 = vunpack.i.h.bf16 %v8108_v32  ;;  %v8109_v34 = vunpack.i.l.bf16 %v8108_v32  ;;  %v4313_v29 = vsel %vm1069_vm6, %v8139_v56, %v8140_v31  ;;  %v4242_v19 = vsel %vm3125_vm13, %v8084_v16, %v8085_v30 }
 0xeb1   :  { %v8168_v44 = vpop.permute.xlu0 %8167  ;;  %4444 = vmatprep.subr.bf16.mxu1 %v4377_v37  ;;  %v8155_v37 = vunpack.i.h.bf16 %v11108_v26  ;;  %v4312_v32 = vsel %vm1069_vm6, %v8094_v58, %v8095_v13  ;;  %v4382_v46 = vpack.c.bf16 %v4243_v18, %v4242_v19 }
 0xeb2   :  { %v8170_v23 = vunpack.i.h.bf16 %v8168_v44  ;;  %v8169_v62 = vunpack.i.l.bf16 %v8168_v44  ;;  %v4266_v54 = vsel %vm3125_vm13, %v8109_v34, %v8110_v63  ;;  %v4385_v10 = vpack.c.bf16 %v4313_v29, %v4312_v32 }
 0xeb3   :  { %v8143_v35 = vpop.permute.xlu1 %8142  ;;  %v4289_v7 = vsel %vm1069_vm6, %v8154_v24, %v8155_v37 }
 0xeb4   :  { %4445 = vmatpush1.bf16.msra.mxu1 %v4376_v49  ;;  %v4219_v14 = vsel %vm4191_vm1, %v8169_v62, %v8170_v23  ;;  %v8145_v25 = vunpack.i.h.bf16 %v8143_v35  ;;  %v8144_v38 = vunpack.i.l.bf16 %v8143_v35 }
 0xeb5   :  { %v11130_v1 = vpop.permute.xlu0 %8172  ;;  %v4379_v57 = vpack.c.bf16 %v4219_v14, %v4218_v45 }
 0xeb6   :  { %v4288_v59 = vsel %vm1069_vm6, %v8144_v38, %v8145_v25  ;;  %v8175_v23 = vunpack.i.h.bf16 %v11130_v1  ;;  %v8174_v62 = vunpack.i.l.bf16 %v11130_v1 }
 0xeb7   :  { %v8158_v28 = vpop.permute.xlu1 %8157  ;;  %4446 = vmatprep.subr.bf16.mxu1 %v4379_v57  ;;  %v4384_v2 = vpack.c.bf16 %v4289_v7, %v4288_v59  ;;  %v4393_v59 = vpack.c.bf16 %v10953_v27, %v10949_v8 }
 0xeb8   :  { %4447 = vmatpush1.bf16.msra.mxu1 %v4378_v22  ;;  %v8160_v47 = vunpack.i.h.bf16 %v8158_v28  ;;  %v8159_v9 = vunpack.i.l.bf16 %v8158_v28  ;;  %v4291_v1 = vsel %vm1069_vm6, %v8174_v62, %v8175_v23 }
 0xeb9   :  { %v8183_v51 = vpop.permute.xlu0 %8182  ;;  %4448 = vmatprep.subr.bf16.mxu1 %v4381_v12 }
 0xeba   :  { %v8185_v42 = vunpack.i.h.bf16 %v8183_v51  ;;  %v8184_v43 = vunpack.i.l.bf16 %v8183_v51  ;;  %v4314_v57 = vsel %vm1069_vm6, %v8159_v9, %v8160_v47  ;;  %v4394_v47 = vpack.c.bf16 %v10973_v11, %v10970_v55  ;;  %v8876_v9 = vld [vmem:[%s11931_s1 + $0x80] ss:$8 sps:$4 sm:$0xff]  }
 0xebb   :  { %v8163_v53 = vpop.permute.xlu1 %8162 }
 0xebc   :  { %4449 = vmatpush1.bf16.msra.mxu1 %v4380_v39  ;;  %v4267_v61 = vsel %vm3125_vm13, %v8184_v43, %v8185_v42  ;;  %v8165_v52 = vunpack.i.h.bf16 %v8163_v53  ;;  %v8164_v50 = vunpack.i.l.bf16 %v8163_v53 }
 0xebd   :  { %v8188_v48 = vpop.permute.xlu0 %8187  ;;  %v4383_v20 = vpack.c.bf16 %v4267_v61, %v4266_v54 }
 0xebe   :  { %v8190_v35 = vunpack.i.h.bf16 %v8188_v48  ;;  %v8189_v33 = vunpack.i.l.bf16 %v8188_v48  ;;  %v4290_v5 = vsel %vm1069_vm6, %v8164_v50, %v8165_v52  ;;  %v8879_v52 = vld [vmem:[%s11931_s1 + $0x94] ss:$8 sps:$4 sm:$0xff]   ;;  %v8881_v50 = vld [vmem:[%s11931_s1 + $0x90] ss:$8 sps:$4 sm:$0xff]  }
 0xebf   :  { %v8178_v26 = vpop.permute.xlu1 %8177  ;;  %4450 = vmatprep.subr.bf16.mxu1 %v4383_v20  ;;  %v4386_v28 = vpack.c.bf16 %v4291_v1, %v4290_v5 }
 0xec0   :  { %v8180_v44 = vunpack.i.h.bf16 %v8178_v26  ;;  %v8179_v6 = vunpack.i.l.bf16 %v8178_v26  ;;  %4451 = vmatpush1.bf16.msra.mxu1 %v4382_v46  ;;  %v4361_v63 = vsel %vm2270_vm12, %v8189_v33, %v8190_v35  ;;  %v4392_v46 = vpack.c.bf16 %v10927_v21, %v10924_v36 }
 0xec1   :  { %v8198_v49 = vpop.permute.xlu0 %8197  ;;  %4452 = vmatprep.subr.bf16.mxu1 %v4385_v10  ;;  %v4395_v10 = vpack.c.bf16 %v10991_v41, %v10988_v60 }
 0xec2   :  { %v8200_v45 = vunpack.i.h.bf16 %v8198_v49  ;;  %v8199_v14 = vunpack.i.l.bf16 %v8198_v49  ;;  %v4360_v12 = vsel %vm2270_vm12, %v8179_v6, %v8180_v44 }
 0xec3   :  { %v8193_v40 = vpop.permute.xlu1 %8192  ;;  %v4389_v39 = vpack.c.bf16 %v4361_v63, %v4360_v12 }
 0xec4   :  { %v8195_v15 = vunpack.i.h.bf16 %v8193_v40  ;;  %v8194_v17 = vunpack.i.l.bf16 %v8193_v40  ;;  %4453 = vmatpush1.bf16.msra.mxu1 %v4384_v2  ;;  %v4315_v22 = vsel %vm1069_vm6, %v8199_v14, %v8200_v45 }
 0xec5   :  { %v8203_v4 = vpop.permute.xlu0 %8202  ;;  %v4387_v0 = vpack.c.bf16 %v4315_v22, %v4314_v57 }
 0xec6   :  { %v8205_v31 = vunpack.i.h.bf16 %v8203_v4  ;;  %v8204_v56 = vunpack.i.l.bf16 %v8203_v4  ;;  %v4336_v30 = vsel %vm2270_vm12, %v8194_v17, %v8195_v15 }
 0xec7   :  { %v8208_v34 = vpop.permute.xlu1 %8207  ;;  %4454 = vmatprep.subr.bf16.mxu1 %v4387_v0 }
 0xec8   :  { %v4337_v16 = vsel %vm2270_vm12, %v8204_v56, %v8205_v31  ;;  %v8210_v13 = vunpack.i.h.bf16 %v8208_v34  ;;  %v8209_v58 = vunpack.i.l.bf16 %v8208_v34  ;;  %4455 = vmatpush1.bf16.msra.mxu1 %v4386_v28 }
 0xec9   :  { %v8218_v51 = vpop.permute.xlu0 %8217  ;;  %4456 = vmatprep.subr.bf16.mxu1 %v4389_v39  ;;  %v4388_v25 = vpack.c.bf16 %v4337_v16, %v4336_v30 }
 0xeca   :  { %v8220_v38 = vunpack.i.h.bf16 %v8218_v51  ;;  %v8219_v42 = vunpack.i.l.bf16 %v8218_v51  ;;  %v4362_v29 = vsel %vm2270_vm12, %v8209_v58, %v8210_v13 }
 0xecb   :  { %v8213_v43 = vpop.permute.xlu1 %8212 }
 0xecc   :  { %v8215_v18 = vunpack.i.h.bf16 %v8213_v43  ;;  %v8214_v53 = vunpack.i.l.bf16 %v8213_v43  ;;  %4457 = vmatpush1.bf16.msra.mxu1 %v4388_v25  ;;  %v4363_v37 = vsel %vm2270_vm12, %v8219_v42, %v8220_v38 }
 0xecd   :  { %v8223_v24 = vpop.permute.xlu0 %8222  ;;  %v4391_v54 = vpack.c.bf16 %v4363_v37, %v4362_v29  ;;  %v6008_v37 = vld [vmem:[%s11934_s4 + $0x80] sm:$0xff] }
 0xece   :  { %v8225_v61 = vunpack.i.h.bf16 %v8223_v24  ;;  %v8224_v19 = vunpack.i.l.bf16 %v8223_v24  ;;  %v4338_v48 = vsel %vm2270_vm12, %v8214_v53, %v8215_v18  ;;  %v6009_v24 = vld [vmem:[%s11934_s4 + $0x88] sm:$0xff] }
 0xecf   :  { %4458 = vmatprep.subr.bf16.mxu1 %v4391_v54  ;;  %v8884_v54 = vld [vmem:[%s11933_s3 + $0x84] ss:$8 sps:$4 sm:$0xff]  }
 0xed0   :  { %v4339_v20 = vsel %vm2270_vm12, %v8224_v19, %v8225_v61  ;;  %v6010_v61 = vld [vmem:[%s11934_s4 + $0x90] sm:$0xff]  ;;  %4935 = vmatprep.mubr.bf16.mxu0 %v8884_v54  ;;  %v6011_v19 = vld [vmem:[%s11934_s4 + $0x98] sm:$0xff] }
 0xed1   :  { %v4390_v32 = vpack.c.bf16 %v4339_v20, %v4338_v48 }
 0xed3   :  { %4459 = vmatpush1.bf16.msra.mxu1 %v4390_v32 }
 0xed4   :  { %4460 = vmatprep.subr.bf16.mxu1 %v4393_v59 }
 0xed7   :  { %4461 = vmatpush1.bf16.msra.mxu1 %v4392_v46 }
 0xed8   :  { %4462 = vmatprep.subr.bf16.mxu1 %v4395_v10 }
 0xedb   :  { %4463 = vmatpush1.bf16.msra.mxu1 %v4394_v47 }
 0xedc   :  { %v4399_v26 = vpop.permute.xlu1 %4398 }
 0xede   :  { %4469 = vmatmul.mubr.bf16.vlgmr.msra.gmra.mrb[32].mxu1 %v8876_v9  ;;  %v4404_v23 = vpop.permute.xlu0 %4403 }
 0xedf   :  { %4478 = vmatprep.mubr.bf16.mxu1 %v8879_v52 }
 0xee0   :  { %v4409_v4 = vpop.permute.xlu1 %4408 }
 0xee2   :  { %v4414_v15 = vpop.permute.xlu0 %4413 }
 0xee6   :  { %4479 = vmatmul.mubr.bf16.gmra.mrb[36].mxu1 %v8881_v50 }
 0xfb1   :  { %v4470_v7 = vpop.f32.mrb[32].mxu1 }
 0xfb2   :  { %v4471_v44 = vadd.f32 %v4470_v7, %v4399_v26  ;;  %v4472_v6 = vpop.f32.mrb[33].mxu1 }
 0xfb3   :  { %v4474_v62 = vpop.f32.mrb[34].mxu1  ;;  %v4473_v0 = vadd.f32 %v4472_v6, %v4399_v26 }
 0xfb4   :  { %v4489_v49 = vmax.f32 %v4471_v44, 0.0  ;;  %v4475_v2 = vadd.f32 %v4474_v62, %v4404_v23  ;;  %v4476_v35 = vpop.f32.mrb[35].mxu1 }
 0xfb5   :  { %v4477_v17 = vadd.f32 %v4476_v35, %v4404_v23  ;;  %v4490_v39 = vmax.f32 %v4473_v0, 0.0 }
 0xfb6   :  { %v4491_v33 = vmax.f32 %v4475_v2, 0.0  ;;  %v11184_v45 = vpack.i.bf16 %v4489_v49, %v8951_v3 }
 0xfb7   :  { %v4492_v28 = vmax.f32 %v4477_v17, 0.0  ;;  %v8246_v38 = vpack.i.bf16 %v4490_v39, %v8951_v3 }
 0xfb8   :  { %8227 = vrot.lane.b32.xlu1 %v11184_v45, %s8967_s0  ;;  %v11189_v14 = vpack.i.bf16 %v4491_v33, %v8951_v3  ;;  %v11205_v58 = vpack.c.bf16 %v4491_v33, %v4489_v49 }
 0xfb9   :  { %v4480_v5 = vpop.f32.mrb[36].mxu1  ;;  %v11203_v13 = vpack.c.bf16 %v4492_v28, %v4490_v39  ;;  %v8286_v42 = vpack.i.bf16 %v4492_v28, %v8951_v3 }
 0xfba   :  { %v4482_v40 = vpop.f32.mrb[37].mxu1  ;;  %8267 = vrot.lane.b32.xlu0 %v11189_v14, %s8967_s0  ;;  %v4481_v31 = vadd.f32 %v4480_v5, %v4409_v4 }
 0xfbb   :  { %v4484_v57 = vpop.f32.mrb[38].mxu1  ;;  %v4483_v56 = vadd.f32 %v4482_v40, %v4409_v4 }
 0xfbc   :  { %v4486_v22 = vpop.f32.mrb[39].mxu1  ;;  %8232 = vrot.lane.b32.xlu1 %v11184_v45, %s8968_s5  ;;  %v4485_v12 = vadd.f32 %v4484_v57, %v4414_v15  ;;  %v4493_v30 = vmax.f32 %v4481_v31, 0.0 }
 0xfbd   :  { %v4487_v1 = vadd.f32 %v4486_v22, %v4414_v15  ;;  %v4494_v16 = vmax.f32 %v4483_v56, 0.0 }
 0xfbe   :  { %8272 = vrot.lane.b32.xlu0 %v11189_v14, %s8968_s5  ;;  %v4495_v63 = vmax.f32 %v4485_v12, 0.0  ;;  %v8306_v43 = vpack.i.bf16 %v4493_v30, %v8951_v3 }
 0xfbf   :  { %v4496_v34 = vmax.f32 %v4487_v1, 0.0  ;;  %v8326_v53 = vpack.i.bf16 %v4494_v16, %v8951_v3 }
 0xfc0   :  { %8237 = vrot.lane.b32.xlu1 %v11184_v45, %s8969_s16  ;;  %v11209_v25 = vpack.c.bf16 %v4495_v63, %v4493_v30  ;;  %v8351_v18 = vpack.i.bf16 %v4495_v63, %v8951_v3 }
 0xfc1   :  { %v11207_v51 = vpack.c.bf16 %v4496_v34, %v4494_v16  ;;  %v8371_v29 = vpack.i.bf16 %v4496_v34, %v8951_v3 }
 0xfc2   :  { %8277 = vrot.lane.b32.xlu0 %v11189_v14, %s8969_s16 }
 0xfc4   :  { %8242 = vrot.lane.b32.xlu1 %v11184_v45, %s8964_s28 }
 0xfc6   :  { %8282 = vrot.lane.b32.xlu0 %v11189_v14, %s8964_s28 }
 0xfc8   :  { %8247 = vrot.lane.b32.xlu1 %v8246_v38, %s8967_s0 }
 0xfca   :  { %8287 = vrot.lane.b32.xlu0 %v8286_v42, %s8967_s0 }
 0xfcc   :  { %8252 = vrot.lane.b32.xlu1 %v8246_v38, %s8968_s5 }
 0xfce   :  { %8292 = vrot.lane.b32.xlu0 %v8286_v42, %s8968_s5 }
 0xfd0   :  { %8257 = vrot.lane.b32.xlu1 %v8246_v38, %s8969_s16 }
 0xfd2   :  { %8297 = vrot.lane.b32.xlu0 %v8286_v42, %s8969_s16 }
 0xfd4   :  { %8262 = vrot.lane.b32.xlu1 %v8246_v38, %s8964_s28 }
 0xfd6   :  { %8302 = vrot.lane.b32.xlu0 %v8286_v42, %s8964_s28 }
 0xfd8   :  { %8307 = vrot.lane.b32.xlu1 %v8306_v43, %s8967_s0 }
 0xfda   :  { %8352 = vrot.lane.b32.xlu0 %v8351_v18, %s8967_s0 }
 0xfdc   :  { %8312 = vrot.lane.b32.xlu1 %v8306_v43, %s8968_s5 }
 0xfde   :  { %8357 = vrot.lane.b32.xlu0 %v8351_v18, %s8968_s5 }
 0xfe0   :  { %8317 = vrot.lane.b32.xlu1 %v8306_v43, %s8969_s16 }
 0xfe2   :  { %8362 = vrot.lane.b32.xlu0 %v8351_v18, %s8969_s16 }
 0xfe4   :  { %8322 = vrot.lane.b32.xlu1 %v8306_v43, %s8964_s28 }
 0xfe6   :  { %8367 = vrot.lane.b32.xlu0 %v8351_v18, %s8964_s28 }
 0xfe8   :  { %8327 = vrot.lane.b32.xlu1 %v8326_v53, %s8967_s0 }
 0xfea   :  { %8372 = vrot.lane.b32.xlu0 %v8371_v29, %s8967_s0 }
 0xfec   :  { %8332 = vrot.lane.b32.xlu1 %v8246_v38, %s8966_s30 }
 0xfee   :  { %8377 = vrot.lane.b32.xlu0 %v8286_v42, %s8966_s30 }
 0xff0   :  { %8337 = vrot.lane.b32.xlu1 %v8326_v53, %s8968_s5 }
 0xff2   :  { %8387 = vrot.lane.b32.xlu0 %v8371_v29, %s8968_s5 }
 0xff4   :  { %8342 = vrot.lane.b32.xlu1 %v8326_v53, %s8969_s16 }
 0xff6   :  { %8392 = vrot.lane.b32.xlu0 %v11189_v14, %s8966_s30 }
 0xff8   :  { %8347 = vrot.lane.b32.xlu1 %v8326_v53, %s8964_s28 }
 0xffa   :  { %8407 = vrot.lane.b32.xlu0 %v8371_v29, %s8969_s16 }
 0xffc   :  { %8382 = vrot.lane.b32.xlu1 %v11184_v45, %s8966_s30 }
 0xffe   :  { %8412 = vrot.lane.b32.xlu0 %v8351_v18, %s8966_s30 }
0x1000   :  { %8397 = vrot.lane.b32.xlu1 %v8326_v53, %s8966_s30 }
0x1002   :  { %8422 = vrot.lane.b32.xlu0 %v8371_v29, %s8964_s28 }
0x1004   :  { %8402 = vrot.lane.b32.xlu1 %v8306_v43, %s8966_s30 }
0x1006   :  { %8427 = vrot.lane.b32.xlu0 %v8286_v42, %s8963_s21 }
0x1008   :  { %8417 = vrot.lane.b32.xlu1 %v8246_v38, %s8963_s21 }
0x100a   :  { %8437 = vrot.lane.b32.xlu0 %v8371_v29, %s8966_s30 }
0x100c   :  { %8432 = vrot.lane.b32.xlu1 %v11184_v45, %s8963_s21 }
0x100e   :  { %8442 = vrot.lane.b32.xlu0 %v11189_v14, %s8963_s21 }
0x1010   :  { %8447 = vrot.lane.b32.xlu1 %v8326_v53, %s8963_s21 }
0x1012   :  { %8457 = vrot.lane.b32.xlu0 %v8371_v29, %s8963_s21 }
0x1014   :  { %8452 = vrot.lane.b32.xlu1 %v8306_v43, %s8963_s21 }
0x1016   :  { %8462 = vrot.lane.b32.xlu0 %v8351_v18, %s8963_s21 }
0x1018   :  { %4865 = vperm.xlu1 %6305, %v6008_v37  }
0x101a   :  { %4870 = vperm.xlu0 %6304, %v6009_v24  }
0x101c   :  { %4875 = vperm.xlu1 %6305, %v6010_v61  }
0x101e   :  { %4880 = vperm.xlu0 %6304, %v6011_v19  }
0x1020   :  { %8467 = vrot.lane.b32.xlu1 %v8951_v3, %s8969_s16 }
0x1022   :  { %8472 = vrot.lane.b32.xlu0 %v8951_v3, %s8969_s16 }
0x1024   :  { %8477 = vrot.lane.b32.xlu1 %v8951_v3, %s8969_s16 }
0x1026   :  { %8482 = vrot.lane.b32.xlu0 %v8951_v3, %s8969_s16 }
0x1028   :  { %8487 = vrot.lane.b32.xlu1 %v8951_v3, %s8969_s16 }
0x102a   :  { %v8228_v48 = vpop.permute.xlu1 %8227  ;;  %8492 = vrot.lane.b32.xlu0 %v8951_v3, %s8969_s16 }
0x102b   :  { %v8230_v6 = vunpack.i.h.bf16 %v8228_v48  ;;  %v8229_v23 = vunpack.i.l.bf16 %v8228_v48 }
0x102c   :  { %v8268_v20 = vpop.permute.xlu0 %8267  ;;  %8497 = vrot.lane.b32.xlu1 %v8951_v3, %s8969_s16 }
0x102d   :  { %v8270_v52 = vunpack.i.h.bf16 %v8268_v20  ;;  %v8269_v50 = vunpack.i.l.bf16 %v8268_v20  ;;  %v4555_v5 = vsel %vm4085_vm15, %v8229_v23, %v8230_v6 }
0x102e   :  { %v11290_v32 = vpop.permute.xlu1 %8232  ;;  %8502 = vrot.lane.b32.xlu0 %v8951_v3, %s8969_s16 }
0x102f   :  { %v4556_v35 = vsel %vm4085_vm15, %v8269_v50, %v8270_v52  ;;  %v8235_v20 = vunpack.i.h.bf16 %v11290_v32  ;;  %v8234_v52 = vunpack.i.l.bf16 %v11290_v32 }
0x1030   :  { %v11296_v59 = vpop.permute.xlu0 %8272  ;;  %8507 = vrot.lane.b32.xlu1 %v8951_v3, %s8966_s30  ;;  %v4835_v15 = vpack.c.bf16 %v4556_v35, %v4555_v5 }
0x1031   :  { %v8275_v18 = vunpack.i.h.bf16 %v11296_v59  ;;  %v8274_v53 = vunpack.i.l.bf16 %v11296_v59 }
0x1032   :  { %v11298_v46 = vpop.permute.xlu1 %8237  ;;  %8512 = vrot.lane.b32.xlu0 %v8951_v3, %s8966_s30 }
0x1034   :  { %v11304_v10 = vpop.permute.xlu0 %8277  ;;  %8517 = vrot.lane.b32.xlu1 %v8951_v3, %s8966_s30 }
0x1036   :  { %v11306_v47 = vpop.permute.xlu1 %8242  ;;  %8522 = vrot.lane.b32.xlu0 %v8951_v3, %s8966_s30 }
0x1038   :  { %v11312_v9 = vpop.permute.xlu0 %8282  ;;  %8527 = vrot.lane.b32.xlu1 %v8951_v3, %s8966_s30 }
0x103a   :  { %v8248_v26 = vpop.permute.xlu1 %8247  ;;  %8532 = vrot.lane.b32.xlu0 %v8951_v3, %s8966_s30 }
0x103b   :  { %v8250_v7 = vunpack.i.h.bf16 %v8248_v26  ;;  %v8249_v44 = vunpack.i.l.bf16 %v8248_v26 }
0x103c   :  { %v8288_v62 = vpop.permute.xlu0 %8287  ;;  %8537 = vrot.lane.b32.xlu1 %v8951_v3, %s8966_s30 }
0x103d   :  { %v8290_v49 = vunpack.i.h.bf16 %v8288_v62  ;;  %v8289_v2 = vunpack.i.l.bf16 %v8288_v62  ;;  %v4587_v45 = vsel %vm4085_vm15, %v8249_v44, %v8250_v7  ;;  %v4612_v62 = vsel %vm4142_vm0, %v8274_v53, %v8275_v18 }
0x103e   :  { %v8253_v33 = vpop.permute.xlu1 %8252  ;;  %8542 = vrot.lane.b32.xlu0 %v8951_v3, %s8966_s30 }
0x103f   :  { %v4588_v14 = vsel %vm4085_vm15, %v8289_v2, %v8290_v49  ;;  %v8255_v24 = vunpack.i.h.bf16 %v8253_v33  ;;  %v8254_v54 = vunpack.i.l.bf16 %v8253_v33  ;;  %v4611_v33 = vsel %vm4142_vm0, %v8234_v52, %v8235_v20 }
0x1040   :  { %v8293_v40 = vpop.permute.xlu0 %8292  ;;  %v4836_v57 = vpack.c.bf16 %v4588_v14, %v4587_v45  ;;  %v8240_v45 = vunpack.i.h.bf16 %v11298_v46 }
0x1041   :  { %v8295_v30 = vunpack.i.h.bf16 %v8293_v40  ;;  %v8294_v16 = vunpack.i.l.bf16 %v8293_v40  ;;  %v4635_v32 = vsel %vm4142_vm0, %v8254_v54, %v8255_v24 }
0x1042   :  { %v11318_v17 = vpop.permute.xlu1 %8257  ;;  %4903 = vmatprep.subr.bf16.mxu0 %v4836_v57 }
0x1043   :  { %4904 = vmatpush1.bf16.msra.mxu0 %v4835_v15  ;;  %v4636_v6 = vsel %vm4142_vm0, %v8294_v16, %v8295_v30  ;;  %v8239_v30 = vunpack.i.l.bf16 %v11298_v46  ;;  %v8259_v18 = vunpack.i.l.bf16 %v11318_v17 }
0x1044   :  { %v11320_v22 = vpop.permute.xlu0 %8297  ;;  %v4840_v5 = vpack.c.bf16 %v4636_v6, %v4635_v32 }
0x1045   :  { %v8300_v40 = vunpack.i.h.bf16 %v11320_v22  ;;  %v8299_v57 = vunpack.i.l.bf16 %v11320_v22  ;;  %v8280_v22 = vunpack.i.h.bf16 %v11304_v10 }
0x1046   :  { %v11322_v12 = vpop.permute.xlu1 %8262 }
0x1048   :  { %v11324_v1 = vpop.permute.xlu0 %8302 }
0x104a   :  { %v8308_v4 = vpop.permute.xlu1 %8307 }
0x104b   :  { %v8310_v61 = vunpack.i.h.bf16 %v8308_v4  ;;  %v8309_v19 = vunpack.i.l.bf16 %v8308_v4 }
0x104c   :  { %v8353_v0 = vpop.permute.xlu0 %8352 }
0x104d   :  { %v8355_v38 = vunpack.i.h.bf16 %v8353_v0  ;;  %v8354_v42 = vunpack.i.l.bf16 %v8353_v0  ;;  %v4557_v49 = vsel %vm4085_vm15, %v8309_v19, %v8310_v61  ;;  %v4684_v19 = vsel %vm4191_vm1, %v8299_v57, %v8300_v40 }
0x104e   :  { %v11326_v31 = vpop.permute.xlu1 %8312  ;;  %v8265_v40 = vunpack.i.h.bf16 %v11322_v12  ;;  %v8264_v57 = vunpack.i.l.bf16 %v11322_v12 }
0x104f   :  { %v4558_v7 = vsel %vm4085_vm15, %v8354_v42, %v8355_v38  ;;  %v4839_v42 = vpack.c.bf16 %v4612_v62, %v4611_v33  ;;  %v8315_v53 = vunpack.i.h.bf16 %v11326_v31  ;;  %v8304_v62 = vunpack.i.l.bf16 %v11324_v1 }
0x1050   :  { %v8358_v56 = vpop.permute.xlu0 %8357  ;;  %v4837_v14 = vpack.c.bf16 %v4558_v7, %v4557_v49  ;;  %v8245_v7 = vunpack.i.h.bf16 %v11306_v47  ;;  %v8285_v33 = vunpack.i.h.bf16 %v11312_v9 }
0x1051   :  { %v8360_v15 = vunpack.i.h.bf16 %v8358_v56  ;;  %v8359_v4 = vunpack.i.l.bf16 %v8358_v56  ;;  %v8279_v56 = vunpack.i.l.bf16 %v11304_v10 }
0x1052   :  { %v11328_v28 = vpop.permute.xlu1 %8317 }
0x1053   :  { %v4614_v54 = vsel %vm4142_vm0, %v8359_v4, %v8360_v15  ;;  %v8320_v15 = vunpack.i.h.bf16 %v11328_v28 }
0x1054   :  { %v11330_v63 = vpop.permute.xlu0 %8362 }
0x1055   :  { %v8365_v49 = vunpack.i.h.bf16 %v11330_v63 }
0x1056   :  { %v11332_v34 = vpop.permute.xlu1 %8322 }
0x1058   :  { %v11334_v39 = vpop.permute.xlu0 %8367 }
0x105a   :  { %v8328_v43 = vpop.permute.xlu1 %8327 }
0x105b   :  { %v8330_v29 = vunpack.i.h.bf16 %v8328_v43  ;;  %v8329_v37 = vunpack.i.l.bf16 %v8328_v43  ;;  %v8260_v43 = vunpack.i.h.bf16 %v11318_v17 }
0x105c   :  { %v8373_v48 = vpop.permute.xlu0 %8372 }
0x105d   :  { %v8375_v50 = vunpack.i.h.bf16 %v8373_v48  ;;  %v8374_v26 = vunpack.i.l.bf16 %v8373_v48  ;;  %v4589_v59 = vsel %vm4085_vm15, %v8329_v37, %v8330_v29  ;;  %v8314_v29 = vunpack.i.l.bf16 %v11326_v31 }
0x105e   :  { %v11341_v44 = vpop.permute.xlu1 %8332  ;;  %v4659_v31 = vsel %vm4191_vm1, %v8239_v30, %v8240_v45  ;;  %v4683_v10 = vsel %vm4191_vm1, %v8259_v18, %v8260_v43  ;;  %v8284_v45 = vunpack.i.l.bf16 %v11312_v9 }
0x105f   :  { %v4590_v23 = vsel %vm4085_vm15, %v8374_v26, %v8375_v50  ;;  %v4613_v20 = vsel %vm4142_vm0, %v8314_v29, %v8315_v53  ;;  %v4660_v26 = vsel %vm4191_vm1, %v8279_v56, %v8280_v22  ;;  %v4731_v29 = vsel %vm3125_vm13, %v8264_v57, %v8265_v40 }
0x1060   :  { %v11348_v2 = vpop.permute.xlu0 %8377  ;;  %v4838_v35 = vpack.c.bf16 %v4590_v23, %v4589_v59  ;;  %v4841_v6 = vpack.c.bf16 %v4614_v54, %v4613_v20  ;;  %v4844_v59 = vpack.c.bf16 %v4684_v19, %v4683_v10  ;;  %v8305_v23 = vunpack.i.h.bf16 %v11324_v1 }
0x1061   :  { %v8319_v1 = vunpack.i.l.bf16 %v11328_v28  ;;  %v4708_v18 = vsel %vm3125_vm13, %v8284_v45, %v8285_v33  ;;  %v8380_v54 = vunpack.i.h.bf16 %v11348_v2  ;;  %v8325_v20 = vunpack.i.h.bf16 %v11332_v34 }
0x1062   :  { %v8338_v0 = vpop.permute.xlu1 %8337  ;;  %4905 = vmatprep.subr.bf16.mxu0 %v4838_v35  ;;  %v8364_v35 = vunpack.i.l.bf16 %v11330_v63  ;;  %v8244_v63 = vunpack.i.l.bf16 %v11306_v47  ;;  %v8335_v10 = vunpack.i.h.bf16 %v11341_v44 }
0x1063   :  { %v8340_v16 = vunpack.i.h.bf16 %v8338_v0  ;;  %v8339_v38 = vunpack.i.l.bf16 %v8338_v0  ;;  %4906 = vmatpush1.bf16.msra.mxu0 %v4837_v14  ;;  %v4661_v28 = vsel %vm4191_vm1, %v8319_v1, %v8320_v15 }
0x1064   :  { %v8388_v37 = vpop.permute.xlu0 %8387  ;;  %4907 = vmatprep.subr.bf16.mxu0 %v4840_v5  ;;  %v4662_v9 = vsel %vm4191_vm1, %v8364_v35, %v8365_v49 }
0x1065   :  { %v8390_v24 = vunpack.i.h.bf16 %v8388_v37  ;;  %v8389_v46 = vunpack.i.l.bf16 %v8388_v37  ;;  %v4637_v17 = vsel %vm4142_vm0, %v8339_v38, %v8340_v16  ;;  %v4843_v16 = vpack.c.bf16 %v4660_v26, %v4659_v31 }
0x1066   :  { %v8343_v61 = vpop.permute.xlu1 %8342  ;;  %v4707_v37 = vsel %vm3125_vm13, %v8244_v63, %v8245_v7  ;;  %v4845_v22 = vpack.c.bf16 %v4662_v9, %v4661_v28  ;;  %v8334_v26 = vunpack.i.l.bf16 %v11341_v44 }
0x1067   :  { %4908 = vmatpush1.bf16.msra.mxu0 %v4839_v42  ;;  %v4638_v48 = vsel %vm4142_vm0, %v8389_v46, %v8390_v24  ;;  %v8345_v14 = vunpack.i.h.bf16 %v8343_v61  ;;  %v8344_v5 = vunpack.i.l.bf16 %v8343_v61  ;;  %v4732_v42 = vsel %vm3125_vm13, %v8304_v62, %v8305_v23 }
0x1068   :  { %v11368_v52 = vpop.permute.xlu0 %8392  ;;  %v4842_v50 = vpack.c.bf16 %v4638_v48, %v4637_v17  ;;  %v4848_v56 = vpack.c.bf16 %v4732_v42, %v4731_v29  ;;  %v8370_v24 = vunpack.i.h.bf16 %v11334_v39  ;;  %v8369_v46 = vunpack.i.l.bf16 %v11334_v39 }
0x1069   :  { %v4685_v43 = vsel %vm4191_vm1, %v8344_v5, %v8345_v14  ;;  %v8379_v61 = vunpack.i.l.bf16 %v11348_v2  ;;  %v4847_v31 = vpack.c.bf16 %v4708_v18, %v4707_v37  ;;  %v8395_v35 = vunpack.i.h.bf16 %v11368_v52 }
0x106a   :  { %v8348_v32 = vpop.permute.xlu1 %8347  ;;  %4909 = vmatprep.subr.bf16.mxu0 %v4842_v50  ;;  %v8324_v50 = vunpack.i.l.bf16 %v11332_v34  ;;  %v4710_v23 = vsel %vm3125_vm13, %v8369_v46, %v8370_v24  ;;  %v4779_v5 = vsel %vm1069_vm6, %v8334_v26, %v8335_v10 }
0x106b   :  { %4910 = vmatpush1.bf16.msra.mxu0 %v4841_v6  ;;  %v8350_v17 = vunpack.i.h.bf16 %v8348_v32  ;;  %v8349_v48 = vunpack.i.l.bf16 %v8348_v32  ;;  %v4780_v49 = vsel %vm1069_vm6, %v8379_v61, %v8380_v54  ;;  %v8394_v32 = vunpack.i.l.bf16 %v11368_v52 }
0x106c   :  { %v8408_v4 = vpop.permute.xlu0 %8407  ;;  %4911 = vmatprep.subr.bf16.mxu0 %v4844_v59  ;;  %v4709_v33 = vsel %vm3125_vm13, %v8324_v50, %v8325_v20  ;;  %v4852_v15 = vpack.c.bf16 %v4780_v49, %v4779_v5 }
0x106d   :  { %v8410_v0 = vunpack.i.h.bf16 %v8408_v4  ;;  %v8409_v30 = vunpack.i.l.bf16 %v8408_v4  ;;  %v4733_v34 = vsel %vm3125_vm13, %v8349_v48, %v8350_v17  ;;  %v4849_v57 = vpack.c.bf16 %v4710_v23, %v4709_v33 }
0x106e   :  { %v8383_v38 = vpop.permute.xlu1 %8382 }
0x106f   :  { %4912 = vmatpush1.bf16.msra.mxu0 %v4843_v16  ;;  %v4686_v12 = vsel %vm4191_vm1, %v8409_v30, %v8410_v0  ;;  %v8385_v39 = vunpack.i.h.bf16 %v8383_v38  ;;  %v8384_v6 = vunpack.i.l.bf16 %v8383_v38  ;;  %v4756_v30 = vsel %vm1069_vm6, %v8394_v32, %v8395_v35 }
0x1070   :  { %v11390_v53 = vpop.permute.xlu0 %8412  ;;  %v4846_v47 = vpack.c.bf16 %v4686_v12, %v4685_v43 }
0x1071   :  { %v4755_v40 = vsel %vm1069_vm6, %v8384_v6, %v8385_v39  ;;  %v8415_v42 = vunpack.i.h.bf16 %v11390_v53  ;;  %v8414_v43 = vunpack.i.l.bf16 %v11390_v53 }
0x1072   :  { %v8398_v19 = vpop.permute.xlu1 %8397  ;;  %4913 = vmatprep.subr.bf16.mxu0 %v4846_v47  ;;  %v4851_v38 = vpack.c.bf16 %v4756_v30, %v4755_v40 }
0x1073   :  { %4914 = vmatpush1.bf16.msra.mxu0 %v4845_v22  ;;  %v8400_v1 = vunpack.i.h.bf16 %v8398_v19  ;;  %v8399_v4 = vunpack.i.l.bf16 %v8398_v19  ;;  %v4758_v53 = vsel %vm1069_vm6, %v8414_v43, %v8415_v42 }
0x1074   :  { %v8423_v7 = vpop.permute.xlu0 %8422  ;;  %4915 = vmatprep.subr.bf16.mxu0 %v4848_v56 }
0x1075   :  { %v8425_v59 = vunpack.i.h.bf16 %v8423_v7  ;;  %v8424_v2 = vunpack.i.l.bf16 %v8423_v7  ;;  %v4781_v56 = vsel %vm1069_vm6, %v8399_v4, %v8400_v1  ;;  %v8882_v4 = vld [vmem:[%s11933_s3 + $0x80] ss:$8 sps:$4 sm:$0xff]  }
0x1076   :  { %v8403_v62 = vpop.permute.xlu1 %8402 }
0x1077   :  { %4916 = vmatpush1.bf16.msra.mxu0 %v4847_v31  ;;  %v4734_v44 = vsel %vm3125_vm13, %v8424_v2, %v8425_v59  ;;  %v8405_v63 = vunpack.i.h.bf16 %v8403_v62  ;;  %v8404_v0 = vunpack.i.l.bf16 %v8403_v62 }
0x1078   :  { %v8428_v45 = vpop.permute.xlu0 %8427  ;;  %v4850_v14 = vpack.c.bf16 %v4734_v44, %v4733_v34 }
0x1079   :  { %v8430_v18 = vunpack.i.h.bf16 %v8428_v45  ;;  %v8429_v28 = vunpack.i.l.bf16 %v8428_v45  ;;  %v4757_v37 = vsel %vm1069_vm6, %v8404_v0, %v8405_v63  ;;  %v8885_v63 = vld [vmem:[%s11933_s3 + $0x94] ss:$8 sps:$4 sm:$0xff]  }
0x107a   :  { %v8418_v52 = vpop.permute.xlu1 %8417  ;;  %4917 = vmatprep.subr.bf16.mxu0 %v4850_v14  ;;  %v4853_v48 = vpack.c.bf16 %v4758_v53, %v4757_v37 }
0x107b   :  { %v8420_v16 = vunpack.i.h.bf16 %v8418_v52  ;;  %v8419_v9 = vunpack.i.l.bf16 %v8418_v52  ;;  %4918 = vmatpush1.bf16.msra.mxu0 %v4849_v57  ;;  %v4828_v50 = vsel %vm2270_vm12, %v8429_v28, %v8430_v18 }
0x107c   :  { %v8438_v12 = vpop.permute.xlu0 %8437  ;;  %4919 = vmatprep.subr.bf16.mxu0 %v4852_v15 }
0x107d   :  { %v8440_v47 = vunpack.i.h.bf16 %v8438_v12  ;;  %v8439_v29 = vunpack.i.l.bf16 %v8438_v12  ;;  %v4827_v61 = vsel %vm2270_vm12, %v8419_v9, %v8420_v16 }
0x107e   :  { %v8433_v22 = vpop.permute.xlu1 %8432  ;;  %v4856_v26 = vpack.c.bf16 %v4828_v50, %v4827_v61 }
0x107f   :  { %v8435_v24 = vunpack.i.h.bf16 %v8433_v22  ;;  %v8434_v46 = vunpack.i.l.bf16 %v8433_v22  ;;  %4920 = vmatpush1.bf16.msra.mxu0 %v4851_v38  ;;  %v4782_v54 = vsel %vm1069_vm6, %v8439_v29, %v8440_v47 }
0x1080   :  { %v8443_v19 = vpop.permute.xlu0 %8442  ;;  %v4854_v17 = vpack.c.bf16 %v4782_v54, %v4781_v56 }
0x1081   :  { %v8445_v31 = vunpack.i.h.bf16 %v8443_v19  ;;  %v8444_v20 = vunpack.i.l.bf16 %v8443_v19  ;;  %v4803_v7 = vsel %vm2270_vm12, %v8434_v46, %v8435_v24 }
0x1082   :  { %v8448_v10 = vpop.permute.xlu1 %8447  ;;  %4921 = vmatprep.subr.bf16.mxu0 %v4854_v17 }
0x1083   :  { %v4804_v39 = vsel %vm2270_vm12, %v8444_v20, %v8445_v31  ;;  %v8450_v6 = vunpack.i.h.bf16 %v8448_v10  ;;  %v8449_v59 = vunpack.i.l.bf16 %v8448_v10  ;;  %4922 = vmatpush1.bf16.msra.mxu0 %v4853_v48 }
0x1084   :  { %v4855_v2 = vpack.c.bf16 %v4804_v39, %v4803_v7  ;;  %v8458_v23 = vpop.permute.xlu0 %8457  ;;  %4923 = vmatprep.subr.bf16.mxu0 %v4856_v26 }
0x1085   :  { %v8460_v62 = vunpack.i.h.bf16 %v8458_v23  ;;  %v8459_v49 = vunpack.i.l.bf16 %v8458_v23  ;;  %v4829_v44 = vsel %vm2270_vm12, %v8449_v59, %v8450_v6 }
0x1086   :  { %v8453_v35 = vpop.permute.xlu1 %8452 }
0x1087   :  { %v8455_v32 = vunpack.i.h.bf16 %v8453_v35  ;;  %v8454_v34 = vunpack.i.l.bf16 %v8453_v35  ;;  %4924 = vmatpush1.bf16.msra.mxu0 %v4855_v2  ;;  %v4830_v33 = vsel %vm2270_vm12, %v8459_v49, %v8460_v62 }
0x1088   :  { %v8463_v45 = vpop.permute.xlu0 %8462  ;;  %v4858_v14 = vpack.c.bf16 %v4830_v33, %v4829_v44 }
0x1089   :  { %v8465_v5 = vunpack.i.h.bf16 %v8463_v45  ;;  %v8464_v40 = vunpack.i.l.bf16 %v8463_v45  ;;  %v4805_v57 = vsel %vm2270_vm12, %v8454_v34, %v8455_v32 }
0x108a   :  { %4925 = vmatprep.subr.bf16.mxu0 %v4858_v14 }
0x108b   :  { %v4806_v15 = vsel %vm2270_vm12, %v8464_v40, %v8465_v5 }
0x108c   :  { %v4857_v1 = vpack.c.bf16 %v4806_v15, %v4805_v57 }
0x108e   :  { %4926 = vmatpush1.bf16.msra.mxu0 %v4857_v1 }
0x108f   :  { %4927 = vmatprep.subr.bf16.mxu0 %v11203_v13  ;;  %v8887_v13 = vld [vmem:[%s11933_s3 + $0x90] ss:$8 sps:$4 sm:$0xff]  }
0x1092   :  { %4928 = vmatpush1.bf16.msra.mxu0 %v11205_v58 }
0x1093   :  { %4929 = vmatprep.subr.bf16.mxu0 %v11207_v51 }
0x1096   :  { %4930 = vmatpush1.bf16.msra.mxu0 %v11209_v25 }
0x1097   :  { %v11447_v58 = vpop.permute.xlu1 %4865 }
0x1099   :  { %4936 = vmatmul.mubr.bf16.vlgmr.msra.gmra.mrb[40].mxu0 %v8882_v4  ;;  %v11449_v51 = vpop.permute.xlu0 %4870 }
0x109a   :  { %4945 = vmatprep.mubr.bf16.mxu0 %v8885_v63 }
0x109b   :  { %v11451_v25 = vpop.permute.xlu1 %4875 }
0x109d   :  { %v11453_v0 = vpop.permute.xlu0 %4880 }
0x109f   :  { %v8468_v30 = vpop.permute.xlu1 %8467 }
0x10a0   :  { %v8470_v38 = vunpack.i.h.bf16 %v8468_v30  ;;  %v8469_v42 = vunpack.i.l.bf16 %v8468_v30 }
0x10a1   :  { %4946 = vmatmul.mubr.bf16.gmra.mrb[44].mxu0 %v8887_v13  ;;  %v8473_v52 = vpop.permute.xlu0 %8472 }
0x10a2   :  { %v8475_v16 = vunpack.i.h.bf16 %v8473_v52  ;;  %v8474_v9 = vunpack.i.l.bf16 %v8473_v52  ;;  %v5078_v43 = vsel %vm4191_vm1, %v8469_v42, %v8470_v38 }
0x10a3   :  { %v11459_v28 = vpop.permute.xlu1 %8477 }
0x10a4   :  { %v5079_v12 = vsel %vm4191_vm1, %v8474_v9, %v8475_v16  ;;  %v8480_v22 = vunpack.i.h.bf16 %v11459_v28  ;;  %v8479_v56 = vunpack.i.l.bf16 %v11459_v28 }
0x10a5   :  { %v11457_v18 = vpop.permute.xlu0 %8482  ;;  %v5287_v47 = vpack.c.bf16 %v5079_v12, %v5078_v43 }
0x10a6   :  { %v8485_v29 = vunpack.i.h.bf16 %v11457_v18  ;;  %v8484_v37 = vunpack.i.l.bf16 %v11457_v18  ;;  %v5046_v46 = vsel %vm4191_vm1, %v8479_v56, %v8480_v22 }
0x10a7   :  { %5354 = vmatprep.subr.bf16.mxu1 %v5287_v47  ;;  %v8488_v53 = vpop.permute.xlu1 %8487 }
0x10a8   :  { %v5047_v24 = vsel %vm4191_vm1, %v8484_v37, %v8485_v29  ;;  %v8490_v48 = vunpack.i.h.bf16 %v8488_v53  ;;  %v8489_v31 = vunpack.i.l.bf16 %v8488_v53 }
0x10a9   :  { %v5286_v54 = vpack.c.bf16 %v5047_v24, %v5046_v46  ;;  %v8493_v61 = vpop.permute.xlu0 %8492 }
0x10aa   :  { %v8495_v19 = vunpack.i.h.bf16 %v8493_v61  ;;  %v8494_v17 = vunpack.i.l.bf16 %v8493_v61  ;;  %v5080_v20 = vsel %vm4191_vm1, %v8489_v31, %v8490_v48 }
0x10ab   :  { %5355 = vmatpush1.bf16.msra.mxu1 %v5286_v54  ;;  %v11475_v26 = vpop.permute.xlu1 %8497 }
0x10ac   :  { %v5081_v50 = vsel %vm4191_vm1, %v8494_v17, %v8495_v19  ;;  %v8500_v59 = vunpack.i.h.bf16 %v11475_v26  ;;  %v8499_v2 = vunpack.i.l.bf16 %v11475_v26 }
0x10ad   :  { %v11473_v10 = vpop.permute.xlu0 %8502  ;;  %v5289_v7 = vpack.c.bf16 %v5081_v50, %v5080_v20 }
0x10ae   :  { %v8505_v39 = vunpack.i.h.bf16 %v11473_v10  ;;  %v8504_v6 = vunpack.i.l.bf16 %v11473_v10  ;;  %v5048_v62 = vsel %vm4191_vm1, %v8499_v2, %v8500_v59 }
0x10af   :  { %5356 = vmatprep.subr.bf16.mxu1 %v5289_v7  ;;  %v8508_v32 = vpop.permute.xlu1 %8507 }
0x10b0   :  { %v5049_v23 = vsel %vm4191_vm1, %v8504_v6, %v8505_v39  ;;  %v8510_v33 = vunpack.i.h.bf16 %v8508_v32  ;;  %v8509_v45 = vunpack.i.l.bf16 %v8508_v32 }
0x10b1   :  { %v5288_v49 = vpack.c.bf16 %v5049_v23, %v5048_v62  ;;  %v8513_v35 = vpop.permute.xlu0 %8512 }
0x10b2   :  { %v8515_v34 = vunpack.i.h.bf16 %v8513_v35  ;;  %v8514_v44 = vunpack.i.l.bf16 %v8513_v35  ;;  %v5126_v14 = vsel %vm1069_vm6, %v8509_v45, %v8510_v33 }
0x10b3   :  { %5357 = vmatpush1.bf16.msra.mxu1 %v5288_v49  ;;  %v11491_v57 = vpop.permute.xlu1 %8517 }
0x10b4   :  { %v5127_v5 = vsel %vm1069_vm6, %v8514_v44, %v8515_v34  ;;  %v8520_v63 = vunpack.i.h.bf16 %v11491_v57  ;;  %v8519_v13 = vunpack.i.l.bf16 %v11491_v57 }
0x10b5   :  { %v11489_v40 = vpop.permute.xlu0 %8522  ;;  %v5291_v15 = vpack.c.bf16 %v5127_v5, %v5126_v14 }
0x10b6   :  { %v8525_v1 = vunpack.i.h.bf16 %v11489_v40  ;;  %v8524_v4 = vunpack.i.l.bf16 %v11489_v40  ;;  %v5102_v30 = vsel %vm1069_vm6, %v8519_v13, %v8520_v63 }
0x10b7   :  { %5358 = vmatprep.subr.bf16.mxu1 %v5291_v15  ;;  %v8528_v38 = vpop.permute.xlu1 %8527 }
0x10b8   :  { %v5103_v52 = vsel %vm1069_vm6, %v8524_v4, %v8525_v1  ;;  %v8530_v12 = vunpack.i.h.bf16 %v8528_v38  ;;  %v8529_v47 = vunpack.i.l.bf16 %v8528_v38 }
0x10b9   :  { %v5290_v16 = vpack.c.bf16 %v5103_v52, %v5102_v30  ;;  %v8533_v9 = vpop.permute.xlu0 %8532 }
0x10ba   :  { %v8535_v42 = vunpack.i.h.bf16 %v8533_v9  ;;  %v8534_v43 = vunpack.i.l.bf16 %v8533_v9  ;;  %v5128_v37 = vsel %vm1069_vm6, %v8529_v47, %v8530_v12 }
0x10bb   :  { %5359 = vmatpush1.bf16.msra.mxu1 %v5290_v16  ;;  %v11510_v48 = vpop.permute.xlu1 %8537 }
0x10bc   :  { %v5129_v56 = vsel %vm1069_vm6, %v8534_v43, %v8535_v42  ;;  %v8540_v50 = vunpack.i.h.bf16 %v11510_v48  ;;  %v8539_v7 = vunpack.i.l.bf16 %v11510_v48  ;;  %v8891_v48 = vld [vmem:[%s11931_s1 + $0xb4] ss:$8 sps:$4 sm:$0xff]  }
0x10bd   :  { %v11505_v46 = vpop.permute.xlu0 %8542  ;;  %v5293_v54 = vpack.c.bf16 %v5129_v56, %v5128_v37 }
0x10be   :  { %v8545_v19 = vunpack.i.h.bf16 %v11505_v46  ;;  %v8544_v17 = vunpack.i.l.bf16 %v11505_v46 }
0x10bf   :  { %5360 = vmatprep.subr.bf16.mxu1 %v5293_v54 }
0x10c0   :  { %v5105_v62 = vsel %vm1069_vm6, %v8544_v17, %v8545_v19 }
0x116c   :  { %v4937_v24 = vpop.f32.mrb[40].mxu0 }
0x116d   :  { %v4938_v61 = vadd.f32 %v4937_v24, %v11447_v58  ;;  %v4939_v53 = vpop.f32.mrb[41].mxu0 }
0x116e   :  { %v4940_v31 = vadd.f32 %v4939_v53, %v11447_v58  ;;  %v4941_v20 = vpop.f32.mrb[42].mxu0  ;;  %v5104_v58 = vsel %vm1069_vm6, %v8539_v7, %v8540_v50 }
0x116f   :  { %v4956_v6 = vmax.f32 %v4938_v61, 0.0  ;;  %v4942_v2 = vadd.f32 %v4941_v20, %v11449_v51  ;;  %v4943_v23 = vpop.f32.mrb[43].mxu0  ;;  %v5292_v44 = vpack.c.bf16 %v5105_v62, %v5104_v58  ;;  %v6021_v62 = vld [vmem:[%s11932_s2 + $0xa8] sm:$0xff]  ;;  %v6023_v58 = vld [vmem:[%s11932_s2 + $0xb8] sm:$0xff] }
0x1170   :  { %v4957_v49 = vmax.f32 %v4940_v31, 0.0  ;;  %v4944_v35 = vadd.f32 %v4943_v23, %v11449_v51  ;;  %v8970_v51 = vmov 0.0|0.0   ;;  %v6020_v23 = vld [vmem:[%s11932_s2 + $0xa0] sm:$0xff] }
0x1171   :  { %v4972_v32 = vadd.f32 %v4956_v6, %v10924_v36  ;;  %v4958_v34 = vmax.f32 %v4942_v2, 0.0  ;;  %5361 = vmatpush1.bf16.msra.mxu1 %v5292_v44 }
0x1172   :  { %v4973_v33 = vadd.f32 %v4957_v49, %v10949_v8  ;;  %v4959_v45 = vmax.f32 %v4944_v35, 0.0  ;;  %5362 = vmatprep.subr.bf16.mxu1 %v8970_v51  ;;  %v8890_v49 = vld [vmem:[%s11931_s1 + $0xa4] ss:$8 sps:$4 sm:$0xff]   ;;  %v6022_v35 = vld [vmem:[%s11932_s2 + $0xb0] sm:$0xff] }
0x1173   :  { %v11525_v14 = vmax.f32 %v4972_v32, 0.0  ;;  %v4974_v5 = vadd.f32 %v4958_v34, %v10927_v21  ;;  %5386 = vmatprep.mubr.bf16.mxu1 %v8890_v49 }
0x1174   :  { %v4975_v15 = vadd.f32 %v4959_v45, %v10953_v27  ;;  %v4947_v4 = vpop.f32.mrb[44].mxu0  ;;  %v11530_v13 = vmax.f32 %v4973_v33, 0.0 }
0x1175   :  { %v11532_v52 = vmax.f32 %v4974_v5, 0.0  ;;  %v4948_v36 = vadd.f32 %v4947_v4, %v11451_v25  ;;  %v4949_v30 = vpop.f32.mrb[45].mxu0  ;;  %v8546_v8 = vpack.i.bf16 %v11525_v14, %v8951_v3  ;;  %5363 = vmatpush1.bf16.msra.mxu1 %v8970_v51 }
0x1176   :  { %v4951_v16 = vpop.f32.mrb[46].mxu0  ;;  %v11537_v9 = vmax.f32 %v4975_v15, 0.0  ;;  %5364 = vmatprep.subr.bf16.mxu1 %v8970_v51  ;;  %v4950_v12 = vadd.f32 %v4949_v30, %v11451_v25  ;;  %v8551_v37 = vpack.i.bf16 %v11530_v13, %v8951_v3 }
0x1177   :  { %v4952_v21 = vadd.f32 %v4951_v16, %v11453_v0  ;;  %v4953_v27 = vpop.f32.mrb[47].mxu0  ;;  %8547 = vrot.lane.b32.xlu1 %v8546_v8, %s8967_s0  ;;  %v8561_v38 = vpack.i.bf16 %v11532_v52, %v8951_v3  ;;  %v4960_v43 = vmax.f32 %v4948_v36, 0.0  ;;  %v8566_v31 = vpack.i.bf16 %v11532_v52, %v11525_v14 }
0x1178   :  { %v4954_v42 = vadd.f32 %v4953_v27, %v11453_v0  ;;  %v8571_v54 = vpack.i.bf16 %v11537_v9, %v8951_v3  ;;  %v4961_v61 = vmax.f32 %v4950_v12, 0.0 }
0x1179   :  { %v4962_v47 = vmax.f32 %v4952_v21, 0.0  ;;  %8562 = vrot.lane.b32.xlu0 %v8561_v38, %s8967_s0  ;;  %5365 = vmatpush1.bf16.msra.mxu1 %v8970_v51  ;;  %v4976_v0 = vadd.f32 %v4960_v43, %v10970_v55 }
0x117a   :  { %v4963_v24 = vmax.f32 %v4954_v42, 0.0  ;;  %v4977_v17 = vadd.f32 %v4961_v61, %v10988_v60 }
0x117b   :  { %v4978_v56 = vadd.f32 %v4962_v47, %v10973_v11  ;;  %8552 = vrot.lane.b32.xlu1 %v8551_v37, %s8967_s0  ;;  %v11561_v11 = vmax.f32 %v4976_v0, 0.0 }
0x117c   :  { %v4979_v53 = vadd.f32 %v4963_v24, %v10991_v41  ;;  %v11572_v7 = vmax.f32 %v4977_v17, 0.0 }
0x117d   :  { %8572 = vrot.lane.b32.xlu0 %v8571_v54, %s8967_s0  ;;  %v11557_v25 = vmax.f32 %v4978_v56, 0.0  ;;  %v8581_v41 = vpack.i.bf16 %v11561_v11, %v8951_v3 }
0x117e   :  { %v11567_v20 = vmax.f32 %v4979_v53, 0.0  ;;  %v8586_v6 = vpack.i.bf16 %v11572_v7, %v8951_v3 }
0x117f   :  { %8557 = vrot.lane.b32.xlu1 %v8551_v37, %s8969_s16  ;;  %v8591_v55 = vpack.i.bf16 %v11557_v25, %v8951_v3  ;;  %v8606_v2 = vpack.i.bf16 %v11557_v25, %v11561_v11  ;;  %v5312_v46 = vpack.c.bf16 %v11557_v25, %v11561_v11 }
0x1180   :  { %v8596_v60 = vpack.i.bf16 %v11567_v20, %v8951_v3 }
0x1181   :  { %8577 = vrot.lane.b32.xlu0 %v8571_v54, %s8969_s16 }
0x1183   :  { %8567 = vrot.lane.b32.xlu1 %v8566_v31, %s8969_s16 }
0x1185   :  { %8592 = vrot.lane.b32.xlu0 %v8591_v55, %s8967_s0 }
0x1187   :  { %8582 = vrot.lane.b32.xlu1 %v8581_v41, %s8967_s0 }
0x1189   :  { %8597 = vrot.lane.b32.xlu0 %v8596_v60, %s8967_s0 }
0x118b   :  { %8587 = vrot.lane.b32.xlu1 %v8586_v6, %s8967_s0 }
0x118d   :  { %8602 = vrot.lane.b32.xlu0 %v8586_v6, %s8969_s16 }
0x118f   :  { %8612 = vrot.lane.b32.xlu1 %v8551_v37, %s8966_s30 }
0x1191   :  { %8607 = vrot.lane.b32.xlu0 %v8606_v2, %s8969_s16 }
0x1193   :  { %8622 = vrot.lane.b32.xlu1 %v8596_v60, %s8969_s16 }
0x1195   :  { %8617 = vrot.lane.b32.xlu0 %v8571_v54, %s8966_s30 }
0x1197   :  { %8627 = vrot.lane.b32.xlu1 %v8566_v31, %s8966_s30 }
0x1199   :  { %8632 = vrot.lane.b32.xlu0 %v8586_v6, %s8966_s30 }
0x119b   :  { %8637 = vrot.lane.b32.xlu1 %v8596_v60, %s8966_s30 }
0x119d   :  { %8642 = vrot.lane.b32.xlu0 %v8606_v2, %s8966_s30 }
0x119f   :  { %5316 = vperm.xlu1 %6305, %v6020_v23  }
0x11a1   :  { %5321 = vperm.xlu0 %6304, %v6021_v62  }
0x11a3   :  { %5326 = vperm.xlu1 %6305, %v6022_v35  }
0x11a5   :  { %5331 = vperm.xlu0 %6304, %v6023_v58  }
0x11a7   :  { %8647 = vrot.lane.b32.xlu1 %v8951_v3, %s8969_s16 }
0x11a9   :  { %8652 = vrot.lane.b32.xlu0 %v8951_v3, %s8969_s16 }
0x11ab   :  { %8657 = vrot.lane.b32.xlu1 %v8951_v3, %s8969_s16 }
0x11ad   :  { %8662 = vrot.lane.b32.xlu0 %v8951_v3, %s8969_s16 }
0x11af   :  { %8667 = vrot.lane.b32.xlu1 %v8951_v3, %s8969_s16 }
0x11b1   :  { %8672 = vrot.lane.b32.xlu0 %v8951_v3, %s8969_s16 }
0x11b3   :  { %8677 = vrot.lane.b32.xlu1 %v8951_v3, %s8969_s16 }
0x11b5   :  { %8682 = vrot.lane.b32.xlu0 %v8951_v3, %s8969_s16 }
0x11b7   :  { %8687 = vrot.lane.b32.xlu1 %v8951_v3, %s8966_s30 }
0x11b9   :  { %8692 = vrot.lane.b32.xlu0 %v8951_v3, %s8966_s30 }
0x11bb   :  { %8697 = vrot.lane.b32.xlu1 %v8951_v3, %s8966_s30 }
0x11bd   :  { %8702 = vrot.lane.b32.xlu0 %v8951_v3, %s8966_s30 }
0x11bf   :  { %8707 = vrot.lane.b32.xlu1 %v8951_v3, %s8966_s30 }
0x11c1   :  { %8712 = vrot.lane.b32.xlu0 %v8951_v3, %s8966_s30 }
0x11c3   :  { %8717 = vrot.lane.b32.xlu1 %v8951_v3, %s8966_s30 }
0x11c5   :  { %8722 = vrot.lane.b32.xlu0 %v8951_v3, %s8966_s30 }
0x11e9   :  { %v8548_v32 = vpop.permute.xlu1 %8547 }
0x11ea   :  { %v8550_v4 = vunpack.i.h.bf16 %v8548_v32  ;;  %v8549_v36 = vunpack.i.l.bf16 %v8548_v32 }
0x11eb   :  { %v8563_v34 = vpop.permute.xlu0 %8562 }
0x11ec   :  { %v8565_v44 = vunpack.i.h.bf16 %v8563_v34  ;;  %v8564_v33 = vunpack.i.l.bf16 %v8563_v34  ;;  %v5166_v43 = vsel %vm4085_vm15, %v8549_v36, %v8550_v4 }
0x11ed   :  { %v8553_v45 = vpop.permute.xlu1 %8552 }
0x11ee   :  { %v8555_v5 = vunpack.i.h.bf16 %v8553_v45  ;;  %v8554_v15 = vunpack.i.l.bf16 %v8553_v45  ;;  %v5167_v21 = vsel %vm4085_vm15, %v8564_v33, %v8565_v44 }
0x11ef   :  { %v8573_v30 = vpop.permute.xlu0 %8572  ;;  %v5298_v37 = vpack.c.bf16 %v5167_v21, %v5166_v43 }
0x11f0   :  { %v8575_v8 = vunpack.i.h.bf16 %v8573_v30  ;;  %v8574_v16 = vunpack.i.l.bf16 %v8573_v30  ;;  %v5198_v38 = vsel %vm4085_vm15, %v8554_v15, %v8555_v5 }
0x11f1   :  { %v8558_v27 = vpop.permute.xlu1 %8557 }
0x11f2   :  { %v5199_v42 = vsel %vm4085_vm15, %v8574_v16, %v8575_v8  ;;  %v8560_v23 = vunpack.i.h.bf16 %v8558_v27  ;;  %v8559_v62 = vunpack.i.l.bf16 %v8558_v27 }
0x11f3   :  { %v8578_v12 = vpop.permute.xlu0 %8577  ;;  %v5299_v47 = vpack.c.bf16 %v5199_v42, %v5198_v38 }
0x11f4   :  { %v8580_v17 = vunpack.i.h.bf16 %v8578_v12  ;;  %v8579_v31 = vunpack.i.l.bf16 %v8578_v12  ;;  %v5238_v8 = vsel %vm4191_vm1, %v8559_v62, %v8560_v23 }
0x11f5   :  { %v8568_v56 = vpop.permute.xlu1 %8567  ;;  %5366 = vmatprep.subr.bf16.mxu1 %v5299_v47 }
0x11f6   :  { %5367 = vmatpush1.bf16.msra.mxu1 %v5298_v37  ;;  %v8570_v58 = vunpack.i.h.bf16 %v8568_v56  ;;  %v8569_v32 = vunpack.i.l.bf16 %v8568_v56  ;;  %v5239_v5 = vsel %vm4191_vm1, %v8579_v31, %v8580_v17 }
0x11f7   :  { %v8593_v24 = vpop.permute.xlu0 %8592  ;;  %v5303_v38 = vpack.c.bf16 %v5239_v5, %v5238_v8  ;;  %v5313_v8 = vpack.c.bf16 %v11567_v20, %v11572_v7 }
0x11f8   :  { %v8595_v60 = vunpack.i.h.bf16 %v8593_v24  ;;  %v8594_v6 = vunpack.i.l.bf16 %v8593_v24  ;;  %v5215_v16 = vsel %vm4191_vm1, %v8485_v29, %v8570_v58  ;;  %v5214_v21 = vsel %vm4191_vm1, %v8480_v22, %v8569_v32 }
0x11f9   :  { %v8583_v54 = vpop.permute.xlu1 %8582 }
0x11fa   :  { %v8585_v0 = vunpack.i.h.bf16 %v8583_v54  ;;  %v8584_v61 = vunpack.i.l.bf16 %v8583_v54  ;;  %v5169_v15 = vsel %vm4085_vm15, %v8594_v6, %v8595_v60  ;;  %v5302_v54 = vpack.c.bf16 %v5215_v16, %v5214_v21 }
0x11fb   :  { %v8598_v53 = vpop.permute.xlu0 %8597 }
0x11fc   :  { %v8600_v55 = vunpack.i.h.bf16 %v8598_v53  ;;  %v8599_v41 = vunpack.i.l.bf16 %v8598_v53  ;;  %v5168_v34 = vsel %vm4085_vm15, %v8584_v61, %v8585_v0 }
0x11fd   :  { %v8588_v2 = vpop.permute.xlu1 %8587  ;;  %v5300_v30 = vpack.c.bf16 %v5169_v15, %v5168_v34 }
0x11fe   :  { %v8590_v49 = vunpack.i.h.bf16 %v8588_v2  ;;  %v8589_v35 = vunpack.i.l.bf16 %v8588_v2  ;;  %v5201_v45 = vsel %vm4085_vm15, %v8599_v41, %v8600_v55 }
0x11ff   :  { %v8603_v44 = vpop.permute.xlu0 %8602 }
0x1200   :  { %v5200_v33 = vsel %vm4085_vm15, %v8589_v35, %v8590_v49  ;;  %v8605_v42 = vunpack.i.h.bf16 %v8603_v44  ;;  %v8604_v43 = vunpack.i.l.bf16 %v8603_v44 }
0x1201   :  { %v8613_v4 = vpop.permute.xlu1 %8612  ;;  %v5301_v36 = vpack.c.bf16 %v5201_v45, %v5200_v33 }
0x1202   :  { %v8615_v37 = vunpack.i.h.bf16 %v8613_v4  ;;  %v8614_v56 = vunpack.i.l.bf16 %v8613_v4  ;;  %v5240_v17 = vsel %vm4191_vm1, %v8604_v43, %v8605_v42 }
0x1203   :  { %v8608_v27 = vpop.permute.xlu0 %8607  ;;  %5368 = vmatprep.subr.bf16.mxu1 %v5301_v36  ;;  %v5311_v36 = vpack.c.bf16 %v11537_v9, %v11530_v13 }
0x1204   :  { %v8610_v12 = vunpack.i.h.bf16 %v8608_v27  ;;  %v8609_v47 = vunpack.i.l.bf16 %v8608_v27  ;;  %5369 = vmatpush1.bf16.msra.mxu1 %v5300_v30  ;;  %v5278_v60 = vsel %vm1069_vm6, %v8614_v56, %v8615_v37  ;;  %v5310_v30 = vpack.c.bf16 %v11532_v52, %v11525_v14 }
0x1205   :  { %v8623_v24 = vpop.permute.xlu1 %8622  ;;  %5370 = vmatprep.subr.bf16.mxu1 %v5303_v38 }
0x1206   :  { %v8625_v18 = vunpack.i.h.bf16 %v8623_v24  ;;  %v8624_v0 = vunpack.i.l.bf16 %v8623_v24  ;;  %v5217_v28 = vsel %vm4191_vm1, %v8505_v39, %v8610_v12  ;;  %v5216_v29 = vsel %vm4191_vm1, %v8500_v59, %v8609_v47 }
0x1207   :  { %v8618_v22 = vpop.permute.xlu0 %8617  ;;  %v5304_v6 = vpack.c.bf16 %v5217_v28, %v5216_v29 }
0x1208   :  { %v8620_v61 = vunpack.i.h.bf16 %v8618_v22  ;;  %v8619_v53 = vunpack.i.l.bf16 %v8618_v22  ;;  %5371 = vmatpush1.bf16.msra.mxu1 %v5302_v54  ;;  %v5241_v31 = vsel %vm4191_vm1, %v8624_v0, %v8625_v18 }
0x1209   :  { %v8628_v55 = vpop.permute.xlu1 %8627  ;;  %v5305_v41 = vpack.c.bf16 %v5241_v31, %v5240_v17 }
0x120a   :  { %v8630_v10 = vunpack.i.h.bf16 %v8628_v55  ;;  %v8629_v2 = vunpack.i.l.bf16 %v8628_v55  ;;  %v5279_v39 = vsel %vm1069_vm6, %v8619_v53, %v8620_v61 }
0x120b   :  { %v8633_v26 = vpop.permute.xlu0 %8632  ;;  %5372 = vmatprep.subr.bf16.mxu1 %v5305_v41  ;;  %v5307_v59 = vpack.c.bf16 %v5279_v39, %v5278_v60 }
0x120c   :  { %v5255_v23 = vsel %vm1069_vm6, %v8525_v1, %v8630_v10  ;;  %v5254_v62 = vsel %vm1069_vm6, %v8520_v63, %v8629_v2  ;;  %v8635_v49 = vunpack.i.h.bf16 %v8633_v26  ;;  %v8634_v35 = vunpack.i.l.bf16 %v8633_v26  ;;  %5373 = vmatpush1.bf16.msra.mxu1 %v5304_v6 }
0x120d   :  { %v5306_v58 = vpack.c.bf16 %v5255_v23, %v5254_v62  ;;  %v8638_v32 = vpop.permute.xlu1 %8637  ;;  %5374 = vmatprep.subr.bf16.mxu1 %v5307_v59 }
0x120e   :  { %v8640_v34 = vunpack.i.h.bf16 %v8638_v32  ;;  %v8639_v44 = vunpack.i.l.bf16 %v8638_v32  ;;  %v5280_v40 = vsel %vm1069_vm6, %v8634_v35, %v8635_v49 }
0x120f   :  { %v8643_v33 = vpop.permute.xlu0 %8642 }
0x1210   :  { %v8645_v45 = vunpack.i.h.bf16 %v8643_v33  ;;  %v8644_v5 = vunpack.i.l.bf16 %v8643_v33  ;;  %5375 = vmatpush1.bf16.msra.mxu1 %v5306_v58  ;;  %v5281_v1 = vsel %vm1069_vm6, %v8639_v44, %v8640_v34 }
0x1211   :  { %v5309_v15 = vpack.c.bf16 %v5281_v1, %v5280_v40 }
0x1212   :  { %v5257_v57 = vsel %vm1069_vm6, %v8545_v19, %v8645_v45  ;;  %v5256_v63 = vsel %vm1069_vm6, %v8540_v50, %v8644_v5  ;;  %v8888_v19 = vld [vmem:[%s11931_s1 + $0xa0] ss:$8 sps:$4 sm:$0xff]   ;;  %v8893_v50 = vld [vmem:[%s11931_s1 + $0xb0] ss:$8 sps:$4 sm:$0xff]  }
0x1213   :  { %v5308_v4 = vpack.c.bf16 %v5257_v57, %v5256_v63  ;;  %5376 = vmatprep.subr.bf16.mxu1 %v5309_v15 }
0x1215   :  { %5377 = vmatpush1.bf16.msra.mxu1 %v5308_v4 }
0x1216   :  { %5378 = vmatprep.subr.bf16.mxu1 %v5311_v36 }
0x1219   :  { %5379 = vmatpush1.bf16.msra.mxu1 %v5310_v30 }
0x121a   :  { %5380 = vmatprep.subr.bf16.mxu1 %v5313_v8 }
0x121d   :  { %5381 = vmatpush1.bf16.msra.mxu1 %v5312_v46 }
0x121e   :  { %v11699_v16 = vpop.permute.xlu1 %5316 }
0x1220   :  { %5387 = vmatmul.mubr.bf16.vlgmr.msra.gmra.mrb[40].mxu1 %v8888_v19  ;;  %v11701_v21 = vpop.permute.xlu0 %5321 }
0x1221   :  { %5396 = vmatprep.mubr.bf16.mxu1 %v8891_v48 }
0x1222   :  { %v11703_v27 = vpop.permute.xlu1 %5326 }
0x1224   :  { %v11705_v38 = vpop.permute.xlu0 %5331 }
0x1226   :  { %v8648_v43 = vpop.permute.xlu1 %8647 }
0x1227   :  { %v8650_v37 = vunpack.i.h.bf16 %v8648_v43  ;;  %v8649_v56 = vunpack.i.l.bf16 %v8648_v43 }
0x1228   :  { %5397 = vmatmul.mubr.bf16.gmra.mrb[44].mxu1 %v8893_v50  ;;  %v8653_v42 = vpop.permute.xlu0 %8652 }
0x1229   :  { %v8655_v12 = vunpack.i.h.bf16 %v8653_v42  ;;  %v8654_v47 = vunpack.i.l.bf16 %v8653_v42  ;;  %v5505_v24 = vsel %vm4191_vm1, %v8649_v56, %v8650_v37 }
0x122a   :  { %v11711_v0 = vpop.permute.xlu1 %8657 }
0x122b   :  { %v5506_v54 = vsel %vm4191_vm1, %v8654_v47, %v8655_v12  ;;  %v8660_v61 = vunpack.i.h.bf16 %v11711_v0  ;;  %v8659_v53 = vunpack.i.l.bf16 %v11711_v0 }
0x122c   :  { %v11709_v18 = vpop.permute.xlu0 %8662  ;;  %v5714_v28 = vpack.c.bf16 %v5506_v54, %v5505_v24 }
0x122d   :  { %v8665_v29 = vunpack.i.h.bf16 %v11709_v18  ;;  %v8664_v22 = vunpack.i.l.bf16 %v11709_v18  ;;  %v5473_v31 = vsel %vm4191_vm1, %v8659_v53, %v8660_v61 }
0x122e   :  { %5781 = vmatprep.subr.bf16.mxu0 %v5714_v28  ;;  %v8668_v60 = vpop.permute.xlu1 %8667 }
0x122f   :  { %v5474_v17 = vsel %vm4191_vm1, %v8664_v22, %v8665_v29  ;;  %v8670_v2 = vunpack.i.h.bf16 %v8668_v60  ;;  %v8669_v39 = vunpack.i.l.bf16 %v8668_v60 }
0x1230   :  { %v5713_v55 = vpack.c.bf16 %v5474_v17, %v5473_v31  ;;  %v8673_v41 = vpop.permute.xlu0 %8672 }
0x1231   :  { %v8675_v6 = vunpack.i.h.bf16 %v8673_v41  ;;  %v8674_v10 = vunpack.i.l.bf16 %v8673_v41  ;;  %v5507_v26 = vsel %vm4191_vm1, %v8669_v39, %v8670_v2 }
0x1232   :  { %5782 = vmatpush1.bf16.msra.mxu0 %v5713_v55  ;;  %v11727_v62 = vpop.permute.xlu1 %8677 }
0x1233   :  { %v5508_v59 = vsel %vm4191_vm1, %v8674_v10, %v8675_v6  ;;  %v8680_v32 = vunpack.i.h.bf16 %v11727_v62  ;;  %v8679_v34 = vunpack.i.l.bf16 %v11727_v62 }
0x1234   :  { %v11725_v23 = vpop.permute.xlu0 %8682  ;;  %v5716_v49 = vpack.c.bf16 %v5508_v59, %v5507_v26 }
0x1235   :  { %v8685_v35 = vunpack.i.h.bf16 %v11725_v23  ;;  %v8684_v58 = vunpack.i.l.bf16 %v11725_v23  ;;  %v5475_v33 = vsel %vm4191_vm1, %v8679_v34, %v8680_v32 }
0x1236   :  { %5783 = vmatprep.subr.bf16.mxu0 %v5716_v49  ;;  %v8688_v40 = vpop.permute.xlu1 %8687 }
0x1237   :  { %v5476_v44 = vsel %vm4191_vm1, %v8684_v58, %v8685_v35  ;;  %v8690_v57 = vunpack.i.h.bf16 %v8688_v40  ;;  %v8689_v63 = vunpack.i.l.bf16 %v8688_v40 }
0x1238   :  { %v5715_v45 = vpack.c.bf16 %v5476_v44, %v5475_v33  ;;  %v8693_v5 = vpop.permute.xlu0 %8692 }
0x1239   :  { %v8695_v1 = vunpack.i.h.bf16 %v8693_v5  ;;  %v8694_v15 = vunpack.i.l.bf16 %v8693_v5  ;;  %v5553_v4 = vsel %vm1069_vm6, %v8689_v63, %v8690_v57 }
0x123a   :  { %5784 = vmatpush1.bf16.msra.mxu0 %v5715_v45  ;;  %v11743_v8 = vpop.permute.xlu1 %8697 }
0x123b   :  { %v5554_v36 = vsel %vm1069_vm6, %v8694_v15, %v8695_v1  ;;  %v8700_v50 = vunpack.i.h.bf16 %v11743_v8  ;;  %v8699_v42 = vunpack.i.l.bf16 %v11743_v8 }
0x123c   :  { %v11741_v30 = vpop.permute.xlu0 %8702  ;;  %v5718_v46 = vpack.c.bf16 %v5554_v36, %v5553_v4 }
0x123d   :  { %v8705_v19 = vunpack.i.h.bf16 %v11741_v30  ;;  %v8704_v48 = vunpack.i.l.bf16 %v11741_v30  ;;  %v5529_v12 = vsel %vm1069_vm6, %v8699_v42, %v8700_v50 }
0x123e   :  { %5785 = vmatprep.subr.bf16.mxu0 %v5718_v46  ;;  %v8708_v56 = vpop.permute.xlu1 %8707 }
0x123f   :  { %v5530_v43 = vsel %vm1069_vm6, %v8704_v48, %v8705_v19  ;;  %v8710_v28 = vunpack.i.h.bf16 %v8708_v56  ;;  %v8709_v22 = vunpack.i.l.bf16 %v8708_v56 }
0x1240   :  { %v5717_v47 = vpack.c.bf16 %v5530_v43, %v5529_v12  ;;  %v8713_v37 = vpop.permute.xlu0 %8712 }
0x1241   :  { %v8715_v24 = vunpack.i.h.bf16 %v8713_v37  ;;  %v8714_v54 = vunpack.i.l.bf16 %v8713_v37  ;;  %v5555_v53 = vsel %vm1069_vm6, %v8709_v22, %v8710_v28 }
0x1242   :  { %5786 = vmatpush1.bf16.msra.mxu0 %v5717_v47  ;;  %v11759_v41 = vpop.permute.xlu1 %8717 }
0x1243   :  { %v5556_v17 = vsel %vm1069_vm6, %v8714_v54, %v8715_v24  ;;  %v8720_v10 = vunpack.i.h.bf16 %v11759_v41  ;;  %v8719_v2 = vunpack.i.l.bf16 %v11759_v41  ;;  %v8897_v41 = vld [vmem:[%s11933_s3 + $0xb4] ss:$8 sps:$4 sm:$0xff]  }
0x1244   :  { %v5720_v31 = vpack.c.bf16 %v5556_v17, %v5555_v53  ;;  %v11757_v55 = vpop.permute.xlu0 %8722 }
0x1245   :  { %v8725_v60 = vunpack.i.h.bf16 %v11757_v55  ;;  %v8724_v6 = vunpack.i.l.bf16 %v11757_v55  ;;  %v5531_v26 = vsel %vm1069_vm6, %v8719_v2, %v8720_v10  ;;  %v8894_v55 = vld [vmem:[%s11933_s3 + $0xa0] ss:$8 sps:$4 sm:$0xff]  }
0x1246   :  { %5787 = vmatprep.subr.bf16.mxu0 %v5720_v31 }
0x1247   :  { %v5532_v39 = vsel %vm1069_vm6, %v8724_v6, %v8725_v60 }
0x1248   :  { %v5719_v59 = vpack.c.bf16 %v5532_v39, %v5531_v26 }
0x124a   :  { %5788 = vmatpush1.bf16.msra.mxu0 %v5719_v59  ;;  %v6033_v59 = vld [vmem:[%s11934_s4 + $0xa8] sm:$0xff] }
0x124b   :  { %5789 = vmatprep.subr.bf16.mxu0 %v8970_v51 }
0x124e   :  { %5790 = vmatpush1.bf16.msra.mxu0 %v8970_v51 }
0x124f   :  { %5791 = vmatprep.subr.bf16.mxu0 %v8970_v51 }
0x1252   :  { %5792 = vmatpush1.bf16.msra.mxu0 %v8970_v51 }
0x12f3   :  { %v5388_v49 = vpop.f32.mrb[40].mxu1 }
0x12f4   :  { %v5389_v58 = vadd.f32 %v5388_v49, %v11699_v16  ;;  %v5390_v34 = vpop.f32.mrb[41].mxu1  ;;  %v8896_v49 = vld [vmem:[%s11933_s3 + $0xa4] ss:$8 sps:$4 sm:$0xff]  }
0x12f5   :  { %v5391_v44 = vadd.f32 %v5390_v34, %v11699_v16  ;;  %v5392_v33 = vpop.f32.mrb[42].mxu1  ;;  %5813 = vmatprep.mubr.bf16.mxu0 %v8896_v49  ;;  %v6035_v34 = vld [vmem:[%s11934_s4 + $0xb8] sm:$0xff] }
0x12f6   :  { %v11775_v45 = vmax.f32 %v5389_v58, 0.0  ;;  %v5393_v5 = vadd.f32 %v5392_v33, %v11701_v21  ;;  %v5394_v40 = vpop.f32.mrb[43].mxu1  ;;  %v6034_v58 = vld [vmem:[%s11934_s4 + $0xb0] sm:$0xff] }
0x12f7   :  { %v5395_v1 = vadd.f32 %v5394_v40, %v11701_v21  ;;  %v5408_v15 = vmax.f32 %v5391_v44, 0.0 }
0x12f8   :  { %v11780_v57 = vmax.f32 %v5393_v5, 0.0  ;;  %v8726_v63 = vpack.i.bf16 %v11775_v45, %v8951_v3 }
0x12f9   :  { %v5410_v4 = vmax.f32 %v5395_v1, 0.0  ;;  %v8731_v51 = vpack.i.bf16 %v5408_v15, %v8951_v3 }
0x12fa   :  { %8727 = vrot.lane.b32.xlu1 %v8726_v63, %s8967_s0  ;;  %v8741_v16 = vpack.i.bf16 %v11780_v57, %v8951_v3  ;;  %v8746_v36 = vpack.i.bf16 %v11780_v57, %v11775_v45  ;;  %v5737_v21 = vpack.c.bf16 %v11780_v57, %v11775_v45 }
0x12fb   :  { %v5398_v46 = vpop.f32.mrb[44].mxu1  ;;  %v11792_v48 = vpack.c.bf16 %v5410_v4, %v5408_v15  ;;  %v8751_v24 = vpack.i.bf16 %v5410_v4, %v8951_v3 }
0x12fc   :  { %v5399_v42 = vadd.f32 %v5398_v46, %v11703_v27  ;;  %v5400_v43 = vpop.f32.mrb[45].mxu1  ;;  %8742 = vrot.lane.b32.xlu0 %v8741_v16, %s8967_s0 }
0x12fd   :  { %v5401_v12 = vadd.f32 %v5400_v43, %v11703_v27  ;;  %v5402_v47 = vpop.f32.mrb[46].mxu1 }
0x12fe   :  { %v5403_v37 = vadd.f32 %v5402_v47, %v11705_v38  ;;  %v5404_v56 = vpop.f32.mrb[47].mxu1  ;;  %8732 = vrot.lane.b32.xlu1 %v8731_v51, %s8967_s0  ;;  %v11802_v28 = vmax.f32 %v5399_v42, 0.0 }
0x12ff   :  { %v5405_v54 = vadd.f32 %v5404_v56, %v11705_v38  ;;  %v5412_v53 = vmax.f32 %v5401_v12, 0.0 }
0x1300   :  { %v11804_v22 = vmax.f32 %v5403_v37, 0.0  ;;  %8752 = vrot.lane.b32.xlu0 %v8751_v24, %s8967_s0  ;;  %v8761_v2 = vpack.i.bf16 %v11802_v28, %v8951_v3 }
0x1301   :  { %v5414_v17 = vmax.f32 %v5405_v54, 0.0  ;;  %v8766_v26 = vpack.i.bf16 %v5412_v53, %v8951_v3 }
0x1302   :  { %8737 = vrot.lane.b32.xlu1 %v8731_v51, %s8969_s16  ;;  %v8786_v27 = vpack.i.bf16 %v11804_v22, %v11802_v28  ;;  %v5739_v31 = vpack.c.bf16 %v11804_v22, %v11802_v28  ;;  %v8771_v38 = vpack.i.bf16 %v11804_v22, %v8951_v3 }
0x1303   :  { %v11812_v6 = vpack.c.bf16 %v5414_v17, %v5412_v53  ;;  %v8776_v39 = vpack.i.bf16 %v5414_v17, %v8951_v3  ;;  %v6032_v3 = vld [vmem:[%s11934_s4 + $0xa0] sm:$0xff] }
0x1304   :  { %8757 = vrot.lane.b32.xlu0 %v8751_v24, %s8969_s16 }
0x1306   :  { %8747 = vrot.lane.b32.xlu1 %v8746_v36, %s8969_s16 }
0x1308   :  { %8772 = vrot.lane.b32.xlu0 %v8771_v38, %s8967_s0 }
0x130a   :  { %8762 = vrot.lane.b32.xlu1 %v8761_v2, %s8967_s0 }
0x130c   :  { %8777 = vrot.lane.b32.xlu0 %v8776_v39, %s8967_s0 }
0x130e   :  { %8767 = vrot.lane.b32.xlu1 %v8766_v26, %s8967_s0 }
0x1310   :  { %8782 = vrot.lane.b32.xlu0 %v8766_v26, %s8969_s16 }
0x1312   :  { %8792 = vrot.lane.b32.xlu1 %v8731_v51, %s8966_s30 }
0x1314   :  { %8787 = vrot.lane.b32.xlu0 %v8786_v27, %s8969_s16 }
0x1316   :  { %8802 = vrot.lane.b32.xlu1 %v8776_v39, %s8969_s16 }
0x1318   :  { %8797 = vrot.lane.b32.xlu0 %v8751_v24, %s8966_s30 }
0x131a   :  { %8807 = vrot.lane.b32.xlu1 %v8746_v36, %s8966_s30 }
0x131c   :  { %8812 = vrot.lane.b32.xlu0 %v8766_v26, %s8966_s30 }
0x131e   :  { %8817 = vrot.lane.b32.xlu1 %v8776_v39, %s8966_s30 }
0x1320   :  { %8822 = vrot.lane.b32.xlu0 %v8786_v27, %s8966_s30 }
0x1322   :  { %5743 = vperm.xlu1 %6305, %v6032_v3  }
0x1324   :  { %5748 = vperm.xlu0 %6304, %v6033_v59  }
0x1326   :  { %5753 = vperm.xlu1 %6305, %v6034_v58  }
0x1328   :  { %5758 = vperm.xlu0 %6304, %v6035_v34  }
0x136c   :  { %v8728_v44 = vpop.permute.xlu1 %8727 }
0x136d   :  { %v8730_v4 = vunpack.i.h.bf16 %v8728_v44  ;;  %v8729_v16 = vunpack.i.l.bf16 %v8728_v44 }
0x136e   :  { %v8743_v33 = vpop.permute.xlu0 %8742 }
0x136f   :  { %v8745_v5 = vunpack.i.h.bf16 %v8743_v33  ;;  %v8744_v40 = vunpack.i.l.bf16 %v8743_v33  ;;  %v5593_v37 = vsel %vm4085_vm15, %v8729_v16, %v8730_v4 }
0x1370   :  { %v8733_v1 = vpop.permute.xlu1 %8732 }
0x1371   :  { %v8735_v15 = vunpack.i.h.bf16 %v8733_v1  ;;  %v8734_v63 = vunpack.i.l.bf16 %v8733_v1  ;;  %v5594_v43 = vsel %vm4085_vm15, %v8744_v40, %v8745_v5 }
0x1372   :  { %v8753_v36 = vpop.permute.xlu0 %8752  ;;  %v5725_v54 = vpack.c.bf16 %v5594_v43, %v5593_v37 }
0x1373   :  { %v8755_v46 = vunpack.i.h.bf16 %v8753_v36  ;;  %v8754_v42 = vunpack.i.l.bf16 %v8753_v36  ;;  %v5625_v12 = vsel %vm4085_vm15, %v8734_v63, %v8735_v15 }
0x1374   :  { %v8738_v51 = vpop.permute.xlu1 %8737 }
0x1375   :  { %v5626_v47 = vsel %vm4085_vm15, %v8754_v42, %v8755_v46  ;;  %v8740_v33 = vunpack.i.h.bf16 %v8738_v51  ;;  %v8739_v5 = vunpack.i.l.bf16 %v8738_v51 }
0x1376   :  { %v8758_v56 = vpop.permute.xlu0 %8757  ;;  %v5726_v24 = vpack.c.bf16 %v5626_v47, %v5625_v12 }
0x1377   :  { %v8760_v26 = vunpack.i.h.bf16 %v8758_v56  ;;  %v8759_v3 = vunpack.i.l.bf16 %v8758_v56  ;;  %v5665_v51 = vsel %vm4191_vm1, %v8739_v5, %v8740_v33 }
0x1378   :  { %v8748_v53 = vpop.permute.xlu1 %8747  ;;  %5793 = vmatprep.subr.bf16.mxu0 %v5726_v24 }
0x1379   :  { %5794 = vmatpush1.bf16.msra.mxu0 %v5725_v54  ;;  %v8750_v15 = vunpack.i.h.bf16 %v8748_v53  ;;  %v8749_v63 = vunpack.i.l.bf16 %v8748_v53  ;;  %v5666_v42 = vsel %vm4191_vm1, %v8759_v3, %v8760_v26 }
0x137a   :  { %v8773_v17 = vpop.permute.xlu0 %8772  ;;  %v5730_v53 = vpack.c.bf16 %v5666_v42, %v5665_v51 }
0x137b   :  { %v8775_v58 = vunpack.i.h.bf16 %v8773_v17  ;;  %v8774_v34 = vunpack.i.l.bf16 %v8773_v17  ;;  %v5642_v56 = vsel %vm4191_vm1, %v8665_v29, %v8750_v15  ;;  %v5641_v24 = vsel %vm4191_vm1, %v8660_v61, %v8749_v63 }
0x137c   :  { %v8763_v27 = vpop.permute.xlu1 %8762 }
0x137d   :  { %v8765_v38 = vunpack.i.h.bf16 %v8763_v27  ;;  %v8764_v2 = vunpack.i.l.bf16 %v8763_v27  ;;  %v5596_v43 = vsel %vm4085_vm15, %v8774_v34, %v8775_v58 }
0x137e   :  { %v8778_v39 = vpop.permute.xlu0 %8777 }
0x137f   :  { %v8780_v59 = vunpack.i.h.bf16 %v8778_v39  ;;  %v8779_v49 = vunpack.i.l.bf16 %v8778_v39  ;;  %v5595_v4 = vsel %vm4085_vm15, %v8764_v2, %v8765_v38 }
0x1380   :  { %v8768_v44 = vpop.permute.xlu1 %8767  ;;  %v5727_v37 = vpack.c.bf16 %v5596_v43, %v5595_v4 }
0x1381   :  { %v8770_v40 = vunpack.i.h.bf16 %v8768_v44  ;;  %v8769_v1 = vunpack.i.l.bf16 %v8768_v44  ;;  %v5628_v46 = vsel %vm4085_vm15, %v8779_v49, %v8780_v59  ;;  %v5729_v59 = vpack.c.bf16 %v5642_v56, %v5641_v24 }
0x1382   :  { %v8783_v16 = vpop.permute.xlu0 %8782 }
0x1383   :  { %v5627_v36 = vsel %vm4085_vm15, %v8769_v1, %v8770_v40  ;;  %v8785_v17 = vunpack.i.h.bf16 %v8783_v16  ;;  %v8784_v27 = vunpack.i.l.bf16 %v8783_v16 }
0x1384   :  { %v8793_v12 = vpop.permute.xlu1 %8792  ;;  %v5728_v47 = vpack.c.bf16 %v5628_v46, %v5627_v36 }
0x1385   :  { %v8795_v39 = vunpack.i.h.bf16 %v8793_v12  ;;  %v8794_v26 = vunpack.i.l.bf16 %v8793_v12  ;;  %v5667_v44 = vsel %vm4191_vm1, %v8784_v27, %v8785_v17 }
0x1386   :  { %v8788_v54 = vpop.permute.xlu0 %8787  ;;  %5795 = vmatprep.subr.bf16.mxu0 %v5728_v47 }
0x1387   :  { %v8790_v38 = vunpack.i.h.bf16 %v8788_v54  ;;  %v8789_v2 = vunpack.i.l.bf16 %v8788_v54  ;;  %5796 = vmatpush1.bf16.msra.mxu0 %v5727_v37  ;;  %v5705_v1 = vsel %vm1069_vm6, %v8794_v26, %v8795_v39 }
0x1388   :  { %v8803_v3 = vpop.permute.xlu1 %8802  ;;  %5797 = vmatprep.subr.bf16.mxu0 %v5730_v53 }
0x1389   :  { %v8805_v18 = vunpack.i.h.bf16 %v8803_v3  ;;  %v8804_v49 = vunpack.i.l.bf16 %v8803_v3  ;;  %v5644_v0 = vsel %vm4191_vm1, %v8685_v35, %v8790_v38  ;;  %v5643_v29 = vsel %vm4191_vm1, %v8680_v32, %v8789_v2 }
0x138a   :  { %v8798_v61 = vpop.permute.xlu0 %8797  ;;  %v5731_v15 = vpack.c.bf16 %v5644_v0, %v5643_v29 }
0x138b   :  { %v8800_v58 = vunpack.i.h.bf16 %v8798_v61  ;;  %v8799_v34 = vunpack.i.l.bf16 %v8798_v61  ;;  %5798 = vmatpush1.bf16.msra.mxu0 %v5729_v59  ;;  %v5668_v33 = vsel %vm4191_vm1, %v8804_v49, %v8805_v18 }
0x138c   :  { %v8808_v5 = vpop.permute.xlu1 %8807  ;;  %v5732_v40 = vpack.c.bf16 %v5668_v33, %v5667_v44 }
0x138d   :  { %v8810_v23 = vunpack.i.h.bf16 %v8808_v5  ;;  %v8809_v63 = vunpack.i.l.bf16 %v8808_v5  ;;  %v5706_v35 = vsel %vm1069_vm6, %v8799_v34, %v8800_v58 }
0x138e   :  { %v8813_v62 = vpop.permute.xlu0 %8812  ;;  %5799 = vmatprep.subr.bf16.mxu0 %v5732_v40  ;;  %v5734_v32 = vpack.c.bf16 %v5706_v35, %v5705_v1 }
0x138f   :  { %v5682_v4 = vsel %vm1069_vm6, %v8705_v19, %v8810_v23  ;;  %v5681_v16 = vsel %vm1069_vm6, %v8700_v50, %v8809_v63  ;;  %v8815_v36 = vunpack.i.h.bf16 %v8813_v62  ;;  %v8814_v46 = vunpack.i.l.bf16 %v8813_v62  ;;  %5800 = vmatpush1.bf16.msra.mxu0 %v5731_v15 }
0x1390   :  { %v5733_v42 = vpack.c.bf16 %v5682_v4, %v5681_v16  ;;  %v8818_v43 = vpop.permute.xlu1 %8817  ;;  %5801 = vmatprep.subr.bf16.mxu0 %v5734_v32 }
0x1391   :  { %v8820_v12 = vunpack.i.h.bf16 %v8818_v43  ;;  %v8819_v47 = vunpack.i.l.bf16 %v8818_v43  ;;  %v5707_v30 = vsel %vm1069_vm6, %v8814_v46, %v8815_v36 }
0x1392   :  { %v8823_v37 = vpop.permute.xlu0 %8822 }
0x1393   :  { %v8825_v51 = vunpack.i.h.bf16 %v8823_v37  ;;  %v8824_v56 = vunpack.i.l.bf16 %v8823_v37  ;;  %5802 = vmatpush1.bf16.msra.mxu0 %v5733_v42  ;;  %v5708_v19 = vsel %vm1069_vm6, %v8819_v47, %v8820_v12 }
0x1394   :  { %v5736_v24 = vpack.c.bf16 %v5708_v19, %v5707_v30 }
0x1395   :  { %v5684_v8 = vsel %vm1069_vm6, %v8725_v60, %v8825_v51  ;;  %v5683_v50 = vsel %vm1069_vm6, %v8720_v10, %v8824_v56  ;;  %v8899_v60 = vld [vmem:[%s11933_s3 + $0xb0] ss:$8 sps:$4 sm:$0xff]   ;;  %s8971_s3 = smov [#allocation7]  }
0x1396   :  { %v5735_v54 = vpack.c.bf16 %v5684_v8, %v5683_v50  ;;  %5803 = vmatprep.subr.bf16.mxu0 %v5736_v24  ;;  %s5896_s28 = sshll.u32 %s8971_s3, 4  ;;  %s5897_s28 = int_to_ptr.vmem [resolvable:$true] %s5896_s28 }
0x1397   :  { %s8922_s22 = scalar_lea.vmem %s5897_s28, 1024  ;;  %p8927_p9 = scmp.lt.s32.totalorder %s5897_s28, %s5897_s28 }
0x1398   :  { %5804 = vmatpush1.bf16.msra.mxu0 %v5735_v54  ;;  %p8923_p8 = scmp.ne.s32.totalorder %s5897_s28, %s8922_s22  ;;  %p8928_p10 = scmp.lt.s32.totalorder %s8922_s22, %s8922_s22 }
0x1399   :  { %5805 = vmatprep.subr.bf16.mxu0 %v11792_v48 }
0x139a   :  { %p8929_p11 = por %p8928_p10, %p8927_p9 }
0x139c   :  { %5806 = vmatpush1.bf16.msra.mxu0 %v5737_v21  ;;  %p8930_p12 = pnand %p8929_p11, %p8923_p8 }
0x139d   :  { %5807 = vmatprep.subr.bf16.mxu0 %v11812_v6 }
0x13a0   :  { %5808 = vmatpush1.bf16.msra.mxu0 %v5739_v31 }
0x13a1   :  { %v5744_v10 = vpop.permute.xlu1 %5743 }
0x13a3   :  { %5814 = vmatmul.mubr.bf16.vlgmr.msra.gmra.mrb[48].mxu0 %v8894_v55  ;;  %v5749_v48 = vpop.permute.xlu0 %5748 }
0x13a4   :  { %5823 = vmatprep.mubr.bf16.mxu0 %v8897_v41 }
0x13a5   :  { %v5754_v18 = vpop.permute.xlu1 %5753 }
0x13a7   :  { %v5759_v44 = vpop.permute.xlu0 %5758 }
0x13ab   :  { %5824 = vmatmul.mubr.bf16.gmra.mrb[52].mxu0 %v8899_v60 }
0x1476   :  { %v5815_v45 = vpop.f32.mrb[48].mxu0 }
0x1477   :  { %v5816_v57 = vadd.f32 %v5815_v45, %v5744_v10  ;;  %v5817_v21 = vpop.f32.mrb[49].mxu0 }
0x1478   :  { %v5818_v6 = vadd.f32 %v5817_v21, %v5744_v10  ;;  %v5819_v53 = vpop.f32.mrb[50].mxu0 }
0x1479   :  { %v5834_v28 = vmax.f32 %v5816_v57, 0.0  ;;  %v5820_v22 = vadd.f32 %v5819_v53, %v5749_v48  ;;  %v5821_v31 = vpop.f32.mrb[51].mxu0 }
0x147a   :  { %v5835_v17 = vmax.f32 %v5818_v6, 0.0  ;;  %v5822_v27 = vadd.f32 %v5821_v31, %v5749_v48 }
0x147b   :  { %v5850_v38 = vadd.f32 %v5834_v28, %v11525_v14  ;;  %v5836_v2 = vmax.f32 %v5820_v22, 0.0 }
0x147c   :  { %v5851_v39 = vadd.f32 %v5835_v17, %v11530_v13  ;;  %v5837_v26 = vmax.f32 %v5822_v27, 0.0 }
0x147d   :  { %v5858_v3 = vmax.f32 %v5850_v38, 0.0  ;;  %v5852_v59 = vadd.f32 %v5836_v2, %v11532_v52 }
0x147e   :  { %v5859_v49 = vmax.f32 %v5851_v39, 0.0  ;;  %v5853_v0 = vadd.f32 %v5837_v26, %v11537_v9  ;;  %v5825_v29 = vpop.f32.mrb[52].mxu0 }
0x147f   :  { %5878 = vst [vmem:[#allocation7] sm:$0xff] %v5858_v3  ;;  %v5860_v61 = vmax.f32 %v5852_v59, 0.0  ;;  %v5826_v58 = vadd.f32 %v5825_v29, %v5754_v18  ;;  %v5827_v34 = vpop.f32.mrb[53].mxu0 }
0x1480   :  { %5887 = vst [vmem:[#allocation7 + $0x20] sm:$0xff] %v5859_v49  ;;  %v5861_v33 = vmax.f32 %v5853_v0, 0.0  ;;  %v5828_v14 = vadd.f32 %v5827_v34, %v5754_v18  ;;  %v5829_v5 = vpop.f32.mrb[54].mxu0 }
0x1481   :  { %5879 = vst [vmem:[#allocation7 + $0x8] sm:$0xff] %v5860_v61  ;;  %v5838_v13 = vmax.f32 %v5826_v58, 0.0  ;;  %v5830_v40 = vadd.f32 %v5829_v5, %v5759_v44  ;;  %v5831_v1 = vpop.f32.mrb[55].mxu0 }
0x1482   :  { %5888 = vst [vmem:[#allocation7 + $0x28] sm:$0xff] %v5861_v33  ;;  %v5839_v52 = vmax.f32 %v5828_v14, 0.0  ;;  %v5832_v15 = vadd.f32 %v5831_v1, %v5759_v44 }
0x1483   :  { %v5854_v23 = vadd.f32 %v5838_v13, %v11561_v11  ;;  %v5840_v9 = vmax.f32 %v5830_v40, 0.0 }
0x1484   :  { %v5855_v63 = vadd.f32 %v5839_v52, %v11572_v7  ;;  %v5841_v35 = vmax.f32 %v5832_v15, 0.0 }
0x1485   :  { %v5862_v62 = vmax.f32 %v5854_v23, 0.0  ;;  %v5856_v32 = vadd.f32 %v5840_v9, %v11557_v25 }
0x1486   :  { %v5863_v4 = vmax.f32 %v5855_v63, 0.0  ;;  %v5857_v16 = vadd.f32 %v5841_v35, %v11567_v20 }
0x1487   :  { %5880 = vst [vmem:[#allocation7 + $0x10] sm:$0xff] %v5862_v62  ;;  %v5864_v36 = vmax.f32 %v5856_v32, 0.0 }
0x1488   :  { %5889 = vst [vmem:[#allocation7 + $0x30] sm:$0xff] %v5863_v4  ;;  %v5865_v46 = vmax.f32 %v5857_v16, 0.0 }
0x1489   :  { %5881 = vst [vmem:[#allocation7 + $0x18] sm:$0xff] %v5864_v36 }
0x148a   :  { %5890 = vst [vmem:[#allocation7 + $0x38] sm:$0xff] %v5865_v46 }
0x148b   :  { %8933 = shalt.err (!%p8930_p12)
}
0x148c   :  { %s8934_s15 = scalar_lea.hbm %s11937_s7, 1024 }
0x148d   :  { %p8935_p13 = scmp.ne.s32.totalorder %s11937_s7, %s8934_s15  ;;  %p8938_p0 = scmp.lt.u32.totalorder %s8934_s15, %s11937_s7 }
0x148f   :  { %p8940_p1 = pnand %p8938_p0, %p8935_p13 }
0x1491   :  { %8943 = shalt.err (!%p8940_p1)
}
0x1492   :  { %5902 = dma.vmem_to_hbm [thread:$0]  %s5897_s28, 1024, %s11937_s7, [#allocation6], %s8949_s11, %s8949_s11, %s8950_s12  }
0x1493   :  { %8946 = dma.done.wait [#allocation6], 1024  }
0x1494   :  { %8947 = vsyncadd [#allocation6], 4294966272 }
0x1495   :  { %5906 = vsyncpa [#allocation5], 1 }
0x1496   :  { %5907 = vsyncpa [#allocation6], 1 }

</bundles_post_ra>
